<compile_context>
chip_gen: v6e
topology: v6e:2x2x1
jax: 0.10.0
libtpu: 0.0.40
codegen_flags: <defaults>
</compile_context>

<pallas_src>
import functools

import numpy as np
import jax
import jax.numpy as jnp
from jax.experimental import pallas as pl
from jax.experimental.pallas import tpu as pltpu

BN_EPS = 1e-5


# ----------------------------------------------------------------------------
# In-kernel helpers (operate on channels-last values)
# ----------------------------------------------------------------------------
def _pad1_hw(v):
    """Zero-pad a (H, W, C) value by 1 on both spatial dims."""
    H, W, C = v.shape
    zr = jnp.zeros((1, W, C), v.dtype)
    v = jnp.concatenate([zr, v, zr], axis=0)            # (H+2, W, C)
    zc = jnp.zeros((H + 2, 1, C), v.dtype)
    return jnp.concatenate([zc, v, zc], axis=1)          # (H+2, W+2, C)


def _conv3x3(v, w_ref):
    """3x3, stride-1, pad-1 conv: (H, W, Cin) x (9*Cin, Dout) -> (H*W, Dout)."""
    H, W, C = v.shape
    vp = _pad1_hw(v)
    cols = []
    for dy in range(3):
        for dx in range(3):
            cols.append(vp[dy:dy + H, dx:dx + W, :].reshape(H * W, C))
    patches = jnp.concatenate(cols, axis=-1)             # (H*W, 9*C) im2col
    return jnp.dot(patches, w_ref[...], preferred_element_type=jnp.float32)


# ----------------------------------------------------------------------------
# Fused bottleneck_IR kernel (one batch element per grid step)
# ----------------------------------------------------------------------------
def _bottleneck_kernel(*refs, shortcut_conv):
    if shortcut_conv:
        (x_ref, s0_ref, b0_ref, w1_ref, b1_ref, a1_ref,
         w2_ref, b2_ref, sel_ref, wsc_ref, bsc_ref, out_ref) = refs
    else:
        (x_ref, s0_ref, b0_ref, w1_ref, b1_ref, a1_ref,
         w2_ref, b2_ref, sel_ref, out_ref) = refs

    H, W, Cin = x_ref.shape
    D = w1_ref.shape[1]

    x = x_ref[...]                                       # (H, W, Cin) NHWC block
    # BatchNorm2d(in_channel), eval mode (pre-folded scale/shift).
    xb = x * s0_ref[...] + b0_ref[...]                   # (1, Cin) lane broadcast

    # conv1: 3x3 stride 1 pad 1, BN1 scale folded into w1, shift in b1.
    y = _conv3x3(xb, w1_ref) + b1_ref[...]               # (H*W, D)
    # PReLU with per-channel alpha on the lane dim.
    y = jnp.where(y > 0, y, y * a1_ref[...])

    # conv2: 3x3 pad 1 computed at stride 1 (BN2 folded); strided output
    # positions are then picked with an exact 0/1 selection matmul.
    y2 = _conv3x3(y.reshape(H, W, D), w2_ref) + b2_ref[...]         # (H*W, D)
    sel = sel_ref[...]                                              # (Ho*Wo, H*W)
    res = jnp.dot(sel, y2, preferred_element_type=jnp.float32)      # (Ho*Wo, D)

    # shortcut branch on the *raw* input at the same strided positions.
    x_sub = jnp.dot(sel, x.reshape(H * W, Cin),
                    preferred_element_type=jnp.float32)             # (Ho*Wo, Cin)
    if shortcut_conv:
        sc = jnp.dot(x_sub, wsc_ref[...],
                     preferred_element_type=jnp.float32) + bsc_ref[...]
    else:
        sc = x_sub                                                  # MaxPool2d(1, s)

    out_ref[...] = res + sc                              # one lane-dense store


# ----------------------------------------------------------------------------
# Wrapper
# ----------------------------------------------------------------------------
def _bn_fold(bn):
    s = bn['gamma'] / jnp.sqrt(bn['var'] + BN_EPS)
    return s, bn['beta'] - bn['mean'] * s


def bottleneck_ir_forward(x_nchw, params, stride):
    N, Cin, H, W = x_nchw.shape
    D = params['w1'].shape[0]
    shortcut_conv = 'wsc' in params
    if not shortcut_conv:
        assert Cin == D, "MaxPool shortcut requires in_channel == depth"

    # layout plumbing in the wrapper: NCHW -> NHWC (channels on the lane dim).
    x = jnp.transpose(x_nchw, (0, 2, 3, 1)).astype(jnp.float32)

    s0, b0 = _bn_fold(params['bn0'])
    s1, b1 = _bn_fold(params['bn1'])
    s2, b2 = _bn_fold(params['bn2'])

    # fold BN scales into conv weights (per output channel); shifts -> biases.
    w1 = jnp.transpose(params['w1'], (2, 3, 1, 0)).reshape(9 * Cin, D) * s1[None, :]
    w2 = jnp.transpose(params['w2'], (2, 3, 1, 0)).reshape(9 * D, D) * s2[None, :]

    # exact 0/1 selection matrix implementing the stride / MaxPool2d(1, s).
    Ho = (H - 1) // stride + 1
    Wo = (W - 1) // stride + 1
    P = Ho * Wo
    sel_np = np.zeros((P, H * W), np.float32)
    for i in range(Ho):
        for j in range(Wo):
            sel_np[i * Wo + j, i * stride * W + j * stride] = 1.0
    sel = jnp.asarray(sel_np)

    args = [x,
            s0.reshape(1, Cin), b0.reshape(1, Cin),
            w1, b1.reshape(1, D), params['alpha'].reshape(1, D),
            w2, b2.reshape(1, D), sel]
    in_specs = [
        pl.BlockSpec((None, H, W, Cin), lambda n: (n, 0, 0, 0)),    # x (per batch)
        pl.BlockSpec((1, Cin), lambda n: (0, 0)),                   # BN0 scale
        pl.BlockSpec((1, Cin), lambda n: (0, 0)),                   # BN0 shift
        pl.BlockSpec((9 * Cin, D), lambda n: (0, 0)),               # w1 (BN1 folded)
        pl.BlockSpec((1, D), lambda n: (0, 0)),                     # b1
        pl.BlockSpec((1, D), lambda n: (0, 0)),                     # PReLU alpha
        pl.BlockSpec((9 * D, D), lambda n: (0, 0)),                 # w2 (BN2 folded)
        pl.BlockSpec((1, D), lambda n: (0, 0)),                     # b2
        pl.BlockSpec((P, H * W), lambda n: (0, 0)),                 # stride selector
    ]
    if shortcut_conv:
        ssc, bsc = _bn_fold(params['bnsc'])
        wsc = jnp.transpose(params['wsc'][:, :, 0, 0], (1, 0)) * ssc[None, :]
        args += [wsc, bsc.reshape(1, D)]
        in_specs += [pl.BlockSpec((Cin, D), lambda n: (0, 0)),      # 1x1 conv (BN folded)
                     pl.BlockSpec((1, D), lambda n: (0, 0))]        # shortcut bias

    out = pl.pallas_call(
        functools.partial(_bottleneck_kernel, shortcut_conv=shortcut_conv),
        grid=(N,),
        in_specs=in_specs,
        out_specs=pl.BlockSpec((None, P, D), lambda n: (n, 0, 0)),
        out_shape=jax.ShapeDtypeStruct((N, P, D), jnp.float32),
        compiler_params=pltpu.CompilerParams(
            dimension_semantics=("parallel",)),
    )(*args)

    # back to NCHW to match the PyTorch module's output layout.
    return jnp.transpose(out.reshape(N, Ho, Wo, D), (0, 3, 1, 2))


# ----------------------------------------------------------------------------
# Pure-JAX reference (mirrors the PyTorch forward, eval-mode BN)
# ----------------------------------------------------------------------------
def reference_forward(x, p, stride):
    hp = jax.lax.Precision.HIGHEST

    def conv(z, w, s, pad):
        return jax.lax.conv_general_dilated(
            z, w, (s, s), ((pad, pad), (pad, pad)),
            dimension_numbers=('NCHW', 'OIHW', 'NCHW'), precision=hp)

    def bn(z, q):
        sc = q['gamma'] / jnp.sqrt(q['var'] + BN_EPS)
        sh = q['beta'] - q['mean'] * sc
        return z * sc[None, :, None, None] + sh[None, :, None, None]

    h = bn(x, p['bn0'])
    h = conv(h, p['w1'], 1, 1)
    h = bn(h, p['bn1'])
    h = jnp.where(h > 0, h, p['alpha'][None, :, None, None] * h)
    h = conv(h, p['w2'], stride, 1)
    h = bn(h, p['bn2'])
    if 'wsc' in p:
        sc = bn(conv(x, p['wsc'], stride, 0), p['bnsc'])
    else:
        sc = x[:, :, ::stride, ::stride]
    return h + sc


# ----------------------------------------------------------------------------
# Parameter construction
# ----------------------------------------------------------------------------
def _bn_init(key, c):
    k = jax.random.split(key, 4)
    return {
        'gamma': 1.0 + 0.1 * jax.random.normal(k[0], (c,), jnp.float32),
        'beta': 0.1 * jax.random.normal(k[1], (c,), jnp.float32),
        'mean': 0.1 * jax.random.normal(k[2], (c,), jnp.float32),
        'var': 0.5 + 0.5 * jnp.abs(jax.random.normal(k[3], (c,), jnp.float32)),
    }


def init_params(key, in_channel, depth):
    ks = jax.random.split(key, 8)
    p = {
        'w1': 0.1 * jax.random.normal(ks[0], (depth, in_channel, 3, 3), jnp.float32),
        'w2': 0.1 * jax.random.normal(ks[1], (depth, depth, 3, 3), jnp.float32),
        'alpha': 0.25 + 0.05 * jax.random.normal(ks[2], (depth,), jnp.float32),
        'bn0': _bn_init(ks[3], in_channel),
        'bn1': _bn_init(ks[4], depth),
        'bn2': _bn_init(ks[5], depth),
    }
    if in_channel != depth:
        p['wsc'] = 0.1 * jax.random.normal(ks[6], (depth, in_channel, 1, 1), jnp.float32)
        p['bnsc'] = _bn_init(ks[7], depth)
    return p


if __name__ == "__main__":
    key = jax.random.PRNGKey(0)
    cases = [
        dict(N=2, in_channel=16, depth=32, H=14, W=14, stride=2),  # conv shortcut, s=2
        dict(N=2, in_channel=16, depth=16, H=16, W=16, stride=2),  # MaxPool shortcut, s=2
        dict(N=2, in_channel=16, depth=32, H=12, W=12, stride=1),  # conv shortcut, s=1
    ]
    for cfg in cases:
        key, kx, kp = jax.random.split(key, 3)
        x = jax.random.normal(kx, (cfg['N'], cfg['in_channel'], cfg['H'], cfg['W']),
                              jnp.float32)
        params = init_params(kp, cfg['in_channel'], cfg['depth'])

        out = bottleneck_ir_forward(x, params, cfg['stride'])
        out = jax.block_until_ready(out)

        ref = reference_forward(x, params, cfg['stride'])
        np.testing.assert_allclose(np.asarray(out), np.asarray(ref),
                                   rtol=1e-2, atol=1e-2)
    print("KERNEL_OK")
</pallas_src>

<mosaic_0001>
module attributes {stable_mosaic.version = 11 : i64} {
  func.func @_bottleneck_kernel(%arg0: i32, %arg1: memref<1x14x14x16xf32, #tpu.memory_space<vmem>>, %arg2: memref<1x16xf32, #tpu.memory_space<vmem>>, %arg3: memref<1x16xf32, #tpu.memory_space<vmem>>, %arg4: memref<144x32xf32, #tpu.memory_space<vmem>>, %arg5: memref<1x32xf32, #tpu.memory_space<vmem>>, %arg6: memref<1x32xf32, #tpu.memory_space<vmem>>, %arg7: memref<288x32xf32, #tpu.memory_space<vmem>>, %arg8: memref<1x32xf32, #tpu.memory_space<vmem>>, %arg9: memref<49x196xf32, #tpu.memory_space<vmem>>, %arg10: memref<16x32xf32, #tpu.memory_space<vmem>>, %arg11: memref<1x32xf32, #tpu.memory_space<vmem>>, %arg12: memref<1x49x32xf32, #tpu.memory_space<vmem>>) attributes {dimension_semantics = [#tpu.dimension_semantics<parallel>], iteration_bounds = array<i64: 2>, scalar_prefetch = 0 : i64, scratch_operands = 0 : i64, tpu.core_type = #tpu.core_type<tc>, window_params = [{transform_indices = @transform_0, window_bounds = array<i64: 1, 14, 14, 16>}, {pipeline_mode = #tpu.pipeline_mode<synchronous>, transform_indices = @transform_1, window_bounds = array<i64: 1, 16>}, {pipeline_mode = #tpu.pipeline_mode<synchronous>, transform_indices = @transform_2, window_bounds = array<i64: 1, 16>}, {pipeline_mode = #tpu.pipeline_mode<synchronous>, transform_indices = @transform_3, window_bounds = array<i64: 144, 32>}, {pipeline_mode = #tpu.pipeline_mode<synchronous>, transform_indices = @transform_4, window_bounds = array<i64: 1, 32>}, {pipeline_mode = #tpu.pipeline_mode<synchronous>, transform_indices = @transform_5, window_bounds = array<i64: 1, 32>}, {pipeline_mode = #tpu.pipeline_mode<synchronous>, transform_indices = @transform_6, window_bounds = array<i64: 288, 32>}, {pipeline_mode = #tpu.pipeline_mode<synchronous>, transform_indices = @transform_7, window_bounds = array<i64: 1, 32>}, {pipeline_mode = #tpu.pipeline_mode<synchronous>, transform_indices = @transform_8, window_bounds = array<i64: 49, 196>}, {pipeline_mode = #tpu.pipeline_mode<synchronous>, transform_indices = @transform_9, window_bounds = array<i64: 16, 32>}, {pipeline_mode = #tpu.pipeline_mode<synchronous>, transform_indices = @transform_10, window_bounds = array<i64: 1, 32>}, {transform_indices = @transform_11, window_bounds = array<i64: 1, 49, 32>}]} {
    %c0 = arith.constant 0 : index
    %c0_0 = arith.constant 0 : index
    %c0_1 = arith.constant 0 : index
    %c0_2 = arith.constant 0 : index
    %0 = vector.load %arg1[%c0, %c0_0, %c0_1, %c0_2] : memref<1x14x14x16xf32, #tpu.memory_space<vmem>>, vector<1x14x14x16xf32>
    %1 = vector.shape_cast %0 : vector<1x14x14x16xf32> to vector<14x14x16xf32>
    %c0_3 = arith.constant 0 : index
    %c0_4 = arith.constant 0 : index
    %2 = vector.load %arg2[%c0_3, %c0_4] : memref<1x16xf32, #tpu.memory_space<vmem>>, vector<1x16xf32>
    %3 = vector.shape_cast %2 : vector<1x16xf32> to vector<1x1x16xf32>
    %4 = vector.broadcast %3 : vector<1x1x16xf32> to vector<14x14x16xf32>
    %5 = arith.mulf %1, %4 : vector<14x14x16xf32>
    %c0_5 = arith.constant 0 : index
    %c0_6 = arith.constant 0 : index
    %6 = vector.load %arg3[%c0_5, %c0_6] : memref<1x16xf32, #tpu.memory_space<vmem>>, vector<1x16xf32>
    %7 = vector.shape_cast %6 : vector<1x16xf32> to vector<1x1x16xf32>
    %8 = vector.broadcast %7 : vector<1x1x16xf32> to vector<14x14x16xf32>
    %9 = arith.addf %5, %8 : vector<14x14x16xf32>
    %cst = arith.constant 0.000000e+00 : f32
    %10 = vector.broadcast %cst : f32 to vector<1x14x16xf32>
    %11 = tpu.concatenate %10, %9, %10 in 0 : vector<1x14x16xf32>, vector<14x14x16xf32>, vector<1x14x16xf32> -> vector<16x14x16xf32>
    %cst_7 = arith.constant 0.000000e+00 : f32
    %12 = vector.broadcast %cst_7 : f32 to vector<16x1x16xf32>
    %13 = tpu.concatenate %12, %11, %12 in 1 : vector<16x1x16xf32>, vector<16x14x16xf32>, vector<16x1x16xf32> -> vector<16x16x16xf32>
    %14 = vector.extract_strided_slice %13 {offsets = [0, 0, 0], sizes = [14, 14, 16], strides = [1, 1, 1]} : vector<16x16x16xf32> to vector<14x14x16xf32>
    %15 = vector.shape_cast %14 : vector<14x14x16xf32> to vector<196x16xf32>
    %16 = vector.extract_strided_slice %13 {offsets = [0, 1, 0], sizes = [14, 14, 16], strides = [1, 1, 1]} : vector<16x16x16xf32> to vector<14x14x16xf32>
    %17 = vector.shape_cast %16 : vector<14x14x16xf32> to vector<196x16xf32>
    %18 = vector.extract_strided_slice %13 {offsets = [0, 2, 0], sizes = [14, 14, 16], strides = [1, 1, 1]} : vector<16x16x16xf32> to vector<14x14x16xf32>
    %19 = vector.shape_cast %18 : vector<14x14x16xf32> to vector<196x16xf32>
    %20 = vector.extract_strided_slice %13 {offsets = [1, 0, 0], sizes = [14, 14, 16], strides = [1, 1, 1]} : vector<16x16x16xf32> to vector<14x14x16xf32>
    %21 = vector.shape_cast %20 : vector<14x14x16xf32> to vector<196x16xf32>
    %22 = vector.extract_strided_slice %13 {offsets = [1, 1, 0], sizes = [14, 14, 16], strides = [1, 1, 1]} : vector<16x16x16xf32> to vector<14x14x16xf32>
    %23 = vector.shape_cast %22 : vector<14x14x16xf32> to vector<196x16xf32>
    %24 = vector.extract_strided_slice %13 {offsets = [1, 2, 0], sizes = [14, 14, 16], strides = [1, 1, 1]} : vector<16x16x16xf32> to vector<14x14x16xf32>
    %25 = vector.shape_cast %24 : vector<14x14x16xf32> to vector<196x16xf32>
    %26 = vector.extract_strided_slice %13 {offsets = [2, 0, 0], sizes = [14, 14, 16], strides = [1, 1, 1]} : vector<16x16x16xf32> to vector<14x14x16xf32>
    %27 = vector.shape_cast %26 : vector<14x14x16xf32> to vector<196x16xf32>
    %28 = vector.extract_strided_slice %13 {offsets = [2, 1, 0], sizes = [14, 14, 16], strides = [1, 1, 1]} : vector<16x16x16xf32> to vector<14x14x16xf32>
    %29 = vector.shape_cast %28 : vector<14x14x16xf32> to vector<196x16xf32>
    %30 = vector.extract_strided_slice %13 {offsets = [2, 2, 0], sizes = [14, 14, 16], strides = [1, 1, 1]} : vector<16x16x16xf32> to vector<14x14x16xf32>
    %31 = vector.shape_cast %30 : vector<14x14x16xf32> to vector<196x16xf32>
    %32 = tpu.concatenate %15, %17, %19, %21, %23, %25, %27, %29, %31 in 1 : vector<196x16xf32>, vector<196x16xf32>, vector<196x16xf32>, vector<196x16xf32>, vector<196x16xf32>, vector<196x16xf32>, vector<196x16xf32>, vector<196x16xf32>, vector<196x16xf32> -> vector<196x144xf32>
    %c0_8 = arith.constant 0 : index
    %c0_9 = arith.constant 0 : index
    %33 = vector.load %arg4[%c0_8, %c0_9] : memref<144x32xf32, #tpu.memory_space<vmem>>, vector<144x32xf32>
    %cst_10 = arith.constant dense<0.000000e+00> : vector<196x32xf32>
    %34 = tpu.matmul %32, %33, %cst_10 {dimension_numbers = #tpu.dot_dimension_numbers<[1], [0], [0], [1], [0, 0, 1, 1], [], []>} : vector<196x144xf32>, vector<144x32xf32>, vector<196x32xf32> -> vector<196x32xf32>
    %c0_11 = arith.constant 0 : index
    %c0_12 = arith.constant 0 : index
    %35 = vector.load %arg5[%c0_11, %c0_12] : memref<1x32xf32, #tpu.memory_space<vmem>>, vector<1x32xf32>
    %36 = vector.broadcast %35 : vector<1x32xf32> to vector<196x32xf32>
    %37 = arith.addf %34, %36 : vector<196x32xf32>
    %cst_13 = arith.constant 0.000000e+00 : f32
    %38 = vector.broadcast %cst_13 : f32 to vector<196x32xf32>
    %39 = arith.cmpf ogt, %37, %38 : vector<196x32xf32>
    %c0_14 = arith.constant 0 : index
    %c0_15 = arith.constant 0 : index
    %40 = vector.load %arg6[%c0_14, %c0_15] : memref<1x32xf32, #tpu.memory_space<vmem>>, vector<1x32xf32>
    %41 = vector.broadcast %40 : vector<1x32xf32> to vector<196x32xf32>
    %42 = arith.mulf %37, %41 : vector<196x32xf32>
    %43 = arith.select %39, %37, %42 : vector<196x32xi1>, vector<196x32xf32>
    %44 = vector.shape_cast %43 : vector<196x32xf32> to vector<14x14x32xf32>
    %cst_16 = arith.constant 0.000000e+00 : f32
    %45 = vector.broadcast %cst_16 : f32 to vector<1x14x32xf32>
    %46 = tpu.concatenate %45, %44, %45 in 0 : vector<1x14x32xf32>, vector<14x14x32xf32>, vector<1x14x32xf32> -> vector<16x14x32xf32>
    %cst_17 = arith.constant 0.000000e+00 : f32
    %47 = vector.broadcast %cst_17 : f32 to vector<16x1x32xf32>
    %48 = tpu.concatenate %47, %46, %47 in 1 : vector<16x1x32xf32>, vector<16x14x32xf32>, vector<16x1x32xf32> -> vector<16x16x32xf32>
    %49 = vector.extract_strided_slice %48 {offsets = [0, 0, 0], sizes = [14, 14, 32], strides = [1, 1, 1]} : vector<16x16x32xf32> to vector<14x14x32xf32>
    %50 = vector.shape_cast %49 : vector<14x14x32xf32> to vector<196x32xf32>
    %51 = vector.extract_strided_slice %48 {offsets = [0, 1, 0], sizes = [14, 14, 32], strides = [1, 1, 1]} : vector<16x16x32xf32> to vector<14x14x32xf32>
    %52 = vector.shape_cast %51 : vector<14x14x32xf32> to vector<196x32xf32>
    %53 = vector.extract_strided_slice %48 {offsets = [0, 2, 0], sizes = [14, 14, 32], strides = [1, 1, 1]} : vector<16x16x32xf32> to vector<14x14x32xf32>
    %54 = vector.shape_cast %53 : vector<14x14x32xf32> to vector<196x32xf32>
    %55 = vector.extract_strided_slice %48 {offsets = [1, 0, 0], sizes = [14, 14, 32], strides = [1, 1, 1]} : vector<16x16x32xf32> to vector<14x14x32xf32>
    %56 = vector.shape_cast %55 : vector<14x14x32xf32> to vector<196x32xf32>
    %57 = vector.extract_strided_slice %48 {offsets = [1, 1, 0], sizes = [14, 14, 32], strides = [1, 1, 1]} : vector<16x16x32xf32> to vector<14x14x32xf32>
    %58 = vector.shape_cast %57 : vector<14x14x32xf32> to vector<196x32xf32>
    %59 = vector.extract_strided_slice %48 {offsets = [1, 2, 0], sizes = [14, 14, 32], strides = [1, 1, 1]} : vector<16x16x32xf32> to vector<14x14x32xf32>
    %60 = vector.shape_cast %59 : vector<14x14x32xf32> to vector<196x32xf32>
    %61 = vector.extract_strided_slice %48 {offsets = [2, 0, 0], sizes = [14, 14, 32], strides = [1, 1, 1]} : vector<16x16x32xf32> to vector<14x14x32xf32>
    %62 = vector.shape_cast %61 : vector<14x14x32xf32> to vector<196x32xf32>
    %63 = vector.extract_strided_slice %48 {offsets = [2, 1, 0], sizes = [14, 14, 32], strides = [1, 1, 1]} : vector<16x16x32xf32> to vector<14x14x32xf32>
    %64 = vector.shape_cast %63 : vector<14x14x32xf32> to vector<196x32xf32>
    %65 = vector.extract_strided_slice %48 {offsets = [2, 2, 0], sizes = [14, 14, 32], strides = [1, 1, 1]} : vector<16x16x32xf32> to vector<14x14x32xf32>
    %66 = vector.shape_cast %65 : vector<14x14x32xf32> to vector<196x32xf32>
    %67 = tpu.concatenate %50, %52, %54, %56, %58, %60, %62, %64, %66 in 1 : vector<196x32xf32>, vector<196x32xf32>, vector<196x32xf32>, vector<196x32xf32>, vector<196x32xf32>, vector<196x32xf32>, vector<196x32xf32>, vector<196x32xf32>, vector<196x32xf32> -> vector<196x288xf32>
    %c0_18 = arith.constant 0 : index
    %c0_19 = arith.constant 0 : index
    %68 = vector.load %arg7[%c0_18, %c0_19] : memref<288x32xf32, #tpu.memory_space<vmem>>, vector<288x32xf32>
    %cst_20 = arith.constant dense<0.000000e+00> : vector<196x32xf32>
    %69 = tpu.matmul %67, %68, %cst_20 {dimension_numbers = #tpu.dot_dimension_numbers<[1], [0], [0], [1], [0, 0, 1, 1], [], []>} : vector<196x288xf32>, vector<288x32xf32>, vector<196x32xf32> -> vector<196x32xf32>
    %c0_21 = arith.constant 0 : index
    %c0_22 = arith.constant 0 : index
    %70 = vector.load %arg8[%c0_21, %c0_22] : memref<1x32xf32, #tpu.memory_space<vmem>>, vector<1x32xf32>
    %71 = vector.broadcast %70 : vector<1x32xf32> to vector<196x32xf32>
    %72 = arith.addf %69, %71 : vector<196x32xf32>
    %c0_23 = arith.constant 0 : index
    %c0_24 = arith.constant 0 : index
    %73 = vector.load %arg9[%c0_23, %c0_24] : memref<49x196xf32, #tpu.memory_space<vmem>>, vector<49x196xf32>
    %cst_25 = arith.constant dense<0.000000e+00> : vector<49x32xf32>
    %74 = tpu.matmul %73, %72, %cst_25 {dimension_numbers = #tpu.dot_dimension_numbers<[1], [0], [0], [1], [0, 0, 1, 1], [], []>} : vector<49x196xf32>, vector<196x32xf32>, vector<49x32xf32> -> vector<49x32xf32>
    %75 = vector.shape_cast %1 : vector<14x14x16xf32> to vector<196x16xf32>
    %cst_26 = arith.constant dense<0.000000e+00> : vector<49x16xf32>
    %76 = tpu.matmul %73, %75, %cst_26 {dimension_numbers = #tpu.dot_dimension_numbers<[1], [0], [0], [1], [0, 0, 1, 1], [], []>} : vector<49x196xf32>, vector<196x16xf32>, vector<49x16xf32> -> vector<49x16xf32>
    %c0_27 = arith.constant 0 : index
    %c0_28 = arith.constant 0 : index
    %77 = vector.load %arg10[%c0_27, %c0_28] : memref<16x32xf32, #tpu.memory_space<vmem>>, vector<16x32xf32>
    %cst_29 = arith.constant dense<0.000000e+00> : vector<49x32xf32>
    %78 = tpu.matmul %76, %77, %cst_29 {dimension_numbers = #tpu.dot_dimension_numbers<[1], [0], [0], [1], [0, 0, 1, 1], [], []>} : vector<49x16xf32>, vector<16x32xf32>, vector<49x32xf32> -> vector<49x32xf32>
    %c0_30 = arith.constant 0 : index
    %c0_31 = arith.constant 0 : index
    %79 = vector.load %arg11[%c0_30, %c0_31] : memref<1x32xf32, #tpu.memory_space<vmem>>, vector<1x32xf32>
    %80 = vector.broadcast %79 : vector<1x32xf32> to vector<49x32xf32>
    %81 = arith.addf %78, %80 : vector<49x32xf32>
    %82 = arith.addf %74, %81 : vector<49x32xf32>
    %c0_32 = arith.constant 0 : index
    %c0_33 = arith.constant 0 : index
    %c0_34 = arith.constant 0 : index
    %83 = vector.load %arg12[%c0_32, %c0_33, %c0_34] : memref<1x49x32xf32, #tpu.memory_space<vmem>>, vector<1x49x32xf32>
    %84 = vector.shape_cast %83 : vector<1x49x32xf32> to vector<49x32xf32>
    %85 = vector.shape_cast %82 : vector<49x32xf32> to vector<1x49x32xf32>
    tpu.vector_store %arg12[%c0_32, %c0_33, %c0_34], %85 {strides = array<i32>} : memref<1x49x32xf32, #tpu.memory_space<vmem>>, vector<1x49x32xf32>,
    return
  }
  func.func @transform_0(%arg0: i32) -> (i32, i32, i32, i32) {
    %c0_i32 = arith.constant 0 : i32
    %c0_i32_0 = arith.constant 0 : i32
    %c0_i32_1 = arith.constant 0 : i32
    %c0_i32_2 = arith.constant 0 : i32
    return %arg0, %c0_i32, %c0_i32_0, %c0_i32_1 : i32, i32, i32, i32
  }
  func.func @transform_1(%arg0: i32) -> (i32, i32) {
    %c0_i32 = arith.constant 0 : i32
    %c0_i32_0 = arith.constant 0 : i32
    %c0_i32_1 = arith.constant 0 : i32
    return %c0_i32, %c0_i32_0 : i32, i32
  }
  func.func @transform_2(%arg0: i32) -> (i32, i32) {
    %c0_i32 = arith.constant 0 : i32
    %c0_i32_0 = arith.constant 0 : i32
    %c0_i32_1 = arith.constant 0 : i32
    return %c0_i32, %c0_i32_0 : i32, i32
  }
  func.func @transform_3(%arg0: i32) -> (i32, i32) {
    %c0_i32 = arith.constant 0 : i32
    %c0_i32_0 = arith.constant 0 : i32
    %c0_i32_1 = arith.constant 0 : i32
    return %c0_i32, %c0_i32_0 : i32, i32
  }
  func.func @transform_4(%arg0: i32) -> (i32, i32) {
    %c0_i32 = arith.constant 0 : i32
    %c0_i32_0 = arith.constant 0 : i32
    %c0_i32_1 = arith.constant 0 : i32
    return %c0_i32, %c0_i32_0 : i32, i32
  }
  func.func @transform_5(%arg0: i32) -> (i32, i32) {
    %c0_i32 = arith.constant 0 : i32
    %c0_i32_0 = arith.constant 0 : i32
    %c0_i32_1 = arith.constant 0 : i32
    return %c0_i32, %c0_i32_0 : i32, i32
  }
  func.func @transform_6(%arg0: i32) -> (i32, i32) {
    %c0_i32 = arith.constant 0 : i32
    %c0_i32_0 = arith.constant 0 : i32
    %c0_i32_1 = arith.constant 0 : i32
    return %c0_i32, %c0_i32_0 : i32, i32
  }
  func.func @transform_7(%arg0: i32) -> (i32, i32) {
    %c0_i32 = arith.constant 0 : i32
    %c0_i32_0 = arith.constant 0 : i32
    %c0_i32_1 = arith.constant 0 : i32
    return %c0_i32, %c0_i32_0 : i32, i32
  }
  func.func @transform_8(%arg0: i32) -> (i32, i32) {
    %c0_i32 = arith.constant 0 : i32
    %c0_i32_0 = arith.constant 0 : i32
    %c0_i32_1 = arith.constant 0 : i32
    return %c0_i32, %c0_i32_0 : i32, i32
  }
  func.func @transform_9(%arg0: i32) -> (i32, i32) {
    %c0_i32 = arith.constant 0 : i32
    %c0_i32_0 = arith.constant 0 : i32
    %c0_i32_1 = arith.constant 0 : i32
    return %c0_i32, %c0_i32_0 : i32, i32
  }
  func.func @transform_10(%arg0: i32) -> (i32, i32) {
    %c0_i32 = arith.constant 0 : i32
    %c0_i32_0 = arith.constant 0 : i32
    %c0_i32_1 = arith.constant 0 : i32
    return %c0_i32, %c0_i32_0 : i32, i32
  }
  func.func @transform_11(%arg0: i32) -> (i32, i32, i32) {
    %c0_i32 = arith.constant 0 : i32
    %c0_i32_0 = arith.constant 0 : i32
    %c0_i32_1 = arith.constant 0 : i32
    return %arg0, %c0_i32, %c0_i32_0 : i32, i32, i32
  }
}

</mosaic_0001>

<bundles_post_ra>
// kernel: tpu_custom_call.1
= control target key start
LH: loop header
LB: loop body
LE: loop exit
PB: predicated region body
PF: predicated region fallthrough
CT: control target
= control target key end

     0   :  { %s12290_s17 = smov 0   ;;  %s19342_s0 = inlined_call_operand.vmem [shape: f32[2,14,14,16], index: 0, kind: input, shape index: {}]   ;;  %s19343_s1 = inlined_call_operand.vmem [shape: f32[1,16], index: 1, kind: input, shape index: {}]   ;;  %s19344_s2 = inlined_call_operand.vmem [shape: f32[1,16], index: 2, kind: input, shape index: {}]   ;;  %s19345_s3 = inlined_call_operand.vmem [shape: f32[144,32], index: 3, kind: input, shape index: {}]   ;;  %s19346_s4 = inlined_call_operand.vmem [shape: f32[1,32], index: 4, kind: input, shape index: {}]   ;;  %s19347_s5 = inlined_call_operand.vmem [shape: f32[1,32], index: 5, kind: input, shape index: {}]   ;;  %s19348_s6 = inlined_call_operand.vmem [shape: f32[288,32], index: 6, kind: input, shape index: {}]   ;;  %s19349_s7 = inlined_call_operand.vmem [shape: f32[1,32], index: 7, kind: input, shape index: {}]   ;;  %s19350_s8 = inlined_call_operand.vmem [shape: f32[49,196], index: 8, kind: input, shape index: {}]   ;;  %s19351_s9 = inlined_call_operand.vmem [shape: f32[16,32], index: 9, kind: input, shape index: {}]   ;;  %s19352_s10 = inlined_call_operand.vmem [shape: f32[1,32], index: 10, kind: input, shape index: {}]   ;;  %s19353_s11 = inlined_call_operand.vmem [shape: f32[2,49,32], index: 11, kind: output, shape index: {}]  }
   0x1 LB: > { %s10993_s18 = sadd.s32 4294967295, %s12218_s17   ;;  %p10997_p0 = scmp.ge.s32.totalorder %s12218_s17, 1  ;;  %s12218_s17 = sphi %s12290_s17, %s21_s17  }
   0x2   : > { %p337_p1 = scmp.lt.s32.totalorder %s12218_s17, 3 }
   0x4   : > { %p338_p2 = pnand %p10997_p0, %p337_p1 }
   0x6   : > { %341 = sbr.rel (%p338_p2) target bundleno = 1531 (0x5fb), region = 64 }
   0xb   : > { %p377_p3 = scmp.lt.s32.totalorder %s10993_s18, 1  ;;  %v652_v0 = vlaneseq  ;;  %vm514_vm0 = vcmask 1040384   ;;  %vm604_vm1 = vcmask 1046528   ;;  %v19354_v1 = vmov 0.0   ;;  %v12309_v9 = vld [vmem:[%s19343_s1] ss:$0 sm:$0xff] }
   0xc   : > { %v515_v2 = vrot.slane %v19354_v1, 7  ;;  %v12221_v3 = vmov 1983009808   ;;  %4418 = vmatprep.subr.mxu0 %v19354_v1  ;;  %9248 = vmatprep.subr.mxu1 %v19354_v1  ;;  %v12319_v12 = vld [vmem:[%s19344_s2] ss:$0 sm:$0xff]  ;;  %s12222_s27 = smov 32  }
   0xd   : > { %s20235_s18 = smov (!%p377_p3, %s10993_s18), 1  ;;  %v650_v4 = vunpack.c.l.s4 %v12221_v3  ;;  %v653_v5 = vshrl.u32 %v652_v0, 7  ;;  %19607 = vst [vmem:[#allocation2_spill] sm:$0xff] %v12319_v12  ;;  %vm1124_vm2 = vcmask 1042434   ;;  %s12223_s28 = smov 48   ;;  %vm1126_vm3 = vcmask 1044484  }
   0xe   : > { %s11336_s19 = smul.u32 224, %s20235_s18  ;;  %v589_v6 = vsel %vm514_vm0, 0.0, %v515_v2  ;;  %v605_v7 = vsel %vm604_vm1, %v515_v2, 0.0  ;;  %s12224_s29 = smov 80   ;;  %vm1128_vm4 = vcmask 1046534   ;;  %vm1125_vm5 = vmor %vm514_vm0, %vm1124_vm2  ;;  %vm4161_vm8 = vcmask 130048  }
   0xf   : > { %v651_v8 = vunpack.c.0.s8 %v650_v4  ;;  %v648_v10 = vcombine.high %v589_v6, %v589_v6  ;;  %v665_v11 = vcombine.high %v605_v7, %v605_v7  ;;  %s12225_s30 = smov 96   ;;  %vm1127_vm6 = vmor %vm1125_vm5, %vm1126_vm3  ;;  %s12226_s12 = smov 16   ;;  %vm4187_vm9 = vcmask 261120  }
  0x10   : > { %s12314_s24 = scalar_lea.vmem %s19342_s0, %s11336_s19  ;;  %vm12642_vm7 = vmor %vm1127_vm6, %vm1128_vm4  ;;  %s12227_s13 = smov 112   ;;  %vm4213_vm10 = vcmask 392192   ;;  %vm4239_vm11 = vcmask 523264   ;;  %vm4265_vm12 = vcmask 654336   ;;  %vm4291_vm13 = vcmask 785408  }
  0x11   : > { %v12321_v13 = vsub.s32 %v651_v8, %v653_v5  ;;  %v387_v14 = vld [vmem:[%s12314_s24] sm:$0xff]  ;;  %v388_v15 = vld [vmem:[%s12314_s24 + $0x8] sm:$0x3f]  ;;  %v389_v16 = vld [vmem:[%s12314_s24 + $0x10] sm:$0xff]  ;;  %s12228_s14 = smov 64   ;;  %vm4317_vm14 = vcmask 916480  }
  0x12   : > { %v422_v17 = vmul.f32 %v12309_v9, %v387_v14  ;;  %v390_v21 = vld [vmem:[%s12314_s24 + $0x18] sm:$0x3f]  ;;  %v391_v22 = vld [vmem:[%s12314_s24 + $0x20] sm:$0xff]  ;;  %v423_v24 = vmul.f32 %v12309_v9, %v388_v15  ;;  %v424_v25 = vmul.f32 %v12309_v9, %v389_v16  ;;  %vm12229_vm15 = vmmov 0  }
  0x13   : > { %v12328_v18 = vrot.slane %v589_v6, %v12321_v13  ;;  %v12331_v19 = vrot.slane %v648_v10, %v12321_v13  ;;  %v12334_v20 = vrot.slane %v605_v7, %v12321_v13  ;;  %v12339_v23 = vrot.slane %v665_v11, %v12321_v13 }
  0x14   : > { %v425_v26 = vmul.f32 %v12309_v9, %v390_v21  ;;  %v457_v27 = vadd.f32 %v12319_v12, %v422_v17  ;;  %v458_v31 = vadd.f32 %v12319_v12, %v423_v24  ;;  %v459_v32 = vadd.f32 %v12319_v12, %v424_v25 }
  0x15   : > { %19608 = vst [vmem:[#allocation3_spill] sm:$0xff] %v12328_v18  ;;  %19609 = vst [vmem:[#allocation4_spill] sm:$0xff] %v12339_v23  ;;  %v12347_v28 = vcombine.high %v12328_v18, %v12328_v18  ;;  %v12351_v29 = vcombine.high %v12331_v19, %v12331_v19  ;;  %v12355_v30 = vcombine.high %v12334_v20, %v12334_v20 }
  0x16   : > { %v426_v33 = vmul.f32 %v12309_v9, %v391_v22  ;;  %v460_v34 = vadd.f32 %v12319_v12, %v425_v26  ;;  %v517_v35 = vrot.slane %v457_v27, 7  ;;  %v518_v39 = vrot.slane %v458_v31, 7 }
  0x17   : > { %19610 = vst [vmem:[#allocation5_spill] sm:$0xff] %v12347_v28  ;;  %v2428_v36 = vcombine.low %v12347_v28, %v12331_v19  ;;  %v2429_v37 = vcombine.low %v12351_v29, %v12334_v20  ;;  %v2445_v38 = vcombine.low %v12355_v30, %v12339_v23  ;;  %v520_v40 = vrot.slane %v459_v32, 7 }
  0x18   : > { %v12368_v41 = vadd.f32 %v12319_v12, %v426_v33  ;;  %v521_v42 = vrot.slane %v460_v34, 7  ;;  %v590_v43 = vsel %vm514_vm0, 0.0, %v517_v35  ;;  %v519_v48 = vsel %vm514_vm0, %v517_v35, %v518_v39 }
  0x19   : > { %v2436_v44 = vrot.slane %v2428_v36, %v12321_v13  ;;  %v2443_v45 = vrot.slane %v2429_v37, %v12321_v13  ;;  %v12374_v46 = vrot.slane %v2445_v38, %v12321_v13  ;;  %v12377_v47 = vrot.slane %v590_v43, %v12321_v13 }
  0x1a   : > { %v591_v49 = vsel %vm514_vm0, 0.0, %v520_v40  ;;  %v681_v50 = vcombine.high %v590_v43, %v590_v43  ;;  %v606_v52 = vsel %vm604_vm1, %v519_v48, 0.0  ;;  %v522_v54 = vsel %vm514_vm0, %v520_v40, %v521_v42 }
  0x1b   : > { %19611 = vst [vmem:[#allocation6_spill] sm:$0xff] %v12374_v46  ;;  %v12381_v51 = vcombine.low %v2436_v44, %v2443_v45  ;;  %v12385_v53 = vrot.slane %v591_v49, %v12321_v13  ;;  %v11017_v55 = vcombine.high %v12339_v23, %v12377_v47  ;;  %v12395_v57 = vcombine.high %v12377_v47, %v12377_v47 }
  0x1c   : > { %v12391_v56 = vrot.slane %v681_v50, %v12321_v13  ;;  %v698_v58 = vcombine.high %v606_v52, %v606_v52  ;;  %v12398_v59 = vrot.slane %v606_v52, %v12321_v13  ;;  %v523_v60 = vrot.slane %v12368_v41, 7  ;;  %v393_v50 = vld [vmem:[%s12314_s24 + $0x30] sm:$0xff] }
  0x1d   : > { %19612 = vst [vmem:[#allocation7_spill] sm:$0xff] %v12381_v51  ;;  %v607_v61 = vsel %vm604_vm1, %v522_v54, 0.0  ;;  %v714_v62 = vcombine.high %v591_v49, %v591_v49  ;;  %v2460_v63 = vrot.slane %v11017_v55, %v12321_v13  ;;  %v2919_v3 = vcombine.low %v12377_v47, %v12395_v57  ;;  %v392_v49 = vld [vmem:[%s12314_s24 + $0x28] sm:$0x3f] }
  0x1e   : > { %v12405_v0 = vcombine.high %v12391_v56, %v12391_v56  ;;  %v12408_v2 = vrot.slane %v698_v58, %v12321_v13  ;;  %v12414_v4 = vcombine.high %v12398_v59, %v12398_v59  ;;  %v1530_v5 = vcombine.low %v12395_v57, %v12391_v56 }
  0x1f   : > { %v592_v6 = vsel %vm514_vm0, 0.0, %v523_v60  ;;  %v12422_v7 = vrot.slane %v714_v62, %v12321_v13  ;;  %v2461_v8 = vcombine.low %v12374_v46, %v2460_v63  ;;  %v2926_v11 = vrot.slane %v2919_v3, %v12321_v13 }
  0x20   : > { %v2462_v10 = vcombine.low %v12391_v56, %v12405_v0  ;;  %v2928_v14 = vcombine.low %v12408_v2, %v12385_v53  ;;  %v2463_v15 = vcombine.low %v12398_v59, %v12414_v4  ;;  %v1531_v16 = vcombine.low %v12405_v0, %v12398_v59 }
  0x21   : > { %v1538_v17 = vrot.slane %v1530_v5, %v12321_v13  ;;  %v1547_v21 = vcombine.low %v12414_v4, %v12408_v2  ;;  %v11356_v22 = vpack.i.bf16 %v2461_v8, %v12381_v51  ;;  %v11024_v26 = vcombine.high %v12408_v2, %v12385_v53 }
  0x22   : > { %v12439_v24 = vrot.slane %v2462_v10, %v12321_v13  ;;  %v2935_v25 = vrot.slane %v2928_v14, %v12321_v13  ;;  %v12445_v27 = vrot.slane %v2463_v15, %v12321_v13  ;;  %v1545_v31 = vrot.slane %v1531_v16, %v12321_v13 }
  0x23   : > { %v12449_v32 = vrot.slane %v1547_v21, %v12321_v13  ;;  %v12453_v33 = vcombine.high %v12385_v53, %v12385_v53  ;;  %11357 = vrot.lane.b32.xlu0 %v11356_v22, %s12222_s27  ;;  %v3652_v35 = vrot.slane %v11024_v26, %v12321_v13  ;;  %v12460_v36 = vcombine.high %v12422_v7, %v12422_v7 }
  0x24   : > { %v2927_v34 = vcombine.low %v2926_v11, %v12439_v24  ;;  %v731_v37 = vcombine.high %v607_v61, %v607_v61  ;;  %v2936_v38 = vcombine.low %v12445_v27, %v2935_v25  ;;  %v12463_v39 = vcombine.low %v1538_v17, %v1545_v31 }
  0x25   : > { %19613 = vst [vmem:[#allocation8_spill] sm:$0xff] %v12449_v32  ;;  %v12466_v40 = vrot.slane %v607_v61, %v12321_v13  ;;  %v747_v42 = vcombine.high %v592_v6, %v592_v6  ;;  %v3653_v43 = vcombine.low %v12449_v32, %v3652_v35  ;;  %v12473_v45 = vrot.slane %v592_v6, %v12321_v13 }
  0x26   : > { %19614 = vst [vmem:[#allocation9_spill] sm:$0xff] %v12463_v39  ;;  %v12470_v44 = vrot.slane %v731_v37, %v12321_v13  ;;  %v1548_v48 = vcombine.low %v12385_v53, %v12453_v33  ;;  %v11361_v52 = vpack.i.bf16 %v2936_v38, %v2927_v34  ;;  %v1564_v58 = vcombine.low %v12422_v7, %v12460_v36 }
  0x27   : > { %v12481_v54 = vcombine.high %v12466_v40, %v12466_v40  ;;  %v12484_v55 = vrot.slane %v747_v42, %v12321_v13  ;;  %v11366_v61 = vpack.i.bf16 %v3653_v43, %v12463_v39  ;;  %v12491_v62 = vcombine.high %v12473_v45, %v12473_v45 }
  0x28   : > { %v12494_v63 = vrot.slane %v1548_v48, %v12321_v13  ;;  %v1581_v3 = vcombine.low %v12470_v44, %v12473_v45  ;;  %11362 = vrot.lane.b32.xlu1 %v11361_v52, %s12223_s28  ;;  %v12502_v6 = vrot.slane %v1564_v58, %v12321_v13  ;;  %v427_v8 = vmul.f32 %v12309_v9, %v392_v49 }
  0x29   : > { %v1565_v5 = vcombine.low %v12466_v40, %v12481_v54  ;;  %v428_v10 = vmul.f32 %v12309_v9, %v393_v50  ;;  %11367 = vrot.lane.b32.xlu0 %v11366_v61, %s12224_s29  ;;  %v1582_v11 = vcombine.low %v12491_v62, %v12484_v55  ;;  %v12516_v16 = vcombine.high %v12484_v55, %v12484_v55 }
  0x2a   : > { %19615 = vst [vmem:[#allocation10_spill] sm:$0xff] %v12494_v63  ;;  %v12510_v14 = vrot.slane %v1581_v3, %v12321_v13  ;;  %v3862_v21 = vcombine.low %v12494_v63, %v12502_v6  ;;  %v462_v22 = vadd.f32 %v12319_v12, %v427_v8  ;;  %v2480_v31 = vcombine.low %v12453_v33, %v12422_v7 }
  0x2b   : > { %v12519_v17 = vrot.slane %v1565_v5, %v12321_v13  ;;  %v12525_v25 = vadd.f32 %v12319_v12, %v428_v10  ;;  %v12528_v26 = vrot.slane %v1582_v11, %v12321_v13  ;;  %v2496_v34 = vcombine.low %v12460_v36, %v12466_v40 }
  0x2c   : > { %19616 = vst [vmem:[#allocation11_spill] sm:$0xff] %v12510_v14  ;;  %v2497_v35 = vcombine.low %v12481_v54, %v12470_v44  ;;  %v524_v38 = vrot.slane %v462_v22, 7  ;;  %v2938_v43 = vcombine.low %v12473_v45, %v12491_v62  ;;  %v12544_v49 = vrot.slane %v2480_v31, %v12321_v13 }
  0x2d   : > { %19617 = vst [vmem:[#allocation12_spill] sm:$0xff] %v12525_v25  ;;  %v3863_v37 = vcombine.low %v12519_v17, %v12510_v14  ;;  %v19356_v42 = vrot.slane %v12525_v25, 7  ;;  %v2504_v50 = vrot.slane %v2496_v34, %v12321_v13  ;;  %v2514_v31 = vcombine.low %v12484_v55, %v12516_v16 }
  0x2e   : > { %v12548_v52 = vrot.slane %v2497_v35, %v12321_v13  ;;  %v525_v61 = vsel %vm514_vm0, %v523_v60, %v524_v38  ;;  %v2945_v5 = vrot.slane %v2938_v43, %v12321_v13  ;;  %v11018_v38 = vcombine.high %v12470_v44, %v12473_v45 }
  0x2f   : > { %v11371_v58 = vpack.i.bf16 %v3863_v37, %v3862_v21  ;;  %v593_v3 = vsel %vm514_vm0, 0.0, %v19356_v42  ;;  %v608_v8 = vsel %vm604_vm1, %v525_v61, 0.0  ;;  %v12562_v22 = vcombine.low %v12544_v49, %v2504_v50 }
  0x30   : > { %19618 = vst [vmem:[#allocation13_spill] sm:$0xff] %v12548_v52  ;;  %v780_v10 = vcombine.high %v593_v3, %v593_v3  ;;  %v12559_v11 = vrot.slane %v593_v3, %v12321_v13  ;;  %v764_v41 = vcombine.high %v608_v8, %v608_v8  ;;  %v12566_v60 = vrot.slane %v608_v8, %v12321_v13 }
  0x31   : > { %19619 = vst [vmem:[#allocation14_spill] sm:$0xff] %v12562_v22  ;;  %11372 = vrot.lane.b32.xlu1 %v11371_v58, %s12225_s30  ;;  %v2946_v21 = vcombine.low %v12548_v52, %v2945_v5  ;;  %v2512_v37 = vcombine.low %v2504_v50, %v12548_v52  ;;  %v2528_v8 = vrot.slane %v2514_v31, %v12321_v13  ;;  %v11002_v52 = vrot.slane %v12328_v18, 9 }
  0x32   : > { %v12572_v34 = vrot.slane %v780_v10, %v12321_v13  ;;  %v12576_v35 = vcombine.high %v12559_v11, %v12559_v11  ;;  %v12584_v43 = vrot.slane %v764_v41, %v12321_v13  ;;  %v12588_v58 = vcombine.high %v12566_v60, %v12566_v60 }
  0x33   : > { %v1598_v61 = vcombine.low %v12516_v16, %v12566_v60  ;;  %v11376_v3 = vpack.i.bf16 %v2946_v21, %v12562_v22  ;;  %v1135_v32 = vrot.slane %v12331_v19, 7  ;;  %v1138_v22 = vrot.slane %v12351_v29, 7 }
  0x34   : > { %v12595_v50 = vcombine.high %v12572_v34, %v12572_v34  ;;  %v1615_v5 = vcombine.low %v12559_v11, %v12576_v35  ;;  %v2547_v10 = vcombine.low %v12576_v35, %v12572_v34  ;;  %v1599_v41 = vcombine.low %v12588_v58, %v12584_v43 }
  0x35   : > { %v12605_v48 = vrot.slane %v1598_v61, %v12321_v13  ;;  %11377 = vrot.lane.b32.xlu1 %v11376_v3, %s12223_s28  ;;  %v2530_v21 = vcombine.low %v12566_v60, %v12588_v58  ;;  %v2948_v15 = vcombine.low %v12584_v43, %v12559_v11  ;;  %v12622_v61 = vrot.slane %v11018_v38, %v12321_v13 }
  0x36   : > { %v1616_v31 = vcombine.low %v12572_v34, %v12595_v50  ;;  %v12616_v1 = vrot.slane %v1615_v5, %v12321_v13  ;;  %v12619_v42 = vrot.slane %v2547_v10, %v12321_v13  ;;  %v12625_v3 = vrot.slane %v1599_v41, %v12321_v13 }
  0x37   : > { %19622 = vst [vmem:[#allocation17_spill] sm:$0xff] %v12622_v61  ;;  %v3864_v46 = vcombine.low %v12528_v26, %v12605_v48  ;;  %v12630_v51 = vrot.slane %v2530_v21, %v12321_v13  ;;  %v2955_v14 = vrot.slane %v2948_v15, %v12321_v13  ;;  %v2529_v10 = vcombine.low %v12622_v61, %v2528_v8 }
  0x38   : > { %19620 = vst [vmem:[#allocation15_spill] sm:$0xff] %v12616_v1  ;;  %19621 = vst [vmem:[#allocation16_spill] sm:$0xff] %v12619_v42  ;;  %v12634_v5 = vrot.slane %v1616_v31, %v12321_v13  ;;  %v12639_v38 = vcombine.high %v12339_v23, %v12339_v23  ;;  %v3865_v21 = vcombine.low %v12625_v3, %v12616_v1  ;;  %v1132_v61 = vrot.slane %v12347_v28, 7 }
  0x39   : > { %v12650_v15 = vcombine.low %v2528_v8, %v12630_v51  ;;  %v2956_v31 = vcombine.low %v2955_v14, %v12619_v42  ;;  %v11386_v63 = vpack.i.bf16 %v2529_v10, %v2512_v37  ;;  %v1137_v14 = vrot.slane %v1135_v32, 2 }
  0x3a   : > { %19623 = vst [vmem:[#allocation18_spill] sm:$0xff] %v12634_v5  ;;  %19624 = vst [vmem:[#allocation19_spill] sm:$0xff] %v12639_v38  ;;  %v11381_v25 = vpack.i.bf16 %v3865_v21, %v3864_v46  ;;  %v12661_v12 = vsel %vm12642_vm7, %v11002_v52, %v1132_v61  ;;  %v1134_v8 = vrot.slane %v1132_v61, 2  ;;  %v1140_v28 = vrot.slane %v1138_v22, 2 }
  0x3b   : > { %19627 = vst [vmem:[#allocation20_spill] sm:$0xff] %v12650_v15  ;;  %v11391_v18 = vpack.i.bf16 %v2956_v31, %v12650_v15  ;;  %19628 = vst [vmem:[#allocation21_spill] sm:$0xff] %v12661_v12  ;;  %11387 = vrot.lane.b32.xlu1 %v11386_v63, %s12222_s27  ;;  %v1141_v42 = vrot.slane %v12334_v20, 7  ;;  %v1144_v37 = vrot.slane %v12355_v30, 7  ;;  %v1147_v10 = vrot.slane %v12339_v23, 7 }
  0x3c   : > { %11382 = vrot.lane.b32.xlu0 %v11381_v25, %s12225_s30  ;;  %v12669_v46 = vsel %vm12642_vm7, %v1134_v8, %v1135_v32  ;;  %v1150_v52 = vrot.slane %v12639_v38, 7  ;;  %v11003_v61 = vrot.slane %v12377_v47, 9  ;;  %v12676_v63 = vsel %vm12642_vm7, %v1137_v14, %v1138_v22 }
  0x3d   : > { %19629 = vst [vmem:[#allocation22_spill] sm:$0xff] %v12669_v46  ;;  %19630 = vst [vmem:[#allocation23_spill] sm:$0xff] %v12676_v63  ;;  %v12680_v21 = vsel %vm12642_vm7, %v1140_v28, %v1141_v42  ;;  %v1143_v31 = vrot.slane %v1141_v42, 2  ;;  %v1146_v25 = vrot.slane %v1144_v37, 2  ;;  %v1149_v39 = vrot.slane %v1147_v10, 2 }
  0x3e   : > { %19631 = vst [vmem:[#allocation24_spill] sm:$0xff] %v12680_v21  ;;  %v1154_v32 = vrot.slane %v12395_v57, 7  ;;  %v1937_v8 = vcombine.low %v12661_v12, %v12669_v46  ;;  %v1938_v38 = vcombine.low %v12676_v63, %v12680_v21  ;;  %v1112_v28 = vcombine.high %v12470_v44, %v12470_v44 }
  0x3f   : > { %v12689_v1 = vsel %vm12642_vm7, %v1143_v31, %v1144_v37  ;;  %v12693_v22 = vsel %vm12642_vm7, %v1146_v25, %v1147_v10  ;;  %v12699_v57 = vcombine.low %v12502_v6, %v12519_v17  ;;  %v12704_v42 = vsel %vm12642_vm7, %v1149_v39, %v1150_v52 }
  0x40   : > { %19632 = vst [vmem:[#allocation25_spill] sm:$0xff] %v12689_v1  ;;  %19633 = vst [vmem:[#allocation26_spill] sm:$0xff] %v12693_v22  ;;  %11392 = vrot.lane.b32.xlu0 %v11391_v18, %s12223_s28  ;;  %v12708_v14 = vsel %vm12642_vm7, %v11003_v61, %v1154_v32  ;;  %v1945_v37 = vrot.slane %v1937_v8, %v12321_v13  ;;  %v1952_v10 = vrot.slane %v1938_v38, %v12321_v13 }
  0x41   : > { %19634 = vst [vmem:[#allocation27_spill] sm:$0xff] %v12704_v42  ;;  %v1954_v31 = vcombine.low %v12689_v1, %v12693_v22  ;;  %v1955_v6 = vcombine.low %v12704_v42, %v12708_v14  ;;  %v3654_v18 = vcombine.low %v12470_v44, %v1112_v28  ;;  %v1194_v17 = vrot.slane %v1112_v28, 7 }
  0x42   : > { %v12717_v25 = vcombine.low %v1945_v37, %v1952_v10  ;;  %v12721_v39 = vcombine.high %v12408_v2, %v12408_v2  ;;  %v2478_v52 = vcombine.low %v12439_v24, %v12445_v27  ;;  %v11004_v38 = vrot.slane %v12385_v53, 9 }
  0x43   : > { %v12727_v61 = vrot.slane %v1954_v31, %v12321_v13  ;;  %v1969_v8 = vrot.slane %v1955_v6, %v12321_v13  ;;  %v3661_v22 = vrot.slane %v3654_v18, %v12321_v13  ;;  %v1176_v28 = vrot.slane %v12453_v33, 7 }
  0x44   : > { %19635 = vst [vmem:[#allocation28_spill] sm:$0xff] %v12717_v25  ;;  %v2479_v37 = vcombine.low %v12408_v2, %v12721_v39  ;;  %v1179_v42 = vrot.slane %v12422_v7, 7  ;;  %v1182_v24 = vrot.slane %v12460_v36, 7  ;;  %v1185_v21 = vrot.slane %v12466_v40, 7 }
  0x45   : > { %19636 = vst [vmem:[#allocation29_spill] sm:$0xff] %v12727_v61  ;;  %v1970_v53 = vcombine.low %v12727_v61, %v1969_v8  ;;  %v3662_v27 = vcombine.low %v3661_v22, %v12528_v26  ;;  %v12741_v31 = vsel %vm12642_vm7, %v11004_v38, %v1176_v28  ;;  %v1178_v6 = vrot.slane %v1176_v28, 2 }
  0x46   : > { %v2487_v33 = vrot.slane %v2479_v37, %v12321_v13  ;;  %v1181_v18 = vrot.slane %v1179_v42, 2  ;;  %v1184_v12 = vrot.slane %v1182_v24, 2  ;;  %v1188_v22 = vrot.slane %v12481_v54, 7 }
  0x47   : > { %v11396_v10 = vpack.i.bf16 %v1970_v53, %v12717_v25  ;;  %v11406_v7 = vpack.i.bf16 %v3662_v27, %v12699_v57  ;;  %v1180_v36 = vsel %vm12642_vm7, %v1178_v6, %v1179_v42  ;;  %v1187_v37 = vrot.slane %v1185_v21, 2 }
  0x48   : > { %v2495_v8 = vcombine.low %v2487_v33, %v12544_v49  ;;  %v1183_v38 = vsel %vm12642_vm7, %v1181_v18, %v1182_v24  ;;  %v1186_v28 = vsel %vm12642_vm7, %v1184_v12, %v1185_v21  ;;  %v1190_v40 = vrot.slane %v1188_v22, 2 }
  0x49   : > { %11397 = vrot.lane.b32.xlu0 %v11396_v10, %s12226_s12  ;;  %11407 = vrot.lane.b32.xlu1 %v11406_v7, %s12224_s29  ;;  %v1191_v53 = vrot.slane %v12470_v44, 7  ;;  %v11005_v42 = vrot.slane %v12473_v45, 9  ;;  %v1198_v54 = vrot.slane %v12491_v62, 7  ;;  %v1189_v24 = vsel %vm12642_vm7, %v1187_v37, %v1188_v22 }
  0x4a   : > { %v11401_v49 = vpack.i.bf16 %v2495_v8, %v2478_v52  ;;  %v1989_v27 = vcombine.low %v12741_v31, %v1180_v36  ;;  %v2005_v12 = vcombine.low %v1183_v38, %v1186_v28  ;;  %v1156_v33 = vrot.slane %v1154_v32, 2 }
  0x4b   : > { %v1192_v21 = vsel %vm12642_vm7, %v1190_v40, %v1191_v53  ;;  %v1193_v10 = vrot.slane %v1191_v53, 2  ;;  %v1199_v6 = vsel %vm12642_vm7, %v11005_v42, %v1198_v54  ;;  %v1157_v52 = vrot.slane %v12391_v56, 7 }
  0x4c   : > { %v12768_v44 = vrot.slane %v1989_v27, %v12321_v13  ;;  %v2006_v45 = vcombine.low %v1189_v24, %v1192_v21  ;;  %v12771_v62 = vrot.slane %v2005_v12, %v12321_v13  ;;  %v1160_v7 = vrot.slane %v12405_v0, 7 }
  0x4d   : > { %11402 = vrot.lane.b32.xlu0 %v11401_v49, %s12222_s27  ;;  %v1195_v18 = vsel %vm12642_vm7, %v1193_v10, %v1194_v17  ;;  %v1163_v22 = vrot.slane %v12398_v59, 7  ;;  %v1166_v32 = vrot.slane %v12414_v4, 7  ;;  %v1158_v56 = vsel %vm12642_vm7, %v1156_v33, %v1157_v52 }
  0x4e   : > { %v12781_v8 = vrot.slane %v2006_v45, %v12321_v13  ;;  %v2022_v37 = vcombine.low %v1195_v18, %v1199_v6  ;;  %v3976_v40 = vcombine.low %v12768_v44, %v12771_v62  ;;  %v1159_v53 = vrot.slane %v1157_v52, 2 }
  0x4f   : > { %v1162_v42 = vrot.slane %v1160_v7, 2  ;;  %v1165_v49 = vrot.slane %v1163_v22, 2  ;;  %v1168_v17 = vrot.slane %v1166_v32, 2  ;;  %v1169_v59 = vrot.slane %v12408_v2, 7 }
  0x50   : > { %v12788_v0 = vrot.slane %v2022_v37, %v12321_v13  ;;  %v3154_v4 = vcombine.low %v12708_v14, %v1158_v56  ;;  %v1200_v27 = vrot.slane %v1198_v54, 2  ;;  %v1161_v12 = vsel %vm12642_vm7, %v1159_v53, %v1160_v7 }
  0x51   : > { %v1164_v10 = vsel %vm12642_vm7, %v1162_v42, %v1163_v22  ;;  %v1167_v33 = vsel %vm12642_vm7, %v1165_v49, %v1166_v32  ;;  %v1201_v45 = vrot.slane %v12484_v55, 7  ;;  %v1170_v2 = vsel %vm12642_vm7, %v1168_v17, %v1169_v59 }
  0x52   : > { %v3977_v52 = vcombine.low %v12781_v8, %v12788_v0  ;;  %v1171_v37 = vrot.slane %v1169_v59, 2  ;;  %v3155_v14 = vcombine.low %v1161_v12, %v1164_v10  ;;  %v3162_v54 = vrot.slane %v3154_v4, %v12321_v13 }
  0x53   : > { %v3171_v25 = vcombine.low %v1167_v33, %v1170_v2  ;;  %v1202_v7 = vsel %vm12642_vm7, %v1200_v27, %v1201_v45  ;;  %v3188_v22 = vcombine.low %v1180_v36, %v1183_v38  ;;  %v19637_v32 = vrot.slane %v12721_v39, 7 }
  0x54   : > { %v11416_v53 = vpack.i.bf16 %v3977_v52, %v3976_v40  ;;  %v3169_v42 = vrot.slane %v3155_v14, %v12321_v13  ;;  %v3189_v49 = vcombine.low %v1186_v28, %v1189_v24  ;;  %v3205_v61 = vcombine.low %v1192_v21, %v1195_v18 }
  0x55   : > { %v1173_v55 = vsel %vm12642_vm7, %v1171_v37, %v19637_v32  ;;  %v3179_v59 = vrot.slane %v3171_v25, %v12321_v13  ;;  %v3196_v4 = vrot.slane %v3188_v22, %v12321_v13  ;;  %v3206_v39 = vcombine.low %v1199_v6, %v1202_v7 }
  0x56   : > { %v3172_v17 = vcombine.low %v1173_v55, %v12741_v31  ;;  %11417 = vrot.lane.b32.xlu0 %v11416_v53, %s12227_s13  ;;  %v3170_v36 = vcombine.low %v3162_v54, %v3169_v42  ;;  %v3203_v38 = vrot.slane %v3189_v49, %v12321_v13  ;;  %v1971_v40 = vcombine.low %v1158_v56, %v1161_v12 }
  0x57   : > { %v3213_v52 = vrot.slane %v3205_v61, %v12321_v13  ;;  %v1972_v28 = vcombine.low %v1164_v10, %v1167_v33  ;;  %v1988_v24 = vcombine.low %v1170_v2, %v1173_v55  ;;  %v3220_v25 = vrot.slane %v3206_v39, %v12321_v13 }
  0x58   : > { %v3186_v27 = vrot.slane %v3172_v17, %v12321_v13  ;;  %v3204_v31 = vcombine.low %v3196_v4, %v3203_v38  ;;  %v1979_v37 = vrot.slane %v1971_v40, %v12321_v13  ;;  %v1203_v21 = vrot.slane %v1201_v45, 2 }
  0x59   : > { %v1986_v14 = vrot.slane %v1972_v28, %v12321_v13  ;;  %v1996_v54 = vrot.slane %v1988_v24, %v12321_v13  ;;  %v1204_v6 = vrot.slane %v12516_v16, 7  ;;  %v3221_v56 = vcombine.low %v3213_v52, %v3220_v25 }
  0x5a   : > { %v3187_v18 = vcombine.low %v3179_v59, %v3186_v27  ;;  %v2021_v12 = vcombine.low %v12771_v62, %v12781_v8  ;;  %v12827_v61 = vcombine.high %v12584_v43, %v12584_v43  ;;  %v1207_v10 = vrot.slane %v12566_v60, 7 }
  0x5b   : > { %v1987_v2 = vcombine.low %v1979_v37, %v1986_v14  ;;  %v2004_v45 = vcombine.low %v1996_v54, %v12768_v44  ;;  %v1205_v22 = vsel %vm12642_vm7, %v1203_v21, %v1204_v6  ;;  %v11426_v53 = vpack.i.bf16 %v3221_v56, %v3204_v31  ;;  %v394_v54 = vld [vmem:[%s12314_s24 + $0x38] sm:$0x3f] }
  0x5c   : > { %v11411_v33 = vpack.i.bf16 %v3187_v18, %v3170_v36  ;;  %v2023_v32 = vcombine.low %v1202_v7, %v1205_v22  ;;  %v1206_v16 = vrot.slane %v1204_v6, 2  ;;  %v1209_v55 = vrot.slane %v1207_v10, 2 }
  0x5d   : > { %v11421_v62 = vpack.i.bf16 %v2004_v45, %v1987_v2  ;;  %v1210_v8 = vrot.slane %v12588_v58, 7  ;;  %v1213_v42 = vrot.slane %v12584_v43, 7  ;;  %v1216_v60 = vrot.slane %v12827_v61, 7  ;;  %11427 = vrot.lane.b32.xlu0 %v11426_v53, %s12228_s14 }
  0x5e   : > { %11412 = vrot.lane.b32.xlu1 %v11411_v33, %s12228_s14  ;;  %v2037_v44 = vrot.slane %v2023_v32, %v12321_v13  ;;  %v1208_v49 = vsel %vm12642_vm7, %v1206_v16, %v1207_v10  ;;  %v11006_v7 = vrot.slane %v12559_v11, 9  ;;  %v1220_v17 = vrot.slane %v12576_v35, 7  ;;  %v395_v33 = vld [vmem:[%s12314_s24 + $0x40] sm:$0xff] }
  0x5f   : > { %v1211_v59 = vsel %vm12642_vm7, %v1209_v55, %v1210_v8  ;;  %v1212_v4 = vrot.slane %v1210_v8, 2  ;;  %v1215_v58 = vrot.slane %v1213_v42, 2  ;;  %v1223_v36 = vrot.slane %v12572_v34, 7  ;;  %v396_v8 = vld [vmem:[%s12314_s24 + $0x48] sm:$0x3f] }
  0x60   : > { %v2038_v38 = vcombine.low %v12788_v0, %v2037_v44  ;;  %v1221_v39 = vsel %vm12642_vm7, %v11006_v7, %v1220_v17  ;;  %v1222_v40 = vrot.slane %v1220_v17, 2  ;;  %v2039_v27 = vcombine.low %v1208_v49, %v1211_v59  ;;  %v19639_v17 = vld [vmem:[#allocation2_spill] sm:$0xff] }
  0x61   : > { %v1214_v35 = vsel %vm12642_vm7, %v1212_v4, %v1213_v42  ;;  %v1217_v52 = vsel %vm12642_vm7, %v1215_v58, %v1216_v60  ;;  %v1225_v28 = vrot.slane %v1223_v36, 2  ;;  %v1226_v34 = vrot.slane %v12595_v50, 7  ;;  %v398_v4 = vld [vmem:[%s12314_s24 + $0x58] sm:$0x3f] }
  0x62   : > { %11422 = vrot.lane.b32.xlu1 %v11421_v62, %s12226_s12  ;;  %v11436_v24 = vpack.i.bf16 %v2038_v38, %v2021_v12  ;;  %v1224_v0 = vsel %vm12642_vm7, %v1222_v40, %v1223_v36  ;;  %v2040_v31 = vcombine.low %v1214_v35, %v1217_v52  ;;  %v12858_v25 = vrot.slane %v2039_v27, %v12321_v13  ;;  %v399_v40 = vld [vmem:[%s12314_s24 + $0x60] sm:$0xff] }
  0x63   : > { %v2056_v37 = vcombine.low %v1221_v39, %v1224_v0  ;;  %v12862_v21 = vsel %vm12642_vm7, %v1225_v28, %v1226_v34  ;;  %v3222_v18 = vcombine.low %v1205_v22, %v1208_v49  ;;  %v3223_v14 = vcombine.low %v1211_v59, %v1214_v35 }
  0x64   : > { %11437 = vrot.lane.b32.xlu0 %v11436_v24, %s12226_s12  ;;  %v12867_v6 = vrot.slane %v2040_v31, %v12321_v13  ;;  %v3978_v56 = vcombine.low %v2037_v44, %v12858_v25  ;;  %v3239_v12 = vcombine.low %v1217_v52, %v1221_v39  ;;  %v3240_v10 = vcombine.low %v1224_v0, %v12862_v21 }
  0x65   : > { %v12873_v2 = vrot.slane %v2056_v37, %v12321_v13  ;;  %v3230_v45 = vrot.slane %v3222_v18, %v12321_v13  ;;  %v3237_v22 = vrot.slane %v3223_v14, %v12321_v13  ;;  %v12879_v53 = vcombine.low %v12605_v48, %v12625_v3  ;;  %v397_v48 = vld [vmem:[%s12314_s24 + $0x50] sm:$0xff] }
  0x66   : > { %v3247_v32 = vrot.slane %v3239_v12, %v12321_v13  ;;  %v3254_v16 = vrot.slane %v3240_v10, %v12321_v13  ;;  %v11025_v55 = vcombine.high %v12584_v43, %v12559_v11  ;;  %v429_v62 = vmul.f32 %v12309_v9, %v394_v54  ;;  %v400_v54 = vld [vmem:[%s12314_s24 + $0x68] sm:$0x3f] }
  0x67   : > { %19638 = vst [vmem:[#allocation30_spill] sm:$0xff] %v12879_v53  ;;  %v3979_v42 = vcombine.low %v12867_v6, %v12873_v2  ;;  %v3238_v60 = vcombine.low %v3230_v45, %v3237_v22  ;;  %v430_v44 = vmul.f32 %v12309_v9, %v395_v33  ;;  %v1228_v49 = vrot.slane %v1226_v34, 2 }
  0x68   : > { %v3255_v3 = vcombine.low %v3247_v32, %v3254_v16  ;;  %v3670_v7 = vrot.slane %v11025_v55, %v12321_v13  ;;  %v464_v59 = vadd.f32 %v19639_v17, %v429_v62  ;;  %v2055_v11 = vcombine.low %v12858_v25, %v12867_v6 }
  0x69   : > { %v11431_v58 = vpack.i.bf16 %v3979_v42, %v3978_v56  ;;  %v465_v36 = vadd.f32 %v19639_v17, %v430_v44  ;;  %v2531_v38 = vcombine.low %v12584_v43, %v12827_v61  ;;  %v431_v39 = vmul.f32 %v12309_v9, %v396_v8  ;;  %v19641_v61 = vld [vmem:[#allocation12_spill] sm:$0xff] }
  0x6a   : > { %v11446_v27 = vpack.i.bf16 %v3255_v3, %v3238_v60  ;;  %v3671_v35 = vcombine.low %v3670_v7, %v12634_v5  ;;  %v527_v52 = vrot.slane %v464_v59, 7  ;;  %v432_v28 = vmul.f32 %v12309_v9, %v397_v48 }
  0x6b   : > { %11432 = vrot.lane.b32.xlu1 %v11431_v58, %s12227_s13  ;;  %v529_v34 = vrot.slane %v465_v36, 7  ;;  %v12905_v24 = vrot.slane %v2531_v38, %v12321_v13  ;;  %v466_v0 = vadd.f32 %v19639_v17, %v431_v39  ;;  %v433_v31 = vmul.f32 %v12309_v9, %v398_v4 }
  0x6c   : > { %v11441_v43 = vpack.i.bf16 %v3671_v35, %v12879_v53  ;;  %v19642_v37 = vrot.slane %v19641_v61, 7  ;;  %v12914_v14 = vadd.f32 %v19639_v17, %v432_v28  ;;  %v12918_v56 = vmul.f32 %v12309_v9, %v399_v40 }
  0x6d   : > { %19640 = vst [vmem:[#allocation2_spill] sm:$0xff] %v12905_v24  ;;  %v594_v12 = vsel %vm514_vm0, 0.0, %v529_v34  ;;  %v2546_v33 = vcombine.low %v12630_v51, %v12905_v24  ;;  %v530_v45 = vrot.slane %v466_v0, 7  ;;  %v12933_v42 = vadd.f32 %v19639_v17, %v433_v31 }
  0x6e   : > { %v528_v18 = vsel %vm514_vm0, %v19642_v37, %v527_v52  ;;  %11442 = vrot.lane.b32.xlu0 %v11441_v43, %s12224_s29  ;;  %v813_v16 = vcombine.high %v594_v12, %v594_v12  ;;  %v12927_v55 = vrot.slane %v594_v12, %v12321_v13  ;;  %v532_v8 = vrot.slane %v12914_v14, 7 }
  0x6f   : > { %v609_v10 = vsel %vm604_vm1, %v528_v18, 0.0  ;;  %11447 = vrot.lane.b32.xlu1 %v11446_v27, %s12228_s14  ;;  %v531_v62 = vsel %vm514_vm0, %v529_v34, %v530_v45  ;;  %v12936_v60 = vmul.f32 %v12309_v9, %v400_v54 }
  0x70   : > { %v797_v22 = vcombine.high %v609_v10, %v609_v10  ;;  %v804_v32 = vrot.slane %v609_v10, %v12321_v13  ;;  %v827_v3 = vrot.slane %v813_v16, %v12321_v13  ;;  %v828_v7 = vcombine.high %v12927_v55, %v12927_v55 }
  0x71   : > { %v11007_v4 = vrot.slane %v12927_v55, 9  ;;  %v12947_v17 = vsel %vm604_vm1, %v531_v62, 0.0 }
  0x72   : > { %v12939_v44 = vrot.slane %v797_v22, %v12321_v13  ;;  %v812_v48 = vcombine.high %v804_v32, %v804_v32  ;;  %v1229_v59 = vrot.slane %v804_v32, 7  ;;  %v2548_v58 = vcombine.low %v12595_v50, %v804_v32 }
  0x73   : > { %v1649_v38 = vcombine.low %v828_v7, %v827_v3  ;;  %v12951_v39 = vcombine.high %v827_v3, %v827_v3  ;;  %v1242_v61 = vrot.slane %v828_v7, 7 }
  0x74   : > { %v1632_v36 = vcombine.low %v804_v32, %v812_v48  ;;  %v1633_v9 = vcombine.low %v12939_v44, %v12927_v55  ;;  %v12955_v40 = vcombine.high %v12939_v44, %v12939_v44  ;;  %v12959_v27 = vsel %vm12642_vm7, %v1228_v49, %v1229_v59 }
  0x75   : > { %v1231_v35 = vrot.slane %v1229_v59, 2  ;;  %v1232_v50 = vrot.slane %v812_v48, 7  ;;  %v12968_v34 = vrot.slane %v1649_v38, %v12321_v13  ;;  %v1235_v0 = vrot.slane %v12939_v44, 7 }
  0x76   : > { %v12962_v52 = vrot.slane %v1632_v36, %v12321_v13  ;;  %v12965_v28 = vrot.slane %v1633_v9, %v12321_v13  ;;  %v1238_v49 = vrot.slane %v12955_v40, 7  ;;  %v1243_v45 = vsel %vm12642_vm7, %v11007_v4, %v1242_v61  ;;  %v4358_v4 = vld [vmem:[%s19345_s3 + $0x78] sm:$0xff] }
  0x77   : > { %v1233_v31 = vsel %vm12642_vm7, %v1231_v35, %v1232_v50  ;;  %v1234_v43 = vrot.slane %v1232_v50, 2  ;;  %v1237_v12 = vrot.slane %v1235_v0, 2  ;;  %v1244_v22 = vrot.slane %v1242_v61, 2  ;;  %v4357_v61 = vld [vmem:[%s19345_s3 + $0x70] sm:$0xff]  ;;  %4419 = vmatpush1.msra.mxu0 %v4358_v4 }
  0x78   : > { %19643 = vst [vmem:[#allocation12_spill] sm:$0xff] %v12962_v52  ;;  %19644 = vst [vmem:[#allocation31_spill] sm:$0xff] %v12965_v28  ;;  %v3866_v37 = vcombine.low %v12634_v5, %v12962_v52  ;;  %v3867_v18 = vcombine.low %v12965_v28, %v12968_v34  ;;  %v1245_v32 = vrot.slane %v827_v3, 7  ;;  %v1248_v59 = vrot.slane %v12951_v39, 7 }
  0x79   : > { %v1236_v10 = vsel %vm12642_vm7, %v1234_v43, %v1235_v0  ;;  %v1239_v62 = vsel %vm12642_vm7, %v1237_v12, %v1238_v49  ;;  %v2057_v36 = vcombine.low %v12862_v21, %v12959_v27  ;;  %v2562_v43 = vrot.slane %v2548_v58, %v12321_v13 }
  0x7a   : > { %v11451_v16 = vpack.i.bf16 %v3867_v18, %v3866_v37  ;;  %v1246_v9 = vsel %vm12642_vm7, %v1244_v22, %v1245_v32  ;;  %v1247_v38 = vrot.slane %v1245_v32, 2  ;;  %v2073_v35 = vcombine.low %v1233_v31, %v1236_v10 }
  0x7b   : > { %v2074_v50 = vcombine.low %v1239_v62, %v1243_v45  ;;  %v2071_v0 = vrot.slane %v2057_v36, %v12321_v13  ;;  %v2564_v49 = vcombine.low %v812_v48, %v12939_v44  ;;  %v2581_v21 = vcombine.low %v827_v3, %v12951_v39  ;;  %v19645_v3 = vld [vmem:[#allocation16_spill] sm:$0xff] }
  0x7c   : > { %11452 = vrot.lane.b32.xlu1 %v11451_v16, %s12225_s30  ;;  %v1249_v37 = vsel %vm12642_vm7, %v1247_v38, %v1248_v59  ;;  %v13005_v18 = vrot.slane %v2073_v35, %v12321_v13  ;;  %v2958_v22 = vcombine.low %v12927_v55, %v828_v7  ;;  %v2563_v32 = vcombine.low %v19645_v3, %v2562_v43 }
  0x7d   : > { %v13008_v12 = vrot.slane %v2074_v50, %v12321_v13  ;;  %v2090_v58 = vcombine.low %v1246_v9, %v1249_v37  ;;  %v2072_v48 = vcombine.low %v12873_v2, %v2071_v0  ;;  %v13014_v16 = vrot.slane %v2564_v49, %v12321_v13 }
  0x7e   : > { %v19646_v36 = vmov 0.0   ;;  %v3980_v38 = vcombine.low %v2071_v0, %v13005_v18  ;;  %v13019_v35 = vrot.slane %v2581_v21, %v12321_v13  ;;  %v2965_v50 = vrot.slane %v2958_v22, %v12321_v13 }
  0x7f   : > { %4420 = vmatprep.subr.mxu0 %v19646_v36  ;;  %v830_v7 = vcombine.high %v12947_v17, %v12947_v17  ;;  %v13025_v2 = vrot.slane %v2090_v58, %v12321_v13  ;;  %v11461_v4 = vpack.i.bf16 %v2072_v48, %v2055_v11  ;;  %v11466_v0 = vpack.i.bf16 %v2563_v32, %v2546_v33 }
  0x80   : > { %19647 = vst [vmem:[#allocation32_spill] sm:$0xff] %v13019_v35  ;;  %4421 = vmatpush1.msra.mxu0 %v4357_v61  ;;  %v13034_v49 = vcombine.low %v2562_v43, %v13014_v16  ;;  %v2966_v21 = vcombine.low %v2965_v50, %v13019_v35  ;;  %v13040_v61 = vrot.slane %v12947_v17, %v12321_v13  ;;  %v1250_v25 = vrot.slane %v1248_v59, 2 }
  0x81   : > { %4422 = vmatprep.subr.mxu0 %v19646_v36  ;;  %v13043_v22 = vrot.slane %v830_v7, %v12321_v13  ;;  %v3981_v6 = vcombine.low %v13008_v12, %v13025_v2  ;;  %11462 = vrot.lane.b32.xlu1 %v11461_v4, %s12226_s12  ;;  %v3256_v51 = vcombine.low %v12959_v27, %v1233_v31  ;;  %v4355_v4 = vld [vmem:[%s19345_s3 + $0x60] sm:$0xff] }
  0x82   : > { %19648 = vst [vmem:[#allocation33_spill] sm:$0xff] %v13034_v49  ;;  %v3257_v11 = vcombine.low %v1236_v10, %v1239_v62  ;;  %v3273_v33 = vcombine.low %v1243_v45, %v1246_v9  ;;  %v11471_v43 = vpack.i.bf16 %v2966_v21, %v13034_v49  ;;  %v1251_v58 = vrot.slane %v13040_v61, 7 }
  0x83   : > { %v1650_v17 = vcombine.low %v12951_v39, %v13040_v61  ;;  %v3672_v48 = vcombine.low %v12939_v44, %v12955_v40  ;;  %v11456_v59 = vpack.i.bf16 %v3981_v6, %v3980_v38  ;;  %v3264_v32 = vrot.slane %v3256_v51, %v12321_v13  ;;  %v4356_v38 = vld [vmem:[%s19345_s3 + $0x68] sm:$0xff] }
  0x84   : > { %v3271_v50 = vrot.slane %v3257_v11, %v12321_v13  ;;  %v3281_v7 = vrot.slane %v3273_v33, %v12321_v13  ;;  %v13060_v27 = vsel %vm12642_vm7, %v1250_v25, %v1251_v58  ;;  %v595_v39 = vsel %vm514_vm0, 0.0, %v532_v8  ;;  %4423 = vmatpush1.msra.mxu0 %v4356_v38 }
  0x85   : > { %v13063_v31 = vrot.slane %v1650_v17, %v12321_v13  ;;  %v3679_v10 = vrot.slane %v3672_v48, %v12321_v13  ;;  %11457 = vrot.lane.b32.xlu0 %v11456_v59, %s12227_s13  ;;  %11472 = vrot.lane.b32.xlu1 %v11471_v43, %s12223_s28  ;;  %v3274_v45 = vcombine.low %v1249_v37, %v13060_v27  ;;  %v533_v9 = vrot.slane %v12933_v42, 7 }
  0x86   : > { %v3272_v40 = vcombine.low %v3264_v32, %v3271_v50  ;;  %v13074_v62 = vcombine.high %v13040_v61, %v13040_v61  ;;  %v846_v25 = vcombine.high %v595_v39, %v595_v39  ;;  %v13089_v6 = vrot.slane %v595_v39, %v12321_v13  ;;  %4424 = vmatprep.subr.mxu0 %v19646_v36  ;;  %v4354_v50 = vld [vmem:[%s19345_s3 + $0x58] sm:$0xff] }
  0x87   : > { %v13085_v21 = vcombine.low %v12968_v34, %v13063_v31  ;;  %v3680_v37 = vcombine.low %v12962_v52, %v3679_v10  ;;  %v3288_v42 = vrot.slane %v3274_v45, %v12321_v13  ;;  %v534_v11 = vsel %vm514_vm0, %v532_v8, %v533_v9  ;;  %4425 = vmatpush1.msra.mxu0 %v4355_v4  ;;  %v4353_v45 = vld [vmem:[%s19345_s3 + $0x50] sm:$0xff] }
  0x88   : > { %v1666_v51 = vcombine.low %v13074_v62, %v13043_v22  ;;  %v13099_v34 = vcombine.high %v13043_v22, %v13043_v22  ;;  %v13104_v43 = vrot.slane %v846_v25, %v12321_v13  ;;  %v13108_v17 = vcombine.high %v13089_v6, %v13089_v6  ;;  %4426 = vmatprep.subr.mxu0 %v19646_v36 }
  0x89   : > { %19649 = vst [vmem:[#allocation34_spill] sm:$0xff] %v13085_v21  ;;  %v11481_v33 = vpack.i.bf16 %v13085_v21, %v3680_v37  ;;  %v611_v48 = vsel %vm604_vm1, %v534_v11, 0.0  ;;  %11467 = vrot.lane.b32.xlu0 %v11466_v0, %s12222_s27  ;;  %v3289_v14 = vcombine.low %v3281_v7, %v3288_v42  ;;  %v1253_v7 = vrot.slane %v1251_v58, 2  ;;  %4427 = vmatpush1.msra.mxu0 %v4354_v50 }
  0x8a   : > { %v13113_v8 = vrot.slane %v1666_v51, %v12321_v13  ;;  %v863_v59 = vcombine.high %v611_v48, %v611_v48  ;;  %v13116_v32 = vrot.slane %v611_v48, %v12321_v13  ;;  %v13124_v10 = vcombine.high %v13104_v43, %v13104_v43  ;;  %4428 = vmatprep.subr.mxu0 %v19646_v36 }
  0x8b   : > { %11482 = vrot.lane.b32.xlu1 %v11481_v33, %s12224_s29  ;;  %v1667_v0 = vcombine.low %v13089_v6, %v13108_v17  ;;  %v1254_v39 = vrot.slane %v13074_v62, 7  ;;  %v11476_v9 = vpack.i.bf16 %v3289_v14, %v3272_v40  ;;  %v1257_v37 = vrot.slane %v13043_v22, 7  ;;  %4429 = vmatpush1.msra.mxu0 %v4353_v45 }
  0x8c   : > { %19650 = vst [vmem:[#allocation35_spill] sm:$0xff] %v13113_v8  ;;  %v3868_v38 = vcombine.low %v13063_v31, %v13113_v8  ;;  %v13136_v4 = vrot.slane %v863_v59, %v12321_v13  ;;  %v1683_v25 = vcombine.low %v13104_v43, %v13124_v10  ;;  %v1260_v51 = vrot.slane %v13099_v34, 7  ;;  %4430 = vmatprep.subr.mxu0 %v19646_v36 }
  0x8d   : > { %v13140_v58 = vrot.slane %v1667_v0, %v12321_v13  ;;  %v13146_v42 = vsel %vm12642_vm7, %v1253_v7, %v1254_v39  ;;  %v1256_v40 = vrot.slane %v1254_v39, 2  ;;  %11477 = vrot.lane.b32.xlu0 %v11476_v9, %s12228_s14  ;;  %v1259_v31 = vrot.slane %v1257_v37, 2  ;;  %v4352_v0 = vld [vmem:[%s19345_s3 + $0x48] sm:$0xff]  ;;  %v4351_v7 = vld [vmem:[%s19345_s3 + $0x40] sm:$0xff] }
  0x8e   : > { %v11008_v11 = vrot.slane %v13089_v6, 9  ;;  %v1264_v33 = vrot.slane %v13108_v17, 7  ;;  %v13154_v48 = vrot.slane %v1683_v25, %v12321_v13  ;;  %v1267_v50 = vrot.slane %v13104_v43, 7  ;;  %4431 = vmatpush1.msra.mxu0 %v4352_v0 }
  0x8f   : > { %19651 = vst [vmem:[#allocation36_spill] sm:$0xff] %v13140_v58  ;;  %v1258_v59 = vsel %vm12642_vm7, %v1256_v40, %v1257_v37  ;;  %v1261_v39 = vsel %vm12642_vm7, %v1259_v31, %v1260_v51  ;;  %v1270_v37 = vrot.slane %v13124_v10, 7  ;;  %v1273_v14 = vrot.slane %v13116_v32, 7  ;;  %4432 = vmatprep.subr.mxu0 %v19646_v36 }
  0x90   : > { %v1265_v45 = vsel %vm12642_vm7, %v11008_v11, %v1264_v33  ;;  %v1266_v9 = vrot.slane %v1264_v33, 2  ;;  %v3869_v25 = vcombine.low %v13140_v58, %v13154_v48  ;;  %v1269_v40 = vrot.slane %v1267_v50, 2  ;;  %4433 = vmatpush1.msra.mxu0 %v4351_v7 }
  0x91   : > { %v2091_v54 = vcombine.low %v13060_v27, %v13146_v42  ;;  %v1272_v51 = vrot.slane %v1270_v37, 2  ;;  %v2107_v11 = vcombine.low %v1258_v59, %v1261_v39  ;;  %v2089_v33 = vcombine.low %v13005_v18, %v13008_v12  ;;  %4434 = vmatprep.subr.mxu0 %v19646_v36 }
  0x92   : > { %v1268_v31 = vsel %vm12642_vm7, %v1266_v9, %v1267_v50  ;;  %v11486_v0 = vpack.i.bf16 %v3869_v25, %v3868_v38  ;;  %v1271_v58 = vsel %vm12642_vm7, %v1269_v40, %v1270_v37  ;;  %v11019_v9 = vcombine.high %v12939_v44, %v12927_v55 }
  0x93   : > { %v2105_v28 = vrot.slane %v2091_v54, %v12321_v13  ;;  %v2108_v52 = vcombine.low %v1265_v45, %v1268_v31  ;;  %v1274_v27 = vsel %vm12642_vm7, %v1272_v51, %v1273_v14  ;;  %v13190_v50 = vrot.slane %v2107_v11, %v12321_v13 }
  0x94   : > { %v2582_v18 = vcombine.low %v13040_v61, %v13074_v62  ;;  %11487 = vrot.lane.b32.xlu0 %v11486_v0, %s12225_s30  ;;  %v2124_v54 = vcombine.low %v1271_v58, %v1274_v27  ;;  %v2599_v7 = vcombine.low %v13108_v17, %v13104_v43  ;;  %v13205_v25 = vrot.slane %v11019_v9, %v12321_v13 }
  0x95   : > { %v13198_v12 = vrot.slane %v2108_v52, %v12321_v13  ;;  %v2106_v38 = vcombine.low %v13025_v2, %v2105_v28  ;;  %v3982_v37 = vcombine.low %v2105_v28, %v13190_v50  ;;  %v2615_v44 = vcombine.low %v13124_v10, %v13116_v32 }
  0x96   : > { %19652 = vst [vmem:[#allocation37_spill] sm:$0xff] %v13205_v25  ;;  %v13208_v55 = vrot.slane %v2582_v18, %v12321_v13  ;;  %v13213_v52 = vrot.slane %v2124_v54, %v12321_v13  ;;  %v13216_v2 = vrot.slane %v2599_v7, %v12321_v13  ;;  %v2967_v62 = vcombine.low %v13043_v22, %v13089_v6 }
  0x97   : > { %v11496_v61 = vpack.i.bf16 %v2106_v38, %v2089_v33  ;;  %v2580_v28 = vcombine.low %v13014_v16, %v13205_v25  ;;  %v13225_v17 = vrot.slane %v2615_v44, %v12321_v13  ;;  %v13229_v10 = vcombine.high %v13116_v32, %v13116_v32 }
  0x98   : > { %19653 = vst [vmem:[#allocation38_spill] sm:$0xff] %v13208_v55  ;;  %v2597_v43 = vcombine.low %v13019_v35, %v13208_v55  ;;  %v3983_v40 = vcombine.low %v13198_v12, %v13213_v52  ;;  %v2974_v51 = vrot.slane %v2967_v62, %v12321_v13  ;;  %v1275_v11 = vrot.slane %v1273_v14, 2 }
  0x99   : > { %11497 = vrot.lane.b32.xlu0 %v11496_v61, %s12226_s12  ;;  %v3290_v16 = vcombine.low %v13146_v42, %v1258_v59  ;;  %v13238_v0 = vcombine.low %v13216_v2, %v13225_v17  ;;  %v1276_v9 = vrot.slane %v13229_v10, 7  ;;  %v3291_v18 = vcombine.low %v1261_v39, %v1265_v45 }
  0x9a   : > { %v11501_v33 = vpack.i.bf16 %v2597_v43, %v2580_v28  ;;  %v11491_v54 = vpack.i.bf16 %v3983_v40, %v3982_v37  ;;  %v2975_v38 = vcombine.low %v13208_v55, %v2974_v51  ;;  %v3307_v44 = vcombine.low %v1268_v31, %v1271_v58  ;;  %v13259_v31 = vld [vmem:[%s19344_s2] ss:$0 sm:$0xff] }
  0x9b   : > { %19654 = vst [vmem:[#allocation39_spill] sm:$0xff] %v13238_v0  ;;  %v3298_v7 = vrot.slane %v3290_v16, %v12321_v13  ;;  %v13245_v61 = vsel %vm12642_vm7, %v1275_v11, %v1276_v9  ;;  %v3305_v42 = vrot.slane %v3291_v18, %v12321_v13  ;;  %v1684_v14 = vcombine.low %v13116_v32, %v13229_v10 }
  0x9c   : > { %v11026_v59 = vcombine.high %v13043_v22, %v13089_v6  ;;  %11492 = vrot.lane.b32.xlu1 %v11491_v54, %s12227_s13  ;;  %v11506_v39 = vpack.i.bf16 %v13238_v0, %v2975_v38  ;;  %v3308_v45 = vcombine.low %v1274_v27, %v13245_v61  ;;  %v3315_v58 = vrot.slane %v3307_v44, %v12321_v13 }
  0x9d   : > { %v469_v37 = vadd.f32 %v13259_v31, %v12918_v56  ;;  %v3306_v32 = vcombine.low %v3298_v7, %v3305_v42  ;;  %v13264_v62 = vrot.slane %v1684_v14, %v12321_v13  ;;  %v470_v28 = vadd.f32 %v13259_v31, %v12936_v60 }
  0x9e   : > { %v3688_v6 = vrot.slane %v11026_v59, %v12321_v13  ;;  %11507 = vrot.lane.b32.xlu0 %v11506_v39, %s12223_s28  ;;  %v3322_v27 = vrot.slane %v3308_v45, %v12321_v13  ;;  %v13273_v40 = vcombine.high %v13136_v4, %v13136_v4  ;;  %v1278_v51 = vrot.slane %v1276_v9, 2 }
  0x9f   : > { %v535_v43 = vrot.slane %v469_v37, 7  ;;  %v13277_v56 = vcombine.low %v13154_v48, %v13264_v62  ;;  %v536_v16 = vrot.slane %v470_v28, 7  ;;  %v1279_v18 = vrot.slane %v13136_v4, 7  ;;  %v4349_v28 = vld [vmem:[%s19345_s3 + $0x30] sm:$0xff] }
  0xa0   : > { %v3689_v11 = vcombine.low %v13113_v8, %v3688_v6  ;;  %11502 = vrot.lane.b32.xlu1 %v11501_v33, %s12222_s27  ;;  %v3323_v60 = vcombine.low %v3315_v58, %v3322_v27  ;;  %v1282_v38 = vrot.slane %v13273_v40, 7 }
  0xa1   : > { %19655 = vst [vmem:[#allocation40_spill] sm:$0xff] %v13277_v56  ;;  %v596_v54 = vsel %vm514_vm0, 0.0, %v535_v43  ;;  %v537_v48 = vsel %vm514_vm0, %v535_v43, %v536_v16  ;;  %v13294_v33 = vsel %vm12642_vm7, %v1278_v51, %v1279_v18  ;;  %v1281_v39 = vrot.slane %v1279_v18, 2 }
  0xa2   : > { %v11516_v9 = vpack.i.bf16 %v13277_v56, %v3689_v11  ;;  %v879_v44 = vcombine.high %v596_v54, %v596_v54  ;;  %v13289_v42 = vrot.slane %v596_v54, %v12321_v13  ;;  %v11511_v14 = vpack.i.bf16 %v3323_v60, %v3306_v32  ;;  %v4350_v32 = vld [vmem:[%s19345_s3 + $0x38] sm:$0xff] }
  0xa3   : > { %v612_v59 = vsel %vm604_vm1, %v537_v48, 0.0  ;;  %v13318_v43 = vsel %vm12642_vm7, %v1281_v39, %v1282_v38  ;;  %v2125_v11 = vcombine.low %v13245_v61, %v13294_v33  ;;  %4435 = vmatpush1.msra.mxu0 %v4350_v32  ;;  %v4347_v32 = vld [vmem:[%s19345_s3 + $0x20] sm:$0xff] }
  0xa4   : > { %11517 = vrot.lane.b32.xlu0 %v11516_v9, %s12224_s29  ;;  %v13298_v45 = vrot.slane %v879_v44, %v12321_v13  ;;  %v13302_v58 = vcombine.high %v13289_v42, %v13289_v42  ;;  %v896_v37 = vcombine.high %v612_v59, %v612_v59  ;;  %v13305_v6 = vrot.slane %v612_v59, %v12321_v13 }
  0xa5   : > { %11512 = vrot.lane.b32.xlu1 %v11511_v14, %s12228_s14  ;;  %v1700_v27 = vcombine.low %v13136_v4, %v13289_v42  ;;  %v11009_v51 = vrot.slane %v13289_v42, 9  ;;  %4436 = vmatprep.subr.mxu0 %v19646_v36 }
  0xa6   : > { %v895_v16 = vcombine.high %v13298_v45, %v13298_v45  ;;  %v13326_v18 = vrot.slane %v896_v37, %v12321_v13  ;;  %v1701_v60 = vcombine.low %v13302_v58, %v13298_v45  ;;  %v13332_v54 = vcombine.high %v13305_v6, %v13305_v6  ;;  %4437 = vmatpush1.msra.mxu0 %v4349_v28  ;;  %v4348_v37 = vld [vmem:[%s19345_s3 + $0x28] sm:$0xff] }
  0xa7   : > { %v13336_v38 = vrot.slane %v1700_v27, %v12321_v13  ;;  %v1286_v61 = vrot.slane %v13302_v58, 7  ;;  %v1289_v9 = vrot.slane %v13298_v45, 7  ;;  %v1295_v48 = vrot.slane %v13305_v6, 7  ;;  %4438 = vmatprep.subr.mxu0 %v19646_v36 }
  0xa8   : > { %v13342_v44 = vrot.slane %v1701_v60, %v12321_v13  ;;  %v1717_v14 = vcombine.low %v895_v16, %v13305_v6  ;;  %v1292_v59 = vrot.slane %v895_v16, 7  ;;  %v1298_v39 = vrot.slane %v13332_v54, 7  ;;  %4439 = vmatpush1.msra.mxu0 %v4348_v37 }
  0xa9   : > { %19656 = vst [vmem:[#allocation41_spill] sm:$0xff] %v13336_v38  ;;  %v3870_v28 = vcombine.low %v13264_v62, %v13336_v38  ;;  %v13357_v27 = vsel %vm12642_vm7, %v11009_v51, %v1286_v61  ;;  %v1288_v60 = vrot.slane %v1286_v61, 2  ;;  %v1291_v7 = vrot.slane %v1289_v9, 2  ;;  %4440 = vmatprep.subr.mxu0 %v19646_v36 }
  0xaa   : > { %19657 = vst [vmem:[#allocation42_spill] sm:$0xff] %v13342_v44  ;;  %v13360_v8 = vrot.slane %v1717_v14, %v12321_v13  ;;  %v1294_v0 = vrot.slane %v1292_v59, 2  ;;  %v1297_v55 = vrot.slane %v1295_v48, 2  ;;  %v2139_v61 = vrot.slane %v2125_v11, %v12321_v13  ;;  %4441 = vmatpush1.msra.mxu0 %v4347_v32 }
  0xab   : > { %v1290_v62 = vsel %vm12642_vm7, %v1288_v60, %v1289_v9  ;;  %v1293_v51 = vsel %vm12642_vm7, %v1291_v7, %v1292_v59  ;;  %v2141_v37 = vcombine.low %v13318_v43, %v13357_v27  ;;  %4442 = vmatprep.subr.mxu0 %v19646_v36  ;;  %v2598_v59 = vcombine.low %v13043_v22, %v13099_v34 }
  0xac   : > { %v3871_v14 = vcombine.low %v13342_v44, %v13360_v8  ;;  %v1296_v56 = vsel %vm12642_vm7, %v1294_v0, %v1295_v48  ;;  %v1299_v38 = vsel %vm12642_vm7, %v1297_v55, %v1298_v39  ;;  %v2142_v21 = vcombine.low %v1290_v62, %v1293_v51  ;;  %v4346_v48 = vld [vmem:[%s19345_s3 + $0x18] sm:$0xff] }
  0xad   : > { %v13380_v7 = vrot.slane %v2141_v37, %v12321_v13  ;;  %v2158_v11 = vcombine.low %v1296_v56, %v1299_v38  ;;  %v2140_v9 = vcombine.low %v13213_v52, %v2139_v61  ;;  %v2616_v0 = vcombine.low %v13229_v10, %v13136_v4  ;;  %4443 = vmatpush1.msra.mxu0 %v4346_v48  ;;  %v4345_v10 = vld [vmem:[%s19345_s3 + $0x10] sm:$0xff]  ;;  %v402_v48 = vld [vmem:[%s12314_s24 + $0x78] sm:$0x3f] }
  0xae   : > { %v11521_v32 = vpack.i.bf16 %v3871_v14, %v3870_v28  ;;  %v13386_v60 = vrot.slane %v2142_v21, %v12321_v13  ;;  %v2633_v55 = vcombine.low %v13298_v45, %v895_v16  ;;  %v19658_v22 = vcombine.low %v13190_v50, %v13198_v12  ;;  %4444 = vmatprep.subr.mxu0 %v19646_v36 }
  0xaf   : > { %v13395_v37 = vrot.slane %v2158_v11, %v12321_v13  ;;  %v3984_v52 = vcombine.low %v2139_v61, %v13380_v7  ;;  %v13402_v21 = vrot.slane %v2598_v59, %v12321_v13  ;;  %v13409_v45 = vrot.slane %v2616_v0, %v12321_v13  ;;  %4445 = vmatpush1.msra.mxu0 %v4345_v10  ;;  %v13456_v10 = vld [vmem:[%s19343_s1] ss:$0 sm:$0xff] }
  0xb0   : > { %v11531_v34 = vpack.i.bf16 %v2140_v9, %v19658_v22  ;;  %11522 = vrot.lane.b32.xlu1 %v11521_v32, %s12225_s30  ;;  %v13412_v16 = vrot.slane %v2633_v55, %v12321_v13  ;;  %v2649_v50 = vcombine.low %v13305_v6, %v13332_v54  ;;  %v2977_v12 = vcombine.low %v13289_v42, %v13302_v58  ;;  %v401_v55 = vld [vmem:[%s12314_s24 + $0x70] sm:$0xff] }
  0xb1   : > { %19659 = vst [vmem:[#allocation43_spill] sm:$0xff] %v13402_v21  ;;  %19660 = vst [vmem:[#allocation44_spill] sm:$0xff] %v13409_v45  ;;  %v3985_v28 = vcombine.low %v13386_v60, %v13395_v37  ;;  %v2614_v61 = vcombine.low %v13402_v21, %v13216_v2  ;;  %v1300_v14 = vrot.slane %v1298_v39, 2  ;;  %v1301_v11 = vrot.slane %v13326_v18, 7  ;;  %4446 = vmatprep.subr.mxu0 %v19646_v36 }
  0xb2   : > { %v2631_v9 = vcombine.low %v13225_v17, %v13409_v45  ;;  %v13427_v6 = vrot.slane %v2649_v50, %v12321_v13  ;;  %v2984_v58 = vrot.slane %v2977_v12, %v12321_v13  ;;  %v3324_v59 = vcombine.low %v13294_v33, %v13318_v43 }
  0xb3   : > { %v11526_v32 = vpack.i.bf16 %v3985_v28, %v3984_v52  ;;  %v1302_v2 = vsel %vm12642_vm7, %v1300_v14, %v1301_v11  ;;  %v3325_v39 = vcombine.low %v13357_v27, %v1290_v62  ;;  %v3341_v0 = vcombine.low %v1293_v51, %v1296_v56 }
  0xb4   : > { %11532 = vrot.lane.b32.xlu1 %v11531_v34, %s12226_s12  ;;  %v11536_v17 = vpack.i.bf16 %v2631_v9, %v2614_v61  ;;  %v2985_v22 = vcombine.low %v13409_v45, %v2984_v58  ;;  %v13442_v33 = vcombine.low %v13412_v16, %v13427_v6  ;;  %v3332_v43 = vrot.slane %v3324_v59, %v12321_v13 }
  0xb5   : > { %11527 = vrot.lane.b32.xlu0 %v11526_v32, %s12227_s13  ;;  %v3339_v27 = vrot.slane %v3325_v39, %v12321_v13  ;;  %v3342_v56 = vcombine.low %v1299_v38, %v1302_v2  ;;  %v3349_v62 = vrot.slane %v3341_v0, %v12321_v13  ;;  %v1718_v51 = vcombine.low %v13332_v54, %v13326_v18 }
  0xb6   : > { %19661 = vst [vmem:[#allocation45_spill] sm:$0xff] %v13442_v33  ;;  %v11541_v52 = vpack.i.bf16 %v13442_v33, %v2985_v22  ;;  %v3690_v34 = vcombine.low %v13136_v4, %v13273_v40  ;;  %v436_v50 = vmul.f32 %v13456_v10, %v401_v55  ;;  %v437_v12 = vmul.f32 %v13456_v10, %v402_v48 }
  0xb7   : > { %v3340_v38 = vcombine.low %v3332_v43, %v3339_v27  ;;  %v3356_v28 = vrot.slane %v3342_v56, %v12321_v13  ;;  %v13462_v54 = vrot.slane %v1718_v51, %v12321_v13  ;;  %v1117_v61 = vcombine.high %v13326_v18, %v13326_v18  ;;  %v403_v43 = vld [vmem:[%s12314_s24 + $0x80] sm:$0xff] }
  0xb8   : > { %11542 = vrot.lane.b32.xlu1 %v11541_v52, %s12223_s28  ;;  %v3697_v40 = vrot.slane %v3690_v34, %v12321_v13  ;;  %v471_v14 = vadd.f32 %v13259_v31, %v436_v50  ;;  %v472_v9 = vadd.f32 %v13259_v31, %v437_v12  ;;  %v1303_v58 = vrot.slane %v1301_v11, 2 }
  0xb9   : > { %11537 = vrot.lane.b32.xlu0 %v11536_v17, %s12222_s27  ;;  %v3357_v59 = vcombine.low %v3349_v62, %v3356_v28  ;;  %v13473_v32 = vcombine.low %v13360_v8, %v13462_v54  ;;  %v1304_v39 = vrot.slane %v1117_v61, 7  ;;  %v11020_v22 = vcombine.high %v13136_v4, %v13289_v42  ;;  %v4343_v28 = vld [vmem:[%s19345_s3] sm:$0xff] }
  0xba   : > { %v3698_v0 = vcombine.low %v3697_v40, %v13342_v44  ;;  %v538_v55 = vrot.slane %v471_v14, 7  ;;  %v539_v48 = vrot.slane %v472_v9, 7  ;;  %v2157_v17 = vcombine.low %v13380_v7, %v13386_v60  ;;  %v4344_v60 = vld [vmem:[%s19345_s3 + $0x8] sm:$0xff] }
  0xbb   : > { %19662 = vst [vmem:[#allocation46_spill] sm:$0xff] %v13473_v32  ;;  %v11546_v27 = vpack.i.bf16 %v3357_v59, %v3340_v38  ;;  %v13481_v11 = vsel %vm12642_vm7, %v1303_v58, %v1304_v39  ;;  %v2650_v8 = vcombine.low %v13326_v18, %v1117_v61  ;;  %v13496_v7 = vmul.f32 %v13456_v10, %v403_v43 }
  0xbc   : > { %v11551_v56 = vpack.i.bf16 %v13473_v32, %v3698_v0  ;;  %v540_v62 = vsel %vm514_vm0, %v538_v55, %v539_v48  ;;  %v597_v51 = vsel %vm514_vm0, 0.0, %v538_v55  ;;  %v2159_v52 = vcombine.low %v1302_v2, %v13481_v11  ;;  %4447 = vmatpush1.msra.mxu0 %v4344_v60 }
  0xbd   : > { %11547 = vrot.lane.b32.xlu0 %v11546_v27, %s12228_s14  ;;  %v613_v4 = vsel %vm604_vm1, %v540_v62, 0.0  ;;  %v912_v42 = vcombine.high %v597_v51, %v597_v51  ;;  %v13493_v34 = vrot.slane %v597_v51, %v12321_v13  ;;  %v13509_v38 = vrot.slane %v11020_v22, %v12321_v13  ;;  %4448 = vmatprep.subr.mxu0 %v19646_v36 }
  0xbe   : > { %11552 = vrot.lane.b32.xlu1 %v11551_v56, %s12224_s29  ;;  %v929_v50 = vcombine.high %v613_v4, %v613_v4  ;;  %v13503_v2 = vrot.slane %v613_v4, %v12321_v13  ;;  %v13506_v12 = vrot.slane %v2159_v52, %v12321_v13  ;;  %v13519_v9 = vrot.slane %v2650_v8, %v12321_v13 }
  0xbf   : > { %19663 = vst [vmem:[#allocation47_spill] sm:$0xff] %v13509_v38  ;;  %v926_v61 = vrot.slane %v912_v42, %v12321_v13  ;;  %v927_v40 = vcombine.high %v13493_v34, %v13493_v34  ;;  %v11010_v14 = vrot.slane %v13493_v34, 9  ;;  %4449 = vmatpush1.msra.mxu0 %v4343_v28  ;;  %v2648_v45 = vcombine.low %v13509_v38, %v13412_v16 }
  0xc0   : > { %19664 = vst [vmem:[#allocation48_spill] sm:$0xff] %v13519_v9  ;;  %v13522_v58 = vrot.slane %v929_v50, %v12321_v13  ;;  %v944_v59 = vcombine.high %v13503_v2, %v13503_v2  ;;  %v1317_v39 = vrot.slane %v13503_v2, 7  ;;  %v2174_v0 = vcombine.low %v13395_v37, %v13506_v12  ;;  %4478 = vmatprep.subr.mxu0 %v19646_v36 }
  0xc1   : > { %v928_v55 = vcombine.high %v926_v61, %v926_v61  ;;  %v1734_v48 = vcombine.low %v13493_v34, %v927_v40  ;;  %v1308_v22 = vrot.slane %v927_v40, 7  ;;  %v1311_v43 = vrot.slane %v926_v61, 7 }
  0xc2   : > { %v1751_v27 = vcombine.low %v13503_v2, %v944_v59  ;;  %v1319_v8 = vrot.slane %v1317_v39, 2  ;;  %v1320_v56 = vrot.slane %v944_v59, 7  ;;  %v1323_v62 = vrot.slane %v13522_v58, 7 }
  0xc3   : > { %v1735_v51 = vcombine.low %v926_v61, %v928_v55  ;;  %v13535_v52 = vrot.slane %v1734_v48, %v12321_v13  ;;  %v1309_v37 = vsel %vm12642_vm7, %v11010_v14, %v1308_v22  ;;  %v1310_v4 = vrot.slane %v1308_v22, 2 }
  0xc4   : > { %v13540_v42 = vrot.slane %v1751_v27, %v12321_v13  ;;  %v1313_v60 = vrot.slane %v1311_v43, 2  ;;  %v1314_v50 = vrot.slane %v928_v55, 7  ;;  %v1321_v28 = vsel %vm12642_vm7, %v1319_v8, %v1320_v56 }
  0xc5   : > { %19665 = vst [vmem:[#allocation49_spill] sm:$0xff] %v13535_v52  ;;  %v13545_v44 = vrot.slane %v1735_v51, %v12321_v13  ;;  %v3872_v32 = vcombine.low %v13462_v54, %v13535_v52  ;;  %v1312_v48 = vsel %vm12642_vm7, %v1310_v4, %v1311_v43  ;;  %v1322_v33 = vrot.slane %v1320_v56, 2  ;;  %v4360_v43 = vld [vmem:[%s19345_s3 + $0x88] sm:$0xff]  ;;  %v4359_v56 = vld [vmem:[%s19345_s3 + $0x80] sm:$0xff] }
  0xc6   : > { %19666 = vst [vmem:[#allocation50_spill] sm:$0xff] %v13540_v42  ;;  %v1315_v14 = vsel %vm12642_vm7, %v1313_v60, %v1314_v50  ;;  %v1316_v22 = vrot.slane %v1314_v50, 2  ;;  %v2175_v27 = vcombine.low %v1309_v37, %v1312_v48  ;;  %v11566_v21 = vpack.i.bf16 %v2174_v0, %v2157_v17  ;;  %4479 = vmatpush2.msra.mxu0 %v4360_v43 }
  0xc7   : > { %19667 = vst [vmem:[#allocation51_spill] sm:$0xff] %v13545_v44  ;;  %v3873_v51 = vcombine.low %v13545_v44, %v13540_v42  ;;  %v1324_v54 = vsel %vm12642_vm7, %v1322_v33, %v1323_v62  ;;  %v2666_v50 = vcombine.low %v927_v40, %v926_v61  ;;  %v2665_v17 = vcombine.low %v13427_v6, %v13519_v9 }
  0xc8   : > { %v1318_v16 = vsel %vm12642_vm7, %v1316_v22, %v1317_v39  ;;  %v13570_v4 = vrot.slane %v2175_v27, %v12321_v13  ;;  %v2192_v60 = vcombine.low %v1321_v28, %v1324_v54  ;;  %v2667_v0 = vcombine.low %v928_v55, %v13503_v2  ;;  %4480 = vmatprep.subr.mxu0 %v19646_v36 }
  0xc9   : > { %v11556_v8 = vpack.i.bf16 %v3873_v51, %v3872_v32  ;;  %v2176_v33 = vcombine.low %v1315_v14, %v1318_v16  ;;  %v13582_v22 = vrot.slane %v2666_v50, %v12321_v13  ;;  %v2683_v61 = vcombine.low %v944_v59, %v13522_v58  ;;  %4481 = vmatpush2.msra.mxu0 %v4359_v56 }
  0xca   : > { %v13577_v52 = vrot.slane %v2192_v60, %v12321_v13  ;;  %v3986_v39 = vcombine.low %v13506_v12, %v13570_v4  ;;  %v13590_v32 = vrot.slane %v2667_v0, %v12321_v13  ;;  %v2987_v2 = vcombine.low %v13326_v18, %v13493_v34  ;;  %11178 = vmatprep.subr.mxu0 %v19646_v36 }
  0xcb   : > { %19668 = vst [vmem:[#allocation52_spill] sm:$0xff] %v13582_v22  ;;  %11557 = vrot.lane.b32.xlu0 %v11556_v8, %s12225_s30  ;;  %v13587_v6 = vrot.slane %v2176_v33, %v12321_v13  ;;  %v1118_v12 = vcombine.high %v13522_v58, %v13522_v58  ;;  %v13597_v40 = vrot.slane %v2683_v61, %v12321_v13  ;;  %v1325_v59 = vrot.slane %v1323_v62, 2 }
  0xcc   : > { %v3358_v55 = vcombine.low %v13481_v11, %v1309_v37  ;;  %v3359_v27 = vcombine.low %v1312_v48, %v1315_v14  ;;  %v2994_v51 = vrot.slane %v2987_v2, %v12321_v13  ;;  %v3375_v56 = vcombine.low %v1318_v16, %v1321_v28  ;;  %v404_v48 = vld [vmem:[%s12314_s24 + $0x88] sm:$0x3f] }
  0xcd   : > { %v3987_v8 = vcombine.low %v13587_v6, %v13577_v52  ;;  %v1326_v43 = vrot.slane %v1118_v12, 7  ;;  %v13606_v60 = vcombine.low %v13590_v32, %v13597_v40  ;;  %v11027_v37 = vcombine.high %v13326_v18, %v13493_v34  ;;  %v405_v34 = vld [vmem:[%s12314_s24 + $0x90] sm:$0xff] }
  0xce   : > { %v3366_v62 = vrot.slane %v3358_v55, %v12321_v13  ;;  %v3373_v11 = vrot.slane %v3359_v27, %v12321_v13  ;;  %v11571_v50 = vpack.i.bf16 %v2665_v17, %v2648_v45  ;;  %v2995_v28 = vcombine.low %v2994_v51, %v13582_v22 }
  0xcf   : > { %19669 = vst [vmem:[#allocation53_spill] sm:$0xff] %v13606_v60  ;;  %v11561_v14 = vpack.i.bf16 %v3987_v8, %v3986_v39  ;;  %11567 = vrot.lane.b32.xlu0 %v11566_v21, %s12226_s12  ;;  %v13617_v16 = vsel %vm12642_vm7, %v1325_v59, %v1326_v43  ;;  %v3383_v0 = vrot.slane %v3375_v56, %v12321_v13  ;;  %v406_v39 = vld [vmem:[%s12314_s24 + $0x98] sm:$0x3f]  ;;  %v407_v59 = vld [vmem:[%s12314_s24 + $0xa0] sm:$0xff] }
  0xd0   : > { %v3376_v33 = vcombine.low %v1324_v54, %v13617_v16  ;;  %v3706_v61 = vrot.slane %v11027_v37, %v12321_v13  ;;  %v3708_v18 = vcombine.low %v13522_v58, %v1118_v12  ;;  %v11576_v21 = vpack.i.bf16 %v13606_v60, %v2995_v28 }
  0xd1   : > { %11562 = vrot.lane.b32.xlu1 %v11561_v14, %s12227_s13  ;;  %v3374_v45 = vcombine.low %v3366_v62, %v3373_v11  ;;  %v439_v17 = vmul.f32 %v13456_v10, %v404_v48  ;;  %v473_v2 = vadd.f32 %v13259_v31, %v13496_v7  ;;  %v440_v43 = vmul.f32 %v13456_v10, %v405_v34 }
  0xd2   : > { %v3390_v54 = vrot.slane %v3376_v33, %v12321_v13  ;;  %v3707_v55 = vcombine.low %v3706_v61, %v13545_v44  ;;  %v3715_v27 = vrot.slane %v3708_v18, %v12321_v13  ;;  %v441_v56 = vmul.f32 %v13456_v10, %v406_v39 }
  0xd3   : > { %11577 = vrot.lane.b32.xlu0 %v11576_v21, %s12223_s28  ;;  %v474_v8 = vadd.f32 %v13259_v31, %v439_v17  ;;  %v541_v51 = vrot.slane %v473_v2, 7  ;;  %v442_v37 = vmul.f32 %v13456_v10, %v407_v59  ;;  %v13647_v28 = vadd.f32 %v13259_v31, %v440_v43 }
  0xd4   : > { %v3391_v7 = vcombine.low %v3383_v0, %v3390_v54  ;;  %v3716_v62 = vcombine.low %v13540_v42, %v3715_v27  ;;  %v13650_v33 = vadd.f32 %v13259_v31, %v441_v56 }
  0xd5   : > { %11572 = vrot.lane.b32.xlu1 %v11571_v50, %s12222_s27  ;;  %v542_v48 = vrot.slane %v474_v8, 7  ;;  %v598_v14 = vsel %vm514_vm0, 0.0, %v541_v51  ;;  %v13658_v50 = vadd.f32 %v13259_v31, %v442_v37 }
  0xd6   : > { %v11581_v61 = vpack.i.bf16 %v3391_v7, %v3374_v45  ;;  %v11586_v0 = vpack.i.bf16 %v3716_v62, %v3707_v55  ;;  %v945_v18 = vcombine.high %v598_v14, %v598_v14  ;;  %v13653_v34 = vrot.slane %v598_v14, %v12321_v13 }
  0xd7   : > { %v543_v39 = vsel %vm514_vm0, %v541_v51, %v542_v48 }
  0xd8   : > { %11587 = vrot.lane.b32.xlu0 %v11586_v0, %s12224_s29  ;;  %v614_v2 = vsel %vm604_vm1, %v543_v39, 0.0  ;;  %v13664_v45 = vrot.slane %v945_v18, %v12321_v13  ;;  %v13668_v59 = vcombine.high %v13653_v34, %v13653_v34  ;;  %v1752_v54 = vcombine.low %v13522_v58, %v13653_v34 }
  0xd9   : > { %11582 = vrot.lane.b32.xlu1 %v11581_v61, %s12228_s14  ;;  %v962_v31 = vcombine.high %v614_v2, %v614_v2  ;;  %v969_v55 = vrot.slane %v614_v2, %v12321_v13  ;;  %v11011_v27 = vrot.slane %v13653_v34, 9  ;;  %v11021_v8 = vcombine.high %v13522_v58, %v13653_v34 }
  0xda   : > { %v961_v51 = vcombine.high %v13664_v45, %v13664_v45  ;;  %v13680_v43 = vrot.slane %v1752_v54, %v12321_v13  ;;  %v1768_v56 = vcombine.low %v13668_v59, %v13664_v45  ;;  %v1330_v7 = vrot.slane %v13668_v59, 7 }
  0xdb   : > { %v13686_v62 = vrot.slane %v962_v31, %v12321_v13  ;;  %v977_v37 = vcombine.high %v969_v55, %v969_v55  ;;  %v1333_v48 = vrot.slane %v13664_v45, 7  ;;  %v1339_v14 = vrot.slane %v969_v55, 7 }
  0xdc   : > { %19670 = vst [vmem:[#allocation54_spill] sm:$0xff] %v13680_v43  ;;  %v1769_v61 = vcombine.low %v961_v51, %v969_v55  ;;  %v13690_v58 = vrot.slane %v1768_v56, %v12321_v13  ;;  %v1331_v18 = vsel %vm12642_vm7, %v11011_v27, %v1330_v7  ;;  %v1332_v54 = vrot.slane %v1330_v7, 2 }
  0xdd   : > { %v1785_v39 = vcombine.low %v977_v37, %v13686_v62  ;;  %v13699_v2 = vcombine.high %v13686_v62, %v13686_v62  ;;  %v1335_v31 = vrot.slane %v1333_v48, 2  ;;  %v1336_v11 = vrot.slane %v961_v51, 7 }
  0xde   : > { %v1783_v17 = vrot.slane %v1769_v61, %v12321_v13  ;;  %v3874_v56 = vcombine.low %v13680_v43, %v13690_v58  ;;  %v1341_v12 = vrot.slane %v1339_v14, 2  ;;  %v1334_v27 = vsel %vm12642_vm7, %v1332_v54, %v1333_v48 }
  0xdf   : > { %v13705_v0 = vrot.slane %v1785_v39, %v12321_v13  ;;  %v1342_v21 = vrot.slane %v977_v37, 7  ;;  %v1345_v36 = vrot.slane %v13686_v62, 7  ;;  %v1337_v7 = vsel %vm12642_vm7, %v1335_v31, %v1336_v11 }
  0xe0   : > { %v1338_v42 = vrot.slane %v1336_v11, 2  ;;  %v1348_v61 = vrot.slane %v13699_v2, 7  ;;  %v2193_v44 = vcombine.low %v13617_v16, %v1331_v18  ;;  %v2209_v38 = vcombine.low %v1334_v27, %v1337_v7 }
  0xe1   : > { %19671 = vst [vmem:[#allocation55_spill] sm:$0xff] %v13705_v0  ;;  %v3875_v43 = vcombine.low %v1783_v17, %v13705_v0  ;;  %v1343_v39 = vsel %vm12642_vm7, %v1341_v12, %v1342_v21  ;;  %v1344_v60 = vrot.slane %v1342_v21, 2  ;;  %v1347_v9 = vrot.slane %v1345_v36, 2 }
  0xe2   : > { %v1340_v48 = vsel %vm12642_vm7, %v1338_v42, %v1339_v14  ;;  %v2207_v54 = vrot.slane %v2193_v44, %v12321_v13  ;;  %v13721_v31 = vrot.slane %v11021_v8, %v12321_v13  ;;  %v13728_v12 = vrot.slane %v2209_v38, %v12321_v13 }
  0xe3   : > { %v11591_v11 = vpack.i.bf16 %v3875_v43, %v3874_v56  ;;  %v1346_v16 = vsel %vm12642_vm7, %v1344_v60, %v1345_v36  ;;  %v1349_v1 = vsel %vm12642_vm7, %v1347_v9, %v1348_v61  ;;  %v2210_v46 = vcombine.low %v1340_v48, %v1343_v39  ;;  %v13751_v61 = vpop.permute.xlu0 %11357 }
  0xe4   : > { %19672 = vst [vmem:[#allocation56_spill] sm:$0xff] %v13721_v31  ;;  %v2226_v21 = vcombine.low %v1346_v16, %v1349_v1  ;;  %v2208_v42 = vcombine.low %v13577_v52, %v2207_v54  ;;  %v2699_v44 = vcombine.low %v13597_v40, %v13721_v31  ;;  %v19673_v36 = vrot.slane %v13647_v28, 7 }
  0xe5   : > { %11592 = vrot.lane.b32.xlu1 %v11591_v11, %s12225_s30  ;;  %v13735_v8 = vrot.slane %v2210_v46, %v12321_v13  ;;  %v2700_v9 = vcombine.low %v13664_v45, %v961_v51  ;;  %v2701_v43 = vcombine.low %v969_v55, %v977_v37  ;;  %v3988_v52 = vcombine.low %v2207_v54, %v13728_v12 }
  0xe6   : > { %v599_v60 = vsel %vm514_vm0, 0.0, %v19673_v36  ;;  %v13742_v38 = vrot.slane %v2226_v21, %v12321_v13  ;;  %v19674_v40 = vcombine.low %v13570_v4, %v13587_v6  ;;  %v19675_v46 = vcombine.low %v13582_v22, %v13590_v32 }
  0xe7   : > { %v985_v11 = vrot.slane %v599_v60, %v12321_v13  ;;  %v13755_v45 = vrot.slane %v2700_v9, %v12321_v13  ;;  %v13758_v55 = vrot.slane %v2701_v43, %v12321_v13  ;;  %v2997_v51 = vcombine.low %v13653_v34, %v13668_v59 }
  0xe8   : > { %v11601_v14 = vpack.i.bf16 %v2208_v42, %v19674_v40  ;;  %v11606_v56 = vpack.i.bf16 %v2699_v44, %v19675_v46  ;;  %v3989_v4 = vcombine.low %v13735_v8, %v13742_v38  ;;  %v3392_v6 = vcombine.low %v1331_v18, %v1334_v27 }
  0xe9   : > { %19676 = vst [vmem:[#allocation57_spill] sm:$0xff] %v13755_v45  ;;  %19677 = vst [vmem:[#allocation58_spill] sm:$0xff] %v13758_v55  ;;  %v3393_v37 = vcombine.low %v1337_v7, %v1340_v48  ;;  %v3409_v32 = vcombine.low %v1343_v39, %v1346_v16  ;;  %v3004_v54 = vrot.slane %v2997_v51, %v12321_v13  ;;  %v11012_v44 = vrot.slane %v985_v11, 9  ;;  %v13778_v48 = vpop.permute.xlu1 %11362  ;;  %v13788_v51 = vpop.permute.xlu0 %11367 }
  0xea   : > { %11602 = vrot.lane.b32.xlu1 %v11601_v14, %s12226_s12  ;;  %v3006_v21 = vcombine.low %v13686_v62, %v985_v11  ;;  %v13767_v42 = vcombine.high %v985_v11, %v985_v11  ;;  %v11596_v36 = vpack.i.bf16 %v3989_v4, %v3988_v52  ;;  %v3400_v9 = vrot.slane %v3392_v6, %v12321_v13 }
  0xeb   : > { %v3407_v34 = vrot.slane %v3393_v37, %v12321_v13  ;;  %v3417_v59 = vrot.slane %v3409_v32, %v12321_v13  ;;  %v3005_v18 = vcombine.low %v3004_v54, %v13755_v45  ;;  %v13776_v39 = vcombine.low %v13690_v58, %v1783_v17 }
  0xec   : > { %v3013_v27 = vrot.slane %v3006_v21, %v12321_v13  ;;  %v1352_v7 = vrot.slane %v13767_v42, 7  ;;  %11597 = vrot.lane.b32.xlu0 %v11596_v36, %s12227_s13  ;;  %v11028_v43 = vcombine.high %v13686_v62, %v985_v11  ;;  %v19679_v52 = vrot.slane %v13650_v33, 7 }
  0xed   : > { %19678 = vst [vmem:[#allocation59_spill] sm:$0xff] %v13776_v39  ;;  %v3408_v16 = vcombine.low %v3400_v9, %v3407_v34  ;;  %v19680_v40 = vrot.slane %v13647_v28, 7  ;;  %v19411_v46 = vrot.slane %v13658_v50, 7  ;;  %v978_v6 = vcombine.high %v599_v60, %v599_v60 }
  0xee   : > { %v3014_v17 = vcombine.low %v13758_v55, %v3013_v27  ;;  %v13793_v58 = vsel %vm12642_vm7, %v11012_v44, %v1352_v7  ;;  %v3724_v33 = vrot.slane %v11028_v43, %v12321_v13  ;;  %v1786_v43 = vcombine.low %v985_v11, %v13767_v42 }
  0xef   : > { %v546_v14 = vsel %vm514_vm0, %v19680_v40, %v19679_v52  ;;  %v3410_v37 = vcombine.low %v1349_v1, %v13793_v58  ;;  %v600_v28 = vsel %vm514_vm0, 0.0, %v19411_v46  ;;  %v13802_v21 = vrot.slane %v978_v6, %v12321_v13  ;;  %v13829_v52 = vpop.permute.xlu1 %11372  ;;  %v13838_v6 = vpop.permute.xlu0 %11382 }
  0xf0   : > { %v615_v4 = vsel %vm604_vm1, %v546_v14, 0.0  ;;  %v11611_v54 = vpack.i.bf16 %v3014_v17, %v3005_v18  ;;  %v1011_v44 = vcombine.high %v600_v28, %v600_v28  ;;  %11607 = vrot.lane.b32.xlu0 %v11606_v56, %s12222_s27  ;;  %v3725_v1 = vcombine.low %v13705_v0, %v3724_v33  ;;  %19681 = vst [vmem:[#allocation60_spill] sm:$0xff] %v13838_v6 }
  0xf1   : > { %v995_v32 = vcombine.high %v615_v4, %v615_v4  ;;  %v13805_v36 = vrot.slane %v615_v4, %v12321_v13  ;;  %v3424_v60 = vrot.slane %v3410_v37, %v12321_v13  ;;  %v13814_v34 = vrot.slane %v600_v28, %v12321_v13 }
  0xf2   : > { %11612 = vrot.lane.b32.xlu1 %v11611_v54, %s12223_s28  ;;  %v13819_v18 = vcombine.high %v13802_v21, %v13802_v21  ;;  %v13826_v56 = vrot.slane %v1011_v44, %v12321_v13  ;;  %v11621_v14 = vpack.i.bf16 %v3725_v1, %v13776_v39  ;;  %v13841_v37 = vrot.slane %v1786_v43, %v12321_v13 }
  0xf3   : > { %v13811_v9 = vrot.slane %v995_v32, %v12321_v13  ;;  %v13823_v27 = vcombine.high %v13805_v36, %v13805_v36  ;;  %v3425_v40 = vcombine.low %v3417_v59, %v3424_v60  ;;  %v13834_v17 = vcombine.high %v13814_v34, %v13814_v34  ;;  %v13881_v46 = vpop.permute.xlu1 %11377  ;;  %v13885_v22 = vpop.permute.xlu0 %11392 }
  0xf4   : > { %19682 = vst [vmem:[#allocation61_spill] sm:$0xff] %v13841_v37  ;;  %v1802_v11 = vcombine.low %v13802_v21, %v13819_v18  ;;  %v1354_v44 = vrot.slane %v1352_v7, 2  ;;  %v1358_v7 = vrot.slane %v13819_v18, 7  ;;  %19685 = vst [vmem:[#allocation64_spill] sm:$0xff] %v13881_v46 }
  0xf5   : > { %v1819_v4 = vcombine.low %v13811_v9, %v13814_v34  ;;  %v1803_v59 = vcombine.low %v13805_v36, %v13823_v27  ;;  %v13849_v33 = vcombine.high %v13811_v9, %v13811_v9  ;;  %v11616_v28 = vpack.i.bf16 %v3425_v40, %v3408_v16  ;;  %19686 = vst [vmem:[#allocation65_spill] sm:$0xff] %v13885_v22 }
  0xf6   : > { %v1820_v32 = vcombine.low %v13834_v17, %v13826_v56  ;;  %11622 = vrot.lane.b32.xlu1 %v11621_v14, %s12224_s29  ;;  %v13858_v60 = vrot.slane %v1802_v11, %v12321_v13  ;;  %v1355_v16 = vrot.slane %v13802_v21, 7  ;;  %v1361_v14 = vrot.slane %v13805_v36, 7 }
  0xf7   : > { %v13854_v54 = vrot.slane %v1819_v4, %v12321_v13  ;;  %v13861_v1 = vrot.slane %v1803_v59, %v12321_v13  ;;  %11617 = vrot.lane.b32.xlu0 %v11616_v28, %s12228_s14  ;;  %v1364_v4 = vrot.slane %v13823_v27, 7  ;;  %v1360_v0 = vrot.slane %v1358_v7, 2  ;;  %v13922_v49 = vpop.permute.xlu1 %11387 }
  0xf8   : > { %v13868_v40 = vrot.slane %v1820_v32, %v12321_v13  ;;  %v3876_v11 = vcombine.low %v13841_v37, %v13858_v60  ;;  %v13879_v43 = vsel %vm12642_vm7, %v1354_v44, %v1355_v16  ;;  %v1357_v28 = vrot.slane %v1355_v16, 2 }
  0xf9   : > { %19683 = vst [vmem:[#allocation62_spill] sm:$0xff] %v13854_v54  ;;  %v3877_v59 = vcombine.low %v13861_v1, %v13854_v54  ;;  %v1363_v39 = vrot.slane %v1361_v14, 2  ;;  %v1366_v31 = vrot.slane %v1364_v4, 2  ;;  %v1367_v25 = vrot.slane %v13811_v9, 7 }
  0xfa   : > { %19684 = vst [vmem:[#allocation63_spill] sm:$0xff] %v13868_v40  ;;  %v13889_v37 = vsel %vm12642_vm7, %v1357_v28, %v1358_v7  ;;  %v1370_v44 = vrot.slane %v13849_v33, 7  ;;  %v13895_v16 = vsel %vm12642_vm7, %v1360_v0, %v1361_v14  ;;  %v11013_v54 = vrot.slane %v13814_v34, 9 }
  0xfb   : > { %v11626_v63 = vpack.i.bf16 %v3877_v59, %v3876_v11  ;;  %v1365_v32 = vsel %vm12642_vm7, %v1363_v39, %v1364_v4  ;;  %v1374_v35 = vrot.slane %v13834_v17, 7  ;;  %v1368_v7 = vsel %vm12642_vm7, %v1366_v31, %v1367_v25 }
  0xfc   : > { %v1369_v11 = vrot.slane %v1367_v25, 2  ;;  %v2227_v59 = vcombine.low %v13793_v58, %v13879_v43  ;;  %v2243_v0 = vcombine.low %v13889_v37, %v13895_v16  ;;  %v2244_v39 = vcombine.low %v1365_v32, %v1368_v7 }
  0xfd   : > { %11627 = vrot.lane.b32.xlu0 %v11626_v63, %s12225_s30  ;;  %v13910_v14 = vsel %vm12642_vm7, %v11013_v54, %v1374_v35  ;;  %v2225_v4 = vcombine.low %v13728_v12, %v13735_v8  ;;  %v2717_v12 = vcombine.low %v13686_v62, %v13699_v2  ;;  %v2718_v8 = vcombine.low %v13767_v42, %v13802_v21 }
  0xfe   : > { %v1371_v31 = vsel %vm12642_vm7, %v1369_v11, %v1370_v44  ;;  %v2241_v25 = vrot.slane %v2227_v59, %v12321_v13  ;;  %v13919_v58 = vrot.slane %v2243_v0, %v12321_v13  ;;  %v13925_v54 = vrot.slane %v2244_v39, %v12321_v13  ;;  %v13932_v44 = vpop.permute.xlu0 %11397 }
  0xff   : > { %v2260_v53 = vcombine.low %v1371_v31, %v13910_v14  ;;  %v2734_v0 = vcombine.low %v13819_v18, %v13805_v36  ;;  %v2735_v39 = vcombine.low %v13823_v27, %v13811_v9  ;;  %v13944_v62 = vrot.slane %v2717_v12, %v12321_v13 }
 0x100   : > { %v3990_v11 = vcombine.low %v2241_v25, %v13919_v58  ;;  %v2242_v59 = vcombine.low %v13742_v38, %v2241_v25  ;;  %v2732_v2 = vrot.slane %v2718_v8, %v12321_v13  ;;  %v3016_v42 = vcombine.low %v13814_v34, %v13834_v17 }
 0x101   : > { %v13941_v63 = vrot.slane %v2260_v53, %v12321_v13  ;;  %19687 = vst [vmem:[#allocation66_spill] sm:$0xff] %v13944_v62  ;;  %v2716_v38 = vcombine.low %v13755_v45, %v13758_v55  ;;  %v13952_v36 = vrot.slane %v2734_v0, %v12321_v13  ;;  %v13955_v18 = vrot.slane %v2735_v39, %v12321_v13  ;;  %v13968_v0 = vpop.permute.xlu1 %11407 }
 0x102   : > { %v11636_v21 = vpack.i.bf16 %v2242_v59, %v2225_v4  ;;  %v2733_v27 = vcombine.low %v13944_v62, %v2732_v2  ;;  %v3023_v25 = vrot.slane %v3016_v42, %v12321_v13  ;;  %v1376_v59 = vrot.slane %v1374_v35, 2 }
 0x103   : > { %19688 = vst [vmem:[#allocation67_spill] sm:$0xff] %v13955_v18  ;;  %v3991_v53 = vcombine.low %v13925_v54, %v13941_v63  ;;  %v13964_v17 = vcombine.low %v2732_v2, %v13952_v36  ;;  %v1377_v12 = vrot.slane %v13826_v56, 7  ;;  %v3426_v4 = vcombine.low %v13879_v43, %v13889_v37 }
 0x104   : > { %11637 = vrot.lane.b32.xlu0 %v11636_v21, %s12226_s12  ;;  %v3024_v28 = vcombine.low %v13955_v18, %v3023_v25  ;;  %v13973_v21 = vpop.permute.xlu0 %11402  ;;  %v11641_v2 = vpack.i.bf16 %v2733_v27, %v2716_v38  ;;  %v3427_v8 = vcombine.low %v13895_v16, %v1365_v32  ;;  %v3443_v35 = vcombine.low %v1368_v7, %v1371_v31  ;;  %v408_v27 = vld [vmem:[%s12314_s24 + $0xa8] sm:$0x3f]  ;;  %v409_v25 = vld [vmem:[%s12314_s24 + $0xb0] sm:$0xff] }
 0x105   : > { %19689 = vst [vmem:[#allocation68_spill] sm:$0xff] %v13964_v17  ;;  %v11631_v39 = vpack.i.bf16 %v3991_v53, %v3990_v11  ;;  %v1378_v11 = vsel %vm12642_vm7, %v1376_v59, %v1377_v12  ;;  %v13984_v53 = vcombine.low %v13858_v60, %v13861_v1  ;;  %v3726_v38 = vcombine.low %v13811_v9, %v13849_v33 }
 0x106   : > { %v11646_v55 = vpack.i.bf16 %v3024_v28, %v13964_v17  ;;  %v3434_v37 = vrot.slane %v3426_v4, %v12321_v13  ;;  %v3441_v43 = vrot.slane %v3427_v8, %v12321_v13  ;;  %v3444_v32 = vcombine.low %v13910_v14, %v1378_v11  ;;  %v14002_v14 = vpop.permute.xlu1 %11412 }
 0x107   : > { %11632 = vrot.lane.b32.xlu1 %v11631_v39, %s12227_s13  ;;  %19690 = vst [vmem:[#allocation69_spill] sm:$0xff] %v13984_v53  ;;  %v3451_v16 = vrot.slane %v3443_v35, %v12321_v13  ;;  %v3733_v7 = vrot.slane %v3726_v38, %v12321_v13  ;;  %v443_v4 = vmul.f32 %v13456_v10, %v408_v27  ;;  %v1379_v35 = vrot.slane %v1377_v12, 2  ;;  %v14014_v27 = vld [vmem:[%s19344_s2] ss:$0 sm:$0xff] }
 0x108   : > { %11647 = vrot.lane.b32.xlu0 %v11646_v55, %s12223_s28  ;;  %v3442_v31 = vcombine.low %v3434_v37, %v3441_v43  ;;  %v3458_v28 = vrot.slane %v3444_v32, %v12321_v13  ;;  %v444_v8 = vmul.f32 %v13456_v10, %v409_v25  ;;  %v1027_v39 = vcombine.high %v13826_v56, %v13826_v56  ;;  %v14009_v38 = vpop.permute.xlu0 %11417 }
 0x109   : > { %v3734_v55 = vcombine.low %v3733_v7, %v13868_v40  ;;  %v478_v10 = vadd.f32 %v14014_v27, %v443_v4  ;;  %v11022_v25 = vcombine.high %v13811_v9, %v13814_v34 }
 0x10a   : > { %v3459_v37 = vcombine.low %v3451_v16, %v3458_v28  ;;  %v1380_v32 = vrot.slane %v1027_v39, 7 }
 0x10b   : > { %11642 = vrot.lane.b32.xlu1 %v11641_v2, %s12222_s27  ;;  %v14018_v2 = vadd.f32 %v14014_v27, %v444_v8  ;;  %v11656_v43 = vpack.i.bf16 %v3734_v55, %v13984_v53  ;;  %v548_v28 = vrot.slane %v478_v10, 7  ;;  %v2259_v55 = vcombine.low %v13919_v58, %v13925_v54 }
 0x10c   : > { %v11651_v16 = vpack.i.bf16 %v3459_v37, %v3442_v31  ;;  %v14029_v4 = vsel %vm12642_vm7, %v1379_v35, %v1380_v32  ;;  %v1382_v8 = vrot.slane %v1380_v32, 2  ;;  %v19691_v31 = vrot.slane %v13658_v50, 7  ;;  %v14044_v32 = vpop.permute.xlu1 %11422  ;;  %v14052_v34 = vpop.permute.xlu0 %11427 }
 0x10d   : > { %v19424_v33 = vrot.slane %v14018_v2, 7  ;;  %11657 = vrot.lane.b32.xlu0 %v11656_v43, %s12224_s29  ;;  %v2261_v35 = vcombine.low %v1378_v11, %v14029_v4  ;;  %v2752_v43 = vcombine.low %v13826_v56, %v1027_v39  ;;  %v2750_v50 = vcombine.low %v13952_v36, %v13955_v18 }
 0x10e   : > { %v549_v37 = vsel %vm514_vm0, %v19691_v31, %v548_v28  ;;  %v14061_v56 = vrot.slane %v11022_v25, %v12321_v13 }
 0x10f   : > { %11652 = vrot.lane.b32.xlu1 %v11651_v16, %s12228_s14  ;;  %v601_v10 = vsel %vm514_vm0, 0.0, %v19424_v33  ;;  %v616_v58 = vsel %vm604_vm1, %v549_v37, 0.0  ;;  %v14058_v11 = vrot.slane %v2261_v35, %v12321_v13 }
 0x110   : > { %v1044_v54 = vcombine.high %v601_v10, %v601_v10  ;;  %v14048_v9 = vrot.slane %v601_v10, %v12321_v13  ;;  %v1028_v16 = vcombine.high %v616_v58, %v616_v58  ;;  %v14055_v28 = vrot.slane %v616_v58, %v12321_v13  ;;  %19692 = vst [vmem:[#allocation70_spill] sm:$0xff] %v14061_v56  ;;  %v14104_v42 = vpop.permute.xlu1 %11432  ;;  %v14112_v18 = vpop.permute.xlu0 %11437 }
 0x111   : > { %v14072_v10 = vrot.slane %v2752_v43, %v12321_v13 }
 0x112   : > { %v14064_v31 = vrot.slane %v1044_v54, %v12321_v13  ;;  %v14068_v37 = vcombine.high %v14048_v9, %v14048_v9  ;;  %v11014_v36 = vrot.slane %v14048_v9, 9  ;;  %v14075_v58 = vrot.slane %v1028_v16, %v12321_v13 }
 0x113   : > { %v14079_v35 = vcombine.high %v14055_v28, %v14055_v28  ;;  %v1836_v25 = vcombine.low %v1027_v39, %v14055_v28  ;;  %v1383_v54 = vrot.slane %v14055_v28, 7 }
 0x114   : > { %v14085_v12 = vcombine.high %v14064_v31, %v14064_v31  ;;  %v1853_v60 = vcombine.low %v14048_v9, %v14068_v37  ;;  %v1396_v43 = vrot.slane %v14068_v37, 7  ;;  %v14098_v39 = vcombine.high %v14075_v58, %v14075_v58 }
 0x115   : > { %v1837_v7 = vcombine.low %v14079_v35, %v14075_v58  ;;  %v14094_v59 = vrot.slane %v1836_v25, %v12321_v13  ;;  %v14102_v1 = vsel %vm12642_vm7, %v1382_v8, %v1383_v54  ;;  %v1385_v53 = vrot.slane %v1383_v54, 2 }
 0x116   : > { %v1854_v33 = vcombine.low %v14064_v31, %v14085_v12  ;;  %v14109_v16 = vrot.slane %v1853_v60, %v12321_v13  ;;  %v1386_v25 = vrot.slane %v14079_v35, 7  ;;  %v1389_v62 = vrot.slane %v14075_v58, 7 }
 0x117   : > { %v14115_v17 = vrot.slane %v1837_v7, %v12321_v13  ;;  %v3878_v8 = vcombine.low %v13868_v40, %v14094_v59  ;;  %v1392_v45 = vrot.slane %v14098_v39, 7  ;;  %v14130_v24 = vsel %vm12642_vm7, %v11014_v36, %v1396_v43 }
 0x118   : > { %19693 = vst [vmem:[#allocation71_spill] sm:$0xff] %v14109_v16  ;;  %v14122_v5 = vrot.slane %v1854_v33, %v12321_v13  ;;  %v14126_v60 = vsel %vm12642_vm7, %v1385_v53, %v1386_v25  ;;  %v1388_v54 = vrot.slane %v1386_v25, 2  ;;  %v1391_v40 = vrot.slane %v1389_v62, 2 }
 0x119   : > { %v3879_v7 = vcombine.low %v14115_v17, %v14109_v16  ;;  %v1398_v3 = vrot.slane %v1396_v43, 2  ;;  %v2277_v6 = vcombine.low %v14102_v1, %v14126_v60  ;;  %v2276_v25 = vcombine.low %v13941_v63, %v14058_v11 }
 0x11a   : > { %19694 = vst [vmem:[#allocation72_spill] sm:$0xff] %v14122_v5  ;;  %v1390_v53 = vsel %vm12642_vm7, %v1388_v54, %v1389_v62  ;;  %v2767_v36 = vcombine.low %v14061_v56, %v14072_v10  ;;  %v14146_v15 = vsel %vm12642_vm7, %v1391_v40, %v1392_v45  ;;  %v19695_v43 = vrot.slane %v14064_v31, 7  ;;  %v14157_v62 = vpop.permute.xlu1 %11447  ;;  %v14163_v40 = vpop.permute.xlu0 %11442 }
 0x11b   : > { %v11661_v46 = vpack.i.bf16 %v3879_v7, %v3878_v8  ;;  %v14155_v33 = vrot.slane %v2277_v6, %v12321_v13  ;;  %19696 = vst [vmem:[#allocation73_spill] sm:$0xff] %v14157_v62  ;;  %v2278_v63 = vcombine.low %v1390_v53, %v14146_v15  ;;  %v11671_v54 = vpack.i.bf16 %v2276_v25, %v2259_v55  ;;  %v19697_v6 = vld [vmem:[#allocation5_spill] sm:$0xff] }
 0x11c   : > { %v14152_v22 = vsel %vm12642_vm7, %v1398_v3, %v19695_v43  ;;  %v11676_v7 = vpack.i.bf16 %v2767_v36, %v2750_v50  ;;  %v19698_v43 = vld [vmem:[#allocation3_spill] sm:$0xff]  ;;  %v1497_v56 = vcombine.low %v12331_v19, %v12351_v29  ;;  %v1513_v25 = vcombine.low %v12334_v20, %v12355_v30  ;;  %v19701_v30 = vld [vmem:[#allocation14_spill] sm:$0xff] }
 0x11d   : > { %v2294_v8 = vcombine.low %v14130_v24, %v14152_v22  ;;  %11662 = vrot.lane.b32.xlu1 %v11661_v46, %s12225_s30  ;;  %v3992_v3 = vcombine.low %v14058_v11, %v14155_v33  ;;  %v1496_v16 = vcombine.low %v19698_v43, %v19697_v6  ;;  %v14173_v62 = vrot.slane %v2278_v63, %v12321_v13 }
 0x11e   : > { %v1514_v46 = vcombine.low %v12339_v23, %v12377_v47  ;;  %v14184_v11 = vrot.slane %v1497_v56, %v12321_v13  ;;  %v14189_v29 = vrot.slane %v1513_v25, %v12321_v13  ;;  %v11400_v20 = vunpack.i.h.bf16 %v13932_v44  ;;  %11033 = vmatprep.mubr.msk.f32.mxu0 %vm4161_vm8, %v19701_v30  ;;  %v14211_v30 = vpop.permute.xlu0 %11457 }
 0x11f   : > { %v14176_v55 = vrot.slane %v2294_v8, %v12321_v13  ;;  %v1504_v50 = vrot.slane %v1496_v16, %v12321_v13  ;;  %v11399_v56 = vunpack.i.l.bf16 %v13932_v44  ;;  %v2768_v16 = vcombine.low %v14055_v28, %v14079_v35  ;;  %v14204_v8 = vpop.permute.xlu1 %11452 }
 0x120   : > { %19699 = vst [vmem:[#allocation5_spill] sm:$0xff] %v14184_v11  ;;  %19700 = vst [vmem:[#allocation74_spill] sm:$0xff] %v14189_v29  ;;  %v1528_v36 = vrot.slane %v1514_v46, %v12321_v13  ;;  %v2785_v63 = vcombine.low %v14068_v37, %v14064_v31  ;;  %v3026_v46 = vcombine.low %v14075_v58, %v14048_v9  ;;  %v1402_v35 = vrot.slane %v14085_v12, 7 }
 0x121   : > { %v3993_v19 = vcombine.low %v14173_v62, %v14176_v55  ;;  %11672 = vrot.lane.b32.xlu1 %v11671_v54, %s12226_s12  ;;  %v14197_v47 = vcombine.low %v1504_v50, %v14184_v11  ;;  %v19703_v54 = vrot.slane %v14064_v31, 7  ;;  %v14216_v28 = vrot.slane %v2768_v16, %v12321_v13 }
 0x122   : > { %v1529_v25 = vcombine.low %v14189_v29, %v1528_v36  ;;  %v14219_v37 = vrot.slane %v2785_v63, %v12321_v13  ;;  %v3460_v36 = vcombine.low %v14029_v4, %v14102_v1  ;;  %v3477_v1 = vcombine.low %v14146_v15, %v14130_v24 }
 0x123   : > { %19702 = vst [vmem:[#allocation14_spill] sm:$0xff] %v14197_v47  ;;  %v11666_v6 = vpack.i.bf16 %v3993_v19, %v3992_v3  ;;  %v1401_v50 = vrot.slane %v19703_v54, 2  ;;  %v4162_v44 = vsel %vm4161_vm8, %v14197_v47, %v11399_v56  ;;  %v3033_v19 = vrot.slane %v3026_v46, %v12321_v13  ;;  %v410_v54 = vld [vmem:[%s12314_s24 + $0xb8] sm:$0x3f] }
 0x124   : > { %19704 = vst [vmem:[#allocation75_spill] sm:$0xff] %v14219_v37  ;;  %v4163_v31 = vsel %vm4161_vm8, %v1529_v25, %v11400_v20  ;;  %v19705_v56 = vunpack.i.l.bf16 %v13751_v61  ;;  %v14233_v63 = vcombine.low %v14072_v10, %v14216_v28  ;;  %v3461_v20 = vcombine.low %v14126_v60, %v1390_v53  ;;  %v411_v53 = vld [vmem:[%s12314_s24 + $0xc0] sm:$0xff] }
 0x125   : > { %11667 = vrot.lane.b32.xlu0 %v11666_v6, %s12227_s13  ;;  %v14237_v6 = vsel %vm12642_vm7, %v1401_v50, %v1402_v35  ;;  %v3034_v25 = vcombine.low %v3033_v19, %v14219_v37  ;;  %v3468_v46 = vrot.slane %v3460_v36, %v12321_v13  ;;  %v19707_v10 = vunpack.i.h.bf16 %v13751_v61  ;;  %v14254_v19 = vpop.permute.xlu1 %11462 }
 0x126   : > { %v4188_v16 = vsel %vm4187_vm9, %v4162_v44, %v19705_v56  ;;  %19706 = vst [vmem:[#allocation76_spill] sm:$0xff] %v14233_v63  ;;  %v3478_v4 = vcombine.low %v14152_v22, %v14237_v6  ;;  %v3475_v50 = vrot.slane %v3461_v20, %v12321_v13  ;;  %v3485_v24 = vrot.slane %v3477_v1, %v12321_v13 }
 0x127   : > { %v4189_v44 = vsel %vm4187_vm9, %v4163_v31, %v19707_v10  ;;  %v11681_v15 = vpack.i.bf16 %v3034_v25, %v14233_v63  ;;  %v11405_v61 = vunpack.i.h.bf16 %v13973_v21  ;;  %v14261_v31 = vpop.permute.xlu0 %11467  ;;  %v11029_v10 = vcombine.high %v14075_v58, %v14048_v9 }
 0x128   : > { %v3492_v22 = vrot.slane %v3478_v4, %v12321_v13  ;;  %v3476_v36 = vcombine.low %v3468_v46, %v3475_v50  ;;  %v14275_v4 = vcombine.low %v14094_v59, %v14115_v17  ;;  %v19713_v50 = vld [vmem:[#allocation10_spill] sm:$0xff] }
 0x129   : > { %11677 = vrot.lane.b32.xlu0 %v11676_v7, %s12222_s27  ;;  %v14269_v7 = vld [vmem:[%s19343_s1] ss:$0 sm:$0xff]  ;;  %11682 = vrot.lane.b32.xlu1 %v11681_v15, %s12223_s28  ;;  %v3742_v9 = vrot.slane %v11029_v10, %v12321_v13  ;;  %v19709_v15 = vunpack.i.l.bf16 %v13778_v48  ;;  %v14291_v10 = vpop.permute.xlu1 %11472 }
 0x12a   : > { %v445_v25 = vmul.f32 %v14269_v7, %v410_v54  ;;  %v3493_v1 = vcombine.low %v3485_v24, %v3492_v22  ;;  %19708 = vst [vmem:[#allocation77_spill] sm:$0xff] %v14275_v4  ;;  %v446_v46 = vmul.f32 %v14269_v7, %v411_v53  ;;  %v11415_v24 = vunpack.i.h.bf16 %v14002_v14 }
 0x12b   : > { %v4214_v17 = vsel %vm4213_vm10, %v4188_v16, %v19709_v15  ;;  %v3743_v59 = vcombine.low %v3742_v9, %v14122_v5  ;;  %v11414_v22 = vunpack.i.l.bf16 %v14002_v14  ;;  %v14300_v9 = vpop.permute.xlu0 %11477  ;;  %v19711_v14 = vrot.slane %v14018_v2, 7 }
 0x12c   : > { %v480_v56 = vadd.f32 %v14014_v27, %v445_v25  ;;  %v11686_v3 = vpack.i.bf16 %v3493_v1, %v3476_v36  ;;  %v14283_v54 = vadd.f32 %v14014_v27, %v446_v46  ;;  %v19710_v25 = vunpack.i.h.bf16 %v13778_v48 }
 0x12d   : > { %v1404_v46 = vrot.slane %v1402_v35, 2 }
 0x12e   : > { %v551_v53 = vrot.slane %v480_v56, 7  ;;  %11687 = vrot.lane.b32.xlu0 %v11686_v3, %s12228_s14  ;;  %v19443_v36 = vrot.slane %v14283_v54, 7  ;;  %v4215_v1 = vsel %vm4213_vm10, %v4189_v44, %v19710_v25  ;;  %v11691_v56 = vpack.i.bf16 %v3743_v59, %v14275_v4 }
 0x12f   : > { %v14307_v3 = vsel %vm4239_vm11, %v4215_v1, %v11415_v24  ;;  %v14315_v44 = vsel %vm4239_vm11, %v4214_v17, %v11414_v22  ;;  %v11425_v59 = vunpack.i.h.bf16 %v14044_v32  ;;  %v11424_v22 = vunpack.i.l.bf16 %v14044_v32 }
 0x130   : > { %v552_v15 = vsel %vm514_vm0, %v19711_v14, %v551_v53  ;;  %v602_v48 = vsel %vm514_vm0, 0.0, %v19443_v36  ;;  %11692 = vrot.lane.b32.xlu1 %v11691_v56, %s12224_s29  ;;  %v19712_v14 = vld [vmem:[#allocation8_spill] sm:$0xff]  ;;  %v2769_v56 = vcombine.low %v14075_v58, %v14098_v39  ;;  %v19716_v39 = vld [vmem:[#allocation9_spill] sm:$0xff] }
 0x131   : > { %v617_v35 = vsel %vm604_vm1, %v552_v15, 0.0  ;;  %v1077_v24 = vcombine.high %v602_v48, %v602_v48  ;;  %v14323_v25 = vrot.slane %v602_v48, %v12321_v13  ;;  %v19714_v15 = vcombine.low %v19712_v14, %v19713_v50  ;;  %v14345_v50 = vpop.permute.xlu1 %11482  ;;  %v14354_v14 = vpop.permute.xlu0 %11487 }
 0x132   : > { %v1061_v2 = vcombine.high %v617_v35, %v617_v35  ;;  %v14320_v53 = vrot.slane %v617_v35, %v12321_v13  ;;  %19715 = vst [vmem:[#allocation8_spill] sm:$0xff] %v14345_v50  ;;  %19717 = vst [vmem:[#allocation10_spill] sm:$0xff] %v14354_v14 }
 0x133   : > { %v4165_v17 = vsel %vm4161_vm8, %v19714_v15, %v11425_v59  ;;  %v14339_v48 = vrot.slane %v1077_v24, %v12321_v13  ;;  %v14343_v1 = vcombine.high %v14323_v25, %v14323_v25  ;;  %v11015_v59 = vrot.slane %v14323_v25, 9 }
 0x134   : > { %v14334_v36 = vrot.slane %v1061_v2, %v12321_v13  ;;  %v1076_v35 = vcombine.high %v14320_v53, %v14320_v53  ;;  %v1405_v32 = vrot.slane %v14320_v53, 7  ;;  %v14350_v58 = vsel %vm4187_vm9, %v4165_v17, %v11405_v61 }
 0x135   : > { %v4164_v2 = vsel %vm4161_vm8, %v19716_v39, %v11424_v22  ;;  %v1887_v45 = vcombine.low %v14343_v1, %v14339_v48  ;;  %v14363_v60 = vcombine.high %v14339_v48, %v14339_v48  ;;  %v1418_v29 = vrot.slane %v14343_v1, 7  ;;  %v14395_v63 = vpop.permute.xlu1 %11492  ;;  %v14406_v50 = vpop.permute.xlu0 %11497 }
 0x136   : > { %v1870_v24 = vcombine.low %v14320_v53, %v1076_v35  ;;  %v1871_v15 = vcombine.low %v14334_v36, %v14323_v25  ;;  %v14367_v61 = vcombine.high %v14334_v36, %v14334_v36  ;;  %v14371_v17 = vsel %vm12642_vm7, %v1404_v46, %v1405_v32  ;;  %19720 = vst [vmem:[#allocation79_spill] sm:$0xff] %v14395_v63  ;;  %v19733_v63 = vld [vmem:[#allocation11_spill] sm:$0xff] }
 0x137   : > { %v1407_v22 = vrot.slane %v1405_v32, 2  ;;  %v1408_v39 = vrot.slane %v1076_v35, 7  ;;  %v14380_v47 = vrot.slane %v1887_v45, %v12321_v13  ;;  %v1411_v23 = vrot.slane %v14334_v36, 7  ;;  %19721 = vst [vmem:[#allocation80_spill] sm:$0xff] %v14406_v50 }
 0x138   : > { %v14374_v16 = vrot.slane %v1870_v24, %v12321_v13  ;;  %v14377_v20 = vrot.slane %v1871_v15, %v12321_v13  ;;  %v1414_v32 = vrot.slane %v14367_v61, 7  ;;  %v1420_v14 = vrot.slane %v1418_v29, 2 }
 0x139   : > { %v14385_v11 = vsel %vm12642_vm7, %v1407_v22, %v1408_v39  ;;  %v1410_v46 = vrot.slane %v1408_v39, 2  ;;  %v1413_v4 = vrot.slane %v1411_v23, 2  ;;  %v14403_v39 = vsel %vm12642_vm7, %v11015_v59, %v1418_v29 }
 0x13a   : > { %19718 = vst [vmem:[#allocation9_spill] sm:$0xff] %v14374_v16  ;;  %19719 = vst [vmem:[#allocation78_spill] sm:$0xff] %v14377_v20  ;;  %v3880_v24 = vcombine.low %v14122_v5, %v14374_v16  ;;  %v3881_v15 = vcombine.low %v14377_v20, %v14380_v47  ;;  %v1421_v5 = vrot.slane %v14339_v48, 7  ;;  %v1424_v20 = vrot.slane %v14363_v60, 7 }
 0x13b   : > { %v14399_v22 = vsel %vm12642_vm7, %v1410_v46, %v1411_v23  ;;  %v14410_v45 = vsel %vm12642_vm7, %v1413_v4, %v1414_v32  ;;  %v2295_v23 = vcombine.low %v14237_v6, %v14371_v17  ;;  %v19722_v32 = vunpack.i.l.bf16 %v13973_v21 }
 0x13c   : > { %v11696_v43 = vpack.i.bf16 %v3881_v15, %v3880_v24  ;;  %v14417_v46 = vsel %vm12642_vm7, %v1420_v14, %v1421_v5  ;;  %v1423_v59 = vrot.slane %v1421_v5, 2  ;;  %v2311_v29 = vcombine.low %v14385_v11, %v14399_v22 }
 0x13d   : > { %v2312_v24 = vcombine.low %v14410_v45, %v14403_v39  ;;  %v2309_v4 = vrot.slane %v2295_v23, %v12321_v13  ;;  %v14428_v15 = vsel %vm4187_vm9, %v4164_v2, %v19722_v32  ;;  %v14431_v6 = vrot.slane %v2769_v56, %v12321_v13  ;;  %v14452_v23 = vpop.permute.xlu1 %11502 }
 0x13e   : > { %11697 = vrot.lane.b32.xlu0 %v11696_v43, %s12225_s30  ;;  %v2786_v5 = vcombine.low %v14085_v12, %v14320_v53  ;;  %v14437_v14 = vsel %vm12642_vm7, %v1423_v59, %v1424_v20  ;;  %v14440_v50 = vrot.slane %v2311_v29, %v12321_v13  ;;  %v2802_v21 = vcombine.low %v1076_v35, %v14334_v36 }
 0x13f   : > { %19723 = vst [vmem:[#allocation81_spill] sm:$0xff] %v14431_v6  ;;  %v14443_v43 = vrot.slane %v2312_v24, %v12321_v13  ;;  %v2328_v2 = vcombine.low %v14417_v46, %v14437_v14  ;;  %v2310_v56 = vcombine.low %v14176_v55, %v2309_v4  ;;  %v2784_v12 = vcombine.low %v14216_v28, %v14431_v6  ;;  %v14462_v55 = vpop.permute.xlu0 %11507 }
 0x140   : > { %v2800_v53 = vrot.slane %v2786_v5, %v12321_v13  ;;  %19724 = vst [vmem:[#allocation82_spill] sm:$0xff] %v14452_v23  ;;  %v3994_v59 = vcombine.low %v2309_v4, %v14440_v50  ;;  %v14456_v29 = vrot.slane %v2802_v21, %v12321_v13  ;;  %v2819_v35 = vcombine.low %v14339_v48, %v14363_v60 }
 0x141   : > { %v3036_v24 = vcombine.low %v14323_v25, %v14343_v1  ;;  %19725 = vst [vmem:[#allocation83_spill] sm:$0xff] %v14462_v55  ;;  %v14465_v28 = vrot.slane %v2328_v2, %v12321_v13  ;;  %v19726_v32 = vcombine.low %v14155_v33, %v14173_v62  ;;  %v19727_v21 = vunpack.i.l.bf16 %v13788_v51  ;;  %v14499_v23 = vpop.permute.xlu1 %11512 }
 0x142   : > { %v2801_v4 = vcombine.low %v14219_v37, %v2800_v53  ;;  %v14476_v6 = vrot.slane %v2819_v35, %v12321_v13  ;;  %v14479_v1 = vcombine.low %v2800_v53, %v14456_v29  ;;  %v19730_v53 = vunpack.i.l.bf16 %v14009_v38 }
 0x143   : > { %v11706_v5 = vpack.i.bf16 %v2310_v56, %v19726_v32  ;;  %v4266_v48 = vsel %vm4265_vm12, %v14315_v44, %v19727_v21  ;;  %v3043_v2 = vrot.slane %v3036_v24, %v12321_v13  ;;  %v3995_v33 = vcombine.low %v14443_v43, %v14465_v28  ;;  %v412_v44 = vld [vmem:[%s12314_s24 + $0xc8] sm:$0x3f] }
 0x144   : > { %19728 = vst [vmem:[#allocation84_spill] sm:$0xff] %v14479_v1  ;;  %v11711_v62 = vpack.i.bf16 %v2801_v4, %v2784_v12  ;;  %v19729_v56 = vunpack.i.l.bf16 %v13829_v52  ;;  %v11440_v24 = vunpack.i.h.bf16 %v14112_v18  ;;  %v11439_v37 = vunpack.i.l.bf16 %v14112_v18  ;;  %v19731_v4 = vld [vmem:[#allocation17_spill] sm:$0xff] }
 0x145   : > { %11707 = vrot.lane.b32.xlu0 %v11706_v5, %s12226_s12  ;;  %v3044_v35 = vcombine.low %v3043_v2, %v14476_v6  ;;  %v11701_v55 = vpack.i.bf16 %v3995_v33, %v3994_v59  ;;  %v447_v59 = vmul.f32 %v14269_v7, %v412_v44  ;;  %v14509_v33 = vpop.permute.xlu0 %11517  ;;  %v19738_v44 = vld [vmem:[#allocation65_spill] sm:$0xff] }
 0x146   : > { %v4292_v32 = vsel %vm4291_vm13, %v4266_v48, %v19729_v56  ;;  %v19732_v48 = vld [vmem:[#allocation13_spill] sm:$0xff]  ;;  %v4166_v18 = vsel %vm4161_vm8, %v12699_v57, %v11439_v37  ;;  %v3494_v57 = vcombine.low %v14371_v17, %v14385_v11  ;;  %v19737_v11 = vunpack.i.h.bf16 %v13788_v51 }
 0x147   : > { %v4318_v21 = vsel %vm4317_vm14, %v4292_v32, %v19730_v53  ;;  %v4131_v56 = vcombine.low %v19732_v48, %v19731_v4  ;;  %v11716_v2 = vpack.i.bf16 %v3044_v35, %v14479_v1  ;;  %v19734_v32 = vcombine.low %v19733_v63, %v12528_v26  ;;  %11702 = vrot.lane.b32.xlu1 %v11701_v55, %s12227_s13 }
 0x148   : > { %4483 = vmatmul.mubr.f32.vlgmr.msra.gmra.mxu0 %v4318_v21  ;;  %v19735_v21 = vunpack.i.h.bf16 %v13922_v49  ;;  %v19736_v35 = vunpack.i.l.bf16 %v13922_v49  ;;  %v1426_v26 = vrot.slane %v1424_v20, 2  ;;  %v482_v37 = vadd.f32 %v14014_v27, %v447_v59 }
 0x149   : > { %v4167_v53 = vsel %vm4161_vm8, %v19734_v32, %v11440_v24  ;;  %11034 = vmatprep.mubr.msk.f32.mxu0 %vm4161_vm8, %v4131_v56  ;;  %11717 = vrot.lane.b32.xlu0 %v11716_v2, %s12223_s28  ;;  %v3495_v63 = vcombine.low %v14399_v22, %v14410_v45  ;;  %v3511_v55 = vcombine.low %v14403_v39, %v14417_v46  ;;  %v19739_v24 = vunpack.i.l.bf16 %v19738_v44  ;;  %v19742_v32 = vld [vmem:[#allocation73_spill] sm:$0xff] }
 0x14a   : > { %v4193_v4 = vsel %vm4187_vm9, %v4167_v53, %v19735_v21  ;;  %v4192_v48 = vsel %vm4187_vm9, %v4166_v18, %v19736_v35  ;;  %v3744_v49 = vcombine.low %v14334_v36, %v14367_v61  ;;  %v14530_v20 = vrot.slane %v3494_v57, %v12321_v13  ;;  %v413_v21 = vld [vmem:[%s12314_s24 + $0xd0] sm:$0xff]  ;;  %v14558_v35 = vpop.permute.xlu1 %11522 }
 0x14b   : > { %v4267_v17 = vsel %vm4265_vm12, %v14307_v3, %v19737_v11  ;;  %v4218_v45 = vsel %vm4213_vm10, %v4192_v48, %v19739_v24  ;;  %v19740_v22 = vunpack.i.h.bf16 %v19738_v44  ;;  %v554_v46 = vrot.slane %v482_v37, 7  ;;  %11712 = vrot.lane.b32.xlu1 %v11711_v62, %s12222_s27 }
 0x14c   : > { %v14543_v56 = vrot.slane %v3495_v63, %v12321_v13  ;;  %v14546_v61 = vrot.slane %v3511_v55, %v12321_v13  ;;  %v3751_v51 = vrot.slane %v3744_v49, %v12321_v13  ;;  %v19741_v3 = vunpack.i.h.bf16 %v13829_v52  ;;  %v14569_v55 = vpop.permute.xlu0 %11527 }
 0x14d   : > { %v4219_v39 = vsel %vm4213_vm10, %v4193_v4, %v19740_v22  ;;  %v11450_v53 = vunpack.i.h.bf16 %v19742_v32  ;;  %v11449_v18 = vunpack.i.l.bf16 %v19742_v32  ;;  %v414_v4 = vld [vmem:[%s12314_s24 + $0xd8] sm:$0x3f]  ;;  %v19743_v48 = vrot.slane %v14283_v54, 7 }
 0x14e   : > { %v4293_v2 = vsel %vm4291_vm13, %v4267_v17, %v19741_v3  ;;  %v3510_v62 = vcombine.low %v14530_v20, %v14543_v56  ;;  %v3752_v52 = vcombine.low %v14374_v16, %v3751_v51  ;;  %v19744_v37 = vunpack.i.h.bf16 %v14009_v38  ;;  %v19745_v38 = vld [vmem:[#allocation20_spill] sm:$0xff] }
 0x14f   : > { %v555_v57 = vsel %vm514_vm0, %v19743_v48, %v554_v46  ;;  %v14573_v11 = vsel %vm4239_vm11, %v4219_v39, %v11450_v53  ;;  %v14576_v54 = vsel %vm4239_vm11, %v4218_v45, %v11449_v18  ;;  %v448_v24 = vmul.f32 %v14269_v7, %v413_v21  ;;  %v19746_v46 = vld [vmem:[#allocation64_spill] sm:$0xff] }
 0x150   : > { %v4319_v63 = vsel %vm4317_vm14, %v4293_v2, %v19744_v37  ;;  %v618_v49 = vsel %vm604_vm1, %v555_v57, 0.0  ;;  %v449_v22 = vmul.f32 %v14269_v7, %v414_v4  ;;  %v19747_v56 = vunpack.i.l.bf16 %v19746_v46  ;;  %v14609_v57 = vpop.permute.xlu1 %11532 }
 0x151   : > { %4488 = vmatmul.mubr.f32.gmra.mxu0 %v4319_v63  ;;  %v1094_v20 = vcombine.high %v618_v49, %v618_v49  ;;  %v14580_v44 = vrot.slane %v618_v49, %v12321_v13  ;;  %v483_v7 = vadd.f32 %v14014_v27, %v448_v24  ;;  %v19748_v21 = vunpack.i.l.bf16 %v14052_v34  ;;  %19749 = vst [vmem:[#allocation17_spill] sm:$0xff] %v14609_v57 }
 0x152   : > { %11035 = vmatprep.mubr.msk.f32.mxu0 %vm4161_vm8, %v19745_v38  ;;  %v4216_v39 = vsel %vm4213_vm10, %v14428_v15, %v19747_v56  ;;  %v484_v15 = vadd.f32 %v14014_v27, %v449_v22  ;;  %v14620_v27 = vpop.permute.xlu0 %11537  ;;  %v19755_v16 = vunpack.i.l.bf16 %v13968_v0 }
 0x153   : > { %v14594_v2 = vrot.slane %v1094_v20, %v12321_v13  ;;  %v1427_v32 = vrot.slane %v14580_v44, 7  ;;  %v1888_v53 = vcombine.low %v14363_v60, %v14580_v44  ;;  %v14602_v18 = vcombine.high %v14580_v44, %v14580_v44  ;;  %19750 = vst [vmem:[#allocation13_spill] sm:$0xff] %v14620_v27 }
 0x154   : > { %v4242_v4 = vsel %vm4239_vm11, %v4216_v39, %v19748_v21  ;;  %v556_v63 = vrot.slane %v483_v7, 7  ;;  %v557_v24 = vrot.slane %v484_v15, 7  ;;  %v19762_v27 = vunpack.i.l.bf16 %v14104_v42 }
 0x155   : > { %v1428_v37 = vsel %vm12642_vm7, %v1426_v26, %v1427_v32  ;;  %v14614_v60 = vrot.slane %v1888_v53, %v12321_v13  ;;  %v14618_v49 = vcombine.high %v14594_v2, %v14594_v2  ;;  %v1904_v38 = vcombine.low %v14602_v18, %v14594_v2 }
 0x156   : > { %v3512_v20 = vcombine.low %v14437_v14, %v1428_v37  ;;  %v1429_v22 = vrot.slane %v1427_v32, 2  ;;  %v603_v56 = vsel %vm514_vm0, 0.0, %v556_v63  ;;  %v1430_v39 = vrot.slane %v14602_v18, 7 }
 0x157   : > { %v14627_v26 = vcombine.low %v14380_v47, %v14614_v60  ;;  %v1433_v53 = vrot.slane %v14594_v2, 7  ;;  %v1440_v21 = vcombine.high %v603_v56, %v603_v56  ;;  %v14634_v14 = vrot.slane %v603_v56, %v12321_v13 }
 0x158   : > { %v3526_v7 = vrot.slane %v3512_v20, %v12321_v13  ;;  %v14637_v3 = vrot.slane %v1904_v38, %v12321_v13  ;;  %v558_v47 = vsel %vm514_vm0, %v556_v63, %v557_v24  ;;  %v14643_v15 = vsel %vm12642_vm7, %v1429_v22, %v1430_v39 }
 0x159   : > { %19751 = vst [vmem:[#allocation11_spill] sm:$0xff] %v14627_v26  ;;  %v11726_v32 = vpack.i.bf16 %v14627_v26, %v3752_v52  ;;  %v1432_v45 = vrot.slane %v1430_v39, 2  ;;  %v14647_v20 = vrot.slane %v1440_v21, %v12321_v13  ;;  %v14651_v56 = vcombine.high %v14634_v14, %v14634_v14  ;;  %v14655_v52 = vpop.permute.xlu1 %11542  ;;  %v14664_v39 = vpop.permute.xlu0 %11547 }
 0x15a   : > { %v3527_v59 = vcombine.low %v14546_v61, %v3526_v7  ;;  %v3882_v38 = vcombine.low %v14614_v60, %v14637_v3  ;;  %19752 = vst [vmem:[#allocation65_spill] sm:$0xff] %v14655_v52  ;;  %v619_v63 = vsel %vm604_vm1, %v558_v47, 0.0  ;;  %v1435_v61 = vrot.slane %v1433_v53, 2  ;;  %19753 = vst [vmem:[#allocation73_spill] sm:$0xff] %v14664_v39 }
 0x15b   : > { %11727 = vrot.lane.b32.xlu0 %v11726_v32, %s12224_s29  ;;  %v14661_v24 = vsel %vm12642_vm7, %v1432_v45, %v1433_v53  ;;  %v1436_v22 = vrot.slane %v14618_v49, 7  ;;  %v14668_v21 = vcombine.high %v14647_v20, %v14647_v20  ;;  %v3883_v60 = vcombine.low %v14634_v14, %v14651_v56 }
 0x15c   : > { %v11721_v7 = vpack.i.bf16 %v3527_v59, %v3510_v62  ;;  %v1457_v32 = vcombine.high %v619_v63, %v619_v63  ;;  %v14677_v45 = vrot.slane %v619_v63, %v12321_v13  ;;  %v11016_v53 = vrot.slane %v14634_v14, 9 }
 0x15d   : > { %v14674_v47 = vsel %vm12642_vm7, %v1435_v61, %v1436_v22  ;;  %v1476_v48 = vrot.slane %v14651_v56, 7  ;;  %v3762_v59 = vcombine.low %v14647_v20, %v14668_v21  ;;  %v3890_v62 = vrot.slane %v3883_v60, %v12321_v13  ;;  %v14701_v26 = vpop.permute.xlu1 %11552  ;;  %v14712_v1 = vpop.permute.xlu0 %11557 }
 0x15e   : > { %11722 = vrot.lane.b32.xlu1 %v11721_v7, %s12228_s14  ;;  %v14686_v51 = vrot.slane %v1457_v32, %v12321_v13  ;;  %v1479_v61 = vrot.slane %v14647_v20, 7  ;;  %v1482_v17 = vrot.slane %v14668_v21, 7  ;;  %v2329_v60 = vcombine.low %v1428_v37, %v14643_v15  ;;  %19754 = vst [vmem:[#allocation20_spill] sm:$0xff] %v14701_v26  ;;  %19756 = vst [vmem:[#allocation64_spill] sm:$0xff] %v14712_v1 }
 0x15f   : > { %v14691_v63 = vsel %vm12642_vm7, %v11016_v53, %v1476_v48  ;;  %v1478_v22 = vrot.slane %v1476_v48, 2  ;;  %v14696_v7 = vrot.slane %v3762_v59, %v12321_v13  ;;  %v2345_v32 = vcombine.low %v14661_v24, %v14674_v47 }
 0x160   : > { %v1481_v5 = vrot.slane %v1479_v61, 2  ;;  %v1484_v48 = vrot.slane %v1482_v17, 2  ;;  %v4268_v12 = vsel %vm4265_vm12, %v4242_v4, %v19755_v16  ;;  %v2327_v59 = vcombine.low %v14440_v50, %v14443_v43  ;;  %v19758_v43 = vld [vmem:[#allocation60_spill] sm:$0xff] }
 0x161   : > { %v14705_v53 = vsel %vm12642_vm7, %v1478_v22, %v1479_v61  ;;  %v3891_v37 = vcombine.low %v3890_v62, %v14696_v7  ;;  %v2343_v26 = vrot.slane %v2329_v60, %v12321_v13  ;;  %v14721_v61 = vrot.slane %v2345_v32, %v12321_v13 }
 0x162   : > { %v14717_v39 = vsel %vm12642_vm7, %v1481_v5, %v1482_v17  ;;  %v19757_v22 = vrot.slane %v14677_v45, 7  ;;  %v3997_v50 = vcombine.low %v14691_v63, %v14705_v53  ;;  %v19759_v4 = vunpack.i.l.bf16 %v19758_v43  ;;  %v19760_v5 = vld [vmem:[#allocation16_spill] sm:$0xff]  ;;  %v19761_v17 = vld [vmem:[#allocation2_spill] sm:$0xff] }
 0x163   : > { %v4132_v1 = vcombine.low %v19761_v17, %v19760_v5  ;;  %v11731_v60 = vpack.i.bf16 %v3891_v37, %v3882_v38  ;;  %v3996_v32 = vcombine.low %v2343_v26, %v14721_v61  ;;  %v2344_v57 = vcombine.low %v14465_v28, %v2343_v26  ;;  %v14757_v26 = vpop.permute.xlu1 %11562  ;;  %v19767_v5 = vld [vmem:[#allocation18_spill] sm:$0xff] }
 0x164   : > { %v14727_v16 = vsel %vm12642_vm7, %v1484_v48, %v19757_v22  ;;  %v4294_v62 = vsel %vm4291_vm13, %v4268_v12, %v19759_v4  ;;  %v4005_v22 = vrot.slane %v3997_v50, %v12321_v13  ;;  %v11023_v12 = vcombine.high %v14334_v36, %v14323_v25  ;;  %v19769_v17 = vld [vmem:[#allocation30_spill] sm:$0xff] }
 0x165   : > { %v3998_v52 = vcombine.low %v14717_v39, %v14727_v16  ;;  %v4320_v48 = vsel %vm4317_vm14, %v4294_v62, %v19762_v27  ;;  %v2820_v38 = vcombine.low %v14580_v44, %v14602_v18  ;;  %11732 = vrot.lane.b32.xlu1 %v11731_v60, %s12225_s30  ;;  %v19763_v4 = vunpack.i.h.bf16 %v19746_v46  ;;  %v14768_v18 = vpop.permute.xlu0 %11567  ;;  %v19766_v62 = vld [vmem:[#allocation15_spill] sm:$0xff] }
 0x166   : > { %4493 = vmatmul.mubr.f32.gmra.mxu0 %v4320_v48  ;;  %v11465_v50 = vunpack.i.h.bf16 %v14254_v19  ;;  %v11464_v28 = vunpack.i.l.bf16 %v14254_v19  ;;  %v11741_v36 = vpack.i.bf16 %v2344_v57, %v2327_v59  ;;  %v14760_v25 = vrot.slane %v11023_v12, %v12321_v13 }
 0x167   : > { %v4012_v37 = vrot.slane %v3998_v52, %v12321_v13  ;;  %11036 = vmatprep.mubr.msk.f32.mxu0 %vm4161_vm8, %v4132_v1  ;;  %v4217_v27 = vsel %vm4213_vm10, %v14350_v58, %v19763_v4  ;;  %v14763_v44 = vrot.slane %v2820_v38, %v12321_v13  ;;  %v19764_v1 = vunpack.i.h.bf16 %v14052_v34 }
 0x168   : > { %v19765_v52 = vunpack.i.h.bf16 %v13968_v0  ;;  %v19768_v57 = vcombine.low %v19766_v62, %v19767_v5  ;;  %v4168_v60 = vsel %vm4161_vm8, %v19769_v17, %v11464_v28  ;;  %v2818_v34 = vcombine.low %v14456_v29, %v14760_v25 }
 0x169   : > { %v4243_v46 = vsel %vm4239_vm11, %v4217_v27, %v19764_v1  ;;  %v4013_v58 = vcombine.low %v4005_v22, %v4012_v37  ;;  %v2835_v48 = vcombine.low %v14476_v6, %v14763_v44  ;;  %v19770_v22 = vunpack.i.h.bf16 %v19758_v43  ;;  %11742 = vrot.lane.b32.xlu1 %v11741_v36, %s12226_s12  ;;  %v14818_v62 = vpop.permute.xlu0 %11577 }
 0x16a   : > { %v4269_v19 = vsel %vm4265_vm12, %v4243_v46, %v19765_v52  ;;  %v4169_v59 = vsel %vm4161_vm8, %v19768_v57, %v11465_v50  ;;  %v11470_v12 = vunpack.i.h.bf16 %v14261_v31  ;;  %v19771_v37 = vunpack.i.h.bf16 %v14104_v42 }
 0x16b   : > { %v4295_v0 = vsel %vm4291_vm13, %v4269_v19, %v19770_v22  ;;  %v11736_v38 = vpack.i.bf16 %v4013_v58, %v3996_v32  ;;  %v11469_v27 = vunpack.i.l.bf16 %v14261_v31  ;;  %v3045_v29 = vcombine.low %v14594_v2, %v14634_v14  ;;  %v19772_v31 = vld [vmem:[#allocation33_spill] sm:$0xff] }
 0x16c   : > { %v4321_v4 = vsel %vm4317_vm14, %v4295_v0, %v19771_v37  ;;  %v11746_v50 = vpack.i.bf16 %v2835_v48, %v2818_v34  ;;  %v4195_v43 = vsel %vm4187_vm9, %v4169_v59, %v11470_v12  ;;  %v3054_v28 = vcombine.low %v14651_v56, %v14647_v20  ;;  %v14810_v20 = vpop.permute.xlu1 %11572 }
 0x16d   : > { %4498 = vmatmul.mubr.f32.gmra.mxu0 %v4321_v4  ;;  %v3055_v32 = vcombine.low %v14668_v21, %v14677_v45  ;;  %11737 = vrot.lane.b32.xlu0 %v11736_v38, %s12227_s13  ;;  %v4194_v42 = vsel %vm4187_vm9, %v4168_v60, %v11469_v27  ;;  %v3052_v36 = vrot.slane %v3045_v29, %v12321_v13  ;;  %v19773_v46 = vrot.slane %v14677_v45, 7 }
 0x16e   : > { %11037 = vmatprep.mubr.msk.f32.mxu0 %vm4161_vm8, %v19772_v31  ;;  %v14806_v1 = vcombine.high %v14677_v45, %v14677_v45  ;;  %v3062_v56 = vrot.slane %v3054_v28, %v12321_v13  ;;  %v3528_v52 = vcombine.low %v14643_v15, %v14661_v24  ;;  %v3529_v19 = vcombine.low %v14674_v47, %v14691_v63 }
 0x16f   : > { %v1487_v58 = vrot.slane %v19773_v46, 2  ;;  %v3069_v21 = vrot.slane %v3055_v32, %v12321_v13  ;;  %v3053_v5 = vcombine.low %v14763_v44, %v3052_v36  ;;  %v3545_v59 = vcombine.low %v14705_v53, %v14717_v39  ;;  %v19777_v36 = vld [vmem:[#allocation32_spill] sm:$0xff]  ;;  %v14863_v46 = vpop.permute.xlu0 %11587 }
 0x170   : > { %v1488_v57 = vrot.slane %v14806_v1, 7  ;;  %v19774_v17 = vunpack.i.l.bf16 %v14163_v40  ;;  %v3536_v15 = vrot.slane %v3528_v52, %v12321_v13  ;;  %v3543_v24 = vrot.slane %v3529_v19, %v12321_v13  ;;  %v14854_v28 = vpop.permute.xlu1 %11582 }
 0x171   : > { %v14828_v34 = vcombine.low %v3062_v56, %v3069_v21  ;;  %v19775_v47 = vunpack.i.l.bf16 %v14204_v8  ;;  %11747 = vrot.lane.b32.xlu0 %v11746_v50, %s12222_s27  ;;  %v3553_v53 = vrot.slane %v3545_v59, %v12321_v13  ;;  %v11475_v22 = vunpack.i.h.bf16 %v14291_v10 }
 0x172   : > { %v4270_v60 = vsel %vm4265_vm12, %v14576_v54, %v19774_v17  ;;  %v14838_v39 = vsel %vm12642_vm7, %v1487_v58, %v1488_v57  ;;  %v19776_v54 = vunpack.i.l.bf16 %v14211_v30  ;;  %v3544_v12 = vcombine.low %v3536_v15, %v3543_v24  ;;  %v19779_v58 = vld [vmem:[#allocation3_spill] sm:$0xff]  ;;  %v19782_v15 = vld [vmem:[#allocation8_spill] sm:$0xff] }
 0x173   : > { %v4296_v63 = vsel %vm4291_vm13, %v4270_v60, %v19775_v47  ;;  %v11751_v0 = vpack.i.bf16 %v14828_v34, %v3053_v5  ;;  %v3546_v38 = vcombine.low %v14727_v16, %v14838_v39  ;;  %v11474_v37 = vunpack.i.l.bf16 %v14291_v10 }
 0x174   : > { %v4322_v48 = vsel %vm4317_vm14, %v4296_v63, %v19776_v54  ;;  %v4221_v4 = vsel %vm4213_vm10, %v4195_v43, %v11475_v22  ;;  %v11480_v27 = vunpack.i.h.bf16 %v14300_v9  ;;  %v11479_v29 = vunpack.i.l.bf16 %v14300_v9  ;;  %v19778_v43 = vld [vmem:[#allocation37_spill] sm:$0xff] }
 0x175   : > { %4503 = vmatmul.mubr.f32.gmra.mxu0 %v4322_v48  ;;  %v11030_v50 = vcombine.high %v14594_v2, %v14634_v14  ;;  %11752 = vrot.lane.b32.xlu1 %v11751_v0, %s12223_s28  ;;  %v3560_v32 = vrot.slane %v3546_v38, %v12321_v13  ;;  %v4220_v16 = vsel %vm4213_vm10, %v4194_v42, %v11474_v37  ;;  %v19781_v17 = vunpack.i.h.bf16 %v14204_v8  ;;  %v19784_v48 = vld [vmem:[#allocation10_spill] sm:$0xff]  ;;  %v14894_v38 = vpop.permute.xlu1 %11592 }
 0x176   : > { %v3763_v10 = vcombine.low %v14677_v45, %v14806_v1  ;;  %v4133_v31 = vcombine.low %v19778_v43, %v19777_v36  ;;  %v4246_v9 = vsel %vm4239_vm11, %v4220_v16, %v11479_v29  ;;  %v3892_v56 = vcombine.low %v14686_v51, %v19779_v58  ;;  %v19786_v37 = vld [vmem:[#allocation22_spill] sm:$0xff]  ;;  %v19788_v29 = vld [vmem:[#allocation24_spill] sm:$0xff]  ;;  %v19789_v16 = vld [vmem:[#allocation7_spill] sm:$0xff] }
 0x177   : > { %v3760_v14 = vrot.slane %v11030_v50, %v12321_v13  ;;  %v3561_v21 = vcombine.low %v3553_v53, %v3560_v32  ;;  %v14870_v52 = vsel %vm4239_vm11, %v4221_v4, %v11480_v27  ;;  %v19780_v45 = vunpack.i.h.bf16 %v14163_v40  ;;  %v19787_v27 = vld [vmem:[#allocation25_spill] sm:$0xff]  ;;  %v14902_v32 = vpop.permute.xlu0 %11597  ;;  %v19790_v43 = vld [vmem:[#allocation79_spill] sm:$0xff] }
 0x178   : > { %v3777_v42 = vrot.slane %v3763_v10, %v12321_v13  ;;  %11038 = vmatprep.mubr.msk.f32.mxu0 %vm4161_vm8, %v4133_v31  ;;  %v3899_v59 = vrot.slane %v3892_v56, %v12321_v13  ;;  %v11485_v24 = vunpack.i.h.bf16 %v19782_v15  ;;  %v19783_v53 = vunpack.i.h.bf16 %v14211_v30 }
 0x179   : > { %v4271_v19 = vsel %vm4265_vm12, %v14573_v11, %v19780_v45  ;;  %v3761_v5 = vcombine.low %v14637_v3, %v3760_v14  ;;  %v11756_v47 = vpack.i.bf16 %v3561_v21, %v3544_v12  ;;  %v11484_v54 = vunpack.i.l.bf16 %v19782_v15  ;;  %v19785_v12 = vld [vmem:[#allocation23_spill] sm:$0xff] }
 0x17a   : > { %v4297_v60 = vsel %vm4291_vm13, %v4271_v19, %v19781_v17  ;;  %v3778_v63 = vcombine.low %v14696_v7, %v3777_v42  ;;  %v3900_v11 = vcombine.low %v3777_v42, %v3899_v59  ;;  %v11490_v22 = vunpack.i.h.bf16 %v19784_v48 }
 0x17b   : > { %v4323_v40 = vsel %vm4317_vm14, %v4297_v60, %v19783_v53  ;;  %v14892_v8 = vcombine.high %v14686_v51, %v14686_v51  ;;  %v1490_v0 = vrot.slane %v1488_v57, 2  ;;  %11757 = vrot.lane.b32.xlu0 %v11756_v47, %s12228_s14  ;;  %v1491_v30 = vrot.slane %v14686_v51, 7  ;;  %v19792_v53 = vld [vmem:[#allocation21_spill] sm:$0xff] }
 0x17c   : > { %4508 = vmatmul.mubr.f32.gmra.mxu0 %v4323_v40  ;;  %v11761_v7 = vpack.i.bf16 %v3778_v63, %v3761_v5  ;;  %v4031_v4 = vcombine.low %v19786_v37, %v19785_v12  ;;  %v4032_v50 = vcombine.low %v19788_v29, %v19787_v27  ;;  %v11766_v10 = vpack.i.bf16 %v19789_v16, %v3900_v11  ;;  %v19791_v5 = vld [vmem:[#allocation80_spill] sm:$0xff]  ;;  %v14932_v12 = vpop.permute.xlu1 %11602  ;;  %v19798_v29 = vld [vmem:[#allocation43_spill] sm:$0xff] }
 0x17d   : > { %v11489_v36 = vunpack.i.l.bf16 %v19784_v48  ;;  %v1494_v57 = vrot.slane %v14892_v8, 7  ;;  %v11495_v31 = vunpack.i.h.bf16 %v19790_v43  ;;  %v1492_v14 = vsel %vm12642_vm7, %v1490_v0, %v1491_v30  ;;  %v19795_v37 = vld [vmem:[#allocation12_spill] sm:$0xff] }
 0x17e   : > { %11762 = vrot.lane.b32.xlu1 %v11761_v7, %s12224_s29  ;;  %v1493_v56 = vrot.slane %v1491_v30, 2  ;;  %v4039_v21 = vrot.slane %v4031_v4, %v12321_v13  ;;  %v4046_v42 = vrot.slane %v4032_v50, %v12321_v13  ;;  %v4014_v45 = vcombine.low %v14838_v39, %v1492_v14  ;;  %v19794_v7 = vld [vmem:[#allocation34_spill] sm:$0xff]  ;;  %v19796_v4 = vld [vmem:[#allocation31_spill] sm:$0xff] }
 0x17f   : > { %v11494_v19 = vunpack.i.l.bf16 %v19790_v43  ;;  %v11500_v59 = vunpack.i.h.bf16 %v19791_v5  ;;  %v11499_v17 = vunpack.i.l.bf16 %v19791_v5  ;;  %11767 = vrot.lane.b32.xlu0 %v11766_v10, %s12225_s30  ;;  %v2836_v47 = vcombine.low %v14594_v2, %v14618_v49  ;;  %v19799_v50 = vld [vmem:[#allocation38_spill] sm:$0xff] }
 0x180   : > { %v1495_v60 = vsel %vm12642_vm7, %v1493_v56, %v1494_v57  ;;  %v3071_v63 = vcombine.low %v14806_v1, %v14686_v51  ;;  %v11031_v39 = vcombine.high %v14686_v51, %v19779_v58  ;;  %v4022_v11 = vrot.slane %v4014_v45, %v12321_v13  ;;  %v14946_v57 = vpop.permute.xlu0 %11607  ;;  %v19800_v56 = vld [vmem:[#allocation82_spill] sm:$0xff] }
 0x181   : > { %v4015_v40 = vcombine.low %v1495_v60, %v19792_v53  ;;  %v14928_v0 = vcombine.low %v4039_v21, %v4046_v42  ;;  %v4171_v30 = vsel %vm4161_vm8, %v19794_v7, %v11500_v59  ;;  %v19797_v2 = vcombine.low %v19795_v37, %v19796_v4 }
 0x182   : > { %v14939_v1 = vrot.slane %v3071_v63, %v12321_v13  ;;  %v14942_v27 = vrot.slane %v11031_v39, %v12321_v13  ;;  %v4134_v10 = vcombine.low %v19799_v50, %v19798_v29  ;;  %v11505_v21 = vunpack.i.h.bf16 %v19800_v56  ;;  %v19801_v63 = vld [vmem:[#allocation83_spill] sm:$0xff] }
 0x183   : > { %19793 = vst [vmem:[#allocation60_spill] sm:$0xff] %v14928_v0  ;;  %v4170_v49 = vsel %vm4161_vm8, %v19797_v2, %v11499_v17  ;;  %v4029_v43 = vrot.slane %v4015_v40, %v12321_v13  ;;  %v11504_v42 = vunpack.i.l.bf16 %v19800_v56  ;;  %v4272_v45 = vsel %vm4265_vm12, %v4246_v9, %v11484_v54  ;;  %2401 = vrot.lane.b32.xlu0 %v14721_v61, %s12226_s12  ;;  %v19802_v2 = vld [vmem:[#allocation39_spill] sm:$0xff] }
 0x184   : > { %v14955_v5 = vrot.slane %v2836_v47, %v12321_v13  ;;  %v4151_v59 = vcombine.low %v14939_v1, %v14942_v27  ;;  %11039 = vmatprep.mubr.msk.f32.mxu0 %vm4161_vm8, %v4134_v10  ;;  %v4298_v17 = vsel %vm4291_vm13, %v4272_v45, %v11489_v36  ;;  %v11510_v39 = vunpack.i.h.bf16 %v19801_v63  ;;  %v19803_v10 = vld [vmem:[#allocation27_spill] sm:$0xff]  ;;  %v19805_v45 = vld [vmem:[#allocation17_spill] sm:$0xff] }
 0x185   : > { %v4030_v40 = vcombine.low %v4022_v11, %v4029_v43  ;;  %v4197_v7 = vsel %vm4187_vm9, %v4171_v30, %v11505_v21  ;;  %v4196_v9 = vsel %vm4187_vm9, %v4170_v49, %v11504_v42  ;;  %v4324_v54 = vsel %vm4317_vm14, %v4298_v17, %v11494_v19  ;;  %v14978_v49 = vpop.permute.xlu1 %11612  ;;  %v19804_v43 = vld [vmem:[#allocation26_spill] sm:$0xff] }
 0x186   : > { %4513 = vmatmul.mubr.f32.gmra.mxu0 %v4324_v54  ;;  %v11509_v61 = vunpack.i.l.bf16 %v19801_v63  ;;  %v4223_v47 = vsel %vm4213_vm10, %v4197_v7, %v11510_v39  ;;  %v3562_v37 = vcombine.low %v1492_v14, %v1495_v60  ;;  %v3779_v4 = vcombine.low %v14686_v51, %v14892_v8  ;;  %v14988_v60 = vpop.permute.xlu0 %11617  ;;  %v19808_v39 = vld [vmem:[#allocation44_spill] sm:$0xff]  ;;  %v19809_v7 = vld [vmem:[#allocation13_spill] sm:$0xff] }
 0x187   : > { %v11771_v36 = vpack.i.bf16 %v14928_v0, %v4030_v40  ;;  %11040 = vmatprep.mubr.msk.f32.mxu0 %vm4161_vm8, %v19802_v2  ;;  %v11515_v11 = vunpack.i.h.bf16 %v14499_v23  ;;  %v11514_v30 = vunpack.i.l.bf16 %v14499_v23  ;;  %v4273_v19 = vsel %vm4265_vm12, %v14870_v52, %v11485_v24  ;;  %3127 = vrot.lane.b32.xlu0 %v14939_v1, %s12223_s28  ;;  %v19814_v2 = vld [vmem:[#allocation65_spill] sm:$0xff]  ;;  %v19860_v1 = vld [vmem:[#allocation11_spill] sm:$0xff] }
 0x188   : > { %v4222_v51 = vsel %vm4213_vm10, %v4196_v9, %v11509_v61  ;;  %v3569_v8 = vrot.slane %v3562_v37, %v12321_v13  ;;  %v3786_v14 = vrot.slane %v3779_v4, %v12321_v13  ;;  %v4299_v23 = vsel %vm4291_vm13, %v4273_v19, %v11490_v22  ;;  %v19811_v61 = vld [vmem:[#allocation35_spill] sm:$0xff] }
 0x189   : > { %11772 = vrot.lane.b32.xlu1 %v11771_v36, %s12227_s13  ;;  %v4248_v52 = vsel %vm4239_vm11, %v4222_v51, %v11514_v30  ;;  %v4249_v15 = vsel %vm4239_vm11, %v4223_v47, %v11515_v11  ;;  %v4325_v24 = vsel %vm4317_vm14, %v4299_v23, %v11495_v31  ;;  %v11520_v29 = vunpack.i.h.bf16 %v14509_v33  ;;  %v19812_v47 = vld [vmem:[#allocation36_spill] sm:$0xff]  ;;  %v15022_v30 = vpop.permute.xlu1 %11622 }
 0x18a   : > { %4518 = vmatmul.mubr.f32.gmra.mxu0 %v4325_v24  ;;  %v11519_v50 = vunpack.i.l.bf16 %v14509_v33  ;;  %v4048_v48 = vcombine.low %v19804_v43, %v19803_v10  ;;  %v11525_v22 = vunpack.i.h.bf16 %v14558_v35  ;;  %v11524_v56 = vunpack.i.l.bf16 %v14558_v35  ;;  %v19807_v33 = vld [vmem:[#allocation47_spill] sm:$0xff]  ;;  %v15029_v24 = vpop.permute.xlu0 %11627 }
 0x18b   : > { %v11530_v21 = vunpack.i.h.bf16 %v14569_v55  ;;  %v11529_v42 = vunpack.i.l.bf16 %v14569_v55  ;;  %v11535_v17 = vunpack.i.h.bf16 %v19805_v45  ;;  %v11534_v31 = vunpack.i.l.bf16 %v19805_v45  ;;  %3835 = vrot.lane.b32.xlu0 %v3786_v14, %s12224_s29  ;;  %v19810_v55 = vld [vmem:[#allocation40_spill] sm:$0xff] }
 0x18c   : > { %v15006_v63 = vrot.slane %v4048_v48, %v12321_v13  ;;  %v4135_v40 = vcombine.low %v19808_v39, %v19807_v33  ;;  %v11540_v9 = vunpack.i.h.bf16 %v19809_v7  ;;  %v11539_v35 = vunpack.i.l.bf16 %v19809_v7 }
 0x18d   : > { %2892 = vrot.lane.b32.xlu1 %v14955_v5, %s12222_s27  ;;  %v4173_v54 = vsel %vm4161_vm8, %v19810_v55, %v11535_v17  ;;  %v19813_v37 = vcombine.low %v19811_v61, %v19812_v47  ;;  %v4274_v36 = vsel %vm4265_vm12, %v4248_v52, %v11519_v50  ;;  %v11545_v11 = vunpack.i.h.bf16 %v19814_v2  ;;  %v19815_v50 = vld [vmem:[#allocation73_spill] sm:$0xff] }
 0x18e   : > { %19806 = vst [vmem:[#allocation16_spill] sm:$0xff] %v15006_v63  ;;  %11041 = vmatprep.mubr.msk.f32.mxu0 %vm4161_vm8, %v4135_v40  ;;  %v4199_v51 = vsel %vm4187_vm9, %v4173_v54, %v11540_v9  ;;  %v4300_v14 = vsel %vm4291_vm13, %v4274_v36, %v11524_v56  ;;  %v11544_v23 = vunpack.i.l.bf16 %v19814_v2  ;;  %v11550_v48 = vunpack.i.h.bf16 %v19815_v50 }
 0x18f   : > { %v4172_v4 = vsel %vm4161_vm8, %v19813_v37, %v11534_v31  ;;  %v4326_v43 = vsel %vm4317_vm14, %v4300_v14, %v11529_v42  ;;  %v4225_v52 = vsel %vm4213_vm10, %v4199_v51, %v11545_v11  ;;  %v11549_v45 = vunpack.i.l.bf16 %v19815_v50  ;;  %4104 = vrot.lane.b32.xlu0 %v15006_v63, %s12227_s13  ;;  %v19816_v31 = vld [vmem:[#allocation20_spill] sm:$0xff]  ;;  %v19817_v42 = vld [vmem:[#allocation45_spill] sm:$0xff]  ;;  %v15063_v51 = vpop.permute.xlu0 %11637  ;;  %v19822_v14 = vld [vmem:[#allocation46_spill] sm:$0xff] }
 0x190   : > { %v4198_v19 = vsel %vm4187_vm9, %v4172_v4, %v11539_v35  ;;  %4523 = vmatmul.mubr.f32.gmra.mxu0 %v4326_v43  ;;  %v4275_v56 = vsel %vm4265_vm12, %v4249_v15, %v11520_v29  ;;  %v11555_v33 = vunpack.i.h.bf16 %v19816_v31  ;;  %v11554_v39 = vunpack.i.l.bf16 %v19816_v31  ;;  %v19818_v35 = vld [vmem:[#allocation64_spill] sm:$0xff]  ;;  %v19823_v43 = vld [vmem:[#allocation41_spill] sm:$0xff] }
 0x191   : > { %v4224_v17 = vsel %vm4213_vm10, %v4198_v19, %v11544_v23  ;;  %3618 = vrot.lane.b32.xlu1 %v3569_v8, %s12228_s14  ;;  %11042 = vmatprep.mubr.msk.f32.mxu0 %vm4161_vm8, %v19817_v42  ;;  %v4251_v7 = vsel %vm4239_vm11, %v4225_v52, %v11550_v48  ;;  %v4301_v9 = vsel %vm4291_vm13, %v4275_v56, %v11525_v22  ;;  %v11560_v55 = vunpack.i.h.bf16 %v19818_v35  ;;  %v19819_v37 = vld [vmem:[#allocation52_spill] sm:$0xff]  ;;  %v15057_v22 = vpop.permute.xlu1 %11632  ;;  %v19824_v52 = vld [vmem:[#allocation42_spill] sm:$0xff] }
 0x192   : > { %v4250_v40 = vsel %vm4239_vm11, %v4224_v17, %v11549_v45  ;;  %v4327_v54 = vsel %vm4317_vm14, %v4301_v9, %v11530_v21  ;;  %v11559_v15 = vunpack.i.l.bf16 %v19818_v35  ;;  %v11565_v29 = vunpack.i.h.bf16 %v14757_v26  ;;  %v19820_v4 = vld [vmem:[#allocation48_spill] sm:$0xff] }
 0x193   : > { %v11564_v61 = vunpack.i.l.bf16 %v14757_v26  ;;  %v11570_v8 = vunpack.i.h.bf16 %v14768_v18  ;;  %v11569_v47 = vunpack.i.l.bf16 %v14768_v18  ;;  %v4136_v36 = vcombine.low %v19820_v4, %v19819_v37  ;;  %v19821_v18 = vld [vmem:[#allocation6_spill] sm:$0xff]  ;;  %v19827_v4 = vld [vmem:[#allocation57_spill] sm:$0xff] }
 0x194   : > { %v11575_v2 = vunpack.i.h.bf16 %v14810_v20  ;;  %4528 = vmatmul.mubr.f32.gmra.mxu0 %v4327_v54  ;;  %v11574_v21 = vunpack.i.l.bf16 %v14810_v20  ;;  %v4276_v11 = vsel %vm4265_vm12, %v4250_v40, %v11554_v39  ;;  %v11580_v19 = vunpack.i.h.bf16 %v14818_v62 }
 0x195   : > { %v11579_v26 = vunpack.i.l.bf16 %v14818_v62  ;;  %3949 = vrot.lane.b32.xlu1 %v19821_v18, %s12225_s30  ;;  %v4175_v23 = vsel %vm4161_vm8, %v19822_v14, %v11570_v8  ;;  %v19825_v50 = vcombine.low %v19823_v43, %v19824_v52  ;;  %11043 = vmatprep.mubr.msk.f32.mxu0 %vm4161_vm8, %v4136_v36  ;;  %v4302_v20 = vsel %vm4291_vm13, %v4276_v11, %v11559_v15  ;;  %v19826_v15 = vld [vmem:[#allocation53_spill] sm:$0xff]  ;;  %v19828_v36 = vld [vmem:[#allocation56_spill] sm:$0xff]  ;;  %v19830_v14 = vld [vmem:[#allocation51_spill] sm:$0xff] }
 0x196   : > { %v11585_v45 = vunpack.i.h.bf16 %v14854_v28  ;;  %v4201_v62 = vsel %vm4187_vm9, %v4175_v23, %v11575_v2  ;;  %v4328_v56 = vsel %vm4317_vm14, %v4302_v20, %v11564_v61  ;;  %v11584_v31 = vunpack.i.l.bf16 %v14854_v28 }
 0x197   : > { %v4174_v48 = vsel %vm4161_vm8, %v19825_v50, %v11569_v47  ;;  %v4277_v42 = vsel %vm4265_vm12, %v4251_v7, %v11555_v33  ;;  %v4227_v40 = vsel %vm4213_vm10, %v4201_v62, %v11580_v19  ;;  %v11589_v54 = vunpack.i.l.bf16 %v14863_v46  ;;  %v15092_v7 = vpop.permute.xlu1 %11642 }
 0x198   : > { %v4200_v17 = vsel %vm4187_vm9, %v4174_v48, %v11574_v21  ;;  %4533 = vmatmul.mubr.f32.gmra.mxu0 %v4328_v56  ;;  %v4303_v35 = vsel %vm4291_vm13, %v4277_v42, %v11560_v55  ;;  %v4253_v61 = vsel %vm4239_vm11, %v4227_v40, %v11585_v45  ;;  %v11590_v8 = vunpack.i.h.bf16 %v14863_v46  ;;  %v15099_v21 = vpop.permute.xlu0 %11647  ;;  %v19832_v48 = vld [vmem:[#allocation50_spill] sm:$0xff] }
 0x199   : > { %v4226_v39 = vsel %vm4213_vm10, %v4200_v17, %v11579_v26  ;;  %11044 = vmatprep.mubr.msk.f32.mxu0 %vm4161_vm8, %v19826_v15  ;;  %v4329_v28 = vsel %vm4317_vm14, %v4303_v35, %v11565_v29  ;;  %v11594_v33 = vunpack.i.l.bf16 %v14894_v38  ;;  %v11599_v47 = vunpack.i.l.bf16 %v14902_v32  ;;  %v19829_v26 = vld [vmem:[#allocation49_spill] sm:$0xff]  ;;  %v19835_v17 = vld [vmem:[#allocation66_spill] sm:$0xff] }
 0x19a   : > { %v4252_v9 = vsel %vm4239_vm11, %v4226_v39, %v11584_v31  ;;  %v11605_v37 = vunpack.i.h.bf16 %v14932_v12  ;;  %v11604_v55 = vunpack.i.l.bf16 %v14932_v12  ;;  %v4137_v2 = vcombine.low %v19828_v36, %v19827_v4  ;;  %v19836_v56 = vld [vmem:[#allocation58_spill] sm:$0xff] }
 0x19b   : > { %v11595_v11 = vunpack.i.h.bf16 %v14894_v38  ;;  %v11610_v29 = vunpack.i.h.bf16 %v14946_v57  ;;  %v11609_v46 = vunpack.i.l.bf16 %v14946_v57  ;;  %v4278_v19 = vsel %vm4265_vm12, %v4252_v9, %v11589_v54  ;;  %v19833_v38 = vld [vmem:[#allocation54_spill] sm:$0xff]  ;;  %v11653_v35 = vpop.permute.xlu1 %11652 }
 0x19c   : > { %4538 = vmatmul.mubr.f32.gmra.mxu0 %v4329_v28  ;;  %v19831_v23 = vcombine.low %v19829_v26, %v19830_v14  ;;  %v4304_v12 = vsel %vm4291_vm13, %v4278_v19, %v11594_v33  ;;  %v11615_v52 = vunpack.i.h.bf16 %v14978_v49  ;;  %v11614_v50 = vunpack.i.l.bf16 %v14978_v49  ;;  %v11658_v33 = vpop.permute.xlu0 %11657  ;;  %v19837_v19 = vld [vmem:[#allocation59_spill] sm:$0xff] }
 0x19d   : > { %v19834_v20 = vcombine.low %v19832_v48, %v19833_v38  ;;  %11045 = vmatprep.mubr.msk.f32.mxu0 %vm4161_vm8, %v4137_v2  ;;  %v4330_v62 = vsel %vm4317_vm14, %v4304_v12, %v11599_v47  ;;  %v4138_v31 = vcombine.low %v19836_v56, %v19835_v17  ;;  %v11619_v42 = vunpack.i.l.bf16 %v14988_v60  ;;  %v19840_v12 = vld [vmem:[#allocation67_spill] sm:$0xff] }
 0x19e   : > { %v4176_v43 = vsel %vm4161_vm8, %v19831_v23, %v11604_v55  ;;  %v11600_v49 = vunpack.i.h.bf16 %v14902_v32  ;;  %v4279_v40 = vsel %vm4265_vm12, %v4253_v61, %v11590_v8  ;;  %v11624_v9 = vunpack.i.l.bf16 %v15022_v30  ;;  %v19838_v23 = vld [vmem:[#allocation68_spill] sm:$0xff] }
 0x19f   : > { %v4177_v45 = vsel %vm4161_vm8, %v19834_v20, %v11605_v37  ;;  %v4202_v57 = vsel %vm4187_vm9, %v4176_v43, %v11609_v46  ;;  %v4305_v15 = vsel %vm4291_vm13, %v4279_v40, %v11595_v11  ;;  %v11629_v28 = vunpack.i.l.bf16 %v15029_v24  ;;  %v11663_v48 = vpop.permute.xlu1 %11662 }
 0x1a0   : > { %v4228_v39 = vsel %vm4213_vm10, %v4202_v57, %v11614_v50  ;;  %v4203_v54 = vsel %vm4187_vm9, %v4177_v45, %v11610_v29  ;;  %4543 = vmatmul.mubr.f32.gmra.mxu0 %v4330_v62  ;;  %v11634_v32 = vunpack.i.l.bf16 %v15057_v22  ;;  %v11620_v61 = vunpack.i.h.bf16 %v14988_v60  ;;  %v11668_v45 = vpop.permute.xlu0 %11667  ;;  %v19841_v57 = vld [vmem:[#allocation55_spill] sm:$0xff]  ;;  %v19842_v62 = vld [vmem:[#allocation61_spill] sm:$0xff] }
 0x1a1   : > { %v4229_v47 = vsel %vm4213_vm10, %v4203_v54, %v11615_v52  ;;  %11046 = vmatprep.mubr.msk.f32.mxu0 %vm4161_vm8, %v4138_v31  ;;  %v4254_v37 = vsel %vm4239_vm11, %v4228_v39, %v11619_v42  ;;  %v11639_v8 = vunpack.i.l.bf16 %v15063_v51  ;;  %v11644_v55 = vunpack.i.l.bf16 %v15092_v7 }
 0x1a2   : > { %v4280_v4 = vsel %vm4265_vm12, %v4254_v37, %v11624_v9  ;;  %v4331_v36 = vsel %vm4317_vm14, %v4305_v15, %v11600_v49  ;;  %v11625_v2 = vunpack.i.h.bf16 %v15022_v30  ;;  %v11640_v11 = vunpack.i.h.bf16 %v15063_v51  ;;  %v19839_v51 = vld [vmem:[#allocation70_spill] sm:$0xff] }
 0x1a3   : > { %v11649_v29 = vunpack.i.l.bf16 %v15099_v21  ;;  %v11630_v46 = vunpack.i.h.bf16 %v15029_v24  ;;  %v4178_v60 = vsel %vm4161_vm8, %v19837_v19, %v11639_v8  ;;  %v11645_v26 = vunpack.i.h.bf16 %v15092_v7  ;;  %v11673_v37 = vpop.permute.xlu1 %11672  ;;  %v19844_v8 = vld [vmem:[#allocation76_spill] sm:$0xff] }
 0x1a4   : > { %4548 = vmatmul.mubr.f32.gmra.mxu0 %v4331_v36  ;;  %v4306_v14 = vsel %vm4291_vm13, %v4280_v4, %v11629_v28  ;;  %v4204_v43 = vsel %vm4187_vm9, %v4178_v60, %v11644_v55  ;;  %v4139_v52 = vcombine.low %v19840_v12, %v19839_v51  ;;  %v11654_v50 = vunpack.i.l.bf16 %v11653_v35  ;;  %v19845_v4 = vld [vmem:[#allocation75_spill] sm:$0xff]  ;;  %v19846_v36 = vld [vmem:[#allocation81_spill] sm:$0xff] }
 0x1a5   : > { %11047 = vmatprep.mubr.msk.f32.mxu0 %vm4161_vm8, %v19838_v23  ;;  %v4332_v30 = vsel %vm4317_vm14, %v4306_v14, %v11634_v32  ;;  %v4255_v24 = vsel %vm4239_vm11, %v4229_v47, %v11620_v61  ;;  %v11635_v38 = vunpack.i.h.bf16 %v15057_v22  ;;  %v4230_v7 = vsel %vm4213_vm10, %v4204_v43, %v11649_v29  ;;  %v19847_v43 = vld [vmem:[#allocation84_spill] sm:$0xff]  ;;  %v19848_v51 = vld [vmem:[#allocation69_spill] sm:$0xff] }
 0x1a6   : > { %v11659_v20 = vunpack.i.l.bf16 %v11658_v33  ;;  %v19843_v17 = vcombine.low %v19841_v57, %v19842_v62  ;;  %v11650_v31 = vunpack.i.h.bf16 %v15099_v21  ;;  %v4256_v39 = vsel %vm4239_vm11, %v4230_v7, %v11654_v50  ;;  %v19849_v7 = vld [vmem:[#allocation62_spill] sm:$0xff] }
 0x1a7   : > { %v4281_v42 = vsel %vm4265_vm12, %v4255_v24, %v11625_v2  ;;  %v11655_v40 = vunpack.i.h.bf16 %v11653_v35  ;;  %v11664_v22 = vunpack.i.l.bf16 %v11663_v48  ;;  %v11669_v9 = vunpack.i.l.bf16 %v11668_v45  ;;  %v11683_v19 = vpop.permute.xlu1 %11682 }
 0x1a8   : > { %v4179_v56 = vsel %vm4161_vm8, %v19843_v17, %v11640_v11  ;;  %4553 = vmatmul.mubr.f32.gmra.mxu0 %v4332_v30  ;;  %v4307_v54 = vsel %vm4291_vm13, %v4281_v42, %v11630_v46  ;;  %v4282_v15 = vsel %vm4265_vm12, %v4256_v39, %v11659_v20  ;;  %v11660_v47 = vunpack.i.h.bf16 %v11658_v33  ;;  %v11678_v11 = vpop.permute.xlu0 %11677  ;;  %v19850_v20 = vld [vmem:[#allocation63_spill] sm:$0xff] }
 0x1a9   : > { %v4205_v49 = vsel %vm4187_vm9, %v4179_v56, %v11645_v26  ;;  %11048 = vmatprep.mubr.msk.f32.mxu0 %vm4161_vm8, %v4139_v52  ;;  %v4333_v21 = vsel %vm4317_vm14, %v4307_v54, %v11635_v38  ;;  %v4308_v32 = vsel %vm4291_vm13, %v4282_v15, %v11664_v22  ;;  %v11665_v35 = vunpack.i.h.bf16 %v11663_v48 }
 0x1aa   : > { %v4231_v28 = vsel %vm4213_vm10, %v4205_v49, %v11650_v31  ;;  %v4334_v55 = vsel %vm4317_vm14, %v4308_v32, %v11669_v9  ;;  %v4140_v2 = vcombine.low %v19846_v36, %v19845_v4  ;;  %v11670_v29 = vunpack.i.h.bf16 %v11668_v45 }
 0x1ab   : > { %v4257_v61 = vsel %vm4239_vm11, %v4231_v28, %v11655_v40  ;;  %v11674_v60 = vunpack.i.l.bf16 %v11673_v37  ;;  %v11679_v23 = vunpack.i.l.bf16 %v11678_v11  ;;  %v11675_v30 = vunpack.i.h.bf16 %v11673_v37  ;;  %v11693_v50 = vpop.permute.xlu1 %11692 }
 0x1ac   : > { %4558 = vmatmul.mubr.f32.gmra.mxu0 %v4333_v21  ;;  %v4283_v46 = vsel %vm4265_vm12, %v4257_v61, %v11660_v47  ;;  %v11688_v14 = vpop.permute.xlu0 %11687  ;;  %v11684_v52 = vunpack.i.l.bf16 %v11683_v19  ;;  %v11680_v48 = vunpack.i.h.bf16 %v11678_v11  ;;  %v19851_v45 = vcombine.low %v19849_v7, %v19850_v20 }
 0x1ad   : > { %11049 = vmatprep.mubr.msk.f32.mxu0 %vm4161_vm8, %v19844_v8  ;;  %v4309_v33 = vsel %vm4291_vm13, %v4283_v46, %v11665_v35  ;;  %v4180_v12 = vsel %vm4161_vm8, %v19848_v51, %v11674_v60  ;;  %v11689_v38 = vunpack.i.l.bf16 %v11688_v14  ;;  %v11685_v62 = vunpack.i.h.bf16 %v11683_v19  ;;  %v9188_v19 = vld [vmem:[%s19348_s6 + $0x108] sm:$0xff]  ;;  %v9187_v60 = vld [vmem:[%s19348_s6 + $0x100] sm:$0xff] }
 0x1ae   : > { %v4335_v26 = vsel %vm4317_vm14, %v4309_v33, %v11670_v29  ;;  %v4206_v24 = vsel %vm4187_vm9, %v4180_v12, %v11679_v23  ;;  %v4181_v57 = vsel %vm4161_vm8, %v19851_v45, %v11675_v30  ;;  %v11694_v56 = vunpack.i.l.bf16 %v11693_v50 }
 0x1af   : > { %v4232_v17 = vsel %vm4213_vm10, %v4206_v24, %v11684_v52  ;;  %v4207_v39 = vsel %vm4187_vm9, %v4181_v57, %v11680_v48  ;;  %v11690_v42 = vunpack.i.h.bf16 %v11688_v14  ;;  %v11695_v9 = vunpack.i.h.bf16 %v11693_v50  ;;  %v19853_v14 = vld [vmem:[#allocation77_spill] sm:$0xff]  ;;  %v19854_v48 = vld [vmem:[#allocation71_spill] sm:$0xff]  ;;  %v19855_v24 = vld [vmem:[#allocation72_spill] sm:$0xff] }
 0x1b0   : > { %4563 = vmatmul.mubr.f32.gmra.mxu0 %v4334_v55  ;;  %v11698_v31 = vpop.permute.xlu0 %11697  ;;  %v4258_v49 = vsel %vm4239_vm11, %v4232_v17, %v11689_v38  ;;  %v4233_v22 = vsel %vm4213_vm10, %v4207_v39, %v11685_v62  ;;  %v4141_v21 = vcombine.low %v14760_v25, %v14476_v6  ;;  %v4142_v55 = vcombine.low %v14763_v44, %v14955_v5  ;;  %v9189_v44 = vld [vmem:[%s19348_s6 + $0x110] sm:$0xff] }
 0x1b1   : > { %11050 = vmatprep.mubr.msk.f32.mxu0 %vm4161_vm8, %v4140_v2  ;;  %v11699_v40 = vunpack.i.l.bf16 %v11698_v31  ;;  %v4284_v54 = vsel %vm4265_vm12, %v4258_v49, %v11694_v56  ;;  %v4259_v47 = vsel %vm4239_vm11, %v4233_v22, %v11690_v42  ;;  %v11700_v37 = vunpack.i.h.bf16 %v11698_v31  ;;  %v9190_v2 = vld [vmem:[%s19348_s6 + $0x118] sm:$0xff] }
 0x1b2   : > { %v4285_v8 = vsel %vm4265_vm12, %v4259_v47, %v11695_v9  ;;  %11179 = vmatpush3.msra.mxu0 %v9190_v2  ;;  %v19852_v29 = vmov 0.0   ;;  %v19856_v38 = vcombine.low %v19854_v48, %v19855_v24  ;;  %v19858_v2 = vld [vmem:[#allocation78_spill] sm:$0xff] }
 0x1b3   : > { %v4310_v32 = vsel %vm4291_vm13, %v4284_v54, %v11699_v40  ;;  %v4311_v4 = vsel %vm4291_vm13, %v4285_v8, %v11700_v37  ;;  %11180 = vmatprep.subr.mxu0 %v19852_v29 }
 0x1b4   : > { %4568 = vmatmul.mubr.f32.gmra.mxu0 %v4335_v26 }
 0x1b5   : > { %11051 = vmatprep.mubr.msk.f32.mxu0 %vm4161_vm8, %v19847_v43  ;;  %11181 = vmatpush3.msra.mxu0 %v9189_v44 }
 0x1b6   : > { %11182 = vmatprep.subr.mxu0 %v19852_v29 }
 0x1b7   : > { %v11708_v25 = vpop.permute.xlu0 %11707  ;;  %11183 = vmatpush3.msra.mxu0 %v9188_v19 }
 0x1b8   : > { %v11709_v5 = vunpack.i.l.bf16 %v11708_v25  ;;  %11184 = vmatprep.subr.mxu0 %v19852_v29  ;;  %v11710_v26 = vunpack.i.h.bf16 %v11708_v25 }
 0x1b9   : > { %v11703_v15 = vpop.permute.xlu1 %11702  ;;  %11185 = vmatpush3.msra.mxu0 %v9187_v60 }
 0x1ba   : > { %v11704_v28 = vunpack.i.l.bf16 %v11703_v15  ;;  %v11705_v61 = vunpack.i.h.bf16 %v11703_v15  ;;  %v4182_v23 = vsel %vm4161_vm8, %v19853_v14, %v11709_v5  ;;  %10830 = vmatprep.subr.mxu0 %v19852_v29  ;;  %v4183_v7 = vsel %vm4161_vm8, %v19856_v38, %v11710_v26 }
 0x1bb   : > { %v11718_v11 = vpop.permute.xlu0 %11717 }
 0x1bc   : > { %v4336_v35 = vsel %vm4317_vm14, %v4310_v32, %v11704_v28  ;;  %v4337_v6 = vsel %vm4317_vm14, %v4311_v4, %v11705_v61  ;;  %v11719_v43 = vunpack.i.l.bf16 %v11718_v11  ;;  %v11720_v20 = vunpack.i.h.bf16 %v11718_v11 }
 0x1bd   : > { %4573 = vmatmul.mubr.f32.gmra.mxu0 %v4336_v35  ;;  %v11713_v36 = vpop.permute.xlu1 %11712 }
 0x1be   : > { %11052 = vmatprep.mubr.msk.f32.mxu0 %vm4161_vm8, %v4141_v21  ;;  %v11714_v46 = vunpack.i.l.bf16 %v11713_v36  ;;  %v11715_v30 = vunpack.i.h.bf16 %v11713_v36  ;;  %v19857_v36 = vld [vmem:[#allocation9_spill] sm:$0xff] }
 0x1bf   : > { %v19859_v11 = vcombine.low %v19857_v36, %v19858_v2  ;;  %v15292_v2 = vld [vmem:[%s19347_s5] ss:$0 sm:$0xff] }
 0x1c0   : > { %v4208_v51 = vsel %vm4187_vm9, %v4182_v23, %v11714_v46  ;;  %v4209_v62 = vsel %vm4187_vm9, %v4183_v7, %v11715_v30 }
 0x1c1   : > { %4578 = vmatmul.mubr.f32.gmra.mxu0 %v4337_v6  ;;  %v4234_v45 = vsel %vm4213_vm10, %v4208_v51, %v11719_v43  ;;  %v4235_v39 = vsel %vm4213_vm10, %v4209_v62, %v11720_v20  ;;  %v19861_v20 = vld [vmem:[#allocation74_spill] sm:$0xff]  ;;  %v19864_v62 = vld [vmem:[#allocation19_spill] sm:$0xff] }
 0x1c2   : > { %11053 = vmatprep.mubr.msk.f32.mxu0 %vm4161_vm8, %v4142_v55 }
 0x1cd   : > { %v11728_v52 = vpop.permute.xlu0 %11727 }
 0x1ce   : > { %v11729_v57 = vunpack.i.l.bf16 %v11728_v52  ;;  %v11730_v42 = vunpack.i.h.bf16 %v11728_v52 }
 0x1d0   : > { %v11723_v33 = vpop.permute.xlu1 %11722 }
 0x1d1   : > { %v11724_v12 = vunpack.i.l.bf16 %v11723_v33  ;;  %v11725_v17 = vunpack.i.h.bf16 %v11723_v33 }
 0x1d3   : > { %v4260_v56 = vsel %vm4239_vm11, %v4234_v45, %v11724_v12  ;;  %v4261_v40 = vsel %vm4239_vm11, %v4235_v39, %v11725_v17  ;;  %v19862_v45 = vld [vmem:[#allocation5_spill] sm:$0xff]  ;;  %v19865_v17 = vld [vmem:[#allocation4_spill] sm:$0xff] }
 0x1d4   : > { %v4286_v49 = vsel %vm4265_vm12, %v4260_v56, %v11729_v57  ;;  %v4287_v47 = vsel %vm4265_vm12, %v4261_v40, %v11730_v42  ;;  %v15259_v57 = vcombine.low %v19862_v45, %v19861_v20  ;;  %v4153_v56 = vcombine.low %v19865_v17, %v19864_v62 }
 0x1d6   : > { %19863 = vst [vmem:[#allocation2_spill] sm:$0xff] %v15259_v57 }
 0x1d7   : > { %v11733_v50 = vpop.permute.xlu1 %11732 }
 0x1d8   : > { %v11734_v31 = vunpack.i.l.bf16 %v11733_v50  ;;  %v11735_v22 = vunpack.i.h.bf16 %v11733_v50 }
 0x1da   : > { %v4312_v54 = vsel %vm4291_vm13, %v4286_v49, %v11734_v31  ;;  %v4313_v37 = vsel %vm4291_vm13, %v4287_v47, %v11735_v22 }
 0x1db   : > { %v11743_v32 = vpop.permute.xlu1 %11742 }
 0x1dc   : > { %v11744_v55 = vunpack.i.l.bf16 %v11743_v32  ;;  %v11745_v25 = vunpack.i.h.bf16 %v11743_v32 }
 0x1de   : > { %v4185_v27 = vsel %vm4161_vm8, %v19860_v1, %v11745_v25  ;;  %v15287_v25 = vld [vmem:[%s19346_s4] ss:$0 sm:$0xff] }
 0x1df   : > { %v11738_v9 = vpop.permute.xlu0 %11737 }
 0x1e0   : > { %v11739_v15 = vunpack.i.l.bf16 %v11738_v9  ;;  %v11740_v28 = vunpack.i.h.bf16 %v11738_v9 }
 0x1e2   : > { %v4338_v21 = vsel %vm4317_vm14, %v4312_v54, %v11739_v15  ;;  %v4339_v35 = vsel %vm4317_vm14, %v4313_v37, %v11740_v28 }
 0x1e3   : > { %4583 = vmatmul.mubr.f32.gmra.mxu0 %v4338_v21  ;;  %v11748_v61 = vpop.permute.xlu0 %11747  ;;  %v15273_v21 = vrot.slane %v4153_v56, %v12321_v13 }
 0x1e4   : > { %11054 = vmatprep.mubr.msk.f32.mxu0 %vm4161_vm8, %v14828_v34  ;;  %v11749_v6 = vunpack.i.l.bf16 %v11748_v61  ;;  %v4184_v34 = vsel %vm4161_vm8, %v19859_v11, %v11744_v55  ;;  %v11750_v33 = vunpack.i.h.bf16 %v11748_v61 }
 0x1e5   : > { %19866 = vst [vmem:[#allocation15_spill] sm:$0xff] %v15273_v21 }
 0x1e6   : > { %v4210_v19 = vsel %vm4187_vm9, %v4184_v34, %v11749_v6  ;;  %v4211_v43 = vsel %vm4187_vm9, %v4185_v27, %v11750_v33 }
 0x1e7   : > { %4588 = vmatmul.mubr.f32.gmra.mxu0 %v4339_v35  ;;  %v11753_v8 = vpop.permute.xlu1 %11752 }
 0x1e8   : > { %11055 = vmatprep.mubr.msk.f32.mxu0 %vm4161_vm8, %v4151_v59  ;;  %v11754_v44 = vunpack.i.l.bf16 %v11753_v8  ;;  %v11755_v59 = vunpack.i.h.bf16 %v11753_v8 }
 0x1ea   : > { %v4236_v26 = vsel %vm4213_vm10, %v4210_v19, %v11754_v44  ;;  %v4237_v52 = vsel %vm4213_vm10, %v4211_v43, %v11755_v59 }
 0x1ed   : > { %v11758_v4 = vpop.permute.xlu0 %11757 }
 0x1ee   : > { %v11759_v60 = vunpack.i.l.bf16 %v11758_v4  ;;  %v11760_v30 = vunpack.i.h.bf16 %v11758_v4 }
 0x1f0   : > { %v11763_v46 = vpop.permute.xlu1 %11762  ;;  %v4262_v51 = vsel %vm4239_vm11, %v4236_v26, %v11759_v60  ;;  %v4263_v31 = vsel %vm4239_vm11, %v4237_v52, %v11760_v30 }
 0x1f1   : > { %v11768_v5 = vpop.permute.xlu0 %11767  ;;  %v11764_v14 = vunpack.i.l.bf16 %v11763_v46  ;;  %v11765_v50 = vunpack.i.h.bf16 %v11763_v46 }
 0x1f2   : > { %v11769_v12 = vunpack.i.l.bf16 %v11768_v5  ;;  %v11770_v39 = vunpack.i.h.bf16 %v11768_v5 }
 0x1f3   : > { %v4288_v48 = vsel %vm4265_vm12, %v4262_v51, %v11764_v14  ;;  %v4289_v9 = vsel %vm4265_vm12, %v4263_v31, %v11765_v50 }
 0x1f4   : > { %v4314_v49 = vsel %vm4291_vm13, %v4288_v48, %v11769_v12 }
 0x1f5   : > { %v2402_v23 = vpop.permute.xlu0 %2401 }
 0x1f6   : > { %v4186_v42 = vsel %vm4161_vm8, %v14637_v3, %v2402_v23  ;;  %v4315_v3 = vsel %vm4291_vm13, %v4289_v9, %v11770_v39 }
 0x1f9   : > { %v3128_v24 = vpop.permute.xlu0 %3127 }
 0x1fb   : > { %v11773_v38 = vpop.permute.xlu1 %11772 }
 0x1fc   : > { %v11774_v7 = vunpack.i.l.bf16 %v11773_v38  ;;  %v11775_v40 = vunpack.i.h.bf16 %v11773_v38 }
 0x1fd   : > { %v3836_v28 = vpop.permute.xlu0 %3835 }
 0x1fe   : > { %v4340_v22 = vsel %vm4317_vm14, %v4314_v49, %v11774_v7  ;;  %v4341_v47 = vsel %vm4317_vm14, %v4315_v3, %v11775_v40 }
 0x1ff   : > { %v2893_v54 = vpop.permute.xlu1 %2892  ;;  %4593 = vmatmul.mubr.f32.gmra.mxu0 %v4340_v22 }
 0x200   : > { %v4212_v15 = vsel %vm4187_vm9, %v4186_v42, %v2893_v54  ;;  %11056 = vmatprep.mubr.msk.f32.mxu0 %vm4161_vm8, %v15259_v57 }
 0x201   : > { %v4238_v37 = vsel %vm4213_vm10, %v4212_v15, %v3128_v24  ;;  %v4105_v35 = vpop.permute.xlu0 %4104 }
 0x203   : > { %v3619_v32 = vpop.permute.xlu1 %3618  ;;  %4598 = vmatmul.mubr.f32.gmra.mxu0 %v4341_v47 }
 0x204   : > { %v4264_v61 = vsel %vm4239_vm11, %v4238_v37, %v3619_v32  ;;  %11057 = vmatprep.mubr.msk.f32.mxu0 %vm4161_vm8, %v15273_v21 }
 0x205   : > { %v4290_v8 = vsel %vm4265_vm12, %v4264_v61, %v3836_v28 }
 0x207   : > { %v3950_v55 = vpop.permute.xlu1 %3949 }
 0x208   : > { %v4316_v4 = vsel %vm4291_vm13, %v4290_v8, %v3950_v55  ;;  %v4484_v36 = vpop.f32.mrf.mxu0 }
 0x209   : > { %v4342_v6 = vsel %vm4317_vm14, %v4316_v4, %v4105_v35  ;;  %v4485_v11 = vadd.f32 %v15287_v25, %v4484_v36 }
 0x20a   : > { %4603 = vmatmul.mubr.f32.gmra.mxu0 %v4342_v6  ;;  %v4486_v34 = vpop.f32.mrf.mxu0 }
 0x20b   : > { %11186 = vmatprep.mubr.msk.f32.mxu0 %vm12229_vm15, %v19852_v29  ;;  %vm4608_vm2 = vcmp.gt.f32.partialorder %v4485_v11, 0.0  ;;  %v4640_v44 = vmul.f32 %v15292_v2, %v4485_v11 }
 0x20d   : > { %v4665_v5 = vsel %vm4608_vm2, %v4485_v11, %v4640_v44 }
 0x20e   : > { %v4715_v46 = vcombine.high %v4665_v5, %v4665_v5  ;;  %v4722_v33 = vrot.slane %v4665_v5, %v12321_v13 }
 0x210   : > { %v4729_v19 = vrot.slane %v4715_v46, %v12321_v13  ;;  %v4730_v60 = vcombine.high %v4722_v33, %v4722_v33 }
 0x211   : > { %v4489_v1 = vpop.f32.mrf.mxu0 }
 0x212   : > { %v4490_v27 = vadd.f32 %v15287_v25, %v4489_v1  ;;  %v4731_v59 = vcombine.high %v4729_v19, %v4729_v19  ;;  %v5131_v26 = vcombine.low %v4722_v33, %v4730_v60 }
 0x213   : > { %v4491_v14 = vpop.f32.mrf.mxu0 }
 0x214   : > { %vm4609_vm3 = vcmp.gt.f32.partialorder %v4490_v27, 0.0  ;;  %v4641_v23 = vmul.f32 %v15292_v2, %v4490_v27  ;;  %v5132_v43 = vcombine.low %v4729_v19, %v4731_v59  ;;  %v5139_v51 = vrot.slane %v5131_v26, %v12321_v13 }
 0x216   : > { %v4666_v30 = vsel %vm4609_vm3, %v4490_v27, %v4641_v23  ;;  %v5146_v12 = vrot.slane %v5132_v43, %v12321_v13 }
 0x217   : > { %v4732_v52 = vcombine.high %v4666_v30, %v4666_v30  ;;  %v4739_v50 = vrot.slane %v4666_v30, %v12321_v13 }
 0x218   : > { %v5147_v48 = vcombine.low %v5139_v51, %v5146_v12 }
 0x219   : > { %v15306_v24 = vrot.slane %v4732_v52, %v12321_v13  ;;  %v4747_v38 = vcombine.high %v4739_v50, %v4739_v50 }
 0x21a   : > { %v5593_v7 = vrot.slane %v5147_v48, 7  ;;  %v19871_v48 = vld [vmem:[#allocation29_spill] sm:$0xff] }
 0x21b   : > { %v5148_v45 = vcombine.low %v4739_v50, %v4747_v38  ;;  %v5162_v31 = vrot.slane %v15306_v24, %v12321_v13  ;;  %v4748_v61 = vcombine.high %v15306_v24, %v15306_v24 }
 0x21c   : > { %v5663_v62 = vsel %vm514_vm0, 0.0, %v5593_v7 }
 0x21d   : > { %v5155_v56 = vrot.slane %v5148_v45, %v12321_v13  ;;  %v5717_v39 = vcombine.high %v5663_v62, %v5663_v62  ;;  %v15313_v42 = vrot.slane %v5663_v62, %v12321_v13 }
 0x21f   : > { %19867 = vst [vmem:[#allocation18_spill] sm:$0xff] %v15313_v42  ;;  %v5163_v49 = vcombine.low %v5155_v56, %v5162_v31  ;;  %v15316_v40 = vrot.slane %v5717_v39, %v12321_v13  ;;  %v15320_v22 = vcombine.high %v15313_v42, %v15313_v42  ;;  %v11073_v9 = vcombine.high %v19865_v17, %v15313_v42 }
 0x220   : > { %v11059_v15 = vrot.slane %v15313_v42, 9 }
 0x221   : > { %v5594_v54 = vrot.slane %v5163_v49, 7  ;;  %v15327_v28 = vcombine.high %v15316_v40, %v15316_v40  ;;  %v6512_v3 = vcombine.low %v15320_v22, %v15316_v40  ;;  %v6161_v47 = vrot.slane %v15320_v22, 7 }
 0x222   : > { %v6164_v37 = vrot.slane %v15316_v40, 7  ;;  %v15337_v35 = vrot.slane %v11073_v9, %v12321_v13  ;;  %v7850_v8 = vcombine.low %v15313_v42, %v15320_v22 }
 0x223   : > { %v5595_v32 = vsel %vm514_vm0, %v5593_v7, %v5594_v54  ;;  %v6520_v4 = vrot.slane %v6512_v3, %v12321_v13  ;;  %v15345_v6 = vsel %vm12642_vm7, %v11059_v15, %v6161_v47  ;;  %v6163_v36 = vrot.slane %v6161_v47, 2  ;;  %v19876_v3 = vld [vmem:[#allocation28_spill] sm:$0xff] }
 0x224   : > { %v5677_v55 = vsel %vm604_vm1, %v5595_v32, 0.0  ;;  %19868 = vst [vmem:[#allocation30_spill] sm:$0xff] %v15345_v6  ;;  %v6918_v44 = vcombine.low %v19803_v10, %v15345_v6  ;;  %v6166_v5 = vrot.slane %v6164_v37, 2  ;;  %v6167_v19 = vrot.slane %v15327_v28, 7 }
 0x225   : > { %v5734_v11 = vcombine.high %v5677_v55, %v5677_v55  ;;  %v15348_v34 = vrot.slane %v5677_v55, %v12321_v13  ;;  %v15354_v33 = vsel %vm12642_vm7, %v6163_v36, %v6164_v37  ;;  %v7393_v1 = vcombine.low %v15316_v40, %v15327_v28 }
 0x226   : > { %v4494_v46 = vpop.f32.mrf.mxu0  ;;  %19869 = vst [vmem:[#allocation33_spill] sm:$0xff] %v15354_v33  ;;  %v15372_v23 = vrot.slane %v6918_v44, %v12321_v13  ;;  %v15376_v43 = vsel %vm12642_vm7, %v6166_v5, %v6167_v19  ;;  %v6169_v30 = vrot.slane %v6167_v19, 2 }
 0x227   : > { %v15362_v27 = vrot.slane %v5734_v11, %v12321_v13  ;;  %v4495_v59 = vadd.f32 %v15287_v25, %v4494_v46  ;;  %v6513_v10 = vcombine.low %v15327_v28, %v15348_v34  ;;  %v15369_v26 = vcombine.high %v15348_v34, %v15348_v34  ;;  %19870 = vst [vmem:[#allocation32_spill] sm:$0xff] %v15376_v43 }
 0x228   : > { %v4496_v14 = vpop.f32.mrf.mxu0  ;;  %v6170_v51 = vrot.slane %v15348_v34, 7  ;;  %v6926_v24 = vcombine.low %v19871_v48, %v15372_v23  ;;  %v6927_v39 = vcombine.low %v15354_v33, %v15376_v43 }
 0x229   : > { %vm4610_vm4 = vcmp.gt.f32.partialorder %v4495_v59, 0.0  ;;  %v4642_v12 = vmul.f32 %v15292_v2, %v4495_v59  ;;  %v6527_v52 = vrot.slane %v6513_v10, %v12321_v13  ;;  %v6529_v50 = vcombine.low %v15369_v26, %v15362_v27 }
 0x22a   : > { %v15387_v38 = vsel %vm12642_vm7, %v6169_v30, %v6170_v51  ;;  %v6172_v7 = vrot.slane %v6170_v51, 2  ;;  %v6173_v45 = vrot.slane %v15369_v26, 7  ;;  %v15410_v32 = vrot.slane %v6927_v39, %v12321_v13 }
 0x22b   : > { %19872 = vst [vmem:[#allocation37_spill] sm:$0xff] %v15387_v38  ;;  %v4667_v62 = vsel %vm4610_vm4, %v4495_v59, %v4642_v12  ;;  %v15390_v56 = vcombine.low %v6520_v4, %v6527_v52  ;;  %v15393_v31 = vrot.slane %v6529_v50, %v12321_v13  ;;  %v15422_v19 = vcombine.high %v15362_v27, %v15362_v27 }
 0x22c   : > { %v4749_v49 = vcombine.high %v4667_v62, %v4667_v62  ;;  %v4756_v40 = vrot.slane %v4667_v62, %v12321_v13  ;;  %v15400_v54 = vsel %vm12642_vm7, %v6172_v7, %v6173_v45  ;;  %v6175_v14 = vrot.slane %v6173_v45, 2 }
 0x22d   : > { %19873 = vst [vmem:[#allocation8_spill] sm:$0xff] %v15390_v56  ;;  %19874 = vst [vmem:[#allocation10_spill] sm:$0xff] %v15393_v31  ;;  %v4499_v9 = vpop.f32.mrf.mxu0  ;;  %v11776_v47 = vpack.i.bf16 %v19876_v3, %v15390_v56  ;;  %v6928_v37 = vcombine.low %v15387_v38, %v15400_v54  ;;  %v6176_v12 = vrot.slane %v15362_v27, 7  ;;  %v6179_v52 = vrot.slane %v15422_v19, 7 }
 0x22e   : > { %19875 = vst [vmem:[#allocation23_spill] sm:$0xff] %v15400_v54  ;;  %v4500_v28 = vadd.f32 %v15287_v25, %v4499_v9  ;;  %v4763_v55 = vrot.slane %v4749_v49, %v12321_v13  ;;  %v4764_v4 = vcombine.high %v4756_v40, %v4756_v40  ;;  %v5164_v36 = vcombine.low %v4748_v61, %v4756_v40 }
 0x22f   : > { %v4501_v11 = vpop.f32.mrf.mxu0  ;;  %11777 = vrot.lane.b32.xlu1 %v11776_v47, %s12222_s27  ;;  %v15418_v46 = vrot.slane %v6928_v37, %v12321_v13  ;;  %v15432_v49 = vrot.slane %v7393_v1, %v12321_v13  ;;  %v15437_v45 = vsel %vm12642_vm7, %v6175_v14, %v6176_v12  ;;  %v6178_v9 = vrot.slane %v6176_v12, 2 }
 0x230   : > { %vm4611_vm5 = vcmp.gt.f32.partialorder %v4500_v28, 0.0  ;;  %v4643_v5 = vmul.f32 %v15292_v2, %v4500_v28  ;;  %v5165_v59 = vcombine.low %v4764_v4, %v4763_v55  ;;  %v5172_v10 = vrot.slane %v5164_v36, %v12321_v13  ;;  %19877 = vst [vmem:[#allocation22_spill] sm:$0xff] %v15437_v45 }
 0x231   : > { %v4765_v61 = vcombine.high %v4763_v55, %v4763_v55  ;;  %v15449_v36 = vsel %vm12642_vm7, %v6178_v9, %v6179_v52 }
 0x232   : > { %v4668_v30 = vsel %vm4611_vm5, %v4500_v28, %v4643_v5  ;;  %v5179_v50 = vrot.slane %v5165_v59, %v12321_v13  ;;  %v15443_v28 = vrot.slane %v7850_v8, %v12321_v13  ;;  %19878 = vst [vmem:[#allocation25_spill] sm:$0xff] %v15449_v36 }
 0x233   : > { %v4766_v7 = vcombine.high %v4668_v30, %v4668_v30  ;;  %v4773_v62 = vrot.slane %v4668_v30, %v12321_v13 }
 0x234   : > { %v5180_v3 = vcombine.low %v5172_v10, %v5179_v50 }
 0x235   : > { %v4504_v39 = vpop.f32.mrf.mxu0  ;;  %v4780_v47 = vrot.slane %v4766_v7, %v12321_v13  ;;  %v4781_v37 = vcombine.high %v4773_v62, %v4773_v62  ;;  %v5181_v55 = vcombine.low %v4765_v61, %v4773_v62  ;;  %v6944_v61 = vcombine.low %v15437_v45, %v15449_v36 }
 0x236   : > { %v4505_v40 = vadd.f32 %v15287_v25, %v4504_v39  ;;  %v5596_v5 = vrot.slane %v5180_v3, 7 }
 0x237   : > { %v4506_v1 = vpop.f32.mrf.mxu0  ;;  %v4782_v22 = vcombine.high %v4780_v47, %v4780_v47  ;;  %v5188_v8 = vrot.slane %v5181_v55, %v12321_v13  ;;  %v5195_v59 = vrot.slane %v4781_v37, %v12321_v13  ;;  %v15467_v3 = vrot.slane %v6944_v61, %v12321_v13 }
 0x238   : > { %vm4612_vm6 = vcmp.gt.f32.partialorder %v4505_v40, 0.0  ;;  %v4644_v4 = vmul.f32 %v15292_v2, %v4505_v40  ;;  %v5664_v12 = vsel %vm514_vm0, 0.0, %v5596_v5 }
 0x239   : > { %v5196_v52 = vcombine.low %v5188_v8, %v5195_v59  ;;  %v5197_v50 = vcombine.low %v4780_v47, %v4782_v22  ;;  %v5750_v62 = vcombine.high %v5664_v12, %v5664_v12  ;;  %v15463_v39 = vrot.slane %v5664_v12, %v12321_v13 }
 0x23a   : > { %v4669_v10 = vsel %vm4612_vm6, %v4505_v40, %v4644_v4 }
 0x23b   : > { %v4783_v7 = vcombine.high %v4669_v10, %v4669_v10  ;;  %v4790_v40 = vrot.slane %v4669_v10, %v12321_v13  ;;  %v5205_v37 = vrot.slane %v5197_v50, %v12321_v13  ;;  %v5597_v55 = vrot.slane %v5196_v52, 7 }
 0x23c   : > { %v4509_v9 = vpop.f32.mrf.mxu0  ;;  %v15473_v47 = vrot.slane %v5750_v62, %v12321_v13  ;;  %v11080_v59 = vcombine.high %v15362_v27, %v15463_v39  ;;  %v15479_v10 = vcombine.high %v15463_v39, %v15463_v39 }
 0x23d   : > { %v4797_v1 = vrot.slane %v4783_v7, %v12321_v13  ;;  %v4510_v4 = vadd.f32 %v15287_v25, %v4509_v9  ;;  %v4798_v22 = vcombine.high %v4790_v40, %v4790_v40  ;;  %v5598_v61 = vsel %vm514_vm0, %v5596_v5, %v5597_v55 }
 0x23e   : > { %v4511_v8 = vpop.f32.mrf.mxu0  ;;  %v15485_v50 = vcombine.high %v15473_v47, %v15473_v47  ;;  %v5678_v7 = vsel %vm604_vm1, %v5598_v61, 0.0  ;;  %v8533_v9 = vrot.slane %v11080_v59, %v12321_v13 }
 0x23f   : > { %v4799_v12 = vcombine.high %v4797_v1, %v4797_v1  ;;  %vm4613_vm10 = vcmp.gt.f32.partialorder %v4510_v4, 0.0  ;;  %v4645_v52 = vmul.f32 %v15292_v2, %v4510_v4  ;;  %v5198_v62 = vcombine.low %v4790_v40, %v4798_v22 }
 0x240   : > { %v5767_v8 = vcombine.high %v5678_v7, %v5678_v7  ;;  %v15490_v11 = vrot.slane %v5678_v7, %v12321_v13  ;;  %v8534_v30 = vcombine.low %v15393_v31, %v8533_v9  ;;  %v7411_v22 = vcombine.low %v15479_v10, %v15473_v47 }
 0x241   : > { %v5214_v44 = vcombine.low %v4797_v1, %v4799_v12  ;;  %v4670_v15 = vsel %vm4613_vm10, %v4510_v4, %v4645_v52  ;;  %v5212_v5 = vrot.slane %v5198_v62, %v12321_v13  ;;  %v6530_v7 = vcombine.low %v15463_v39, %v15479_v10 }
 0x242   : > { %v4800_v55 = vcombine.high %v4670_v15, %v4670_v15  ;;  %v4807_v14 = vrot.slane %v4670_v15, %v12321_v13  ;;  %v15496_v60 = vrot.slane %v5767_v8, %v12321_v13  ;;  %v7427_v59 = vcombine.low %v15485_v50, %v15490_v11 }
 0x243   : > { %v5221_v40 = vrot.slane %v5214_v44, %v12321_v13  ;;  %v5213_v1 = vcombine.low %v5205_v37, %v5212_v5  ;;  %v11781_v15 = vpack.i.bf16 %v6926_v24, %v8534_v30  ;;  %v15509_v52 = vrot.slane %v7411_v22, %v12321_v13 }
 0x244   : > { %v4814_v4 = vrot.slane %v4800_v55, %v12321_v13  ;;  %v4815_v61 = vcombine.high %v4807_v14, %v4807_v14  ;;  %v5228_v12 = vrot.slane %v4807_v14, %v12321_v13  ;;  %v15512_v44 = vrot.slane %v7427_v59, %v12321_v13 }
 0x245   : > { %v5599_v62 = vrot.slane %v5213_v1, 7  ;;  %11782 = vrot.lane.b32.xlu0 %v11781_v15, %s12222_s27  ;;  %v15522_v48 = vrot.slane %v6530_v7, %v12321_v13  ;;  %v6546_v24 = vcombine.low %v15473_v47, %v15485_v50  ;;  %v15528_v14 = vcombine.high %v15490_v11, %v15490_v11 }
 0x246   : > { %v5229_v37 = vcombine.low %v5221_v40, %v5228_v12  ;;  %v5230_v9 = vcombine.low %v4815_v61, %v4814_v4  ;;  %v4816_v8 = vcombine.high %v4814_v4, %v4814_v4  ;;  %v4514_v5 = vpop.f32.mrf.mxu0  ;;  %v15519_v23 = vcombine.low %v15509_v52, %v15512_v44 }
 0x247   : > { %19879 = vst [vmem:[#allocation24_spill] sm:$0xff] %v15522_v48  ;;  %v5665_v30 = vsel %vm514_vm0, 0.0, %v5599_v62  ;;  %v4515_v22 = vadd.f32 %v15287_v25, %v4514_v5  ;;  %v6554_v12 = vrot.slane %v6546_v24, %v12321_v13 }
 0x248   : > { %v5238_v55 = vrot.slane %v5230_v9, %v12321_v13  ;;  %v5600_v40 = vrot.slane %v5229_v37, 7  ;;  %v5783_v59 = vcombine.high %v5665_v30, %v5665_v30  ;;  %v15534_v1 = vrot.slane %v5665_v30, %v12321_v13  ;;  %v4516_v4 = vpop.f32.mrf.mxu0  ;;  %11187 = vmatmul.mubr.msk.f32.vlgmr.msra.gmra.mxu0 %vm4187_vm9, %v15519_v23 }
 0x249   : > { %vm4614_vm12 = vcmp.gt.f32.partialorder %v4515_v22, 0.0  ;;  %v4646_v7 = vmul.f32 %v15292_v2, %v4515_v22  ;;  %11189 = vmatprep.mubr.msk.f32.mxu0 %vm12229_vm15, %v19852_v29  ;;  %v6547_v37 = vcombine.low %v15490_v11, %v15528_v14  ;;  %v8743_v4 = vcombine.low %v15522_v48, %v6554_v12 }
 0x24a   : > { %v5601_v15 = vsel %vm514_vm0, %v5599_v62, %v5600_v40  ;;  %v15548_v9 = vrot.slane %v5783_v59, %v12321_v13  ;;  %v4519_v30 = vpop.f32.mrf.mxu0  ;;  %v7428_v62 = vcombine.low %v15528_v14, %v15496_v60 }
 0x24b   : > { %v5679_v5 = vsel %vm604_vm1, %v5601_v15, 0.0  ;;  %v4671_v61 = vsel %vm4614_vm12, %v4515_v22, %v4646_v7  ;;  %v4520_v51 = vadd.f32 %v15287_v25, %v4519_v30  ;;  %v11786_v53 = vpack.i.bf16 %v19789_v16, %v8743_v4 }
 0x24c   : > { %v5800_v24 = vcombine.high %v5679_v5, %v5679_v5  ;;  %v15555_v40 = vrot.slane %v5679_v5, %v12321_v13  ;;  %v4817_v63 = vcombine.high %v4671_v61, %v4671_v61  ;;  %v4824_v0 = vrot.slane %v4671_v61, %v12321_v13  ;;  %v4521_v59 = vpop.f32.mrf.mxu0 }
 0x24d   : > { %v15561_v15 = vrot.slane %v6547_v37, %v12321_v13  ;;  %vm4615_vm14 = vcmp.gt.f32.partialorder %v4520_v51, 0.0  ;;  %v4647_v48 = vmul.f32 %v15292_v2, %v4520_v51  ;;  %v15568_v5 = vrot.slane %v7428_v62, %v12321_v13  ;;  %11787 = vrot.lane.b32.xlu0 %v11786_v53, %s12228_s14 }
 0x24e   : > { %v15564_v21 = vrot.slane %v5800_v24, %v12321_v13  ;;  %v4831_v22 = vrot.slane %v4817_v63, %v12321_v13  ;;  %v4832_v7 = vcombine.high %v4824_v0, %v4824_v0  ;;  %v5231_v30 = vcombine.low %v4816_v8, %v4824_v0 }
 0x24f   : > { %v15573_v16 = vcombine.low %v6554_v12, %v15561_v15  ;;  %v4672_v61 = vsel %vm4615_vm14, %v4520_v51, %v4647_v48  ;;  %v11074_v37 = vcombine.high %v15496_v60, %v15534_v1  ;;  %v15579_v4 = vcombine.high %v15534_v1, %v15534_v1 }
 0x250   : > { %v6563_v62 = vcombine.low %v15496_v60, %v15534_v1  ;;  %v4833_v24 = vcombine.high %v4831_v22, %v4831_v22  ;;  %v5245_v63 = vrot.slane %v5231_v30, %v12321_v13  ;;  %v5247_v0 = vcombine.low %v4832_v7, %v4831_v22  ;;  %v4524_v53 = vpop.f32.mrf.mxu0 }
 0x251   : > { %19880 = vst [vmem:[#allocation7_spill] sm:$0xff] %v15573_v16  ;;  %v4834_v8 = vcombine.high %v4672_v61, %v4672_v61  ;;  %v4841_v12 = vrot.slane %v4672_v61, %v12321_v13  ;;  %v4525_v51 = vadd.f32 %v15287_v25, %v4524_v53  ;;  %v19881_v48 = vcombine.low %v15410_v32, %v15418_v46 }
 0x252   : > { %v15591_v31 = vrot.slane %v11074_v37, %v12321_v13  ;;  %v5246_v57 = vcombine.low %v5238_v55, %v5245_v63  ;;  %v5254_v58 = vrot.slane %v5247_v0, %v12321_v13  ;;  %v5261_v30 = vrot.slane %v4833_v24, %v12321_v13  ;;  %v4526_v7 = vpop.f32.mrf.mxu0 }
 0x253   : > { %v11791_v59 = vpack.i.bf16 %v19881_v48, %v15573_v16  ;;  %v4848_v22 = vrot.slane %v4834_v8, %v12321_v13  ;;  %v4849_v56 = vcombine.high %v4841_v12, %v4841_v12  ;;  %vm4616_vm2 = vcmp.gt.f32.partialorder %v4525_v51, 0.0 }
 0x254   : > { %v4648_v61 = vmul.f32 %v15292_v2, %v4525_v51  ;;  %v8984_v32 = vcombine.low %v15568_v5, %v15591_v31  ;;  %v5262_v46 = vcombine.low %v5254_v58, %v5261_v30  ;;  %v5602_v37 = vrot.slane %v5246_v57, 7  ;;  %v4529_v55 = vpop.f32.mrf.mxu0 }
 0x255   : > { %11792 = vrot.lane.b32.xlu1 %v11791_v59, %s12222_s27  ;;  %v4850_v53 = vcombine.high %v4848_v22, %v4848_v22  ;;  %v6564_v63 = vcombine.low %v15579_v4, %v15548_v9  ;;  %v5263_v24 = vcombine.low %v4841_v12, %v4849_v56  ;;  %v4530_v8 = vadd.f32 %v15287_v25, %v4529_v55 }
 0x256   : > { %v4673_v0 = vsel %vm4616_vm2, %v4525_v51, %v4648_v61  ;;  %11190 = vmatmul.mubr.msk.f32.gmra.mxu0 %vm4187_vm9, %v8984_v32  ;;  %v15605_v48 = vrot.slane %v6563_v62, %v12321_v13  ;;  %v5603_v59 = vrot.slane %v5262_v46, 7  ;;  %v5666_v7 = vsel %vm514_vm0, 0.0, %v5602_v37  ;;  %v4531_v57 = vpop.f32.mrf.mxu0 }
 0x257   : > { %v5264_v16 = vcombine.low %v4848_v22, %v4850_v53  ;;  %v4851_v58 = vcombine.high %v4673_v0, %v4673_v0  ;;  %11192 = vmatprep.mubr.msk.f32.mxu0 %vm12229_vm15, %v19852_v29  ;;  %v5816_v30 = vcombine.high %v5666_v7, %v5666_v7  ;;  %v15611_v56 = vrot.slane %v5666_v7, %v12321_v13 }
 0x258   : > { %19882 = vst [vmem:[#allocation79_spill] sm:$0xff] %v15605_v48  ;;  %v5271_v12 = vrot.slane %v5263_v24, %v12321_v13  ;;  %v4858_v51 = vrot.slane %v4673_v0, %v12321_v13  ;;  %v5604_v62 = vsel %vm514_vm0, %v5602_v37, %v5603_v59  ;;  %vm4617_vm3 = vcmp.gt.f32.partialorder %v4530_v8, 0.0  ;;  %v15618_v22 = vpop.f32.mrf.mxu0 }
 0x259   : > { %v5278_v61 = vrot.slane %v5264_v16, %v12321_v13  ;;  %v4865_v32 = vrot.slane %v4851_v58, %v12321_v13  ;;  %v5680_v46 = vsel %vm604_vm1, %v5604_v62, 0.0  ;;  %v15622_v53 = vrot.slane %v5816_v30, %v12321_v13 }
 0x25a   : > { %v4866_v55 = vcombine.high %v4858_v51, %v4858_v51  ;;  %v4649_v7 = vmul.f32 %v15292_v2, %v4530_v8  ;;  %v5833_v24 = vcombine.high %v5680_v46, %v5680_v46  ;;  %v15626_v0 = vrot.slane %v5680_v46, %v12321_v13  ;;  %v4536_v59 = vpop.f32.mrf.mxu0 }
 0x25b   : > { %v5279_v37 = vcombine.low %v5271_v12, %v5278_v61  ;;  %v5294_v16 = vrot.slane %v4865_v32, %v12321_v13  ;;  %v4867_v20 = vcombine.high %v4865_v32, %v4865_v32  ;;  %v15630_v17 = vrot.slane %v6564_v63, %v12321_v13 }
 0x25c   : > { %v5280_v58 = vcombine.low %v4858_v51, %v4866_v55  ;;  %v4674_v57 = vsel %vm4617_vm3, %v4530_v8, %v4649_v7  ;;  %v15633_v30 = vrot.slane %v5833_v24, %v12321_v13  ;;  %v15636_v54 = vpop.f32.mrf.mxu0  ;;  %v8744_v61 = vcombine.low %v15561_v15, %v15605_v48 }
 0x25d   : > { %19883 = vst [vmem:[#allocation80_spill] sm:$0xff] %v15630_v17  ;;  %v5605_v62 = vrot.slane %v5279_v37, 7  ;;  %v4868_v42 = vcombine.high %v4674_v57, %v4674_v57  ;;  %v4875_v45 = vrot.slane %v4674_v57, %v12321_v13  ;;  %v15645_v63 = vcombine.high %v15496_v60, %v15496_v60 }
 0x25e   : > { %v5287_v12 = vrot.slane %v5280_v58, %v12321_v13  ;;  %v4541_v7 = vpop.f32.mrf.mxu0  ;;  %v19884_v59 = vcombine.low %v19821_v18, %v15337_v35  ;;  %v11060_v48 = vrot.slane %v15463_v39, 9  ;;  %v6192_v18 = vrot.slane %v15490_v11, 7 }
 0x25f   : > { %v5667_v51 = vsel %vm514_vm0, 0.0, %v5605_v62  ;;  %v15649_v32 = vrot.slane %v4868_v42, %v12321_v13  ;;  %v4883_v46 = vcombine.high %v4875_v45, %v4875_v45  ;;  %v5296_v55 = vcombine.low %v4867_v20, %v4875_v45 }
 0x260   : > { %v5849_v24 = vcombine.high %v5667_v51, %v5667_v51  ;;  %v15652_v37 = vrot.slane %v5667_v51, %v12321_v13  ;;  %v5295_v15 = vcombine.low %v5287_v12, %v5294_v16  ;;  %v11796_v58 = vpack.i.bf16 %v19884_v59, %v8744_v61  ;;  %v15661_v38 = vpop.f32.mrf.mxu0 }
 0x261   : > { %v5297_v57 = vcombine.low %v4883_v46, %v15649_v32  ;;  %v5304_v8 = vrot.slane %v5296_v55, %v12321_v13  ;;  %v6183_v42 = vrot.slane %v15479_v10, 7  ;;  %v6186_v16 = vrot.slane %v15473_v47, 7 }
 0x262   : > { %v15664_v20 = vrot.slane %v5849_v24, %v12321_v13  ;;  %v5606_v45 = vrot.slane %v5295_v15, 7  ;;  %11797 = vrot.lane.b32.xlu1 %v11796_v58, %s12228_s14  ;;  %v8535_v35 = vcombine.low %v15496_v60, %v15645_v63  ;;  %v4546_v46 = vpop.f32.mrf.mxu0  ;;  %v15682_v24 = vcombine.high %v15548_v9, %v15548_v9 }
 0x263   : > { %v5311_v12 = vrot.slane %v5297_v57, %v12321_v13  ;;  %v15673_v61 = vsel %vm12642_vm7, %v11060_v48, %v6183_v42  ;;  %v6185_v10 = vrot.slane %v6183_v42, 2  ;;  %v6188_v46 = vrot.slane %v6186_v16, 2 }
 0x264   : > { %19885 = vst [vmem:[#allocation34_spill] sm:$0xff] %v15673_v61  ;;  %v5607_v55 = vsel %vm514_vm0, %v5605_v62, %v5606_v45  ;;  %v8542_v47 = vrot.slane %v8535_v35, %v12321_v13  ;;  %v15693_v62 = vcombine.high %v15555_v40, %v15555_v40  ;;  %v15695_v58 = vpop.f32.mrf.mxu0  ;;  %v6189_v51 = vrot.slane %v15485_v50, 7 }
 0x265   : > { %v5681_v15 = vsel %vm604_vm1, %v5607_v55, 0.0  ;;  %v15685_v59 = vcombine.low %v5304_v8, %v5311_v12  ;;  %v15689_v48 = vsel %vm12642_vm7, %v6185_v10, %v6186_v16  ;;  %v7445_v12 = vcombine.low %v15548_v9, %v15682_v24 }
 0x266   : > { %19886 = vst [vmem:[#allocation12_spill] sm:$0xff] %v15689_v48  ;;  %v5866_v57 = vcombine.high %v5681_v15, %v5681_v15  ;;  %v15698_v42 = vrot.slane %v5681_v15, %v12321_v13  ;;  %v6945_v45 = vcombine.low %v15673_v61, %v15689_v48  ;;  %v8543_v8 = vcombine.low %v8542_v47, %v15630_v17  ;;  %v4551_v55 = vpop.f32.mrf.mxu0 }
 0x267   : > { %v19489_v35 = vrot.slane %v15685_v59, 7  ;;  %v7461_v10 = vcombine.low %v15555_v40, %v15693_v62  ;;  %v15718_v61 = vrot.slane %v7445_v12, %v12321_v13  ;;  %v6195_v16 = vrot.slane %v15528_v14, 7 }
 0x268   : > { %v15709_v7 = vrot.slane %v5866_v57, %v12321_v13  ;;  %v6959_v15 = vrot.slane %v6945_v45, %v12321_v13  ;;  %v15724_v57 = vpop.f32.mrf.mxu0  ;;  %v15732_v50 = vsel %vm12642_vm7, %v6188_v46, %v6189_v51  ;;  %v19888_v46 = vcombine.low %v15348_v34, %v15369_v26 }
 0x269   : > { %v5668_v47 = vsel %vm514_vm0, 0.0, %v19489_v35  ;;  %v15721_v36 = vrot.slane %v7461_v10, %v12321_v13  ;;  %19887 = vst [vmem:[#allocation31_spill] sm:$0xff] %v15732_v50  ;;  %v6191_v10 = vrot.slane %v6189_v51, 2  ;;  %v6194_v35 = vrot.slane %v6192_v18, 2 }
 0x26a   : > { %v5882_v55 = vcombine.high %v5668_v47, %v5668_v47  ;;  %v15727_v45 = vrot.slane %v5668_v47, %v12321_v13  ;;  %v6960_v11 = vcombine.low %v15467_v3, %v6959_v15  ;;  %v4556_v43 = vpop.f32.mrf.mxu0  ;;  %v6580_v3 = vcombine.low %v15682_v24, %v15555_v40 }
 0x26b   : > { %v15736_v12 = vcombine.low %v15718_v61, %v15721_v36  ;;  %v15749_v6 = vrot.slane %v19888_v46, %v12321_v13  ;;  %v15755_v51 = vsel %vm12642_vm7, %v6191_v10, %v6192_v18  ;;  %v15759_v43 = vsel %vm12642_vm7, %v6194_v35, %v6195_v16 }
 0x26c   : > { %v15741_v33 = vrot.slane %v5882_v55, %v12321_v13  ;;  %v11806_v47 = vpack.i.bf16 %v6960_v11, %v8543_v8  ;;  %19889 = vst [vmem:[#allocation43_spill] sm:$0xff] %v15755_v51  ;;  %19890 = vst [vmem:[#allocation38_spill] sm:$0xff] %v15759_v43  ;;  %v6197_v8 = vrot.slane %v6195_v16, 2  ;;  %v6198_v55 = vrot.slane %v15496_v60, 7  ;;  %v15762_v11 = vpop.f32.mrf.mxu0 }
 0x26d   : > { %11193 = vmatmul.mubr.msk.f32.gmra.mxu0 %vm4187_vm9, %v15736_v12  ;;  %v6961_v34 = vcombine.low %v15732_v50, %v15755_v51  ;;  %v6588_v18 = vrot.slane %v6580_v3, %v12321_v13  ;;  %v7409_v10 = vcombine.low %v15432_v49, %v15749_v6  ;;  %v6581_v60 = vcombine.low %v15693_v62, %v15564_v21  ;;  %v9170_v51 = vld [vmem:[%s19348_s6 + $0x78] sm:$0xff] }
 0x26e   : > { %11807 = vrot.lane.b32.xlu0 %v11806_v47, %s12222_s27  ;;  %v15774_v35 = vsel %vm12642_vm7, %v6197_v8, %v6198_v55  ;;  %11195 = vmatprep.mubr.msk.f32.mxu0 %vm12229_vm15, %v19852_v29  ;;  %v6200_v16 = vrot.slane %v6198_v55, 2  ;;  %v11061_v47 = vrot.slane %v15534_v1, 9  ;;  %v4561_v46 = vpop.f32.mrf.mxu0  ;;  %v19892_v55 = vrot.slane %v15645_v63, 7 }
 0x26f   : > { %19891 = vst [vmem:[#allocation82_spill] sm:$0xff] %v15774_v35  ;;  %v6969_v26 = vrot.slane %v6961_v34, %v12321_v13  ;;  %v8745_v3 = vcombine.low %v15630_v17, %v6588_v18  ;;  %v6962_v14 = vcombine.low %v15759_v43, %v15774_v35  ;;  %v15790_v50 = vrot.slane %v6581_v60, %v12321_v13 }
 0x270   : > { %v15796_v46 = vsel %vm12642_vm7, %v6200_v16, %v19892_v55  ;;  %v7859_v34 = vcombine.low %v15362_v27, %v15463_v39  ;;  %v15802_v17 = vcombine.high %v15611_v56, %v15611_v56  ;;  %v15804_v8 = vpop.f32.mrf.mxu0  ;;  %9249 = vmatpush1.msra.mxu1 %v9170_v51  ;;  %v19894_v63 = vrot.slane %v15579_v4, 7 }
 0x271   : > { %19893 = vst [vmem:[#allocation83_spill] sm:$0xff] %v15796_v46  ;;  %v8854_v35 = vcombine.low %v6959_v15, %v6969_v26  ;;  %v11811_v43 = vpack.i.bf16 %v7409_v10, %v8745_v3  ;;  %v6976_v60 = vrot.slane %v6962_v14, %v12321_v13  ;;  %9250 = vmatprep.subr.mxu1 %v19852_v29 }
 0x272   : > { %v15811_v16 = vsel %vm12642_vm7, %v11061_v47, %v19894_v63  ;;  %v15815_v39 = vcombine.low %v6588_v18, %v15790_v50  ;;  %v7866_v51 = vrot.slane %v7859_v34, %v12321_v13  ;;  %v15822_v15 = vcombine.high %v15564_v21, %v15564_v21  ;;  %v4566_v14 = vpop.f32.mrf.mxu0  ;;  %v9169_v34 = vld [vmem:[%s19348_s6 + $0x70] sm:$0xff] }
 0x273   : > { %19895 = vst [vmem:[#allocation39_spill] sm:$0xff] %v15811_v16  ;;  %v6978_v55 = vcombine.low %v15796_v46, %v15811_v16  ;;  %v19897_v10 = vcombine.low %v15443_v28, %v15432_v49  ;;  %11812 = vrot.lane.b32.xlu0 %v11811_v43, %s12228_s14  ;;  %v6977_v3 = vcombine.low %v6969_v26, %v6976_v60  ;;  %v9168_v14 = vld [vmem:[%s19348_s6 + $0x68] sm:$0xff] }
 0x274   : > { %19896 = vst [vmem:[#allocation27_spill] sm:$0xff] %v15815_v39  ;;  %v7478_v18 = vcombine.low %v15802_v17, %v15622_v53  ;;  %v4535_v63 = vadd.f32 %v15287_v25, %v15618_v22  ;;  %v7867_v28 = vcombine.low %v15749_v6, %v7866_v51  ;;  %v7462_v26 = vcombine.low %v15564_v21, %v15822_v15 }
 0x275   : > { %v11801_v47 = vpack.i.bf16 %v19897_v10, %v8854_v35  ;;  %v15839_v49 = vrot.slane %v6978_v55, %v12321_v13  ;;  %v15845_v35 = vpop.f32.mrf.mxu0  ;;  %9251 = vmatpush1.msra.mxu1 %v9169_v34  ;;  %v11821_v22 = vpack.i.bf16 %v6977_v3, %v15815_v39  ;;  %v4884_v34 = vcombine.high %v15649_v32, %v15649_v32 }
 0x276   : > { %v15850_v10 = vrot.slane %v7478_v18, %v12321_v13  ;;  %vm4618_vm4 = vcmp.gt.f32.partialorder %v4535_v63, 0.0  ;;  %v4650_v55 = vmul.f32 %v15292_v2, %v4535_v63  ;;  %9252 = vmatprep.subr.mxu1 %v19852_v29  ;;  %v15856_v51 = vrot.slane %v7462_v26, %v12321_v13 }
 0x277   : > { %11802 = vrot.lane.b32.xlu1 %v11801_v47, %s12225_s30  ;;  %v8855_v6 = vcombine.low %v6976_v60, %v15839_v49  ;;  %v6597_v47 = vcombine.low %v15611_v56, %v15802_v17  ;;  %v4571_v3 = vpop.f32.mrf.mxu0  ;;  %9253 = vmatpush1.msra.mxu1 %v9168_v14  ;;  %v7410_v43 = vcombine.low %v15362_v27, %v15422_v19 }
 0x278   : > { %v4675_v18 = vsel %vm4618_vm4, %v4535_v63, %v4650_v55  ;;  %v15866_v39 = vcombine.high %v15622_v53, %v15622_v53  ;;  %v15870_v60 = vcombine.high %v15626_v0, %v15626_v0  ;;  %9254 = vmatprep.subr.mxu1 %v19852_v29  ;;  %v8985_v26 = vcombine.low %v15856_v51, %v15850_v10 }
 0x279   : > { %v11816_v32 = vpack.i.bf16 %v7867_v28, %v8855_v6  ;;  %v4885_v3 = vcombine.high %v4675_v18, %v4675_v18  ;;  %v4892_v63 = vrot.slane %v4675_v18, %v12321_v13  ;;  %v15878_v27 = vrot.slane %v6597_v47, %v12321_v13  ;;  %v9167_v28 = vld [vmem:[%s19348_s6 + $0x60] sm:$0xff] }
 0x27a   : > { %v7418_v19 = vrot.slane %v7410_v43, %v12321_v13  ;;  %v7479_v14 = vcombine.low %v15866_v39, %v15626_v0  ;;  %v7495_v55 = vcombine.low %v15870_v60, %v15633_v30  ;;  %11196 = vmatmul.mubr.msk.f32.gmra.mxu0 %vm4187_vm9, %v8985_v26  ;;  %v19899_v43 = vrot.slane %v15579_v4, 7  ;;  %9255 = vmatpush1.msra.mxu1 %v9167_v28 }
 0x27b   : > { %11822 = vrot.lane.b32.xlu1 %v11821_v22, %s12222_s27  ;;  %19898 = vst [vmem:[#allocation26_spill] sm:$0xff] %v15878_v27  ;;  %11817 = vrot.lane.b32.xlu0 %v11816_v32, %s12225_s30  ;;  %v4899_v22 = vrot.slane %v4885_v3, %v12321_v13  ;;  %v4900_v6 = vcombine.high %v4892_v63, %v4892_v63 }
 0x27c   : > { %v5313_v47 = vcombine.low %v4884_v34, %v4892_v63  ;;  %v6207_v18 = vrot.slane %v19899_v43, 2  ;;  %v7426_v16 = vcombine.low %v7418_v19, %v15509_v52  ;;  %v8746_v46 = vcombine.low %v15790_v50, %v15878_v27  ;;  %11198 = vmatprep.mubr.msk.f32.mxu0 %vm12229_vm15, %v19852_v29  ;;  %9256 = vmatprep.subr.mxu1 %v19852_v29 }
 0x27d   : > { %v15899_v48 = vrot.slane %v7479_v14, %v12321_v13  ;;  %v15902_v32 = vrot.slane %v7495_v55, %v12321_v13  ;;  %v4901_v26 = vcombine.high %v4899_v22, %v4899_v22  ;;  %v5327_v3 = vrot.slane %v4900_v6, %v12321_v13 }
 0x27e   : > { %v5320_v34 = vrot.slane %v5313_v47, %v12321_v13  ;;  %v6208_v63 = vrot.slane %v15548_v9, 7  ;;  %v11826_v52 = vpack.i.bf16 %v7426_v16, %v8746_v46  ;;  %v6211_v19 = vrot.slane %v15682_v24, 7 }
 0x27f   : > { %v15909_v50 = vcombine.low %v15899_v48, %v15902_v32  ;;  %v6598_v14 = vcombine.low %v15622_v53, %v15866_v39  ;;  %v15915_v43 = vcombine.low %v4899_v22, %v4901_v26  ;;  %v11081_v46 = vcombine.high %v15564_v21, %v15611_v56  ;;  %v15958_v22 = vpop.f32.mrf.mxu0 }
 0x280   : > { %v5328_v55 = vcombine.low %v5320_v34, %v5327_v3  ;;  %v15919_v6 = vsel %vm12642_vm7, %v6207_v18, %v6208_v63  ;;  %v6210_v9 = vrot.slane %v6208_v63, 2  ;;  %11827 = vrot.lane.b32.xlu1 %v11826_v52, %s12228_s14  ;;  %v4540_v16 = vadd.f32 %v15287_v25, %v15636_v54  ;;  %v9166_v54 = vld [vmem:[%s19348_s6 + $0x58] sm:$0xff] }
 0x281   : > { %19900 = vst [vmem:[#allocation17_spill] sm:$0xff] %v15919_v6  ;;  %11199 = vmatmul.mubr.msk.f32.gmra.mxu0 %vm4187_vm9, %v15909_v50  ;;  %v15925_v24 = vrot.slane %v6598_v14, %v12321_v13  ;;  %v6213_v28 = vrot.slane %v6211_v19, 2  ;;  %v6214_v26 = vrot.slane %v15555_v40, 7  ;;  %v8551_v3 = vrot.slane %v11081_v46, %v12321_v13  ;;  %9257 = vmatpush1.msra.mxu1 %v9166_v54  ;;  %v4576_v54 = vpop.f32.mrf.mxu0 }
 0x282   : > { %v5609_v47 = vrot.slane %v5328_v55, 7  ;;  %v15935_v18 = vsel %vm12642_vm7, %v6210_v9, %v6211_v19  ;;  %11201 = vmatprep.mubr.msk.f32.mxu0 %vm12229_vm15, %v19852_v29  ;;  %vm4619_vm5 = vcmp.gt.f32.partialorder %v4540_v16, 0.0  ;;  %v4651_v25 = vmul.f32 %v15292_v2, %v4540_v16  ;;  %9258 = vmatprep.subr.mxu1 %v19852_v29 }
 0x283   : > { %19901 = vst [vmem:[#allocation47_spill] sm:$0xff] %v15925_v24  ;;  %19902 = vst [vmem:[#allocation44_spill] sm:$0xff] %v15935_v18  ;;  %v6979_v34 = vcombine.low %v15919_v6, %v15935_v18  ;;  %v19903_v63 = vrot.slane %v15685_v59, 7  ;;  %v15952_v40 = vsel %vm12642_vm7, %v6213_v28, %v6214_v26  ;;  %v6216_v19 = vrot.slane %v6214_v26, 2 }
 0x284   : > { %19904 = vst [vmem:[#allocation13_spill] sm:$0xff] %v15952_v40  ;;  %v6217_v14 = vrot.slane %v15693_v62, 7  ;;  %v8552_v9 = vcombine.low %v8551_v3, %v15925_v24  ;;  %v4676_v46 = vsel %vm4619_vm5, %v4540_v16, %v4651_v25  ;;  %v9165_v62 = vld [vmem:[%s19348_s6 + $0x50] sm:$0xff]  ;;  %v6614_v3 = vcombine.low %v15626_v0, %v15870_v60 }
 0x285   : > { %v5610_v52 = vsel %vm514_vm0, %v19903_v63, %v5609_v47  ;;  %v6993_v2 = vrot.slane %v6979_v34, %v12321_v13  ;;  %v4902_v28 = vcombine.high %v4676_v46, %v4676_v46  ;;  %v4909_v26 = vrot.slane %v4676_v46, %v12321_v13  ;;  %9259 = vmatpush1.msra.mxu1 %v9165_v62  ;;  %v15993_v62 = vpop.f32.mrf.mxu0 }
 0x286   : > { %v5682_v55 = vsel %vm604_vm1, %v5610_v52, 0.0  ;;  %v15971_v16 = vsel %vm12642_vm7, %v6216_v19, %v6217_v14  ;;  %v7443_v25 = vcombine.low %v15512_v44, %v15568_v5  ;;  %9260 = vmatprep.subr.mxu1 %v19852_v29  ;;  %v15985_v46 = vrot.slane %v6614_v3, %v12321_v13  ;;  %19907 = vst [vmem:[#allocation36_spill] sm:$0xff] %v15993_v62 }
 0x287   : > { %v5899_v59 = vcombine.high %v5682_v55, %v5682_v55  ;;  %v15962_v47 = vrot.slane %v5682_v55, %v12321_v13  ;;  %v6994_v34 = vcombine.low %v15839_v49, %v6993_v2  ;;  %19905 = vst [vmem:[#allocation40_spill] sm:$0xff] %v15971_v16  ;;  %v4916_v52 = vrot.slane %v4902_v28, %v12321_v13 }
 0x288   : > { %v4917_v55 = vcombine.high %v4909_v26, %v4909_v26  ;;  %v6995_v49 = vcombine.low %v15952_v40, %v15971_v16  ;;  %19906 = vst [vmem:[#allocation35_spill] sm:$0xff] %v15985_v46  ;;  %v15989_v44 = vcombine.high %v15664_v20, %v15664_v20  ;;  %v6219_v18 = vrot.slane %v6217_v14, 2 }
 0x289   : > { %v15978_v63 = vrot.slane %v5899_v59, %v12321_v13  ;;  %v11836_v19 = vpack.i.bf16 %v6994_v34, %v8552_v9  ;;  %v11075_v59 = vcombine.high %v15633_v30, %v15652_v37  ;;  %v4918_v28 = vcombine.high %v4916_v52, %v4916_v52 }
 0x28a   : > { %v5330_v54 = vcombine.low %v4909_v26, %v4917_v55  ;;  %v15996_v27 = vrot.slane %v6995_v49, %v12321_v13  ;;  %v16000_v9 = vcombine.high %v15633_v30, %v15633_v30  ;;  %v8747_v34 = vcombine.low %v15925_v24, %v15985_v46  ;;  %v4581_v26 = vpop.f32.mrf.mxu0 }
 0x28b   : > { %11837 = vrot.lane.b32.xlu0 %v11836_v19, %s12222_s27  ;;  %v16006_v3 = vrot.slane %v11075_v59, %v12321_v13  ;;  %v7512_v16 = vcombine.low %v15664_v20, %v15989_v44  ;;  %v16011_v49 = vcombine.low %v4916_v52, %v4918_v28  ;;  %v6220_v6 = vrot.slane %v15564_v21, 7  ;;  %v9164_v19 = vld [vmem:[%s19348_s6 + $0x48] sm:$0xff]  ;;  %v9163_v59 = vld [vmem:[%s19348_s6 + $0x40] sm:$0xff] }
 0x28c   : > { %v5344_v55 = vrot.slane %v5330_v54, %v12321_v13  ;;  %v8856_v40 = vcombine.low %v6993_v2, %v15996_v27  ;;  %v11841_v24 = vpack.i.bf16 %v7443_v25, %v8747_v34  ;;  %v8553_v52 = vcombine.low %v15633_v30, %v16000_v9  ;;  %9261 = vmatpush1.msra.mxu1 %v9164_v19 }
 0x28d   : > { %v16022_v14 = vrot.slane %v7512_v16, %v12321_v13  ;;  %v19908_v2 = vrot.slane %v15915_v43, %v12321_v13  ;;  %v16035_v62 = vsel %vm12642_vm7, %v6219_v18, %v6220_v6  ;;  %v6222_v25 = vrot.slane %v6220_v6, 2  ;;  %9262 = vmatprep.subr.mxu1 %v19852_v29  ;;  %v9162_v16 = vld [vmem:[%s19348_s6 + $0x38] sm:$0xff] }
 0x28e   : > { %v11831_v26 = vpack.i.bf16 %v15519_v23, %v8856_v40  ;;  %19909 = vst [vmem:[#allocation65_spill] sm:$0xff] %v16035_v62  ;;  %v8560_v34 = vrot.slane %v8553_v52, %v12321_v13  ;;  %v11062_v23 = vrot.slane %v15611_v56, 9  ;;  %v6227_v40 = vrot.slane %v15802_v17, 7  ;;  %9263 = vmatpush1.msra.mxu1 %v9163_v59  ;;  %v9161_v17 = vld [vmem:[%s19348_s6 + $0x30] sm:$0xff] }
 0x28f   : > { %v16030_v28 = vcombine.low %v19908_v2, %v5344_v55  ;;  %11842 = vrot.lane.b32.xlu0 %v11841_v24, %s12228_s14  ;;  %v8986_v43 = vcombine.low %v16006_v3, %v16022_v14  ;;  %v19910_v18 = vrot.slane %v15822_v15, 7  ;;  %v6230_v24 = vrot.slane %v15622_v53, 7  ;;  %9264 = vmatprep.subr.mxu1 %v19852_v29  ;;  %v16077_v2 = vld [vmem:[%s19346_s4] ss:$0 sm:$0xff] }
 0x290   : > { %11832 = vrot.lane.b32.xlu1 %v11831_v26, %s12225_s30  ;;  %v7869_v19 = vcombine.low %v15534_v1, %v15579_v4  ;;  %v8561_v59 = vcombine.low %v15985_v46, %v8560_v34  ;;  %v16068_v52 = vsel %vm12642_vm7, %v11062_v23, %v6227_v40  ;;  %v6229_v53 = vrot.slane %v6227_v40, 2  ;;  %9265 = vmatpush1.msra.mxu1 %v9162_v16  ;;  %v16100_v40 = vld [vmem:[%s19347_s5] ss:$0 sm:$0xff] }
 0x291   : > { %v19508_v6 = vrot.slane %v16030_v28, 7  ;;  %v16053_v55 = vsel %vm12642_vm7, %v6222_v25, %v19910_v18  ;;  %11202 = vmatmul.mubr.msk.f32.gmra.mxu0 %vm4187_vm9, %v8986_v43  ;;  %19912 = vst [vmem:[#allocation20_spill] sm:$0xff] %v16068_v52  ;;  %v4545_v26 = vadd.f32 %v16077_v2, %v15661_v38  ;;  %v5353_v25 = vrot.slane %v16011_v49, %v12321_v13 }
 0x292   : > { %19911 = vst [vmem:[#allocation73_spill] sm:$0xff] %v16053_v55  ;;  %v6996_v15 = vcombine.low %v16035_v62, %v16053_v55  ;;  %v7876_v4 = vrot.slane %v7869_v19, %v12321_v13  ;;  %11204 = vmatprep.mubr.msk.f32.mxu0 %vm12229_vm15, %v19852_v29  ;;  %9266 = vmatprep.subr.mxu1 %v19852_v29  ;;  %v6239_v54 = vrot.slane %v15870_v60, 7  ;;  %v6242_v60 = vrot.slane %v15633_v30, 7 }
 0x293   : > { %v5669_v1 = vsel %vm514_vm0, 0.0, %v19508_v6  ;;  %v16092_v23 = vsel %vm12642_vm7, %v6229_v53, %v6230_v24  ;;  %9267 = vmatpush1.msra.mxu1 %v9161_v17  ;;  %vm4620_vm6 = vcmp.gt.f32.partialorder %v4545_v26, 0.0  ;;  %v4652_v18 = vmul.f32 %v16100_v40, %v4545_v26 }
 0x294   : > { %v5915_v16 = vcombine.high %v5669_v1, %v5669_v1  ;;  %v16087_v43 = vrot.slane %v5669_v1, %v12321_v13  ;;  %v7010_v34 = vrot.slane %v6996_v15, %v12321_v13  ;;  %19913 = vst [vmem:[#allocation45_spill] sm:$0xff] %v16092_v23  ;;  %v7012_v38 = vcombine.low %v16068_v52, %v16092_v23 }
 0x295   : > { %v7877_v49 = vcombine.low %v15568_v5, %v7876_v4  ;;  %9268 = vmatprep.subr.mxu1 %v19852_v29  ;;  %v6232_v15 = vrot.slane %v6230_v24, 2  ;;  %v6233_v53 = vrot.slane %v15866_v39, 7  ;;  %v4677_v1 = vsel %vm4620_vm6, %v4545_v26, %v4652_v18 }
 0x296   : > { %v16105_v19 = vrot.slane %v5915_v16, %v12321_v13  ;;  %v7011_v17 = vcombine.low %v15996_v27, %v7010_v34  ;;  %v7020_v5 = vrot.slane %v7012_v38, %v12321_v13  ;;  %v6236_v4 = vrot.slane %v15626_v0, 7 }
 0x297   : > { %v4919_v46 = vcombine.high %v4677_v1, %v4677_v1  ;;  %v4926_v23 = vrot.slane %v4677_v1, %v12321_v13  ;;  %v16115_v16 = vsel %vm12642_vm7, %v6232_v15, %v6233_v53  ;;  %v6235_v27 = vrot.slane %v6233_v53, 2 }
 0x298   : > { %v11851_v6 = vpack.i.bf16 %v7011_v17, %v8561_v59  ;;  %19914 = vst [vmem:[#allocation64_spill] sm:$0xff] %v16115_v16  ;;  %v8857_v55 = vcombine.low %v7010_v34, %v7020_v5  ;;  %v6238_v24 = vrot.slane %v6236_v4, 2  ;;  %v6241_v52 = vrot.slane %v6239_v54, 2 }
 0x299   : > { %v4933_v39 = vrot.slane %v4919_v46, %v12321_v13  ;;  %v4934_v26 = vcombine.high %v4926_v23, %v4926_v23  ;;  %v5360_v0 = vrot.slane %v4926_v23, %v12321_v13  ;;  %v16123_v38 = vsel %vm12642_vm7, %v6235_v27, %v6236_v4 }
 0x29a   : > { %11852 = vrot.lane.b32.xlu1 %v11851_v6, %s12222_s27  ;;  %v11846_v59 = vpack.i.bf16 %v7877_v49, %v8857_v55  ;;  %19915 = vst [vmem:[#allocation52_spill] sm:$0xff] %v16123_v38  ;;  %v16127_v34 = vsel %vm12642_vm7, %v6238_v24, %v6239_v54  ;;  %v16131_v18 = vcombine.high %v15652_v37, %v15652_v37 }
 0x29b   : > { %19916 = vst [vmem:[#allocation48_spill] sm:$0xff] %v16127_v34  ;;  %v5361_v6 = vcombine.low %v5353_v25, %v5360_v0  ;;  %v5362_v46 = vcombine.low %v4934_v26, %v4933_v39  ;;  %v16135_v23 = vsel %vm12642_vm7, %v6241_v52, %v6242_v60  ;;  %v7013_v55 = vcombine.low %v16115_v16, %v16123_v38  ;;  %v9159_v26 = vld [vmem:[%s19348_s6 + $0x20] sm:$0xff] }
 0x29c   : > { %19917 = vst [vmem:[#allocation46_spill] sm:$0xff] %v16135_v23  ;;  %11847 = vrot.lane.b32.xlu0 %v11846_v59, %s12225_s30  ;;  %v7029_v49 = vcombine.low %v16127_v34, %v16135_v23  ;;  %v6631_v54 = vcombine.low %v16131_v18, %v15664_v20  ;;  %v6632_v17 = vcombine.low %v15989_v44, %v15698_v42 }
 0x29d   : > { %v4550_v25 = vadd.f32 %v16077_v2, %v15695_v58  ;;  %v5370_v52 = vrot.slane %v5362_v46, %v12321_v13  ;;  %v5612_v15 = vrot.slane %v5361_v6, 7  ;;  %v7027_v53 = vrot.slane %v7013_v55, %v12321_v13  ;;  %v9160_v58 = vld [vmem:[%s19348_s6 + $0x28] sm:$0xff] }
 0x29e   : > { %v4935_v1 = vcombine.high %v4933_v39, %v4933_v39  ;;  %v16151_v4 = vrot.slane %v7029_v49, %v12321_v13  ;;  %v16154_v27 = vrot.slane %v6631_v54, %v12321_v13  ;;  %v16157_v24 = vrot.slane %v6632_v17, %v12321_v13  ;;  %9269 = vmatpush1.msra.mxu1 %v9160_v58 }
 0x29f   : > { %vm4621_vm10 = vcmp.gt.f32.partialorder %v4550_v25, 0.0  ;;  %v19918_v39 = vrot.slane %v16030_v28, 7  ;;  %v7028_v59 = vcombine.low %v7020_v5, %v7027_v53  ;;  %v4653_v6 = vmul.f32 %v16100_v40, %v4550_v25  ;;  %9270 = vmatprep.subr.mxu1 %v19852_v29 }
 0x2a0   : > { %v16171_v46 = vcombine.high %v15698_v42, %v15698_v42  ;;  %v8858_v49 = vcombine.low %v7027_v53, %v16151_v4  ;;  %v16177_v54 = vcombine.low %v16154_v27, %v16157_v24  ;;  %v16181_v28 = vcombine.high %v15709_v7, %v15709_v7  ;;  %9271 = vmatpush1.msra.mxu1 %v9159_v26 }
 0x2a1   : > { %v5613_v0 = vsel %vm514_vm0, %v19918_v39, %v5612_v15  ;;  %v4678_v15 = vsel %vm4621_vm10, %v4550_v25, %v4653_v6  ;;  %9272 = vmatprep.subr.mxu1 %v19852_v29 }
 0x2a2   : > { %v5683_v55 = vsel %vm604_vm1, %v5613_v0, 0.0  ;;  %19919 = vst [vmem:[#allocation41_spill] sm:$0xff] %v16177_v54  ;;  %v7513_v58 = vcombine.low %v15698_v42, %v16171_v46  ;;  %v11856_v53 = vpack.i.bf16 %v15736_v12, %v8858_v49  ;;  %v11866_v39 = vpack.i.bf16 %v7028_v59, %v16177_v54 }
 0x2a3   : > { %v5932_v5 = vcombine.high %v5683_v55, %v5683_v55  ;;  %v16185_v17 = vrot.slane %v5683_v55, %v12321_v13  ;;  %v4936_v0 = vcombine.high %v4678_v15, %v4678_v15  ;;  %v4943_v23 = vrot.slane %v4678_v15, %v12321_v13 }
 0x2a4   : > { %v16198_v25 = vrot.slane %v7513_v58, %v12321_v13  ;;  %v7529_v26 = vcombine.low %v15709_v7, %v16181_v28  ;;  %11857 = vrot.lane.b32.xlu1 %v11856_v53, %s12225_s30  ;;  %11867 = vrot.lane.b32.xlu0 %v11866_v39, %s12222_s27  ;;  %v6244_v49 = vrot.slane %v6242_v60, 2  ;;  %v6615_v15 = vcombine.low %v15633_v30, %v15652_v37 }
 0x2a5   : > { %v16194_v38 = vrot.slane %v5932_v5, %v12321_v13  ;;  %v4950_v12 = vrot.slane %v4936_v0, %v12321_v13  ;;  %v4951_v59 = vcombine.high %v4943_v23, %v4943_v23  ;;  %v5363_v6 = vcombine.low %v4935_v1, %v4943_v23  ;;  %v16231_v0 = vpop.f32.mrf.mxu0 }
 0x2a6   : > { %v16206_v5 = vrot.slane %v7529_v26, %v12321_v13  ;;  %v7460_v58 = vcombine.low %v15591_v31, %v15718_v61  ;;  %v6648_v55 = vcombine.low %v16171_v46, %v15709_v7  ;;  %v7477_v23 = vcombine.low %v15721_v36, %v15856_v51 }
 0x2a7   : > { %v4952_v53 = vcombine.high %v4950_v12, %v4950_v12  ;;  %v5377_v39 = vrot.slane %v5363_v6, %v12321_v13  ;;  %v5379_v54 = vcombine.low %v4951_v59, %v4950_v12  ;;  %v16220_v1 = vrot.slane %v6615_v15, %v12321_v13 }
 0x2a8   : > { %v8987_v60 = vcombine.low %v16198_v25, %v16206_v5  ;;  %v16223_v30 = vrot.slane %v6648_v55, %v12321_v13  ;;  %v19922_v31 = vrot.slane %v16000_v9, 7  ;;  %v11063_v12 = vrot.slane %v15652_v37, 9 }
 0x2a9   : > { %19920 = vst [vmem:[#allocation42_spill] sm:$0xff] %v16220_v1  ;;  %v5378_v26 = vcombine.low %v5370_v52, %v5377_v39  ;;  %v5386_v36 = vrot.slane %v5379_v54, %v12321_v13  ;;  %v5393_v51 = vrot.slane %v4952_v53, %v12321_v13  ;;  %v8748_v55 = vcombine.low %v16220_v1, %v16154_v27  ;;  %v4586_v52 = vpop.f32.mrf.mxu0 }
 0x2aa   : > { %19921 = vst [vmem:[#allocation53_spill] sm:$0xff] %v16223_v30  ;;  %v16229_v61 = vsel %vm12642_vm7, %v6244_v49, %v19922_v31  ;;  %11205 = vmatmul.mubr.msk.f32.gmra.mxu0 %vm4187_vm9, %v8987_v60  ;;  %v8749_v9 = vcombine.low %v16157_v24, %v16223_v30  ;;  %v6249_v59 = vrot.slane %v16131_v18, 7  ;;  %v11082_v6 = vcombine.high %v15709_v7, %v15727_v45 }
 0x2ab   : > { %19923 = vst [vmem:[#allocation57_spill] sm:$0xff] %v16229_v61  ;;  %v5394_v49 = vcombine.low %v5386_v36, %v5393_v51  ;;  %v5614_v54 = vrot.slane %v5378_v26, 7  ;;  %v6252_v15 = vrot.slane %v15664_v20, 7  ;;  %v6255_v53 = vrot.slane %v15989_v44, 7  ;;  %11207 = vmatprep.mubr.msk.f32.mxu0 %vm12229_vm15, %v19852_v29  ;;  %v16253_v31 = vpop.f32.mrf.mxu0 }
 0x2ac   : > { %v11861_v39 = vpack.i.bf16 %v7460_v58, %v8748_v55  ;;  %v11871_v27 = vpack.i.bf16 %v7477_v23, %v8749_v9  ;;  %v16250_v24 = vsel %vm12642_vm7, %v11063_v12, %v6249_v59  ;;  %v8569_v60 = vrot.slane %v11082_v6, %v12321_v13  ;;  %v9158_v58 = vld [vmem:[%s19348_s6 + $0x18] sm:$0xff]  ;;  %v9157_v55 = vld [vmem:[%s19348_s6 + $0x10] sm:$0xff] }
 0x2ad   : > { %19924 = vst [vmem:[#allocation56_spill] sm:$0xff] %v16250_v24  ;;  %v5615_v52 = vrot.slane %v5394_v49, 7  ;;  %v5670_v26 = vsel %vm514_vm0, 0.0, %v5614_v54  ;;  %v7030_v20 = vcombine.low %v16229_v61, %v16250_v24  ;;  %v6251_v44 = vrot.slane %v6249_v59, 2  ;;  %v4591_v9 = vpop.f32.mrf.mxu0  ;;  %9273 = vmatpush1.msra.mxu1 %v9158_v58 }
 0x2ae   : > { %v5948_v23 = vcombine.high %v5670_v26, %v5670_v26  ;;  %v16262_v36 = vrot.slane %v5670_v26, %v12321_v13  ;;  %11862 = vrot.lane.b32.xlu1 %v11861_v39, %s12228_s14  ;;  %11872 = vrot.lane.b32.xlu0 %v11871_v27, %s12228_s14  ;;  %v8570_v51 = vcombine.low %v16223_v30, %v8569_v60  ;;  %v6254_v12 = vrot.slane %v6252_v15, 2 }
 0x2af   : > { %v5616_v59 = vsel %vm514_vm0, %v5614_v54, %v5615_v52  ;;  %v7044_v6 = vrot.slane %v7030_v20, %v12321_v13  ;;  %v16274_v49 = vsel %vm12642_vm7, %v6251_v44, %v6252_v15  ;;  %v7879_v39 = vcombine.low %v15564_v21, %v15611_v56  ;;  %9274 = vmatprep.subr.mxu1 %v19852_v29  ;;  %v9156_v15 = vld [vmem:[%s19348_s6 + $0x8] sm:$0xff] }
 0x2b0   : > { %19925 = vst [vmem:[#allocation49_spill] sm:$0xff] %v16274_v49  ;;  %v5684_v27 = vsel %vm604_vm1, %v5616_v59, 0.0  ;;  %v16280_v60 = vrot.slane %v5948_v23, %v12321_v13  ;;  %v16284_v26 = vsel %vm12642_vm7, %v6254_v12, %v6255_v53  ;;  %v6257_v54 = vrot.slane %v6255_v53, 2  ;;  %9275 = vmatpush1.msra.mxu1 %v9157_v55  ;;  %v9155_v12 = vld [vmem:[%s19348_s6] sm:$0xff] }
 0x2b1   : > { %19926 = vst [vmem:[#allocation51_spill] sm:$0xff] %v16284_v26  ;;  %v5965_v52 = vcombine.high %v5684_v27, %v5684_v27  ;;  %v16291_v21 = vrot.slane %v5684_v27, %v12321_v13  ;;  %v7045_v56 = vcombine.low %v16151_v4, %v7044_v6  ;;  %v7046_v20 = vcombine.low %v16274_v49, %v16284_v26 }
 0x2b2   : > { %v7886_v44 = vrot.slane %v7879_v39, %v12321_v13  ;;  %v6258_v53 = vrot.slane %v15698_v42, 7  ;;  %v6261_v58 = vrot.slane %v16171_v46, 7  ;;  %v6264_v23 = vrot.slane %v15709_v7, 7  ;;  %9276 = vmatprep.subr.mxu1 %v19852_v29 }
 0x2b3   : > { %v16305_v4 = vrot.slane %v5965_v52, %v12321_v13  ;;  %v11876_v9 = vpack.i.bf16 %v7045_v56, %v8570_v51  ;;  %v16308_v55 = vrot.slane %v7046_v20, %v12321_v13  ;;  %v16312_v42 = vcombine.high %v15727_v45, %v15727_v45  ;;  %9277 = vmatpush1.msra.mxu1 %v9156_v15  ;;  %v9186_v51 = vld [vmem:[%s19348_s6 + $0xf8] sm:$0xff] }
 0x2b4   : > { %v7887_v46 = vcombine.low %v7886_v44, %v15850_v10  ;;  %v16317_v59 = vsel %vm12642_vm7, %v6257_v54, %v6258_v53  ;;  %v6260_v39 = vrot.slane %v6258_v53, 2  ;;  %v6263_v27 = vrot.slane %v6261_v58, 2  ;;  %9278 = vmatprep.subr.mxu1 %v19852_v29 }
 0x2b5   : > { %19927 = vst [vmem:[#allocation50_spill] sm:$0xff] %v16317_v59  ;;  %11877 = vrot.lane.b32.xlu1 %v11876_v9, %s12222_s27  ;;  %v8859_v52 = vcombine.low %v7044_v6, %v16308_v55  ;;  %v6266_v56 = vrot.slane %v6264_v23, 2  ;;  %v16327_v15 = vcombine.high %v15741_v33, %v15741_v33  ;;  %v7530_v54 = vcombine.low %v16312_v42, %v15741_v33 }
 0x2b6   : > { %9279 = vmatpush1.msra.mxu1 %v9155_v12  ;;  %v16333_v20 = vsel %vm12642_vm7, %v6260_v39, %v6261_v58  ;;  %v16337_v44 = vsel %vm12642_vm7, %v6263_v27, %v6264_v23  ;;  %v4555_v6 = vadd.f32 %v16077_v2, %v15724_v57  ;;  %v6649_v53 = vcombine.low %v15727_v45, %v16312_v42  ;;  %v9185_v57 = vld [vmem:[%s19348_s6 + $0xf0] sm:$0xff] }
 0x2b7   : > { %19928 = vst [vmem:[#allocation54_spill] sm:$0xff] %v16333_v20  ;;  %19929 = vst [vmem:[#allocation66_spill] sm:$0xff] %v16337_v44  ;;  %9280 = vmatprep.subr.mxu1 %v19852_v29  ;;  %v11881_v9 = vpack.i.bf16 %v7887_v46, %v8859_v52  ;;  %v19930_v30 = vrot.slane %v16181_v28, 7  ;;  %v7047_v58 = vcombine.low %v16317_v59, %v16333_v20  ;;  %v6280_v49 = vrot.slane %v15962_v47, 7 }
 0x2b8   : > { %v16353_v23 = vrot.slane %v7530_v54, %v12321_v13  ;;  %9281 = vmatpush2.msra.mxu1 %v9186_v51  ;;  %v7546_v28 = vcombine.low %v16327_v15, %v15962_v47  ;;  %vm4622_vm12 = vcmp.gt.f32.partialorder %v4555_v6, 0.0  ;;  %v16367_v27 = vrot.slane %v6649_v53, %v12321_v13  ;;  %v9184_v53 = vld [vmem:[%s19348_s6 + $0xe8] sm:$0xff] }
 0x2b9   : > { %v16348_v12 = vsel %vm12642_vm7, %v6266_v56, %v19930_v30  ;;  %v4654_v30 = vmul.f32 %v16100_v40, %v4555_v6  ;;  %9282 = vmatprep.subr.mxu1 %v19852_v29  ;;  %11882 = vrot.lane.b32.xlu0 %v11881_v9, %s12225_s30  ;;  %v7061_v39 = vrot.slane %v7047_v58, %v12321_v13 }
 0x2ba   : > { %19931 = vst [vmem:[#allocation58_spill] sm:$0xff] %v16348_v12  ;;  %v7063_v46 = vcombine.low %v16337_v44, %v16348_v12  ;;  %19932 = vst [vmem:[#allocation59_spill] sm:$0xff] %v16367_v27  ;;  %v6665_v51 = vcombine.low %v15741_v33, %v16327_v15  ;;  %v7494_v52 = vcombine.low %v15850_v10, %v15899_v48  ;;  %9283 = vmatpush2.msra.mxu1 %v9185_v57 }
 0x2bb   : > { %v16377_v54 = vrot.slane %v7546_v28, %v12321_v13  ;;  %v4679_v1 = vsel %vm4622_vm12, %v4555_v6, %v4654_v30  ;;  %v16381_v9 = vcombine.high %v15962_v47, %v15962_v47  ;;  %v7062_v10 = vcombine.low %v16308_v55, %v7061_v39  ;;  %9284 = vmatprep.subr.mxu1 %v19852_v29 }
 0x2bc   : > { %v16374_v56 = vrot.slane %v7063_v46, %v12321_v13  ;;  %v4953_v58 = vcombine.high %v4679_v1, %v4679_v1  ;;  %v4960_v12 = vrot.slane %v4679_v1, %v12321_v13  ;;  %v6673_v48 = vrot.slane %v6665_v51, %v12321_v13  ;;  %9285 = vmatpush2.msra.mxu1 %v9184_v53 }
 0x2bd   : > { %v16393_v46 = vcombine.low %v16353_v23, %v16377_v54  ;;  %v6666_v57 = vcombine.low %v15962_v47, %v16381_v9  ;;  %v7547_v28 = vcombine.low %v16381_v9, %v15978_v63  ;;  %v11076_v51 = vcombine.high %v15978_v63, %v16087_v43  ;;  %9286 = vmatprep.subr.mxu1 %v19852_v29 }
 0x2be   : > { %v8860_v6 = vcombine.low %v7061_v39, %v16374_v56  ;;  %v4967_v1 = vrot.slane %v4953_v58, %v12321_v13  ;;  %v4968_v30 = vcombine.high %v4960_v12, %v4960_v12  ;;  %v8750_v55 = vcombine.low %v16367_v27, %v6673_v48  ;;  %v9183_v39 = vld [vmem:[%s19348_s6 + $0xe0] sm:$0xff] }
 0x2bf   : > { %11208 = vmatmul.mubr.msk.f32.gmra.mxu0 %vm4187_vm9, %v16393_v46  ;;  %v6680_v53 = vrot.slane %v6666_v57, %v12321_v13  ;;  %v16412_v58 = vrot.slane %v7547_v28, %v12321_v13  ;;  %v4560_v27 = vadd.f32 %v16077_v2, %v15762_v11  ;;  %v16419_v24 = vrot.slane %v11076_v51, %v12321_v13 }
 0x2c0   : > { %v11886_v20 = vpack.i.bf16 %v15909_v50, %v8860_v6  ;;  %v4969_v44 = vcombine.high %v4967_v1, %v4967_v1  ;;  %v5395_v26 = vcombine.low %v4960_v12, %v4968_v30  ;;  %v11891_v59 = vpack.i.bf16 %v7494_v52, %v8750_v55  ;;  %11210 = vmatprep.mubr.msk.f32.mxu0 %vm12229_vm15, %v19852_v29 }
 0x2c1   : > { %v16422_v50 = vcombine.low %v6673_v48, %v6680_v53  ;;  %vm4623_vm14 = vcmp.gt.f32.partialorder %v4560_v27, 0.0  ;;  %v4655_v6 = vmul.f32 %v16100_v40, %v4560_v27  ;;  %v6682_v57 = vcombine.low %v15978_v63, %v16087_v43  ;;  %9287 = vmatpush2.msra.mxu1 %v9183_v39 }
 0x2c2   : > { %11887 = vrot.lane.b32.xlu1 %v11886_v20, %s12225_s30  ;;  %v5396_v11 = vcombine.low %v4967_v1, %v4969_v44  ;;  %v5403_v12 = vrot.slane %v5395_v26, %v12321_v13  ;;  %v8988_v52 = vcombine.low %v16412_v58, %v16419_v24  ;;  %v7511_v28 = vcombine.low %v15902_v32, %v16006_v3  ;;  %v16441_v44 = vpop.f32.mrf.mxu0 }
 0x2c3   : > { %19933 = vst [vmem:[#allocation68_spill] sm:$0xff] %v16422_v50  ;;  %9288 = vmatprep.subr.mxu1 %v19852_v29  ;;  %v11896_v20 = vpack.i.bf16 %v7062_v10, %v16422_v50  ;;  %v4680_v48 = vsel %vm4623_vm14, %v4560_v27, %v4655_v6  ;;  %v16435_v30 = vrot.slane %v6682_v57, %v12321_v13  ;;  %v9182_v27 = vld [vmem:[%s19348_s6 + $0xd8] sm:$0xff]  ;;  %v11064_v51 = vrot.slane %v15727_v45, 9 }
 0x2c4   : > { %v16439_v55 = vcombine.high %v16087_v43, %v16087_v43  ;;  %v5410_v26 = vrot.slane %v5396_v11, %v12321_v13  ;;  %11211 = vmatmul.mubr.msk.f32.gmra.mxu0 %vm4187_vm9, %v8988_v52  ;;  %v4970_v1 = vcombine.high %v4680_v48, %v4680_v48  ;;  %v4977_v32 = vrot.slane %v4680_v48, %v12321_v13  ;;  %v4596_v57 = vpop.f32.mrf.mxu0  ;;  %v9181_v11 = vld [vmem:[%s19348_s6 + $0xd0] sm:$0xff] }
 0x2c5   : > { %19934 = vst [vmem:[#allocation70_spill] sm:$0xff] %v16435_v30  ;;  %v16448_v3 = vcombine.high %v15978_v63, %v15978_v63  ;;  %11897 = vrot.lane.b32.xlu0 %v11896_v20, %s12222_s27  ;;  %v8751_v10 = vcombine.low %v6680_v53, %v16435_v30  ;;  %v6271_v39 = vrot.slane %v16312_v42, 7  ;;  %v6274_v6 = vrot.slane %v15741_v33, 7  ;;  %11213 = vmatprep.mubr.msk.f32.mxu0 %vm12229_vm15, %v19852_v29 }
 0x2c6   : > { %11892 = vrot.lane.b32.xlu1 %v11891_v59, %s12228_s14  ;;  %v5411_v52 = vcombine.low %v5403_v12, %v5410_v26  ;;  %v16463_v48 = vrot.slane %v4970_v1, %v12321_v13  ;;  %v4985_v59 = vcombine.high %v4977_v32, %v4977_v32  ;;  %9289 = vmatpush2.msra.mxu1 %v9182_v27  ;;  %v16473_v57 = vpop.f32.mrf.mxu0  ;;  %v9180_v12 = vld [vmem:[%s19348_s6 + $0xc8] sm:$0xff] }
 0x2c7   : > { %v11901_v53 = vpack.i.bf16 %v7511_v28, %v8751_v10  ;;  %v16469_v42 = vsel %vm12642_vm7, %v11064_v51, %v6271_v39  ;;  %v6273_v33 = vrot.slane %v6271_v39, 2  ;;  %v6683_v20 = vcombine.low %v16439_v55, %v16105_v19  ;;  %9290 = vmatprep.subr.mxu1 %v19852_v29 }
 0x2c8   : > { %19935 = vst [vmem:[#allocation67_spill] sm:$0xff] %v16469_v42  ;;  %v5617_v26 = vrot.slane %v5411_v52, 7  ;;  %v5412_v1 = vcombine.low %v4977_v32, %v4985_v59  ;;  %v5426_v28 = vrot.slane %v16463_v48, %v12321_v13  ;;  %v8571_v27 = vcombine.low %v15978_v63, %v16448_v3  ;;  %9291 = vmatpush2.msra.mxu1 %v9181_v11  ;;  %v4601_v32 = vpop.f32.mrf.mxu0 }
 0x2c9   : > { %11902 = vrot.lane.b32.xlu0 %v11901_v53, %s12228_s14  ;;  %v16486_v10 = vsel %vm12642_vm7, %v6273_v33, %v6274_v6  ;;  %v16489_v51 = vrot.slane %v6683_v20, %v12321_v13  ;;  %v6276_v39 = vrot.slane %v6274_v6, 2  ;;  %v6277_v52 = vrot.slane %v16327_v15, 7  ;;  %9292 = vmatprep.subr.mxu1 %v19852_v29 }
 0x2ca   : > { %19936 = vst [vmem:[#allocation55_spill] sm:$0xff] %v16486_v10  ;;  %v5671_v59 = vsel %vm514_vm0, 0.0, %v5617_v26  ;;  %v5419_v30 = vrot.slane %v5412_v1, %v12321_v13  ;;  %v7064_v11 = vcombine.low %v16469_v42, %v16486_v10  ;;  %v8578_v53 = vrot.slane %v8571_v27, %v12321_v13  ;;  %9293 = vmatpush2.msra.mxu1 %v9180_v12 }
 0x2cb   : > { %19937 = vst [vmem:[#allocation61_spill] sm:$0xff] %v16489_v51  ;;  %v5981_v33 = vcombine.high %v5671_v59, %v5671_v59  ;;  %v16499_v20 = vrot.slane %v5671_v59, %v12321_v13  ;;  %v6279_v15 = vrot.slane %v6277_v52, 2  ;;  %9294 = vmatprep.subr.mxu1 %v19852_v29  ;;  %v16508_v27 = vsel %vm12642_vm7, %v6276_v39, %v6277_v52  ;;  %v16528_v52 = vpop.f32.mrf.mxu0 }
 0x2cc   : > { %v5427_v32 = vcombine.low %v5419_v30, %v5426_v28  ;;  %v7078_v50 = vrot.slane %v7064_v11, %v12321_v13  ;;  %v8579_v1 = vcombine.low %v8578_v53, %v16489_v51  ;;  %19938 = vst [vmem:[#allocation76_spill] sm:$0xff] %v16508_v27  ;;  %v7889_v12 = vcombine.low %v15652_v37, %v16131_v18 }
 0x2cd   : > { %v16514_v59 = vcombine.high %v16105_v19, %v16105_v19  ;;  %v16518_v30 = vcombine.high %v16185_v17, %v16185_v17  ;;  %v16521_v28 = vrot.slane %v5981_v33, %v12321_v13  ;;  %v16526_v39 = vsel %vm12642_vm7, %v6279_v15, %v6280_v49  ;;  %v4606_v10 = vpop.f32.mrf.mxu0 }
 0x2ce   : > { %v5618_v11 = vrot.slane %v5427_v32, 7  ;;  %v7079_v47 = vcombine.low %v16374_v56, %v7078_v50  ;;  %19939 = vst [vmem:[#allocation75_spill] sm:$0xff] %v16526_v39  ;;  %v7080_v37 = vcombine.low %v16508_v27, %v16526_v39  ;;  %v7896_v18 = vrot.slane %v7889_v12, %v12321_v13 }
 0x2cf   : > { %v7564_v53 = vcombine.low %v16105_v19, %v16514_v59  ;;  %v7580_v33 = vcombine.low %v16185_v17, %v16518_v30  ;;  %v6699_v15 = vcombine.low %v16514_v59, %v16185_v17  ;;  %v4565_v6 = vadd.f32 %v16077_v2, %v15804_v8 }
 0x2d0   : > { %v5619_v32 = vsel %vm514_vm0, %v5617_v26, %v5618_v11  ;;  %v11911_v56 = vpack.i.bf16 %v7079_v47, %v8579_v1  ;;  %v16546_v12 = vrot.slane %v7080_v37, %v12321_v13  ;;  %v7897_v27 = vcombine.low %v7896_v18, %v16022_v14 }
 0x2d1   : > { %v16543_v39 = vsel %vm604_vm1, %v5619_v32, 0.0  ;;  %v7528_v42 = vcombine.low %v16022_v14, %v16198_v25  ;;  %v16555_v1 = vrot.slane %v7564_v53, %v12321_v13  ;;  %v16558_v8 = vrot.slane %v7580_v33, %v12321_v13 }
 0x2d2   : > { %v5998_v26 = vcombine.high %v16543_v39, %v16543_v39  ;;  %11912 = vrot.lane.b32.xlu1 %v11911_v56, %s12222_s27  ;;  %v6707_v10 = vrot.slane %v6699_v15, %v12321_v13  ;;  %v16563_v11 = vrot.slane %v16543_v39, %v12321_v13  ;;  %v8861_v47 = vcombine.low %v7078_v50, %v16546_v12  ;;  %v9179_v39 = vld [vmem:[%s19348_s6 + $0xc0] sm:$0xff] }
 0x2d3   : > { %vm4624_vm2 = vcmp.gt.f32.partialorder %v4565_v6, 0.0  ;;  %v4656_v14 = vmul.f32 %v16100_v40, %v4565_v6  ;;  %v16569_v37 = vcombine.low %v16555_v1, %v16558_v8  ;;  %v4986_v53 = vcombine.high %v16463_v48, %v16463_v48  ;;  %9295 = vmatpush2.msra.mxu1 %v9179_v39 }
 0x2d4   : > { %v8752_v18 = vcombine.low %v16489_v51, %v6707_v10  ;;  %v6282_v33 = vrot.slane %v6280_v49, 2  ;;  %v11906_v32 = vpack.i.bf16 %v7897_v27, %v8861_v47  ;;  %v6283_v50 = vrot.slane %v16381_v9, 7  ;;  %9296 = vmatprep.subr.mxu1 %v19852_v29 }
 0x2d5   : > { %v4681_v56 = vsel %vm4624_vm2, %v4565_v6, %v4656_v14  ;;  %v6286_v15 = vrot.slane %v15978_v63, 7  ;;  %11214 = vmatmul.mubr.msk.f32.gmra.mxu0 %vm4187_vm9, %v16569_v37  ;;  %v6700_v49 = vcombine.low %v16518_v30, %v16194_v38  ;;  %v11065_v6 = vrot.slane %v16087_v43, 9 }
 0x2d6   : > { %v11916_v61 = vpack.i.bf16 %v7528_v42, %v8752_v18  ;;  %v4987_v51 = vcombine.high %v4681_v56, %v4681_v56  ;;  %v4994_v34 = vrot.slane %v4681_v56, %v12321_v13  ;;  %11907 = vrot.lane.b32.xlu0 %v11906_v32, %s12225_s30  ;;  %v16587_v48 = vsel %vm12642_vm7, %v6282_v33, %v6283_v50  ;;  %v9178_v42 = vld [vmem:[%s19348_s6 + $0xb8] sm:$0xff] }
 0x2d7   : > { %19940 = vst [vmem:[#allocation81_spill] sm:$0xff] %v16587_v48  ;;  %v6285_v9 = vrot.slane %v6283_v50, 2  ;;  %11216 = vmatprep.mubr.msk.f32.mxu0 %vm12229_vm15, %v19852_v29  ;;  %v6288_v63 = vrot.slane %v6286_v15, 2  ;;  %v16600_v18 = vrot.slane %v6700_v49, %v12321_v13  ;;  %v19942_v39 = vrot.slane %v16448_v3, 7  ;;  %9297 = vmatpush2.msra.mxu1 %v9178_v42  ;;  %v9176_v42 = vld [vmem:[%s19348_s6 + $0xa8] sm:$0xff] }
 0x2d8   : > { %11917 = vrot.lane.b32.xlu1 %v11916_v61, %s12228_s14  ;;  %v16597_v27 = vrot.slane %v4987_v51, %v12321_v13  ;;  %v5002_v47 = vcombine.high %v4994_v34, %v4994_v34  ;;  %v5428_v14 = vcombine.low %v4986_v53, %v4994_v34  ;;  %v6293_v61 = vrot.slane %v16439_v55, 7  ;;  %v9177_v34 = vld [vmem:[%s19348_s6 + $0xb0] sm:$0xff]  ;;  %9298 = vmatprep.subr.mxu1 %v19852_v29 }
 0x2d9   : > { %v16604_v33 = vsel %vm12642_vm7, %v6285_v9, %v6286_v15  ;;  %v16610_v32 = vsel %vm12642_vm7, %v6288_v63, %v19942_v39  ;;  %v7898_v51 = vcombine.low %v15709_v7, %v15727_v45  ;;  %v16622_v3 = vcombine.low %v6707_v10, %v16600_v18  ;;  %9299 = vmatpush2.msra.mxu1 %v9177_v34 }
 0x2da   : > { %19941 = vst [vmem:[#allocation84_spill] sm:$0xff] %v16604_v33  ;;  %19943 = vst [vmem:[#allocation69_spill] sm:$0xff] %v16610_v32  ;;  %v5429_v53 = vcombine.low %v5002_v47, %v16597_v27  ;;  %v5436_v56 = vrot.slane %v5428_v14, %v12321_v13  ;;  %v7081_v50 = vcombine.low %v16587_v48, %v16604_v33  ;;  %9300 = vmatprep.subr.mxu1 %v19852_v29 }
 0x2db   : > { %19944 = vst [vmem:[#allocation62_spill] sm:$0xff] %v16622_v3  ;;  %v16628_v7 = vsel %vm12642_vm7, %v11065_v6, %v6293_v61  ;;  %v7905_v45 = vrot.slane %v7898_v51, %v12321_v13  ;;  %v16633_v15 = vcombine.high %v16262_v36, %v16262_v36  ;;  %v16637_v49 = vcombine.high %v16194_v38, %v16194_v38 }
 0x2dc   : > { %19945 = vst [vmem:[#allocation63_spill] sm:$0xff] %v16628_v7  ;;  %v5443_v10 = vrot.slane %v5429_v53, %v12321_v13  ;;  %v7095_v9 = vrot.slane %v7081_v50, %v12321_v13  ;;  %v7097_v63 = vcombine.low %v16610_v32, %v16628_v7  ;;  %v4570_v6 = vadd.f32 %v16077_v2, %v15845_v35 }
 0x2dd   : > { %v16650_v47 = vrot.slane %v5998_v26, %v12321_v13  ;;  %v7906_v14 = vcombine.low %v16198_v25, %v7905_v45  ;;  %v7581_v39 = vcombine.low %v16194_v38, %v16637_v49  ;;  %v7597_v51 = vcombine.low %v16633_v15, %v16280_v60  ;;  %9301 = vmatpush2.msra.mxu1 %v9176_v42  ;;  %v9175_v42 = vld [vmem:[%s19348_s6 + $0xa0] sm:$0xff] }
 0x2de   : > { %v16658_v53 = vcombine.low %v5436_v56, %v5443_v10  ;;  %v7096_v35 = vcombine.low %v16546_v12, %v7095_v9  ;;  %v16662_v34 = vrot.slane %v7097_v63, %v12321_v13  ;;  %vm4625_vm3 = vcmp.gt.f32.partialorder %v4570_v6, 0.0  ;;  %9302 = vmatprep.subr.mxu1 %v19852_v29 }
 0x2df   : > { %v16665_v26 = vrot.slane %v7581_v39, %v12321_v13  ;;  %v16668_v25 = vrot.slane %v7597_v51, %v12321_v13  ;;  %v4657_v50 = vmul.f32 %v16100_v40, %v4570_v6  ;;  %v5003_v45 = vcombine.high %v16597_v27, %v16597_v27  ;;  %9303 = vmatpush2.msra.mxu1 %v9175_v42 }
 0x2e0   : > { %v11926_v56 = vpack.i.bf16 %v7096_v35, %v16622_v3  ;;  %v8862_v10 = vcombine.low %v7095_v9, %v16662_v34  ;;  %v6716_v63 = vcombine.low %v16262_v36, %v16633_v15  ;;  %v16687_v12 = vcombine.high %v16280_v60, %v16280_v60  ;;  %9304 = vmatprep.subr.mxu1 %v19852_v29 }
 0x2e1   : > { %v8989_v27 = vcombine.low %v16665_v26, %v16668_v25  ;;  %v4682_v51 = vsel %vm4625_vm3, %v4570_v6, %v4657_v50  ;;  %v19946_v9 = vrot.slane %v16658_v53, 7  ;;  %v9174_v6 = vld [vmem:[%s19348_s6 + $0x98] sm:$0xff] }
 0x2e2   : > { %11927 = vrot.lane.b32.xlu0 %v11926_v56, %s12222_s27  ;;  %v11921_v3 = vpack.i.bf16 %v7906_v14, %v8862_v10  ;;  %v5004_v7 = vcombine.high %v4682_v51, %v4682_v51  ;;  %v5011_v33 = vrot.slane %v4682_v51, %v12321_v13  ;;  %v16700_v42 = vrot.slane %v6716_v63, %v12321_v13 }
 0x2e3   : > { %v5672_v35 = vsel %vm514_vm0, 0.0, %v19946_v9  ;;  %11217 = vmatmul.mubr.msk.f32.gmra.mxu0 %vm4187_vm9, %v8989_v27  ;;  %v7545_v9 = vcombine.low %v16206_v5, %v16353_v23  ;;  %v16706_v14 = vcombine.high %v16291_v21, %v16291_v21  ;;  %v6295_v27 = vrot.slane %v6293_v61, 2  ;;  %9305 = vmatpush2.msra.mxu1 %v9174_v6 }
 0x2e4   : > { %v6014_v50 = vcombine.high %v5672_v35, %v5672_v35  ;;  %19947 = vst [vmem:[#allocation77_spill] sm:$0xff] %v16700_v42  ;;  %11922 = vrot.lane.b32.xlu1 %v11921_v3, %s12225_s30  ;;  %v5018_v56 = vrot.slane %v5004_v7, %v12321_v13  ;;  %v5019_v10 = vcombine.high %v5011_v33, %v5011_v33  ;;  %v6296_v61 = vrot.slane %v16105_v19, 7 }
 0x2e5   : > { %v5445_v51 = vcombine.low %v5003_v45, %v5011_v33  ;;  %11219 = vmatprep.mubr.msk.f32.mxu0 %vm12229_vm15, %v19852_v29  ;;  %v16713_v63 = vrot.slane %v5672_v35, %v12321_v13  ;;  %v8753_v5 = vcombine.low %v16600_v18, %v16700_v42  ;;  %v7598_v23 = vcombine.low %v16687_v12, %v16291_v21  ;;  %v9173_v18 = vld [vmem:[%s19348_s6 + $0x90] sm:$0xff] }
 0x2e6   : > { %v7614_v3 = vcombine.low %v16706_v14, %v16305_v4  ;;  %v5020_v7 = vcombine.high %v5018_v56, %v5018_v56  ;;  %v5459_v45 = vrot.slane %v5019_v10, %v12321_v13  ;;  %9306 = vmatprep.subr.mxu1 %v19852_v29  ;;  %v6299_v6 = vrot.slane %v16514_v59, 7 }
 0x2e7   : > { %v5452_v33 = vrot.slane %v5445_v51, %v12321_v13  ;;  %v11931_v35 = vpack.i.bf16 %v7545_v9, %v8753_v5  ;;  %v16729_v39 = vrot.slane %v7598_v23, %v12321_v13  ;;  %9307 = vmatpush2.msra.mxu1 %v9173_v18  ;;  %v16736_v10 = vrot.slane %v6014_v50, %v12321_v13 }
 0x2e8   : > { %v16732_v42 = vrot.slane %v7614_v3, %v12321_v13  ;;  %v16740_v51 = vsel %vm12642_vm7, %v6295_v27, %v6296_v61  ;;  %v6298_v32 = vrot.slane %v6296_v61, 2  ;;  %9308 = vmatprep.subr.mxu1 %v19852_v29  ;;  %v6717_v59 = vcombine.low %v16280_v60, %v16687_v12 }
 0x2e9   : > { %v5460_v19 = vcombine.low %v5452_v33, %v5459_v45  ;;  %19948 = vst [vmem:[#allocation71_spill] sm:$0xff] %v16740_v51  ;;  %11932 = vrot.lane.b32.xlu0 %v11931_v35, %s12228_s14  ;;  %v11083_v50 = vcombine.high %v16194_v38, %v16262_v36  ;;  %v6301_v5 = vrot.slane %v6299_v6, 2  ;;  %v16752_v23 = vcombine.low %v5018_v56, %v5020_v7 }
 0x2ea   : > { %v16746_v9 = vcombine.low %v16729_v39, %v16732_v42  ;;  %v16756_v3 = vsel %vm12642_vm7, %v6298_v32, %v6299_v6  ;;  %v6302_v33 = vrot.slane %v16185_v17, 7  ;;  %v16762_v45 = vrot.slane %v6717_v59, %v12321_v13 }
 0x2eb   : > { %v5621_v27 = vrot.slane %v5460_v19, 7  ;;  %19949 = vst [vmem:[#allocation72_spill] sm:$0xff] %v16756_v3  ;;  %v7098_v61 = vcombine.low %v16740_v51, %v16756_v3  ;;  %v8587_v18 = vrot.slane %v11083_v50, %v12321_v13  ;;  %v6305_v56 = vrot.slane %v16518_v30, 7  ;;  %v9172_v19 = vld [vmem:[%s19348_s6 + $0x88] sm:$0xff] }
 0x2ec   : > { %11220 = vmatmul.mubr.msk.f32.gmra.mxu0 %vm4187_vm9, %v16746_v9  ;;  %19950 = vst [vmem:[#allocation9_spill] sm:$0xff] %v16762_v45  ;;  %v19951_v7 = vrot.slane %v16658_v53, 7  ;;  %v16773_v17 = vsel %vm12642_vm7, %v6301_v5, %v6302_v33  ;;  %v6304_v35 = vrot.slane %v6302_v33, 2  ;;  %v6733_v6 = vcombine.low %v16291_v21, %v16706_v14  ;;  %9309 = vmatpush2.msra.mxu1 %v9172_v19 }
 0x2ed   : > { %19952 = vst [vmem:[#allocation78_spill] sm:$0xff] %v16773_v17  ;;  %11222 = vmatprep.mubr.msk.f32.mxu0 %vm12229_vm15, %v19852_v29  ;;  %v7112_v53 = vrot.slane %v7098_v61, %v12321_v13  ;;  %v8588_v59 = vcombine.low %v8587_v18, %v16762_v45  ;;  %v7562_v50 = vcombine.low %v16377_v54, %v16412_v58  ;;  %v9171_v61 = vld [vmem:[%s19348_s6 + $0x80] sm:$0xff]  ;;  %v6308_v5 = vrot.slane %v16194_v38, 7 }
 0x2ee   : > { %v5622_v32 = vsel %vm514_vm0, %v19951_v7, %v5621_v27  ;;  %v16791_v33 = vsel %vm12642_vm7, %v6304_v35, %v6305_v56  ;;  %v16794_v7 = vrot.slane %v6733_v6, %v12321_v13  ;;  %9310 = vmatprep.subr.mxu1 %v19852_v29  ;;  %v6307_v35 = vrot.slane %v6305_v56, 2 }
 0x2ef   : > { %v5686_v30 = vsel %vm604_vm1, %v5622_v32, 0.0  ;;  %19953 = vst [vmem:[#allocation11_spill] sm:$0xff] %v16791_v33  ;;  %v7113_v54 = vcombine.low %v16662_v34, %v7112_v53  ;;  %v7114_v18 = vcombine.low %v16773_v17, %v16791_v33  ;;  %v16805_v32 = vcombine.high %v16305_v4, %v16305_v4  ;;  %9311 = vmatpush2.msra.mxu1 %v9171_v61 }
 0x2f0   : > { %v6031_v27 = vcombine.high %v5686_v30, %v5686_v30  ;;  %19954 = vst [vmem:[#allocation5_spill] sm:$0xff] %v16794_v7  ;;  %v16808_v6 = vrot.slane %v5686_v30, %v12321_v13  ;;  %v8754_v19 = vcombine.low %v16762_v45, %v16794_v7  ;;  %v4575_v34 = vadd.f32 %v16077_v2, %v15958_v22 }
 0x2f1   : > { %10597 = vmatprep.subr.mxu1 %v19852_v29  ;;  %v11941_v3 = vpack.i.bf16 %v7113_v54, %v8588_v59  ;;  %v7122_v56 = vrot.slane %v7114_v18, %v12321_v13  ;;  %v8589_v30 = vcombine.low %v16305_v4, %v16805_v32  ;;  %v16824_v45 = vsel %vm12642_vm7, %v6307_v35, %v6308_v5 }
 0x2f2   : > { %v16817_v33 = vrot.slane %v6031_v27, %v12321_v13  ;;  %v11946_v61 = vpack.i.bf16 %v7562_v50, %v8754_v19  ;;  %19955 = vst [vmem:[#allocation19_spill] sm:$0xff] %v16824_v45  ;;  %v6310_v17 = vrot.slane %v6308_v5, 2  ;;  %vm4626_vm4 = vcmp.gt.f32.partialorder %v4575_v34, 0.0 }
 0x2f3   : > { %11942 = vrot.lane.b32.xlu1 %v11941_v3, %s12222_s27  ;;  %v8863_v22 = vcombine.low %v7112_v53, %v7122_v56  ;;  %v8596_v2 = vrot.slane %v8589_v30, %v12321_v13  ;;  %v4658_v27 = vmul.f32 %v16100_v40, %v4575_v34  ;;  %v11066_v59 = vrot.slane %v16262_v36, 9 }
 0x2f4   : > { %v19956_v54 = vrot.slane %v16637_v49, 7  ;;  %v6315_v18 = vrot.slane %v16633_v15, 7  ;;  %v6318_v5 = vrot.slane %v16280_v60, 7  ;;  %v7908_v3 = vcombine.low %v16087_v43, %v16439_v55 }
 0x2f5   : > { %v11936_v53 = vpack.i.bf16 %v16393_v46, %v8863_v22  ;;  %v8597_v35 = vcombine.low %v16794_v7, %v8596_v2  ;;  %v4683_v19 = vsel %vm4626_vm4, %v4575_v34, %v4658_v27  ;;  %v6321_v55 = vrot.slane %v16687_v12, 7 }
 0x2f6   : > { %v16834_v50 = vsel %vm12642_vm7, %v6310_v17, %v19956_v54  ;;  %v5021_v49 = vcombine.high %v4683_v19, %v4683_v19  ;;  %v5028_v30 = vrot.slane %v4683_v19, %v12321_v13  ;;  %v16847_v17 = vsel %vm12642_vm7, %v11066_v59, %v6315_v18 }
 0x2f7   : > { %19957 = vst [vmem:[#allocation29_spill] sm:$0xff] %v16834_v50  ;;  %v7115_v40 = vcombine.low %v16824_v45, %v16834_v50  ;;  %19958 = vst [vmem:[#allocation28_spill] sm:$0xff] %v16847_v17  ;;  %v6317_v15 = vrot.slane %v6315_v18, 2  ;;  %11937 = vrot.lane.b32.xlu0 %v11936_v53, %s12225_s30  ;;  %11947 = vrot.lane.b32.xlu1 %v11946_v61, %s12228_s14  ;;  %v7915_v60 = vrot.slane %v7908_v3, %v12321_v13 }
 0x2f8   : > { %v6320_v46 = vrot.slane %v6318_v5, 2  ;;  %v5035_v34 = vrot.slane %v5021_v49, %v12321_v13  ;;  %v5036_v22 = vcombine.high %v5028_v30, %v5028_v30  ;;  %v6324_v27 = vrot.slane %v16291_v21, 7 }
 0x2f9   : > { %v7129_v43 = vrot.slane %v7115_v40, %v12321_v13  ;;  %v16857_v2 = vsel %vm12642_vm7, %v6317_v15, %v6318_v5  ;;  %v7916_v18 = vcombine.low %v16412_v58, %v7915_v60  ;;  %v6323_v12 = vrot.slane %v6321_v55, 2 }
 0x2fa   : > { %19959 = vst [vmem:[#allocation85_spill] sm:$0xff] %v16857_v2  ;;  %v7131_v61 = vcombine.low %v16847_v17, %v16857_v2  ;;  %v5037_v3 = vcombine.high %v5035_v34, %v5035_v34  ;;  %v5462_v53 = vcombine.low %v5028_v30, %v5036_v22  ;;  %v6326_v40 = vrot.slane %v6324_v27, 2  ;;  %v19962_v30 = vld [vmem:[#allocation36_spill] sm:$0xff] }
 0x2fb   : > { %v7130_v54 = vcombine.low %v7122_v56, %v7129_v43  ;;  %v16869_v5 = vsel %vm12642_vm7, %v6320_v46, %v6321_v55  ;;  %v6327_v21 = vrot.slane %v16706_v14, 7  ;;  %v16875_v15 = vsel %vm12642_vm7, %v6323_v12, %v6324_v27 }
 0x2fc   : > { %v16865_v49 = vrot.slane %v7131_v61, %v12321_v13  ;;  %19960 = vst [vmem:[#allocation86_spill] sm:$0xff] %v16869_v5  ;;  %v5476_v56 = vrot.slane %v5462_v53, %v12321_v13  ;;  %19961 = vst [vmem:[#allocation87_spill] sm:$0xff] %v16875_v15  ;;  %v19544_v58 = vrot.slane %v16305_v4, 7  ;;  %v5478_v46 = vcombine.low %v5035_v34, %v5037_v3  ;;  %v16899_v53 = vld [vmem:[%s19347_s5] ss:$0 sm:$0xff] }
 0x2fd   : > { %v11956_v19 = vpack.i.bf16 %v7130_v54, %v8597_v35  ;;  %v16881_v35 = vld [vmem:[%s19346_s4] ss:$0 sm:$0xff]  ;;  %v6329_v55 = vrot.slane %v6327_v21, 2  ;;  %v7132_v22 = vcombine.low %v16869_v5, %v16875_v15  ;;  %v19963_v27 = vrot.slane %v16752_v23, %v12321_v13 }
 0x2fe   : > { %v4580_v60 = vadd.f32 %v16881_v35, %v19962_v30  ;;  %v8864_v14 = vcombine.low %v7129_v43, %v16865_v49  ;;  %v16894_v61 = vsel %vm12642_vm7, %v6326_v40, %v6327_v21  ;;  %v16911_v12 = vcombine.high %v16521_v28, %v16521_v28 }
 0x2ff   : > { %11957 = vrot.lane.b32.xlu0 %v11956_v19, %s12222_s27  ;;  %v5477_v54 = vcombine.low %v19963_v27, %v5476_v56  ;;  %19964 = vst [vmem:[#allocation36_spill] sm:$0xff] %v16894_v61  ;;  %v16906_v3 = vsel %vm12642_vm7, %v6329_v55, %v19544_v58  ;;  %v7146_v23 = vrot.slane %v7132_v22, %v12321_v13 }
 0x300   : > { %vm4627_vm5 = vcmp.gt.f32.partialorder %v4580_v60, 0.0  ;;  %v4659_v43 = vmul.f32 %v16899_v53, %v4580_v60  ;;  %v11951_v34 = vpack.i.bf16 %v7916_v18, %v8864_v14  ;;  %19965 = vst [vmem:[#allocation88_spill] sm:$0xff] %v16906_v3  ;;  %v7148_v19 = vcombine.low %v16894_v61, %v16906_v3 }
 0x301   : > { %v5623_v40 = vrot.slane %v5477_v54, 7  ;;  %v11077_v18 = vcombine.high %v16305_v4, %v16499_v20  ;;  %v7631_v14 = vcombine.low %v16521_v28, %v16911_v12  ;;  %v16923_v55 = vcombine.high %v16499_v20, %v16499_v20 }
 0x302   : > { %v4684_v21 = vsel %vm4627_vm5, %v4580_v60, %v4659_v43  ;;  %11952 = vrot.lane.b32.xlu1 %v11951_v34, %s12225_s30  ;;  %v16927_v27 = vrot.slane %v7148_v19, %v12321_v13  ;;  %v5485_v60 = vrot.slane %v5478_v46, %v12321_v13  ;;  %v6734_v54 = vcombine.low %v16305_v4, %v16499_v20 }
 0x303   : > { %v5038_v56 = vcombine.high %v4684_v21, %v4684_v21  ;;  %v5045_v30 = vrot.slane %v4684_v21, %v12321_v13  ;;  %v5673_v22 = vsel %vm514_vm0, 0.0, %v5623_v40  ;;  %v16936_v59 = vrot.slane %v11077_v18, %v12321_v13 }
 0x304   : > { %v6047_v43 = vcombine.high %v5673_v22, %v5673_v22  ;;  %v16939_v58 = vrot.slane %v5673_v22, %v12321_v13  ;;  %v8865_v7 = vcombine.low %v7146_v23, %v16927_v27  ;;  %v16944_v46 = vrot.slane %v7631_v14, %v12321_v13 }
 0x305   : > { %v16933_v34 = vrot.slane %v5038_v56, %v12321_v13  ;;  %v5053_v21 = vcombine.high %v5045_v30, %v5045_v30  ;;  %v5492_v19 = vrot.slane %v5045_v30, %v12321_v13  ;;  %v16953_v15 = vrot.slane %v6734_v54, %v12321_v13 }
 0x306   : > { %v16947_v3 = vrot.slane %v6047_v43, %v12321_v13  ;;  %v6750_v18 = vcombine.low %v16923_v55, %v16521_v28  ;;  %v11961_v22 = vpack.i.bf16 %v16569_v37, %v8865_v7  ;;  %v8990_v30 = vcombine.low %v16936_v59, %v16944_v46 }
 0x307   : > { %v16950_v56 = vcombine.low %v5053_v21, %v16933_v34  ;;  %19966 = vst [vmem:[#allocation89_spill] sm:$0xff] %v16953_v15  ;;  %v5493_v61 = vcombine.low %v5485_v60, %v5492_v19  ;;  %v6751_v14 = vcombine.low %v16911_v12, %v16563_v11  ;;  %v7579_v54 = vcombine.low %v16419_v24, %v16555_v1 }
 0x308   : > { %v6758_v21 = vrot.slane %v6750_v18, %v12321_v13  ;;  %v16969_v2 = vcombine.high %v16563_v11, %v16563_v11  ;;  %11962 = vrot.lane.b32.xlu0 %v11961_v22, %s12225_s30  ;;  %11223 = vmatmul.mubr.msk.f32.gmra.mxu0 %vm4187_vm9, %v8990_v30  ;;  %v7147_v60 = vcombine.low %v16865_v49, %v7146_v23 }
 0x309   : > { %v5624_v37 = vrot.slane %v5493_v61, 7  ;;  %v6765_v7 = vrot.slane %v6751_v14, %v12321_v13  ;;  %v16977_v19 = vcombine.high %v16650_v47, %v16650_v47  ;;  %11225 = vmatprep.mubr.msk.f32.mxu0 %vm12229_vm15, %v19852_v29  ;;  %v4585_v61 = vadd.f32 %v16881_v35, %v16231_v0 }
 0x30a   : > { %v8755_v18 = vcombine.low %v16953_v15, %v6758_v21  ;;  %v7632_v24 = vcombine.low %v16563_v11, %v16969_v2  ;;  %v6767_v1 = vcombine.low %v16969_v2, %v16650_v47  ;;  %v7596_v30 = vcombine.low %v16558_v8, %v16665_v26 }
 0x30b   : > { %v5625_v49 = vsel %vm514_vm0, %v5623_v40, %v5624_v37  ;;  %v16989_v23 = vcombine.low %v6758_v21, %v6765_v7  ;;  %v7648_v22 = vcombine.low %v16650_v47, %v16977_v19  ;;  %vm4628_vm6 = vcmp.gt.f32.partialorder %v4585_v61, 0.0 }
 0x30c   : > { %v5687_v14 = vsel %vm604_vm1, %v5625_v49, 0.0  ;;  %v11966_v43 = vpack.i.bf16 %v7579_v54, %v8755_v18  ;;  %v16998_v5 = vrot.slane %v6767_v1, %v12321_v13  ;;  %v17002_v40 = vrot.slane %v7632_v24, %v12321_v13 }
 0x30d   : > { %19967 = vst [vmem:[#allocation90_spill] sm:$0xff] %v16989_v23  ;;  %v6064_v50 = vcombine.high %v5687_v14, %v5687_v14  ;;  %v11971_v0 = vpack.i.bf16 %v7147_v60, %v16989_v23  ;;  %v17005_v21 = vrot.slane %v7648_v22, %v12321_v13  ;;  %v17008_v37 = vrot.slane %v5687_v14, %v12321_v13 }
 0x30e   : > { %19968 = vst [vmem:[#allocation91_spill] sm:$0xff] %v16998_v5  ;;  %11967 = vrot.lane.b32.xlu0 %v11966_v43, %s12228_s14  ;;  %v8756_v8 = vcombine.low %v6765_v7, %v16998_v5  ;;  %v4660_v26 = vmul.f32 %v16899_v53, %v4585_v61  ;;  %v5054_v60 = vcombine.high %v16933_v34, %v16933_v34  ;;  %v19969_v18 = vrot.slane %v16305_v4, 7 }
 0x30f   : > { %11972 = vrot.lane.b32.xlu1 %v11971_v0, %s12222_s27  ;;  %v8991_v54 = vcombine.low %v17002_v40, %v17005_v21  ;;  %v11067_v1 = vrot.slane %v16499_v20, 9  ;;  %v6337_v7 = vrot.slane %v16923_v55, 7  ;;  %v11084_v22 = vcombine.high %v16650_v47, %v16713_v63 }
 0x310   : > { %v6332_v24 = vrot.slane %v19969_v18, 2  ;;  %v11976_v49 = vpack.i.bf16 %v7596_v30, %v8756_v8  ;;  %v4685_v43 = vsel %vm4628_vm6, %v4585_v61, %v4660_v26  ;;  %v19970_v15 = vrot.slane %v16805_v32, 7 }
 0x311   : > { %11226 = vmatmul.mubr.msk.f32.gmra.mxu0 %vm4187_vm9, %v8991_v54  ;;  %v5055_v14 = vcombine.high %v4685_v43, %v4685_v43  ;;  %v5062_v0 = vrot.slane %v4685_v43, %v12321_v13  ;;  %v6340_v34 = vrot.slane %v16521_v28, 7  ;;  %v17035_v61 = vsel %vm12642_vm7, %v11067_v1, %v6337_v7 }
 0x312   : > { %v17030_v4 = vsel %vm12642_vm7, %v6332_v24, %v19970_v15  ;;  %19972 = vst [vmem:[#allocation93_spill] sm:$0xff] %v17035_v61  ;;  %v8605_v30 = vrot.slane %v11084_v22, %v12321_v13  ;;  %11228 = vmatprep.mubr.msk.f32.mxu0 %vm12229_vm15, %v19852_v29  ;;  %v6339_v8 = vrot.slane %v6337_v7, 2  ;;  %v6343_v26 = vrot.slane %v16911_v12, 7 }
 0x313   : > { %19971 = vst [vmem:[#allocation92_spill] sm:$0xff] %v17030_v4  ;;  %11977 = vrot.lane.b32.xlu1 %v11976_v49, %s12228_s14  ;;  %v5069_v32 = vrot.slane %v5055_v14, %v12321_v13  ;;  %v5070_v15 = vcombine.high %v5062_v0, %v5062_v0  ;;  %v5495_v54 = vcombine.low %v5054_v60, %v5062_v0  ;;  %v6342_v1 = vrot.slane %v6340_v34, 2 }
 0x314   : > { %v7149_v28 = vcombine.low %v17030_v4, %v17035_v61  ;;  %v8606_v18 = vcombine.low %v16998_v5, %v8605_v30  ;;  %v17048_v24 = vsel %vm12642_vm7, %v6339_v8, %v6340_v34  ;;  %v7918_v43 = vcombine.low %v16194_v38, %v16262_v36 }
 0x315   : > { %19973 = vst [vmem:[#allocation94_spill] sm:$0xff] %v17048_v24  ;;  %v5071_v12 = vcombine.high %v5069_v32, %v5069_v32  ;;  %v5509_v49 = vrot.slane %v5495_v54, %v12321_v13  ;;  %v5511_v7 = vcombine.low %v5070_v15, %v5069_v32  ;;  %v17055_v60 = vrot.slane %v6064_v50, %v12321_v13 }
 0x316   : > { %v7163_v22 = vrot.slane %v7149_v28, %v12321_v13  ;;  %v17059_v14 = vsel %vm12642_vm7, %v6342_v1, %v6343_v26  ;;  %v17063_v0 = vcombine.high %v16713_v63, %v16713_v63  ;;  %v17067_v38 = vcombine.high %v16736_v10, %v16736_v10 }
 0x317   : > { %19974 = vst [vmem:[#allocation95_spill] sm:$0xff] %v17059_v14  ;;  %v19975_v36 = vrot.slane %v16950_v56, %v12321_v13  ;;  %v5518_v30 = vrot.slane %v5511_v7, %v12321_v13  ;;  %v5525_v50 = vrot.slane %v5071_v12, %v12321_v13  ;;  %v7165_v32 = vcombine.low %v17048_v24, %v17059_v14 }
 0x318   : > { %v7164_v8 = vcombine.low %v16927_v27, %v7163_v22  ;;  %v7925_v15 = vrot.slane %v7918_v43, %v12321_v13  ;;  %v7649_v54 = vcombine.low %v17063_v0, %v16736_v10  ;;  %v7665_v28 = vcombine.low %v17067_v38, %v16808_v6 }
 0x319   : > { %v5510_v34 = vcombine.low %v19975_v36, %v5509_v49  ;;  %v5526_v1 = vcombine.low %v5518_v30, %v5525_v50  ;;  %v4590_v7 = vadd.f32 %v16881_v35, %v16253_v31  ;;  %v17085_v12 = vrot.slane %v7165_v32, %v12321_v13 }
 0x31a   : > { %v11981_v49 = vpack.i.bf16 %v7164_v8, %v8606_v18  ;;  %v17088_v27 = vrot.slane %v7649_v54, %v12321_v13  ;;  %v17091_v43 = vrot.slane %v7665_v28, %v12321_v13  ;;  %v6345_v36 = vrot.slane %v6343_v26, 2 }
 0x31b   : > { %v5626_v56 = vrot.slane %v5510_v34, 7  ;;  %v5627_v5 = vrot.slane %v5526_v1, 7  ;;  %vm4629_vm10 = vcmp.gt.f32.partialorder %v4590_v7, 0.0  ;;  %v4661_v18 = vmul.f32 %v16899_v53, %v4590_v7 }
 0x31c   : > { %11982 = vrot.lane.b32.xlu0 %v11981_v49, %s12222_s27  ;;  %v7926_v31 = vcombine.low %v7925_v15, %v16668_v25  ;;  %v8866_v30 = vcombine.low %v7163_v22, %v17085_v12  ;;  %v17100_v50 = vcombine.low %v17088_v27, %v17091_v43  ;;  %v6346_v32 = vrot.slane %v16563_v11, 7 }
 0x31d   : > { %v5674_v23 = vsel %vm514_vm0, 0.0, %v5626_v56  ;;  %v5628_v8 = vsel %vm514_vm0, %v5626_v56, %v5627_v5  ;;  %v4686_v26 = vsel %vm4629_vm10, %v4590_v7, %v4661_v18  ;;  %v6349_v54 = vrot.slane %v16969_v2, 7 }
 0x31e   : > { %v6080_v34 = vcombine.high %v5674_v23, %v5674_v23  ;;  %v5688_v28 = vsel %vm604_vm1, %v5628_v8, 0.0  ;;  %v17107_v1 = vrot.slane %v5674_v23, %v12321_v13  ;;  %v11986_v49 = vpack.i.bf16 %v7926_v31, %v8866_v30  ;;  %11229 = vmatmul.mubr.msk.f32.gmra.mxu0 %vm4187_vm9, %v17100_v50 }
 0x31f   : > { %v5072_v22 = vcombine.high %v4686_v26, %v4686_v26  ;;  %v6097_v14 = vcombine.high %v5688_v28, %v5688_v28  ;;  %v5079_v5 = vrot.slane %v4686_v26, %v12321_v13  ;;  %v17117_v11 = vsel %vm12642_vm7, %v6345_v36, %v6346_v32  ;;  %11231 = vmatprep.mubr.msk.f32.mxu0 %vm12229_vm15, %v19852_v29 }
 0x320   : > { %v17112_v15 = vrot.slane %v6080_v34, %v12321_v13  ;;  %19976 = vst [vmem:[#allocation96_spill] sm:$0xff] %v17117_v11  ;;  %11987 = vrot.lane.b32.xlu1 %v11986_v49, %s12225_s30  ;;  %v6348_v23 = vrot.slane %v6346_v32, 2  ;;  %v6351_v56 = vrot.slane %v6349_v54, 2  ;;  %v6352_v7 = vrot.slane %v16650_v47, 7 }
 0x321   : > { %v5086_v2 = vrot.slane %v5072_v22, %v12321_v13  ;;  %v17125_v18 = vrot.slane %v5688_v28, %v12321_v13  ;;  %v5087_v34 = vcombine.high %v5079_v5, %v5079_v5  ;;  %v17129_v31 = vcombine.high %v16808_v6, %v16808_v6 }
 0x322   : > { %v6784_v36 = vcombine.low %v16736_v10, %v17067_v38  ;;  %v17135_v8 = vsel %vm12642_vm7, %v6348_v23, %v6349_v54  ;;  %v17139_v26 = vsel %vm12642_vm7, %v6351_v56, %v6352_v7  ;;  %v6354_v32 = vrot.slane %v6352_v7, 2 }
 0x323   : > { %v5088_v30 = vcombine.high %v5086_v2, %v5086_v2  ;;  %19977 = vst [vmem:[#allocation97_spill] sm:$0xff] %v17135_v8  ;;  %19978 = vst [vmem:[#allocation98_spill] sm:$0xff] %v17139_v26  ;;  %v5527_v28 = vcombine.low %v5079_v5, %v5087_v34  ;;  %v7166_v49 = vcombine.low %v17117_v11, %v17135_v8  ;;  %v19979_v4 = vrot.slane %v16977_v19, 7 }
 0x324   : > { %v6785_v22 = vcombine.low %v16808_v6, %v17129_v31  ;;  %v6792_v61 = vrot.slane %v6784_v36, %v12321_v13  ;;  %v6768_v23 = vcombine.low %v16713_v63, %v17063_v0  ;;  %v7613_v5 = vcombine.low %v16668_v25, %v16729_v39 }
 0x325   : > { %v5528_v24 = vcombine.low %v5086_v2, %v5088_v30  ;;  %v17150_v54 = vsel %vm12642_vm7, %v6354_v32, %v19979_v4  ;;  %v5535_v56 = vrot.slane %v5527_v28, %v12321_v13  ;;  %v7180_v7 = vrot.slane %v7166_v49, %v12321_v13 }
 0x326   : > { %19980 = vst [vmem:[#allocation99_spill] sm:$0xff] %v17150_v54  ;;  %v7182_v34 = vcombine.low %v17139_v26, %v17150_v54  ;;  %v6799_v2 = vrot.slane %v6785_v22, %v12321_v13  ;;  %v17163_v4 = vrot.slane %v6768_v23, %v12321_v13  ;;  %v7666_v36 = vcombine.low %v17129_v31, %v16817_v33 }
 0x327   : > { %v5542_v19 = vrot.slane %v5528_v24, %v12321_v13  ;;  %v11078_v25 = vcombine.high %v16817_v33, %v16939_v58  ;;  %v7181_v32 = vcombine.low %v17085_v12, %v7180_v7  ;;  %v4595_v28 = vadd.f32 %v16881_v35, %v16441_v44 }
 0x328   : > { %19981 = vst [vmem:[#allocation100_spill] sm:$0xff] %v17163_v4  ;;  %v17170_v39 = vrot.slane %v7182_v34, %v12321_v13  ;;  %v17172_v30 = vcombine.low %v6792_v61, %v6799_v2  ;;  %v8757_v49 = vcombine.low %v17163_v4, %v6792_v61  ;;  %v17181_v22 = vrot.slane %v7666_v36, %v12321_v13 }
 0x329   : > { %v17177_v24 = vcombine.low %v5535_v56, %v5542_v19  ;;  %v17184_v23 = vrot.slane %v11078_v25, %v12321_v13  ;;  %vm4630_vm12 = vcmp.gt.f32.partialorder %v4595_v28, 0.0  ;;  %v4662_v12 = vmul.f32 %v16899_v53, %v4595_v28 }
 0x32a   : > { %19982 = vst [vmem:[#allocation101_spill] sm:$0xff] %v17172_v30  ;;  %v8867_v34 = vcombine.low %v7180_v7, %v17170_v39  ;;  %v12001_v54 = vpack.i.bf16 %v7181_v32, %v17172_v30  ;;  %v17190_v8 = vrot.slane %v6097_v14, %v12321_v13  ;;  %v6801_v56 = vcombine.low %v16817_v33, %v16939_v58 }
 0x32b   : > { %v5629_v44 = vrot.slane %v17177_v24, 7  ;;  %v8992_v61 = vcombine.low %v17181_v22, %v17184_v23  ;;  %v11996_v7 = vpack.i.bf16 %v7613_v5, %v8757_v49  ;;  %v4687_v36 = vsel %vm4630_vm12, %v4595_v28, %v4662_v12 }
 0x32c   : > { %v11991_v19 = vpack.i.bf16 %v16746_v9, %v8867_v34  ;;  %12002 = vrot.lane.b32.xlu1 %v12001_v54, %s12222_s27  ;;  %v17201_v25 = vcombine.high %v16939_v58, %v16939_v58  ;;  %v5089_v32 = vcombine.high %v4687_v36, %v4687_v36  ;;  %v5096_v24 = vrot.slane %v4687_v36, %v12321_v13 }
 0x32d   : > { %v5675_v14 = vsel %vm514_vm0, 0.0, %v5629_v44  ;;  %11232 = vmatmul.mubr.msk.f32.gmra.mxu0 %vm4187_vm9, %v8992_v61  ;;  %v17207_v30 = vrot.slane %v6801_v56, %v12321_v13  ;;  %v7630_v9 = vcombine.low %v16732_v42, %v16936_v59  ;;  %v17216_v54 = vcombine.high %v16817_v33, %v16817_v33 }
 0x32e   : > { %v6113_v4 = vcombine.high %v5675_v14, %v5675_v14  ;;  %11992 = vrot.lane.b32.xlu0 %v11991_v19, %s12225_s30  ;;  %11234 = vmatprep.mubr.msk.f32.mxu0 %vm12229_vm15, %v19852_v29  ;;  %v5103_v5 = vrot.slane %v5089_v32, %v12321_v13  ;;  %v5104_v28 = vcombine.high %v5096_v24, %v5096_v24  ;;  %v6359_v34 = vrot.slane %v17063_v0, 7 }
 0x32f   : > { %19983 = vst [vmem:[#allocation102_spill] sm:$0xff] %v17207_v30  ;;  %v8758_v49 = vcombine.low %v6799_v2, %v17207_v30  ;;  %v17222_v12 = vrot.slane %v5675_v14, %v12321_v13  ;;  %v11068_v42 = vrot.slane %v16713_v63, 9  ;;  %v6802_v59 = vcombine.low %v17201_v25, %v16947_v3 }
 0x330   : > { %v17225_v61 = vrot.slane %v6113_v4, %v12321_v13  ;;  %v5544_v56 = vcombine.low %v5096_v24, %v5104_v28  ;;  %v5558_v19 = vrot.slane %v5103_v5, %v12321_v13  ;;  %v6362_v32 = vrot.slane %v16736_v10, 7 }
 0x331   : > { %v12006_v36 = vpack.i.bf16 %v7630_v9, %v8758_v49  ;;  %v6361_v0 = vrot.slane %v6359_v34, 2  ;;  %v17234_v2 = vrot.slane %v6802_v59, %v12321_v13  ;;  %v8607_v4 = vcombine.low %v16817_v33, %v17216_v54 }
 0x332   : > { %11997 = vrot.lane.b32.xlu0 %v11996_v7, %s12228_s14  ;;  %v4600_v14 = vadd.f32 %v16881_v35, %v16473_v57  ;;  %v5551_v30 = vrot.slane %v5544_v56, %v12321_v13  ;;  %v17244_v24 = vsel %vm12642_vm7, %v11068_v42, %v6359_v34  ;;  %v17248_v10 = vcombine.high %v16947_v3, %v16947_v3 }
 0x333   : > { %19984 = vst [vmem:[#allocation103_spill] sm:$0xff] %v17234_v2  ;;  %12007 = vrot.lane.b32.xlu1 %v12006_v36, %s12228_s14  ;;  %19985 = vst [vmem:[#allocation104_spill] sm:$0xff] %v17244_v24  ;;  %v17252_v7 = vcombine.high %v17008_v37, %v17008_v37  ;;  %v17256_v9 = vsel %vm12642_vm7, %v6361_v0, %v6362_v32  ;;  %v8614_v57 = vrot.slane %v8607_v4, %v12321_v13 }
 0x334   : > { %19986 = vst [vmem:[#allocation105_spill] sm:$0xff] %v17256_v9  ;;  %vm4631_vm14 = vcmp.gt.f32.partialorder %v4600_v14, 0.0  ;;  %v4663_v28 = vmul.f32 %v16899_v53, %v4600_v14  ;;  %v5559_v49 = vcombine.low %v5551_v30, %v5558_v19  ;;  %v7183_v34 = vcombine.low %v17244_v24, %v17256_v9 }
 0x335   : > { %v7683_v42 = vcombine.low %v16947_v3, %v17248_v10  ;;  %v7699_v59 = vcombine.low %v17008_v37, %v17252_v7  ;;  %v8615_v56 = vcombine.low %v8614_v57, %v17234_v2  ;;  %v5105_v0 = vcombine.high %v5103_v5, %v5103_v5 }
 0x336   : > { %v4688_v36 = vsel %vm4631_vm14, %v4600_v14, %v4663_v28  ;;  %v6365_v26 = vrot.slane %v17067_v38, 7  ;;  %v5630_v4 = vrot.slane %v5559_v49, 7  ;;  %v7197_v11 = vrot.slane %v7183_v34, %v12321_v13 }
 0x337   : > { %v5106_v17 = vcombine.high %v4688_v36, %v4688_v36  ;;  %v5113_v30 = vrot.slane %v4688_v36, %v12321_v13  ;;  %v17271_v19 = vrot.slane %v7683_v42, %v12321_v13  ;;  %v17274_v9 = vrot.slane %v7699_v59, %v12321_v13 }
 0x338   : > { %v6364_v24 = vrot.slane %v6362_v32, 2  ;;  %v6367_v45 = vrot.slane %v6365_v26, 2  ;;  %v5631_v57 = vsel %vm514_vm0, %v5629_v44, %v5630_v4  ;;  %v7198_v5 = vcombine.low %v17170_v39, %v7197_v11 }
 0x339   : > { %v17279_v38 = vrot.slane %v5106_v17, %v12321_v13  ;;  %v5121_v14 = vcombine.high %v5113_v30, %v5113_v30  ;;  %v5689_v28 = vsel %vm604_vm1, %v5631_v57, 0.0  ;;  %v5560_v49 = vcombine.low %v5105_v0, %v5113_v30 }
 0x33a   : > { %v17284_v34 = vcombine.low %v17271_v19, %v17274_v9  ;;  %v6368_v42 = vrot.slane %v16808_v6, 7  ;;  %v6130_v59 = vcombine.high %v5689_v28, %v5689_v28  ;;  %v6377_v32 = vrot.slane %v17216_v54, 7 }
 0x33b   : > { %v12016_v36 = vpack.i.bf16 %v7198_v5, %v8615_v56  ;;  %v5561_v44 = vcombine.low %v5121_v14, %v17279_v38  ;;  %v17293_v17 = vsel %vm12642_vm7, %v6364_v24, %v6365_v26  ;;  %v7928_v6 = vcombine.low %v16499_v20, %v16923_v55 }
 0x33c   : > { %11235 = vmatmul.mubr.msk.f32.gmra.mxu0 %vm4187_vm9, %v17284_v34  ;;  %19987 = vst [vmem:[#allocation106_spill] sm:$0xff] %v17293_v17  ;;  %v17297_v39 = vsel %vm12642_vm7, %v6367_v45, %v6368_v42  ;;  %v6818_v54 = vcombine.low %v17248_v10, %v17008_v37  ;;  %v17304_v56 = vrot.slane %v5689_v28, %v12321_v13  ;;  %v17311_v45 = vpop.permute.xlu1 %11777  ;;  %v6370_v14 = vrot.slane %v6368_v42, 2  ;;  %v17335_v42 = vpop.permute.xlu0 %11782 }
 0x33d   : > { %19988 = vst [vmem:[#allocation107_spill] sm:$0xff] %v17297_v39  ;;  %12017 = vrot.lane.b32.xlu0 %v12016_v36, %s12222_s27  ;;  %v5568_v0 = vrot.slane %v5560_v49, %v12321_v13  ;;  %v5575_v26 = vrot.slane %v5561_v44, %v12321_v13  ;;  %v7199_v24 = vcombine.low %v17293_v17, %v17297_v39  ;;  %v6371_v28 = vrot.slane %v17129_v31, 7 }
 0x33e   : > { %v17314_v4 = vrot.slane %v6130_v59, %v12321_v13  ;;  %v7935_v20 = vrot.slane %v7928_v6, %v12321_v13  ;;  %v6826_v55 = vrot.slane %v6818_v54, %v12321_v13  ;;  %v7647_v30 = vcombine.low %v16944_v46, %v17002_v40  ;;  %11237 = vmatprep.mubr.msk.f32.mxu0 %vm12229_vm15, %v19852_v29  ;;  %v17331_v6 = vpop.f32.mrf.mxu0 }
 0x33f   : > { %v17322_v57 = vcombine.low %v5568_v0, %v5575_v26  ;;  %v7207_v5 = vrot.slane %v7199_v24, %v12321_v13  ;;  %v6819_v44 = vcombine.low %v17252_v7, %v17055_v60  ;;  %19989 = vst [vmem:[#allocation108_spill] sm:$0xff] %v17331_v6  ;;  %v6373_v26 = vrot.slane %v6371_v28, 2 }
 0x340   : > { %v7936_v49 = vcombine.low %v7935_v20, %v16944_v46  ;;  %v8759_v59 = vcombine.low %v17234_v2, %v6826_v55  ;;  %v6374_v24 = vrot.slane %v16817_v33, 7  ;;  %v17340_v20 = vsel %vm12642_vm7, %v6370_v14, %v6371_v28  ;;  %v11188_v2 = vpop.f32.mrf.mxu0 }
 0x341   : > { %v19571_v54 = vrot.slane %v17322_v57, 7  ;;  %v8868_v0 = vcombine.low %v7197_v11, %v7207_v5  ;;  %19990 = vst [vmem:[#allocation109_spill] sm:$0xff] %v17340_v20  ;;  %v17343_v36 = vrot.slane %v6819_v44, %v12321_v13  ;;  %v6381_v2 = vrot.slane %v17201_v25, 7 }
 0x342   : > { %v12021_v31 = vpack.i.bf16 %v7647_v30, %v8759_v59  ;;  %v17350_v33 = vsel %vm12642_vm7, %v6373_v26, %v6374_v24  ;;  %v4605_v30 = vadd.f32 %v16881_v35, %v16528_v52  ;;  %v17359_v44 = vpop.f32.mrf.mxu0  ;;  %v6376_v35 = vrot.slane %v6374_v24, 2 }
 0x343   : > { %v5676_v11 = vsel %vm514_vm0, 0.0, %v19571_v54  ;;  %v12011_v6 = vpack.i.bf16 %v7936_v49, %v8868_v0  ;;  %19991 = vst [vmem:[#allocation110_spill] sm:$0xff] %v17350_v33  ;;  %v7200_v14 = vcombine.low %v17340_v20, %v17350_v33  ;;  %19992 = vst [vmem:[#allocation111_spill] sm:$0xff] %v17359_v44  ;;  %v17363_v49 = vcombine.low %v6826_v55, %v17343_v36 }
 0x344   : > { %v6447_v59 = vcombine.high %v5676_v11, %v5676_v11  ;;  %12022 = vrot.lane.b32.xlu0 %v12021_v31, %s12228_s14  ;;  %vm4632_vm2 = vcmp.gt.f32.partialorder %v4605_v30, 0.0  ;;  %v4664_v52 = vmul.f32 %v16899_v53, %v4605_v30  ;;  %v5122_v26 = vcombine.high %v17279_v38, %v17279_v38  ;;  %v11191_v28 = vpop.f32.mrf.mxu0 }
 0x345   : > { %12012 = vrot.lane.b32.xlu1 %v12011_v6, %s12225_s30  ;;  %19993 = vst [vmem:[#allocation112_spill] sm:$0xff] %v17363_v49  ;;  %v7214_v0 = vrot.slane %v7200_v14, %v12321_v13  ;;  %v11069_v31 = vrot.slane %v16939_v58, 9  ;;  %v17373_v6 = vsel %vm12642_vm7, %v6376_v35, %v6377_v32  ;;  %v7937_v55 = vcombine.low %v16650_v47, %v16713_v63  ;;  %v17390_v32 = vpop.permute.xlu0 %11787 }
 0x346   : > { %v4689_v46 = vsel %vm4632_vm2, %v4605_v30, %v4664_v52  ;;  %19994 = vst [vmem:[#allocation113_spill] sm:$0xff] %v17373_v6  ;;  %v17379_v53 = vcombine.high %v17107_v1, %v17107_v1  ;;  %v17388_v30 = vcombine.high %v17055_v60, %v17055_v60  ;;  %19996 = vst [vmem:[#allocation115_spill] sm:$0xff] %v17390_v32  ;;  %v17392_v28 = vpop.f32.mrf.mxu0  ;;  %v17402_v52 = vpop.permute.xlu1 %11792  ;;  %v6396_v51 = vrot.slane %v17055_v60, 7 }
 0x347   : > { %v7215_v24 = vcombine.low %v7207_v5, %v7214_v0  ;;  %v5129_v38 = vrot.slane %v4689_v46, %v12321_v13  ;;  %v17384_v14 = vsel %vm12642_vm7, %v11069_v31, %v6381_v2  ;;  %19997 = vst [vmem:[#allocation116_spill] sm:$0xff] %v17392_v28  ;;  %v17395_v47 = vrot.slane %v5676_v11, %v12321_v13 }
 0x348   : > { %19995 = vst [vmem:[#allocation114_spill] sm:$0xff] %v17384_v14  ;;  %v7216_v63 = vcombine.low %v17373_v6, %v17384_v14  ;;  %v7944_v5 = vrot.slane %v7937_v55, %v12321_v13  ;;  %v7716_v46 = vcombine.low %v17379_v53, %v17112_v15  ;;  %v17405_v35 = vrot.slane %v6447_v59, %v12321_v13  ;;  %v11194_v28 = vpop.f32.mrf.mxu0 }
 0x349   : > { %v12031_v31 = vpack.i.bf16 %v7215_v24, %v17363_v49  ;;  %v5130_v54 = vcombine.high %v5129_v38, %v5129_v38  ;;  %v5577_v44 = vcombine.low %v5122_v26, %v5129_v38  ;;  %v7700_v14 = vcombine.low %v17055_v60, %v17388_v30 }
 0x34a   : > { %v17409_v11 = vrot.slane %v7216_v63, %v12321_v13  ;;  %v17414_v55 = vrot.slane %v7716_v46, %v12321_v13  ;;  %v6835_v38 = vcombine.low %v17107_v1, %v17379_v53  ;;  %v7945_v28 = vcombine.low %v17002_v40, %v7944_v5  ;;  %v17444_v5 = vpop.permute.xlu1 %11797 }
 0x34b   : > { %12032 = vrot.lane.b32.xlu1 %v12031_v31, %s12222_s27  ;;  %v5584_v59 = vrot.slane %v5577_v44, %v12321_v13  ;;  %v5591_v24 = vrot.slane %v5130_v54, %v12321_v13  ;;  %v17426_v46 = vrot.slane %v7700_v14, %v12321_v13  ;;  %v7664_v54 = vcombine.low %v17005_v21, %v17088_v27 }
 0x34c   : > { %v8869_v63 = vcombine.low %v7214_v0, %v17409_v11  ;;  %v17430_v31 = vrot.slane %v6835_v38, %v12321_v13  ;;  %v17436_v44 = vcombine.high %v17112_v15, %v17112_v15  ;;  %v17442_v0 = vcombine.high %v17125_v18, %v17125_v18  ;;  %v17451_v38 = vpop.f32.mrf.mxu0 }
 0x34d   : > { %v5592_v49 = vcombine.low %v5584_v59, %v5591_v24  ;;  %v8993_v40 = vcombine.low %v17426_v46, %v17414_v55  ;;  %v6383_v14 = vrot.slane %v6381_v2, 2  ;;  %v6384_v27 = vrot.slane %v16947_v3, 7  ;;  %19999 = vst [vmem:[#allocation118_spill] sm:$0xff] %v17451_v38 }
 0x34e   : > { %19998 = vst [vmem:[#allocation117_spill] sm:$0xff] %v17430_v31  ;;  %v12026_v26 = vpack.i.bf16 %v7945_v28, %v8869_v63  ;;  %v8760_v24 = vcombine.low %v17343_v36, %v17430_v31  ;;  %v7717_v21 = vcombine.low %v17436_v44, %v17125_v18  ;;  %v7733_v2 = vcombine.low %v17442_v0, %v17190_v8  ;;  %v17462_v63 = vpop.permute.xlu0 %11807  ;;  %v11197_v38 = vpop.f32.mrf.mxu0 }
 0x34f   : > { %v5633_v59 = vrot.slane %v5592_v49, 7  ;;  %11238 = vmatmul.mubr.msk.f32.gmra.mxu0 %vm4187_vm9, %v8993_v40  ;;  %v6387_v28 = vrot.slane %v17248_v10, 7  ;;  %v6836_v49 = vcombine.low %v17112_v15, %v17436_v44  ;;  %v11085_v36 = vcombine.high %v17055_v60, %v17107_v1  ;;  %20000 = vst [vmem:[#allocation119_spill] sm:$0xff] %v17462_v63 }
 0x350   : > { %12027 = vrot.lane.b32.xlu0 %v12026_v26, %s12225_s30  ;;  %v20001_v3 = vrot.slane %v17322_v57, 7  ;;  %v12036_v26 = vpack.i.bf16 %v7664_v54, %v8760_v24  ;;  %11240 = vmatprep.mubr.msk.f32.mxu0 %vm12229_vm15, %v19852_v29  ;;  %v17470_v40 = vrot.slane %v7717_v21, %v12321_v13  ;;  %v17474_v10 = vsel %vm12642_vm7, %v6383_v14, %v6384_v27  ;;  %v17507_v39 = vpop.f32.mrf.mxu0 }
 0x351   : > { %20002 = vst [vmem:[#allocation120_spill] sm:$0xff] %v17474_v10  ;;  %v17478_v6 = vrot.slane %v7733_v2, %v12321_v13  ;;  %v6386_v57 = vrot.slane %v6384_v27, 2  ;;  %v8623_v21 = vrot.slane %v11085_v36, %v12321_v13  ;;  %v6390_v27 = vrot.slane %v17008_v37, 7  ;;  %v17496_v2 = vpop.permute.xlu1 %11802  ;;  %20005 = vst [vmem:[#allocation123_spill] sm:$0xff] %v17507_v39 }
 0x352   : > { %v5634_v33 = vsel %vm514_vm0, %v20001_v3, %v5633_v59  ;;  %v17481_v59 = vrot.slane %v6836_v49, %v12321_v13  ;;  %12037 = vrot.lane.b32.xlu1 %v12036_v26, %s12228_s14  ;;  %v6389_v3 = vrot.slane %v6387_v28, 2  ;;  %v6393_v38 = vrot.slane %v17252_v7, 7 }
 0x353   : > { %v5690_v31 = vsel %vm604_vm1, %v5634_v33, 0.0  ;;  %v17488_v14 = vcombine.low %v17470_v40, %v17478_v6  ;;  %v17492_v33 = vsel %vm12642_vm7, %v6386_v57, %v6387_v28  ;;  %v17517_v57 = vpop.permute.xlu0 %11812  ;;  %v17538_v39 = vcombine.high %v17190_v8, %v17190_v8 }
 0x354   : > { %20003 = vst [vmem:[#allocation121_spill] sm:$0xff] %v17481_v59  ;;  %v6464_v54 = vcombine.high %v5690_v31, %v5690_v31  ;;  %20004 = vst [vmem:[#allocation122_spill] sm:$0xff] %v17492_v33  ;;  %v17499_v49 = vrot.slane %v5690_v31, %v12321_v13  ;;  %v7217_v24 = vcombine.low %v17474_v10, %v17492_v33  ;;  %v6392_v31 = vrot.slane %v6390_v27, 2 }
 0x355   : > { %11241 = vmatmul.mubr.msk.f32.gmra.mxu0 %vm4187_vm9, %v17488_v14  ;;  %v8624_v37 = vcombine.low %v8623_v21, %v17481_v59  ;;  %v17514_v7 = vsel %vm12642_vm7, %v6389_v3, %v6390_v27  ;;  %v6852_v33 = vcombine.low %v17125_v18, %v17442_v0  ;;  %v11200_v21 = vpop.f32.mrf.mxu0  ;;  %v17532_v27 = vcombine.high %v17225_v61, %v17225_v61  ;;  %v17552_v48 = vpop.permute.xlu1 %11822 }
 0x356   : > { %v17502_v36 = vrot.slane %v6464_v54, %v12321_v13  ;;  %20006 = vst [vmem:[#allocation124_spill] sm:$0xff] %v17514_v7  ;;  %v7231_v54 = vrot.slane %v7217_v24, %v12321_v13  ;;  %11243 = vmatprep.mubr.msk.f32.mxu0 %vm12229_vm15, %v19852_v29  ;;  %v17528_v3 = vsel %vm12642_vm7, %v6392_v31, %v6393_v38  ;;  %v6395_v31 = vrot.slane %v6393_v38, 2 }
 0x357   : > { %20007 = vst [vmem:[#allocation125_spill] sm:$0xff] %v17528_v3  ;;  %v11079_v24 = vcombine.high %v17190_v8, %v17222_v12  ;;  %v7233_v21 = vcombine.low %v17514_v7, %v17528_v3  ;;  %v17544_v26 = vrot.slane %v6852_v33, %v12321_v13  ;;  %v7681_v20 = vcombine.low %v17091_v43, %v17181_v22  ;;  %v17559_v10 = vpop.f32.mrf.mxu0 }
 0x358   : > { %v7232_v28 = vcombine.low %v17409_v11, %v7231_v54  ;;  %v7750_v17 = vcombine.low %v17225_v61, %v17532_v27  ;;  %v8625_v38 = vcombine.low %v17190_v8, %v17538_v39  ;;  %20009 = vst [vmem:[#allocation127_spill] sm:$0xff] %v17559_v10  ;;  %v17569_v7 = vsel %vm12642_vm7, %v6395_v31, %v6396_v51 }
 0x359   : > { %20008 = vst [vmem:[#allocation126_spill] sm:$0xff] %v17544_v26  ;;  %v7241_v16 = vrot.slane %v7233_v21, %v12321_v13  ;;  %v8761_v33 = vcombine.low %v17481_v59, %v17544_v26  ;;  %v17562_v43 = vrot.slane %v11079_v24, %v12321_v13  ;;  %v11805_v24 = vunpack.i.h.bf16 %v17496_v2  ;;  %v11203_v62 = vpop.f32.mrf.mxu0 }
 0x35a   : > { %v12046_v11 = vpack.i.bf16 %v7232_v28, %v8624_v37  ;;  %v17565_v3 = vrot.slane %v7750_v17, %v12321_v13  ;;  %v6398_v37 = vrot.slane %v6396_v51, 2  ;;  %v17571_v28 = vpop.permute.xlu0 %11817  ;;  %v8632_v10 = vrot.slane %v8625_v38, %v12321_v13 }
 0x35b   : > { %v8870_v21 = vcombine.low %v7231_v54, %v7241_v16  ;;  %v12051_v63 = vpack.i.bf16 %v7681_v20, %v8761_v33  ;;  %v20010_v31 = vrot.slane %v17388_v30, 7  ;;  %v6403_v20 = vrot.slane %v17379_v53, 7 }
 0x35c   : > { %12047 = vrot.lane.b32.xlu0 %v12046_v11, %s12222_s27  ;;  %v8994_v17 = vcombine.low %v17562_v43, %v17565_v3  ;;  %v8633_v59 = vcombine.low %v17544_v26, %v8632_v10  ;;  %v6406_v30 = vrot.slane %v17112_v15, 7  ;;  %v7947_v33 = vcombine.low %v16939_v58, %v17201_v25 }
 0x35d   : > { %v17583_v51 = vsel %vm12642_vm7, %v6398_v37, %v20010_v31  ;;  %v12041_v54 = vpack.i.bf16 %v17100_v50, %v8870_v21  ;;  %v6409_v37 = vrot.slane %v17436_v44, 7  ;;  %v17597_v31 = vpop.permute.xlu1 %11827  ;;  %v11070_v10 = vrot.slane %v17107_v1, 9 }
 0x35e   : > { %20011 = vst [vmem:[#allocation128_spill] sm:$0xff] %v17583_v51  ;;  %v7234_v38 = vcombine.low %v17569_v7, %v17583_v51  ;;  %11244 = vmatmul.mubr.msk.f32.gmra.mxu0 %vm4187_vm9, %v8994_v17  ;;  %v6412_v21 = vrot.slane %v17125_v18, 7  ;;  %v6415_v53 = vrot.slane %v17442_v0, 7  ;;  %v6405_v15 = vrot.slane %v6403_v20, 2  ;;  %v17609_v44 = vpop.permute.xlu0 %11837 }
 0x35f   : > { %12042 = vrot.lane.b32.xlu1 %v12041_v54, %s12225_s30  ;;  %v7954_v17 = vrot.slane %v7947_v33, %v12321_v13  ;;  %v6408_v58 = vrot.slane %v6406_v30, 2  ;;  %11246 = vmatprep.mubr.msk.f32.mxu0 %vm12229_vm15, %v19852_v29  ;;  %v6411_v54 = vrot.slane %v6409_v37, 2  ;;  %v17613_v18 = vsel %vm12642_vm7, %v11070_v10, %v6403_v20  ;;  %v20014_v20 = vld [vmem:[#allocation30_spill] sm:$0xff]  ;;  %v20015_v10 = vld [vmem:[#allocation33_spill] sm:$0xff] }
 0x360   : > { %12052 = vrot.lane.b32.xlu0 %v12051_v63, %s12228_s14  ;;  %v7248_v50 = vrot.slane %v7234_v38, %v12321_v13  ;;  %v6414_v38 = vrot.slane %v6412_v21, 2  ;;  %v6417_v62 = vrot.slane %v6415_v53, 2  ;;  %v17617_v0 = vsel %vm12642_vm7, %v6405_v15, %v6406_v30 }
 0x361   : > { %20012 = vst [vmem:[#allocation129_spill] sm:$0xff] %v17617_v0  ;;  %v7955_v33 = vcombine.low %v17181_v22, %v7954_v17  ;;  %v17622_v11 = vsel %vm12642_vm7, %v6408_v58, %v6409_v37  ;;  %v17628_v26 = vsel %vm12642_vm7, %v6411_v54, %v6412_v21  ;;  %v20016_v51 = vcombine.low %v20014_v20, %v20015_v10  ;;  %v20020_v21 = vld [vmem:[#allocation32_spill] sm:$0xff]  ;;  %v20021_v17 = vld [vmem:[#allocation37_spill] sm:$0xff]  ;;  %v17650_v54 = vpop.permute.xlu1 %11832 }
 0x362   : > { %v7249_v63 = vcombine.low %v7241_v16, %v7248_v50  ;;  %v7250_v16 = vcombine.low %v17613_v18, %v17617_v0  ;;  %20013 = vst [vmem:[#allocation130_spill] sm:$0xff] %v17628_v26  ;;  %v17636_v22 = vsel %vm12642_vm7, %v6414_v38, %v6415_v53  ;;  %v20018_v37 = vrot.slane %v17190_v8, 7 }
 0x363   : > { %v8093_v30 = vrot.slane %v20016_v51, %v12321_v13  ;;  %20017 = vst [vmem:[#allocation30_spill] sm:$0xff] %v17636_v22  ;;  %v7251_v15 = vcombine.low %v17622_v11, %v17628_v26  ;;  %v20022_v58 = vcombine.low %v20020_v21, %v20021_v17  ;;  %v20023_v21 = vunpack.i.h.bf16 %v17311_v45  ;;  %v20024_v17 = vld [vmem:[#allocation14_spill] sm:$0xff] }
 0x364   : > { %v12061_v25 = vpack.i.bf16 %v7249_v63, %v8633_v59  ;;  %v17642_v59 = vsel %vm12642_vm7, %v6417_v62, %v20018_v37  ;;  %v7258_v53 = vrot.slane %v7250_v16, %v12321_v13  ;;  %v20042_v0 = vunpack.i.l.bf16 %v17444_v5 }
 0x365   : > { %20019 = vst [vmem:[#allocation33_spill] sm:$0xff] %v17642_v59  ;;  %v8100_v63 = vrot.slane %v20022_v58, %v12321_v13  ;;  %v7267_v62 = vcombine.low %v17636_v22, %v17642_v59  ;;  %v7265_v20 = vrot.slane %v7251_v15, %v12321_v13  ;;  %v9005_v58 = vsel %vm4187_vm9, %v20024_v17, %v20023_v21 }
 0x366   : > { %12062 = vrot.lane.b32.xlu1 %v12061_v25, %s12222_s27  ;;  %v17664_v25 = vpop.permute.xlu0 %11842  ;;  %v8871_v51 = vcombine.low %v7248_v50, %v7258_v53  ;;  %v20025_v59 = vunpack.i.h.bf16 %v17390_v32  ;;  %v17679_v21 = vcombine.high %v17222_v12, %v17222_v12  ;;  %v6853_v50 = vcombine.low %v17190_v8, %v17222_v12 }
 0x367   : > { %v8101_v10 = vcombine.low %v8093_v30, %v8100_v63  ;;  %v17667_v16 = vrot.slane %v7267_v62, %v12321_v13  ;;  %v20026_v30 = vunpack.i.l.bf16 %v17311_v45  ;;  %v6870_v45 = vcombine.low %v17532_v27, %v17304_v56 }
 0x368   : > { %v9030_v38 = vsel %vm4239_vm11, %v9005_v58, %v20025_v59  ;;  %v12056_v62 = vpack.i.bf16 %v7955_v33, %v8871_v51  ;;  %v20027_v59 = vunpack.i.l.bf16 %v17390_v32  ;;  %v7698_v33 = vcombine.low %v17184_v23, %v17271_v19  ;;  %v17699_v51 = vpop.permute.xlu1 %11852  ;;  %v20031_v23 = vld [vmem:[#allocation23_spill] sm:$0xff]  ;;  %v20032_v19 = vld [vmem:[#allocation22_spill] sm:$0xff] }
 0x369   : > { %v9080_v63 = vsel %vm4187_vm9, %v8101_v10, %v20026_v30  ;;  %v9055_v37 = vsel %vm4291_vm13, %v9030_v38, %v11805_v24  ;;  %v8872_v17 = vcombine.low %v7265_v20, %v17667_v16  ;;  %v20028_v10 = vunpack.i.l.bf16 %v17496_v2 }
 0x36a   : > { %v9105_v58 = vsel %vm4239_vm11, %v9080_v63, %v20027_v59  ;;  %v17693_v38 = vrot.slane %v6853_v50, %v12321_v13  ;;  %v6869_v30 = vcombine.low %v17679_v21, %v17225_v61  ;;  %v17701_v15 = vpop.f32.mrf.mxu0  ;;  %12057 = vrot.lane.b32.xlu0 %v12056_v62, %s12225_s30  ;;  %v11819_v2 = vunpack.i.l.bf16 %v17571_v28  ;;  %v20035_v62 = vld [vmem:[#allocation34_spill] sm:$0xff] }
 0x36b   : > { %v9130_v24 = vsel %vm4291_vm13, %v9105_v58, %v20028_v10  ;;  %20030 = vst [vmem:[#allocation37_spill] sm:$0xff] %v17701_v15  ;;  %v12066_v63 = vpack.i.bf16 %v17284_v34, %v8872_v17  ;;  %v17707_v50 = vrot.slane %v6870_v45, %v12321_v13  ;;  %v7266_v59 = vcombine.low %v7258_v53, %v7265_v20  ;;  %v20034_v15 = vld [vmem:[#allocation25_spill] sm:$0xff]  ;;  %v17722_v45 = vpop.permute.xlu0 %11847 }
 0x36c   : > { %20029 = vst [vmem:[#allocation32_spill] sm:$0xff] %v17693_v38  ;;  %9312 = vmatprep.mubr.f32.mxu1 %v9130_v24  ;;  %v6877_v58 = vrot.slane %v6869_v30, %v12321_v13  ;;  %v20033_v10 = vcombine.low %v20031_v23, %v20032_v19  ;;  %v20036_v26 = vcombine.low %v20034_v15, %v20035_v62  ;;  %v11206_v53 = vpop.f32.mrf.mxu0  ;;  %v20037_v30 = vld [vmem:[#allocation18_spill] sm:$0xff]  ;;  %v20038_v15 = vld [vmem:[#allocation4_spill] sm:$0xff]  ;;  %vm10572_vm0 = vcmask 556032  }
 0x36d   : > { %9313 = vmatmul.mubr.f32.vlgmr.msra.gmra.mxu1 %v9055_v37  ;;  %v17720_v17 = vcombine.high %v17304_v56, %v17304_v56  ;;  %12067 = vrot.lane.b32.xlu1 %v12066_v63, %s12225_s30  ;;  %v17729_v24 = vcombine.high %v17314_v4, %v17314_v4  ;;  %v6440_v37 = vrot.slane %v17314_v4, 7  ;;  %vm10594_vm1 = vcmask 1043456  }
 0x36e   : > { %v8110_v32 = vrot.slane %v20033_v10, %v12321_v13  ;;  %v8117_v34 = vrot.slane %v20036_v26, %v12321_v13  ;;  %v6503_v26 = vcombine.low %v20038_v15, %v20037_v30  ;;  %v8762_v23 = vcombine.low %v17693_v38, %v6877_v58  ;;  %v17750_v38 = vpop.permute.xlu1 %11857 }
 0x36f   : > { %v17735_v19 = vcombine.low %v6877_v58, %v17707_v50  ;;  %v7751_v63 = vcombine.low %v17304_v56, %v17720_v17  ;;  %v7767_v62 = vcombine.low %v17314_v4, %v17729_v24  ;;  %v20040_v15 = vunpack.i.l.bf16 %v17335_v42 }
 0x370   : > { %v8118_v10 = vcombine.low %v8110_v32, %v8117_v34  ;;  %v6510_v53 = vrot.slane %v6503_v26, %v12321_v13  ;;  %v12071_v22 = vpack.i.bf16 %v7698_v33, %v8762_v23  ;;  %v20041_v32 = vrot.slane %v17190_v8, 7 }
 0x371   : > { %20039 = vst [vmem:[#allocation14_spill] sm:$0xff] %v17735_v19  ;;  %v12076_v30 = vpack.i.bf16 %v7266_v59, %v17735_v19  ;;  %v17756_v20 = vrot.slane %v7751_v63, %v12321_v13  ;;  %v17759_v33 = vrot.slane %v7767_v62, %v12321_v13  ;;  %v20043_v59 = vld [vmem:[#allocation74_spill] sm:$0xff]  ;;  %v17769_v63 = vpop.permute.xlu0 %11867  ;;  %v6443_v62 = vrot.slane %v17729_v24, 7 }
 0x372   : > { %v9081_v58 = vsel %vm4187_vm9, %v8118_v10, %v20040_v15  ;;  %v6420_v34 = vrot.slane %v20041_v32, 2  ;;  %v6511_v23 = vcombine.low %v20043_v59, %v6510_v53  ;;  %12072 = vrot.lane.b32.xlu1 %v12071_v22, %s12228_s14  ;;  %v11071_v10 = vrot.slane %v17222_v12, 9 }
 0x373   : > { %v9106_v26 = vsel %vm4239_vm11, %v9081_v58, %v20042_v0  ;;  %12077 = vrot.lane.b32.xlu0 %v12076_v30, %s12222_s27  ;;  %v6425_v15 = vrot.slane %v17679_v21, 7  ;;  %v6886_v0 = vcombine.low %v17720_v17, %v17314_v4  ;;  %v8995_v53 = vcombine.low %v17756_v20, %v17759_v33 }
 0x374   : > { %v9131_v8 = vsel %vm4291_vm13, %v9106_v26, %v11819_v2  ;;  %v20044_v22 = vunpack.i.h.bf16 %v17335_v42  ;;  %v11086_v2 = vcombine.high %v17314_v4, %v17395_v47  ;;  %v20045_v58 = vunpack.i.h.bf16 %v17444_v5 }
 0x375   : > { %9317 = vmatprep.mubr.f32.mxu1 %v9131_v8  ;;  %v20046_v26 = vrot.slane %v17538_v39, 7  ;;  %v17790_v24 = vsel %vm12642_vm7, %v11071_v10, %v6425_v15  ;;  %v17793_v42 = vrot.slane %v6886_v0, %v12321_v13  ;;  %11247 = vmatmul.mubr.msk.f32.gmra.mxu0 %vm4187_vm9, %v8995_v53  ;;  %v17815_v53 = vcombine.high %v17405_v35, %v17405_v35 }
 0x376   : > { %v9006_v30 = vsel %vm4187_vm9, %v6511_v23, %v20044_v22  ;;  %20047 = vst [vmem:[#allocation23_spill] sm:$0xff] %v17790_v24  ;;  %v20049_v23 = vunpack.i.h.bf16 %v17571_v28  ;;  %v8641_v8 = vrot.slane %v11086_v2, %v12321_v13  ;;  %11249 = vmatprep.mubr.msk.f32.mxu0 %vm12229_vm15, %v19852_v29  ;;  %v17811_v28 = vcombine.high %v17395_v47, %v17395_v47  ;;  %v17817_v22 = vpop.permute.xlu1 %11862 }
 0x377   : > { %v9031_v32 = vsel %vm4239_vm11, %v9006_v30, %v20045_v58  ;;  %v17786_v59 = vsel %vm12642_vm7, %v6420_v34, %v20046_v26  ;;  %20048 = vst [vmem:[#allocation22_spill] sm:$0xff] %v17793_v42  ;;  %v7715_v34 = vcombine.low %v17274_v9, %v17426_v46  ;;  %v8763_v10 = vcombine.low %v17707_v50, %v17793_v42 }
 0x378   : > { %v9056_v5 = vsel %vm4291_vm13, %v9031_v32, %v20049_v23  ;;  %v7268_v39 = vcombine.low %v17786_v59, %v17790_v24  ;;  %v8642_v46 = vcombine.low %v17793_v42, %v8641_v8  ;;  %v6431_v30 = vrot.slane %v17532_v27, 7  ;;  %v17830_v23 = vpop.permute.xlu0 %11872 }
 0x379   : > { %9318 = vmatmul.mubr.f32.gmra.mxu1 %v9056_v5  ;;  %v12081_v2 = vpack.i.bf16 %v7715_v34, %v8763_v10  ;;  %v7985_v58 = vcombine.low %v17811_v28, %v17405_v35  ;;  %v7986_v32 = vcombine.low %v17815_v53, %v17499_v49  ;;  %v6434_v26 = vrot.slane %v17304_v56, 7 }
 0x37a   : > { %v17820_v9 = vrot.slane %v7268_v39, %v12321_v13  ;;  %v6433_v39 = vrot.slane %v6431_v30, 2  ;;  %v6437_v8 = vrot.slane %v17720_v17, 7  ;;  %v6427_v50 = vrot.slane %v6425_v15, 2  ;;  %v20059_v15 = vld [vmem:[#allocation38_spill] sm:$0xff] }
 0x37b   : > { %12082 = vrot.lane.b32.xlu0 %v12081_v2, %s12228_s14  ;;  %v7993_v27 = vrot.slane %v7985_v58, %v12321_v13  ;;  %v8000_v34 = vrot.slane %v7986_v32, %v12321_v13  ;;  %v6436_v10 = vrot.slane %v6434_v26, 2  ;;  %v6428_v2 = vrot.slane %v17225_v61, 7  ;;  %v17852_v32 = vpop.permute.xlu1 %11877 }
 0x37c   : > { %v7283_v5 = vcombine.low %v17667_v16, %v17820_v9  ;;  %v17841_v56 = vsel %vm12642_vm7, %v6433_v39, %v6434_v26  ;;  %v6439_v19 = vrot.slane %v6437_v8, 2  ;;  %v6442_v16 = vrot.slane %v6440_v37, 2 }
 0x37d   : > { %20050 = vst [vmem:[#allocation25_spill] sm:$0xff] %v17841_v56  ;;  %v17843_v42 = vcombine.low %v7993_v27, %v8000_v34  ;;  %v17847_v17 = vsel %vm12642_vm7, %v6436_v10, %v6437_v8  ;;  %v7957_v58 = vcombine.low %v17055_v60, %v17107_v1  ;;  %v20055_v8 = vld [vmem:[#allocation12_spill] sm:$0xff]  ;;  %v20056_v27 = vld [vmem:[#allocation31_spill] sm:$0xff] }
 0x37e   : > { %v12086_v0 = vpack.i.bf16 %v7283_v5, %v8642_v46  ;;  %20051 = vst [vmem:[#allocation34_spill] sm:$0xff] %v17847_v17  ;;  %v17858_v46 = vsel %vm12642_vm7, %v6439_v19, %v6440_v37  ;;  %v17862_v26 = vsel %vm12642_vm7, %v6442_v16, %v6443_v62  ;;  %v7285_v61 = vcombine.low %v17841_v56, %v17847_v17  ;;  %v17875_v19 = vpop.permute.xlu0 %11882  ;;  %v20058_v16 = vld [vmem:[#allocation43_spill] sm:$0xff] }
 0x37f   : > { %20052 = vst [vmem:[#allocation18_spill] sm:$0xff] %v17858_v46  ;;  %20053 = vst [vmem:[#allocation4_spill] sm:$0xff] %v17862_v26  ;;  %11250 = vmatmul.mubr.msk.f32.gmra.mxu0 %vm4187_vm9, %v17843_v42  ;;  %v7301_v1 = vcombine.low %v17858_v46, %v17862_v26  ;;  %v6430_v37 = vrot.slane %v6428_v2, 2  ;;  %v17877_v62 = vpop.f32.mrf.mxu0  ;;  %v7964_v5 = vrot.slane %v7957_v58, %v12321_v13  ;;  %v20069_v56 = vunpack.i.l.bf16 %v17517_v57 }
 0x380   : > { %12087 = vrot.lane.b32.xlu1 %v12086_v0, %s12222_s27  ;;  %v17873_v0 = vsel %vm12642_vm7, %v6427_v50, %v6428_v2  ;;  %20054 = vst [vmem:[#allocation74_spill] sm:$0xff] %v17877_v62  ;;  %v20057_v34 = vcombine.low %v20055_v8, %v20056_v27  ;;  %v20060_v60 = vcombine.low %v20058_v16, %v20059_v15  ;;  %v20063_v16 = vld [vmem:[#allocation8_spill] sm:$0xff]  ;;  %v20065_v62 = vld [vmem:[#allocation3_spill] sm:$0xff] }
 0x381   : > { %11252 = vmatprep.mubr.msk.f32.mxu0 %vm12229_vm15, %v19852_v29  ;;  %v17892_v2 = vrot.slane %v7285_v61, %v12321_v13  ;;  %v17895_v58 = vrot.slane %v7301_v1, %v12321_v13  ;;  %v17899_v39 = vsel %vm12642_vm7, %v6430_v37, %v6431_v30  ;;  %v11209_v27 = vpop.f32.mrf.mxu0  ;;  %v17910_v1 = vcombine.high %v17499_v49, %v17499_v49 }
 0x382   : > { %v8127_v10 = vrot.slane %v20057_v34, %v12321_v13  ;;  %v8134_v50 = vrot.slane %v20060_v60, %v12321_v13  ;;  %20061 = vst [vmem:[#allocation12_spill] sm:$0xff] %v17899_v39  ;;  %v7284_v15 = vcombine.low %v17873_v0, %v17899_v39  ;;  %v20062_v34 = vunpack.i.h.bf16 %v17402_v52  ;;  %v17922_v26 = vpop.permute.xlu0 %11897 }
 0x383   : > { %v8874_v30 = vcombine.low %v17892_v2, %v17895_v58  ;;  %v7965_v37 = vcombine.low %v7964_v5, %v17414_v55  ;;  %v20064_v27 = vunpack.i.h.bf16 %v17517_v57  ;;  %v20067_v5 = vunpack.i.h.bf16 %v17650_v54 }
 0x384   : > { %v8135_v60 = vcombine.low %v8127_v10, %v8134_v50  ;;  %v9007_v61 = vsel %vm4187_vm9, %v20063_v16, %v20062_v34  ;;  %v11087_v10 = vcombine.high %v17502_v36, %v20065_v62  ;;  %v17920_v50 = vpop.permute.xlu1 %11887  ;;  %v17925_v34 = vrot.slane %v7284_v15, %v12321_v13 }
 0x385   : > { %v9032_v8 = vsel %vm4239_vm11, %v9007_v61, %v20064_v27  ;;  %v20066_v16 = vunpack.i.l.bf16 %v17402_v52  ;;  %v8002_v61 = vcombine.low %v17910_v1, %v17502_v36  ;;  %v17935_v27 = vpop.f32.mrf.mxu0  ;;  %v12096_v39 = vpack.i.bf16 %v17488_v14, %v8874_v30 }
 0x386   : > { %v9057_v46 = vsel %vm4291_vm13, %v9032_v8, %v20067_v5  ;;  %20068 = vst [vmem:[#allocation31_spill] sm:$0xff] %v17935_v27  ;;  %v9003_v24 = vrot.slane %v11087_v10, %v12321_v13  ;;  %v20070_v8 = vunpack.i.l.bf16 %v17650_v54  ;;  %v8643_v14 = vcombine.low %v17405_v35, %v17815_v53  ;;  %v20075_v27 = vld [vmem:[#allocation2_spill] sm:$0xff] }
 0x387   : > { %v9082_v17 = vsel %vm4187_vm9, %v8135_v60, %v20066_v16  ;;  %v8873_v60 = vcombine.low %v17820_v9, %v17925_v34  ;;  %v17949_v5 = vrot.slane %v8002_v61, %v12321_v13  ;;  %v11212_v57 = vpop.f32.mrf.mxu0  ;;  %12097 = vrot.lane.b32.xlu1 %v12096_v39, %s12225_s30  ;;  %v8764_v54 = vcombine.low %v17395_v47, %v17811_v28 }
 0x388   : > { %v9107_v15 = vsel %vm4239_vm11, %v9082_v17, %v20069_v56  ;;  %v11849_v56 = vunpack.i.l.bf16 %v17722_v45  ;;  %v7732_v17 = vcombine.low %v17414_v55, %v17470_v40  ;;  %v8644_v9 = vcombine.low %v17499_v49, %v17910_v1 }
 0x389   : > { %v9132_v16 = vsel %vm4291_vm13, %v9107_v15, %v20070_v8  ;;  %v12091_v30 = vpack.i.bf16 %v7965_v37, %v8873_v60  ;;  %v9004_v10 = vcombine.low %v17949_v5, %v9003_v24  ;;  %v17963_v61 = vrot.slane %v8643_v14, %v12321_v13  ;;  %v17974_v37 = vpop.permute.xlu1 %11892  ;;  %v20071_v60 = vld [vmem:[#allocation83_spill] sm:$0xff] }
 0x38a   : > { %9322 = vmatprep.mubr.f32.mxu1 %v9132_v16  ;;  %v8773_v39 = vcombine.low %v17502_v36, %v20065_v62  ;;  %v8771_v15 = vrot.slane %v8764_v54, %v12321_v13  ;;  %v7749_v55 = vcombine.low %v17478_v6, %v17562_v43  ;;  %v17971_v40 = vrot.slane %v8644_v9, %v12321_v13  ;;  %v20072_v16 = vld [vmem:[#allocation82_spill] sm:$0xff]  ;;  %v20073_v43 = vld [vmem:[#allocation17_spill] sm:$0xff]  ;;  %v20074_v14 = vld [vmem:[#allocation39_spill] sm:$0xff] }
 0x38b   : > { %9323 = vmatmul.mubr.f32.gmra.mxu1 %v9057_v46  ;;  %v17976_v46 = vpop.permute.xlu0 %11902  ;;  %12092 = vrot.lane.b32.xlu0 %v12091_v30, %s12225_s30  ;;  %v8136_v6 = vcombine.low %v20072_v16, %v20071_v60  ;;  %v8137_v57 = vcombine.low %v20074_v14, %v20073_v43  ;;  %v6483_v30 = vrot.slane %v17811_v28, 7  ;;  %v6486_v16 = vrot.slane %v17405_v35, 7 }
 0x38c   : > { %11253 = vmatmul.mubr.msk.f32.gmra.mxu0 %vm4187_vm9, %v9004_v10  ;;  %v8780_v24 = vrot.slane %v8773_v39, %v12321_v13  ;;  %v8772_v54 = vcombine.low %v8771_v15, %v17963_v61  ;;  %v7766_v15 = vcombine.low %v17565_v3, %v17756_v20  ;;  %v11072_v14 = vrot.slane %v17395_v47, 9 }
 0x38d   : > { %11255 = vmatprep.mubr.msk.f32.mxu0 %vm12229_vm15, %v19852_v29  ;;  %v8144_v39 = vrot.slane %v8136_v6, %v12321_v13  ;;  %v8151_v60 = vrot.slane %v8137_v57, %v12321_v13  ;;  %v6485_v8 = vrot.slane %v6483_v30, 2  ;;  %v17999_v9 = vpop.permute.xlu1 %11912  ;;  %v6488_v52 = vrot.slane %v6486_v16, 2 }
 0x38e   : > { %v8781_v10 = vcombine.low %v17971_v40, %v8780_v24  ;;  %v12101_v43 = vpack.i.bf16 %v7732_v17, %v8772_v54  ;;  %v6489_v24 = vrot.slane %v17815_v53, 7  ;;  %v18007_v35 = vsel %vm12642_vm7, %v11072_v14, %v6483_v30  ;;  %v20076_v53 = vld [vmem:[#allocation119_spill] sm:$0xff] }
 0x38f   : > { %v8152_v62 = vcombine.low %v8144_v39, %v8151_v60  ;;  %v18011_v17 = vsel %vm12642_vm7, %v6485_v8, %v6486_v16  ;;  %v6492_v6 = vrot.slane %v17499_v49, 7  ;;  %v18016_v57 = vpop.permute.xlu0 %11907  ;;  %v20078_v49 = vunpack.i.h.bf16 %v20076_v53  ;;  %v20080_v39 = vld [vmem:[#allocation24_spill] sm:$0xff] }
 0x390   : > { %v12106_v28 = vpack.i.bf16 %v7749_v55, %v8781_v10  ;;  %11256 = vmatmul.mubr.msk.f32.gmra.mxu0 %vm4187_vm9, %v20075_v27  ;;  %12102 = vrot.lane.b32.xlu1 %v12101_v43, %s12228_s14  ;;  %v7967_v55 = vcombine.low %v17222_v12, %v17679_v21  ;;  %v20077_v27 = vunpack.i.l.bf16 %v20076_v53  ;;  %v6491_v30 = vrot.slane %v6489_v24, 2  ;;  %v20079_v10 = vld [vmem:[#allocation10_spill] sm:$0xff] }
 0x391   : > { %11258 = vmatprep.mubr.msk.f32.mxu0 %vm12229_vm15, %v19852_v29  ;;  %v8875_v8 = vcombine.low %v18007_v35, %v18011_v17  ;;  %v20081_v12 = vcombine.low %v20079_v10, %v20080_v39  ;;  %v20082_v60 = vunpack.i.l.bf16 %v17597_v31  ;;  %v20083_v43 = vld [vmem:[#allocation6_spill] sm:$0xff]  ;;  %v20086_v39 = vld [vmem:[#allocation15_spill] sm:$0xff] }
 0x392   : > { %12107 = vrot.lane.b32.xlu0 %v12106_v28, %s12228_s14  ;;  %v9083_v54 = vsel %vm4187_vm9, %v8152_v62, %v20077_v27  ;;  %v12121_v14 = vpack.i.bf16 %v20083_v43, %v7766_v15  ;;  %v18038_v62 = vsel %vm12642_vm7, %v6488_v52, %v6489_v24  ;;  %v20084_v28 = vunpack.i.h.bf16 %v17597_v31  ;;  %v20087_v24 = vld [vmem:[#allocation13_spill] sm:$0xff] }
 0x393   : > { %v9008_v21 = vsel %vm4187_vm9, %v20081_v12, %v20078_v49  ;;  %v9108_v16 = vsel %vm4239_vm11, %v9083_v54, %v20082_v60  ;;  %v18046_v10 = vsel %vm12642_vm7, %v6491_v30, %v6492_v6  ;;  %v7974_v49 = vrot.slane %v7967_v55, %v12321_v13  ;;  %v20088_v30 = vld [vmem:[#allocation44_spill] sm:$0xff]  ;;  %v18061_v12 = vpop.permute.xlu1 %11917  ;;  %v20089_v60 = vld [vmem:[#allocation65_spill] sm:$0xff] }
 0x394   : > { %v9033_v27 = vsel %vm4239_vm11, %v9008_v21, %v20084_v28  ;;  %v9133_v53 = vsel %vm4291_vm13, %v9108_v16, %v11849_v56  ;;  %v20085_v54 = vunpack.i.h.bf16 %v17722_v45  ;;  %11259 = vmatmul.mubr.msk.f32.gmra.mxu0 %vm4187_vm9, %v20086_v39  ;;  %12122 = vrot.lane.b32.xlu1 %v12121_v14, %s12228_s14  ;;  %v8876_v31 = vcombine.low %v18038_v62, %v18046_v10  ;;  %v20090_v16 = vld [vmem:[#allocation40_spill] sm:$0xff] }
 0x395   : > { %9327 = vmatprep.mubr.f32.mxu1 %v9133_v53  ;;  %v8883_v52 = vrot.slane %v8875_v8, %v12321_v13  ;;  %v8153_v55 = vcombine.low %v20088_v30, %v20087_v24  ;;  %v7975_v45 = vcombine.low %v7974_v49, %v17565_v3  ;;  %v8154_v43 = vcombine.low %v20090_v16, %v20089_v60  ;;  %v18078_v24 = vpop.f32.mrf.mxu0 }
 0x396   : > { %v9058_v15 = vsel %vm4291_vm13, %v9033_v27, %v20085_v54  ;;  %v6480_v14 = vcombine.high %v17502_v36, %v17502_v36  ;;  %v8890_v8 = vrot.slane %v8876_v31, %v12321_v13  ;;  %v6494_v27 = vrot.slane %v6492_v6, 2  ;;  %v18072_v54 = vpop.permute.xlu0 %11927 }
 0x397   : > { %9328 = vmatmul.mubr.f32.gmra.mxu1 %v9058_v15  ;;  %v8161_v28 = vrot.slane %v8153_v55, %v12321_v13  ;;  %v6495_v53 = vrot.slane %v17910_v1, 7  ;;  %v8168_v3 = vrot.slane %v8154_v43, %v12321_v13  ;;  %v6498_v49 = vrot.slane %v17502_v36, 7  ;;  %v11215_v21 = vpop.f32.mrf.mxu0 }
 0x398   : > { %v6501_v15 = vrot.slane %v6480_v14, 7  ;;  %v7976_v39 = vcombine.low %v17314_v4, %v17395_v47  ;;  %v8891_v30 = vcombine.low %v8883_v52, %v8890_v8  ;;  %v11875_v31 = vunpack.i.h.bf16 %v17830_v23  ;;  %v18095_v8 = vpop.permute.xlu1 %11922  ;;  %v20093_v21 = vld [vmem:[#allocation7_spill] sm:$0xff] }
 0x399   : > { %v11874_v55 = vunpack.i.l.bf16 %v17830_v23  ;;  %v6497_v6 = vrot.slane %v6495_v53, 2  ;;  %v8169_v60 = vcombine.low %v8161_v28, %v8168_v3  ;;  %v6500_v1 = vrot.slane %v6498_v49, 2 }
 0x39a   : > { %v7983_v16 = vrot.slane %v7976_v39, %v12321_v13  ;;  %v8659_v43 = vcombine.low %v17963_v61, %v17971_v40  ;;  %v12111_v56 = vpack.i.bf16 %v7975_v45, %v8891_v30  ;;  %v18087_v4 = vsel %vm12642_vm7, %v6494_v27, %v6495_v53  ;;  %v18118_v39 = vpop.permute.xlu0 %11932 }
 0x39b   : > { %v18091_v47 = vsel %vm12642_vm7, %v6497_v6, %v6498_v49  ;;  %v7300_v52 = vcombine.low %v17925_v34, %v17892_v2  ;;  %v20091_v28 = vunpack.i.l.bf16 %v17552_v48  ;;  %v18102_v61 = vsel %vm12642_vm7, %v6500_v1, %v6501_v15  ;;  %v20095_v49 = vld [vmem:[#allocation21_spill] sm:$0xff] }
 0x39c   : > { %v8892_v40 = vcombine.low %v18087_v4, %v18091_v47  ;;  %v20092_v45 = vunpack.i.h.bf16 %v17552_v48  ;;  %12112 = vrot.lane.b32.xlu0 %v12111_v56, %s12225_s30  ;;  %v20094_v2 = vunpack.i.l.bf16 %v17664_v25  ;;  %v7984_v53 = vcombine.low %v17756_v20, %v7983_v16 }
 0x39d   : > { %v9084_v3 = vsel %vm4187_vm9, %v8169_v60, %v20091_v28  ;;  %v8893_v41 = vcombine.low %v18102_v61, %v20095_v49  ;;  %v11880_v15 = vunpack.i.h.bf16 %v17852_v32  ;;  %v20096_v48 = vunpack.i.l.bf16 %v17750_v38 }
 0x39e   : > { %v9009_v27 = vsel %vm4187_vm9, %v20093_v21, %v20092_v45  ;;  %v9109_v34 = vsel %vm4239_vm11, %v9084_v3, %v20094_v2  ;;  %v8900_v6 = vrot.slane %v8892_v40, %v12321_v13  ;;  %v12116_v56 = vpack.i.bf16 %v7300_v52, %v8659_v43  ;;  %v20099_v52 = vld [vmem:[#allocation60_spill] sm:$0xff] }
 0x39f   : > { %v9134_v30 = vsel %vm4291_vm13, %v9109_v34, %v20096_v48  ;;  %v20097_v60 = vunpack.i.h.bf16 %v17664_v25  ;;  %v8907_v20 = vrot.slane %v8893_v41, %v12321_v13  ;;  %v20098_v16 = vunpack.i.h.bf16 %v17750_v38  ;;  %v20100_v40 = vld [vmem:[#allocation20_spill] sm:$0xff]  ;;  %v18144_v48 = vpop.permute.xlu1 %11942 }
 0x3a0   : > { %9332 = vmatprep.mubr.f32.mxu1 %v9134_v30  ;;  %v11879_v3 = vunpack.i.l.bf16 %v17852_v32  ;;  %v8660_v45 = vcombine.low %v17502_v36, %v6480_v14  ;;  %v11885_v21 = vunpack.i.h.bf16 %v17875_v19  ;;  %v11884_v43 = vunpack.i.l.bf16 %v17875_v19  ;;  %12117 = vrot.lane.b32.xlu0 %v12116_v56, %s12222_s27  ;;  %v20102_v41 = vld [vmem:[#allocation64_spill] sm:$0xff]  ;;  %v20103_v36 = vld [vmem:[#allocation45_spill] sm:$0xff] }
 0x3a1   : > { %v9034_v1 = vsel %vm4239_vm11, %v9009_v27, %v20097_v60  ;;  %v12126_v25 = vpack.i.bf16 %v17843_v42, %v20099_v52  ;;  %v20101_v27 = vld [vmem:[#allocation73_spill] sm:$0xff]  ;;  %v8908_v34 = vcombine.low %v8900_v6, %v8907_v20  ;;  %v11890_v49 = vunpack.i.h.bf16 %v17920_v50  ;;  %v20104_v42 = vld [vmem:[#allocation16_spill] sm:$0xff] }
 0x3a2   : > { %v9059_v28 = vsel %vm4291_vm13, %v9034_v1, %v20098_v16  ;;  %v8170_v2 = vcombine.low %v20101_v27, %v20100_v40  ;;  %v8667_v38 = vrot.slane %v8660_v45, %v12321_v13  ;;  %v8171_v14 = vcombine.low %v20103_v36, %v20102_v41  ;;  %v20106_v1 = vld [vmem:[#allocation79_spill] sm:$0xff]  ;;  %v20107_v56 = vld [vmem:[#allocation80_spill] sm:$0xff]  ;;  %v20137_v32 = vld [vmem:[#allocation41_spill] sm:$0xff] }
 0x3a3   : > { %9333 = vmatmul.mubr.f32.gmra.mxu1 %v9059_v28  ;;  %v11889_v19 = vunpack.i.l.bf16 %v17920_v50  ;;  %v12141_v60 = vpack.i.bf16 %v17949_v5, %v20104_v42  ;;  %v20105_v6 = vunpack.i.h.bf16 %v17609_v44  ;;  %v20108_v20 = vcombine.low %v20106_v1, %v20107_v56  ;;  %v18159_v50 = vpop.permute.xlu0 %11937  ;;  %v20110_v41 = vld [vmem:[#allocation48_spill] sm:$0xff]  ;;  %v20112_v1 = vld [vmem:[#allocation57_spill] sm:$0xff] }
 0x3a4   : > { %v8178_v30 = vrot.slane %v8170_v2, %v12321_v13  ;;  %v12131_v28 = vpack.i.bf16 %v7984_v53, %v8908_v34  ;;  %v8185_v45 = vrot.slane %v8171_v14, %v12321_v13  ;;  %v11895_v52 = vunpack.i.h.bf16 %v17974_v37  ;;  %v20111_v36 = vld [vmem:[#allocation52_spill] sm:$0xff]  ;;  %12127 = vrot.lane.b32.xlu0 %v12126_v25, %s12225_s30 }
 0x3a5   : > { %v9010_v16 = vsel %vm4187_vm9, %v20108_v20, %v20105_v6  ;;  %v11894_v40 = vunpack.i.l.bf16 %v17974_v37  ;;  %v12136_v27 = vpack.i.bf16 %v17895_v58, %v8667_v38  ;;  %v20109_v5 = vunpack.i.h.bf16 %v17817_v22  ;;  %v20113_v6 = vld [vmem:[#allocation46_spill] sm:$0xff]  ;;  %v20115_v38 = vld [vmem:[#allocation27_spill] sm:$0xff] }
 0x3a6   : > { %v8187_v42 = vcombine.low %v20111_v36, %v20110_v41  ;;  %v8188_v53 = vcombine.low %v20113_v6, %v20112_v1  ;;  %12132 = vrot.lane.b32.xlu1 %v12131_v28, %s12225_s30  ;;  %v8186_v34 = vcombine.low %v8178_v30, %v8185_v45  ;;  %v11900_v56 = vunpack.i.h.bf16 %v17922_v26  ;;  %v18191_v1 = vpop.permute.xlu1 %11947 }
 0x3a7   : > { %v9035_v2 = vsel %vm4239_vm11, %v9010_v16, %v20109_v5  ;;  %v20114_v58 = vunpack.i.h.bf16 %v17699_v51  ;;  %v18177_v16 = vpop.f32.mrf.mxu0  ;;  %v11899_v28 = vunpack.i.l.bf16 %v17922_v26  ;;  %v11904_v36 = vunpack.i.l.bf16 %v17976_v46 }
 0x3a8   : > { %v9060_v14 = vsel %vm4291_vm13, %v9035_v2, %v11885_v21  ;;  %v8195_v5 = vrot.slane %v8187_v42, %v12321_v13  ;;  %v8202_v41 = vrot.slane %v8188_v53, %v12321_v13  ;;  %v20116_v21 = vunpack.i.l.bf16 %v17609_v44  ;;  %7823 = vrot.lane.b32.xlu0 %v17759_v33, %s12228_s14  ;;  %v20122_v33 = vld [vmem:[#allocation51_spill] sm:$0xff] }
 0x3a9   : > { %v9011_v20 = vsel %vm4187_vm9, %v20115_v38, %v20114_v58  ;;  %v11905_v2 = vunpack.i.h.bf16 %v17976_v46  ;;  %v11218_v42 = vpop.f32.mrf.mxu0  ;;  %v20117_v6 = vunpack.i.l.bf16 %v17817_v22  ;;  %v11909_v38 = vunpack.i.l.bf16 %v18016_v57 }
 0x3aa   : > { %v9036_v25 = vsel %vm4239_vm11, %v9011_v20, %v11875_v31  ;;  %v9085_v30 = vsel %vm4187_vm9, %v8186_v34, %v20116_v21  ;;  %v8203_v58 = vcombine.low %v8195_v5, %v8202_v41  ;;  %v11915_v31 = vunpack.i.h.bf16 %v17999_v9  ;;  %12137 = vrot.lane.b32.xlu1 %v12136_v27, %s12222_s27  ;;  %v18205_v20 = vpop.permute.xlu0 %11957 }
 0x3ab   : > { %v9061_v45 = vsel %vm4291_vm13, %v9036_v25, %v11890_v49  ;;  %v9110_v53 = vsel %vm4239_vm11, %v9085_v30, %v20117_v6  ;;  %v11910_v34 = vunpack.i.h.bf16 %v18016_v57  ;;  %v11920_v22 = vunpack.i.h.bf16 %v18061_v12  ;;  %v20119_v25 = vld [vmem:[#allocation49_spill] sm:$0xff]  ;;  %v20121_v30 = vld [vmem:[#allocation50_spill] sm:$0xff] }
 0x3ac   : > { %v9135_v49 = vsel %vm4291_vm13, %v9110_v53, %v11884_v43  ;;  %v20118_v5 = vunpack.i.l.bf16 %v17699_v51  ;;  %v11919_v27 = vunpack.i.l.bf16 %v18061_v12  ;;  %v20120_v43 = vld [vmem:[#allocation56_spill] sm:$0xff]  ;;  %v8205_v42 = vcombine.low %v20122_v33, %v20121_v30  ;;  %v20123_v51 = vld [vmem:[#allocation47_spill] sm:$0xff]  ;;  %v20127_v30 = vld [vmem:[#allocation54_spill] sm:$0xff] }
 0x3ad   : > { %9337 = vmatprep.mubr.f32.mxu1 %v9135_v49  ;;  %v8204_v21 = vcombine.low %v20120_v43, %v20119_v25  ;;  %v20124_v49 = vld [vmem:[#allocation26_spill] sm:$0xff]  ;;  %v11925_v43 = vunpack.i.h.bf16 %v18095_v8  ;;  %v11924_v23 = vunpack.i.l.bf16 %v18095_v8  ;;  %v11934_v8 = vunpack.i.l.bf16 %v18118_v39 }
 0x3ae   : > { %v9086_v41 = vsel %vm4187_vm9, %v8203_v58, %v20118_v5  ;;  %9338 = vmatmul.mubr.f32.gmra.mxu1 %v9060_v14  ;;  %v6613_v58 = vcombine.low %v20124_v49, %v20123_v51  ;;  %v8219_v25 = vrot.slane %v8205_v42, %v12321_v13  ;;  %12142 = vrot.lane.b32.xlu1 %v12141_v60, %s12225_s30  ;;  %v20128_v51 = vld [vmem:[#allocation67_spill] sm:$0xff]  ;;  %v18237_v42 = vpop.f32.mrf.mxu0  ;;  %v18247_v53 = vpop.permute.xlu0 %11962  ;;  %vm10936_vm7 = vcmask 253952  }
 0x3af   : > { %v9111_v57 = vsel %vm4239_vm11, %v9086_v41, %v11874_v55  ;;  %v8212_v44 = vrot.slane %v8204_v21, %v12321_v13  ;;  %v20125_v55 = vunpack.i.h.bf16 %v17769_v63  ;;  %v20126_v41 = vld [vmem:[#allocation66_spill] sm:$0xff]  ;;  %v18235_v21 = vpop.permute.xlu1 %11952 }
 0x3b0   : > { %v9136_v5 = vsel %vm4291_vm13, %v9111_v57, %v11889_v19  ;;  %v8221_v33 = vcombine.low %v20127_v30, %v20126_v41  ;;  %v20129_v19 = vld [vmem:[#allocation58_spill] sm:$0xff]  ;;  %v11945_v41 = vunpack.i.h.bf16 %v18144_v48  ;;  %v11221_v6 = vpop.f32.mrf.mxu0 }
 0x3b1   : > { %9342 = vmatprep.mubr.f32.mxu1 %v9136_v5  ;;  %v9012_v14 = vsel %vm4187_vm9, %v6613_v58, %v20125_v55  ;;  %v8222_v57 = vcombine.low %v20129_v19, %v20128_v51  ;;  %v8220_v49 = vcombine.low %v8212_v44, %v8219_v25  ;;  %v11935_v5 = vunpack.i.h.bf16 %v18118_v39  ;;  %v20130_v30 = vld [vmem:[#allocation42_spill] sm:$0xff]  ;;  %v20131_v51 = vld [vmem:[#allocation35_spill] sm:$0xff] }
 0x3b2   : > { %v9037_v60 = vsel %vm4239_vm11, %v9012_v14, %v11895_v52  ;;  %9343 = vmatmul.mubr.f32.gmra.mxu1 %v9061_v45  ;;  %v8229_v58 = vrot.slane %v8221_v33, %v12321_v13  ;;  %v6630_v19 = vcombine.low %v20131_v51, %v20130_v30  ;;  %v20132_v44 = vunpack.i.l.bf16 %v17769_v63  ;;  %v18289_v46 = vpop.permute.xlu0 %11967 }
 0x3b3   : > { %v8236_v55 = vrot.slane %v8222_v57, %v12321_v13  ;;  %v9062_v25 = vsel %vm4291_vm13, %v9037_v60, %v11910_v34  ;;  %v11944_v45 = vunpack.i.l.bf16 %v18144_v48  ;;  %v11940_v14 = vunpack.i.h.bf16 %v18159_v50  ;;  %v18262_v63 = vpop.permute.xlu1 %11972  ;;  %v20162_v48 = vld [vmem:[#allocation62_spill] sm:$0xff] }
 0x3b4   : > { %v9087_v52 = vsel %vm4187_vm9, %v8220_v49, %v20132_v44  ;;  %v9013_v30 = vsel %vm4187_vm9, %v6630_v19, %v11880_v15  ;;  %v11939_v6 = vunpack.i.l.bf16 %v18159_v50  ;;  %v11950_v60 = vunpack.i.h.bf16 %v18191_v1  ;;  %v20133_v15 = vld [vmem:[#allocation76_spill] sm:$0xff]  ;;  %v20136_v19 = vld [vmem:[#allocation75_spill] sm:$0xff] }
 0x3b5   : > { %v9112_v33 = vsel %vm4239_vm11, %v9087_v52, %v11894_v40  ;;  %v8237_v57 = vcombine.low %v8229_v58, %v8236_v55  ;;  %v9038_v34 = vsel %vm4239_vm11, %v9013_v30, %v11905_v2  ;;  %v11949_v51 = vunpack.i.l.bf16 %v18191_v1  ;;  %v20134_v58 = vld [vmem:[#allocation55_spill] sm:$0xff]  ;;  %v20135_v55 = vld [vmem:[#allocation81_spill] sm:$0xff] }
 0x3b6   : > { %v9137_v49 = vsel %vm4291_vm13, %v9112_v33, %v11909_v38  ;;  %v11960_v40 = vunpack.i.h.bf16 %v18205_v20  ;;  %v8238_v50 = vcombine.low %v20134_v58, %v20133_v15  ;;  %v8239_v44 = vcombine.low %v20136_v19, %v20135_v55  ;;  %v20140_v58 = vld [vmem:[#allocation71_spill] sm:$0xff] }
 0x3b7   : > { %9347 = vmatprep.mubr.f32.mxu1 %v9137_v49  ;;  %v9088_v37 = vsel %vm4187_vm9, %v8237_v57, %v11879_v3  ;;  %v9063_v1 = vsel %vm4291_vm13, %v9038_v34, %v11925_v43  ;;  %v11959_v38 = vunpack.i.l.bf16 %v18205_v20  ;;  %v9014_v3 = vsel %vm4187_vm9, %v20137_v32, %v11900_v56  ;;  %v20138_v49 = vld [vmem:[#allocation69_spill] sm:$0xff]  ;;  %v20139_v34 = vld [vmem:[#allocation84_spill] sm:$0xff]  ;;  %v18300_v55 = vpop.permute.xlu1 %11977  ;;  %v20142_v19 = vld [vmem:[#allocation59_spill] sm:$0xff] }
 0x3b8   : > { %9348 = vmatmul.mubr.f32.gmra.mxu1 %v9062_v25  ;;  %v9113_v2 = vsel %vm4239_vm11, %v9088_v37, %v11904_v36  ;;  %v8246_v33 = vrot.slane %v8238_v50, %v12321_v13  ;;  %v8253_v57 = vrot.slane %v8239_v44, %v12321_v13  ;;  %v9039_v25 = vsel %vm4239_vm11, %v9014_v3, %v11920_v22  ;;  %v20141_v50 = vld [vmem:[#allocation63_spill] sm:$0xff]  ;;  %v20145_v32 = vld [vmem:[#allocation72_spill] sm:$0xff] }
 0x3b9   : > { %v9138_v52 = vsel %vm4291_vm13, %v9113_v2, %v11924_v23  ;;  %v9064_v36 = vsel %vm4291_vm13, %v9039_v25, %v11940_v14  ;;  %v11955_v43 = vunpack.i.h.bf16 %v18235_v21  ;;  %v11954_v30 = vunpack.i.l.bf16 %v18235_v21  ;;  %v20143_v14 = vld [vmem:[#allocation53_spill] sm:$0xff]  ;;  %v20144_v21 = vld [vmem:[#allocation78_spill] sm:$0xff] }
 0x3ba   : > { %9352 = vmatprep.mubr.f32.mxu1 %v9138_v52  ;;  %v8255_v56 = vcombine.low %v20139_v34, %v20138_v49  ;;  %v8254_v37 = vcombine.low %v8246_v33, %v8253_v57  ;;  %v11965_v23 = vunpack.i.h.bf16 %v18247_v53  ;;  %v11964_v15 = vunpack.i.l.bf16 %v18247_v53  ;;  %v20146_v52 = vld [vmem:[#allocation19_spill] sm:$0xff] }
 0x3bb   : > { %v8256_v22 = vcombine.low %v20141_v50, %v20140_v58  ;;  %v6664_v44 = vcombine.low %v20143_v14, %v20142_v19  ;;  %v11970_v2 = vunpack.i.h.bf16 %v18289_v46  ;;  %v8272_v3 = vcombine.low %v20145_v32, %v20144_v21  ;;  %v20147_v33 = vld [vmem:[#allocation11_spill] sm:$0xff] }
 0x3bc   : > { %9353 = vmatmul.mubr.f32.gmra.mxu1 %v9063_v1  ;;  %v8273_v57 = vcombine.low %v20147_v33, %v20146_v52  ;;  %v9089_v53 = vsel %vm4187_vm9, %v8254_v37, %v11899_v28  ;;  %v8263_v25 = vrot.slane %v8255_v56, %v12321_v13  ;;  %v11969_v49 = vunpack.i.l.bf16 %v18289_v46  ;;  %v12182_v19 = vld [vmem:[%s12314_s24 + $0x88] sm:$0x3f]  ;;  %v18342_v33 = vld.sshfl [vmem:[%s12314_s24 + $0x90] sm:$0xff pattern:$0x76325410] }
 0x3bd   : > { %v8270_v1 = vrot.slane %v8256_v22, %v12321_v13  ;;  %v9114_v34 = vsel %vm4239_vm11, %v9089_v53, %v11919_v27  ;;  %v9015_v58 = vsel %vm4187_vm9, %v6664_v44, %v11915_v31  ;;  %v8280_v50 = vrot.slane %v8272_v3, %v12321_v13  ;;  %v18328_v22 = vpop.permute.xlu0 %11982  ;;  %v20150_v3 = vld [vmem:[#allocation68_spill] sm:$0xff] }
 0x3be   : > { %v8287_v26 = vrot.slane %v8273_v57, %v12321_v13  ;;  %v9139_v28 = vsel %vm4291_vm13, %v9114_v34, %v11939_v6  ;;  %v9040_v37 = vsel %vm4239_vm11, %v9015_v58, %v11935_v5  ;;  %v11975_v12 = vunpack.i.h.bf16 %v18262_v63 }
 0x3bf   : > { %v8271_v56 = vcombine.low %v8263_v25, %v8270_v1  ;;  %9357 = vmatprep.mubr.f32.mxu1 %v9139_v28  ;;  %v9065_v27 = vsel %vm4291_vm13, %v9040_v37, %v11955_v43  ;;  %v9951_v14 = vcombine.high %v12182_v19, %v12182_v19  ;;  %v9958_v44 = vrot.slane %v12182_v19, %v12321_v13  ;;  %v18344_v43 = vpop.permute.xlu1 %11987 }
 0x3c0   : > { %v8288_v31 = vcombine.low %v8280_v50, %v8287_v26  ;;  %9358 = vmatmul.mubr.f32.gmra.mxu1 %v9064_v36  ;;  %v20148_v6 = vunpack.i.l.bf16 %v17999_v9  ;;  %v20149_v5 = vunpack.i.h.bf16 %v18072_v54  ;;  %v20151_v36 = vunpack.i.l.bf16 %v18072_v54 }
 0x3c1   : > { %v9965_v25 = vrot.slane %v9951_v14, %v12321_v13  ;;  %v9966_v58 = vcombine.high %v9958_v44, %v9958_v44  ;;  %v11980_v50 = vunpack.i.h.bf16 %v18300_v55  ;;  %v11979_v26 = vunpack.i.l.bf16 %v18300_v55  ;;  %v18364_v37 = vpop.permute.xlu0 %11992 }
 0x3c2   : > { %v9090_v21 = vsel %vm4187_vm9, %v8271_v56, %v20148_v6  ;;  %v9016_v52 = vsel %vm4187_vm9, %v20150_v3, %v20149_v5  ;;  %v9091_v9 = vsel %vm4187_vm9, %v8288_v31, %v20151_v36  ;;  %v11990_v31 = vunpack.i.h.bf16 %v18344_v43  ;;  %v12185_v6 = vld [vmem:[%s12314_s24 + $0x70] sm:$0xff] }
 0x3c3   : > { %v9115_v57 = vsel %vm4239_vm11, %v9090_v21, %v11934_v8  ;;  %v9041_v53 = vsel %vm4239_vm11, %v9016_v52, %v11950_v60  ;;  %v9116_v34 = vsel %vm4239_vm11, %v9091_v9, %v11949_v51  ;;  %v10388_v54 = vcombine.low %v9965_v25, %v18342_v33  ;;  %v18373_v5 = vpop.permute.xlu1 %12002 }
 0x3c4   : > { %v9140_v1 = vsel %vm4291_vm13, %v9115_v57, %v11954_v30  ;;  %v9141_v39 = vsel %vm4291_vm13, %v9116_v34, %v11964_v15  ;;  %v9066_v8 = vsel %vm4291_vm13, %v9041_v53, %v11965_v23  ;;  %v10387_v60 = vcombine.low %v9958_v44, %v9966_v58  ;;  %v12184_v30 = vld [vmem:[%s12314_s24 + $0x80] sm:$0xff]  ;;  %v12186_v57 = vld [vmem:[%s12314_s24 + $0x78] sm:$0x3f] }
 0x3c5   : > { %9362 = vmatprep.mubr.f32.mxu1 %v9140_v1  ;;  %v9934_v56 = vcombine.high %v12184_v30, %v12184_v30  ;;  %v9941_v51 = vrot.slane %v12184_v30, %v12321_v13  ;;  %v10402_v15 = vrot.slane %v10388_v54, %v12321_v13  ;;  %v11989_v19 = vunpack.i.l.bf16 %v18344_v43  ;;  %v20153_v54 = vld [vmem:[#allocation29_spill] sm:$0xff]  ;;  %v20154_v30 = vld [vmem:[#allocation86_spill] sm:$0xff] }
 0x3c6   : > { %9363 = vmatmul.mubr.f32.gmra.mxu1 %v9065_v27  ;;  %v10395_v27 = vrot.slane %v10387_v60, %v12321_v13  ;;  %v9901_v21 = vcombine.high %v12185_v6, %v12185_v6  ;;  %v11995_v3 = vunpack.i.h.bf16 %v18364_v37  ;;  %v11994_v52 = vunpack.i.l.bf16 %v18364_v37 }
 0x3c7   : > { %9367 = vmatprep.mubr.f32.mxu1 %v9141_v39  ;;  %v9948_v14 = vrot.slane %v9934_v56, %v12321_v13  ;;  %v9949_v44 = vcombine.high %v9941_v51, %v9941_v51  ;;  %v9918_v36 = vcombine.high %v12186_v57, %v12186_v57  ;;  %v9925_v9 = vrot.slane %v12186_v57, %v12321_v13  ;;  %v20152_v39 = vld [vmem:[#allocation28_spill] sm:$0xff]  ;;  %v20155_v56 = vld [vmem:[#allocation85_spill] sm:$0xff] }
 0x3c8   : > { %v10403_v53 = vcombine.low %v10395_v27, %v10402_v15  ;;  %v9915_v1 = vrot.slane %v9901_v21, %v12321_v13  ;;  %v8289_v60 = vcombine.low %v20153_v54, %v20152_v39  ;;  %v8290_v23 = vcombine.low %v20155_v56, %v20154_v30  ;;  %v20157_v15 = vld [vmem:[#allocation70_spill] sm:$0xff]  ;;  %v18407_v56 = vpop.f32.mrf.mxu0 }
 0x3c9   : > { %v9950_v43 = vcombine.high %v9948_v14, %v9948_v14  ;;  %v10370_v25 = vcombine.low %v9941_v51, %v9949_v44  ;;  %v9932_v34 = vrot.slane %v9918_v36, %v12321_v13  ;;  %v9933_v58 = vcombine.high %v9925_v9, %v9925_v9  ;;  %v18388_v51 = vpop.permute.xlu1 %12007 }
 0x3ca   : > { %9368 = vmatmul.mubr.f32.gmra.mxu1 %v9066_v8  ;;  %v9917_v57 = vcombine.high %v9915_v1, %v9915_v1  ;;  %v20156_v8 = vld [vmem:[#allocation61_spill] sm:$0xff]  ;;  %v12005_v21 = vunpack.i.h.bf16 %v18373_v5  ;;  %v8297_v36 = vrot.slane %v8289_v60, %v12321_v13  ;;  %v8304_v39 = vrot.slane %v8290_v23, %v12321_v13  ;;  %v20158_v23 = vld [vmem:[#allocation36_spill] sm:$0xff]  ;;  %v20159_v60 = vld [vmem:[#allocation87_spill] sm:$0xff] }
 0x3cb   : > { %10598 = vmatpush1.msra.mxu1 %v10403_v53  ;;  %v10371_v28 = vcombine.low %v9948_v14, %v9950_v43  ;;  %v10378_v32 = vrot.slane %v10370_v25, %v12321_v13  ;;  %v6698_v27 = vcombine.low %v20157_v15, %v20156_v8  ;;  %v10354_v44 = vcombine.low %v9933_v58, %v9932_v34  ;;  %v18403_v58 = vpop.permute.xlu0 %11997  ;;  %v20161_v15 = vld [vmem:[#allocation88_spill] sm:$0xff] }
 0x3cc   : > { %10599 = vmatprep.subr.mxu1 %v19852_v29  ;;  %v10353_v14 = vcombine.low %v9917_v57, %v9925_v9  ;;  %v12004_v43 = vunpack.i.l.bf16 %v18373_v5  ;;  %v8305_v30 = vcombine.low %v8297_v36, %v8304_v39  ;;  %v12187_v36 = vld [vmem:[%s12314_s24 + $0x68] sm:$0x3f] }
 0x3cd   : > { %v10385_v53 = vrot.slane %v10371_v28, %v12321_v13  ;;  %v9017_v25 = vsel %vm4187_vm9, %v6698_v27, %v11945_v41  ;;  %v10368_v54 = vrot.slane %v10354_v44, %v12321_v13  ;;  %v8306_v28 = vcombine.low %v20159_v60, %v20158_v23  ;;  %v20160_v41 = vld [vmem:[#allocation92_spill] sm:$0xff]  ;;  %v11224_v23 = vpop.f32.mrf.mxu0 }
 0x3ce   : > { %v9042_v34 = vsel %vm4239_vm11, %v9017_v25, %v11970_v2  ;;  %v10361_v57 = vrot.slane %v10353_v14, %v12321_v13  ;;  %v8307_v27 = vcombine.low %v20161_v15, %v20160_v41  ;;  %v9092_v44 = vsel %vm4187_vm9, %v8305_v30, %v11944_v45  ;;  %v18427_v14 = vpop.permute.xlu1 %12012 }
 0x3cf   : > { %v10386_v9 = vcombine.low %v10378_v32, %v10385_v53  ;;  %v9067_v8 = vsel %vm4291_vm13, %v9042_v34, %v11990_v31  ;;  %v8314_v2 = vrot.slane %v8306_v28, %v12321_v13  ;;  %v9885_v39 = vcombine.high %v12187_v36, %v12187_v36  ;;  %v12188_v28 = vld [vmem:[%s12314_s24 + $0x60] sm:$0xff] }
 0x3d0   : > { %v9908_v25 = vrot.slane %v12185_v6, %v12321_v13  ;;  %v10369_v32 = vcombine.low %v10361_v57, %v10368_v54  ;;  %v9117_v31 = vsel %vm4239_vm11, %v9092_v44, %v11969_v49  ;;  %v8321_v53 = vrot.slane %v8307_v27, %v12321_v13  ;;  %v18435_v49 = vpop.permute.xlu0 %12017  ;;  %v12189_v44 = vld [vmem:[%s12314_s24 + $0x58] sm:$0x3f] }
 0x3d1   : > { %10600 = vmatpush1.msra.mxu1 %v10386_v9  ;;  %v9018_v45 = vsel %vm4187_vm9, %v20162_v48, %v11960_v40  ;;  %v9142_v6 = vsel %vm4291_vm13, %v9117_v31, %v11989_v19  ;;  %v9899_v54 = vrot.slane %v9885_v39, %v12321_v13  ;;  %v12000_v40 = vunpack.i.h.bf16 %v18403_v58 }
 0x3d2   : > { %10601 = vmatprep.subr.mxu1 %v19852_v29  ;;  %v9916_v30 = vcombine.high %v9908_v25, %v9908_v25  ;;  %v9043_v46 = vsel %vm4239_vm11, %v9018_v45, %v11980_v50  ;;  %9372 = vmatprep.mubr.f32.mxu1 %v9142_v6  ;;  %v8322_v34 = vcombine.low %v8314_v2, %v8321_v53  ;;  %v11999_v19 = vunpack.i.l.bf16 %v18403_v58  ;;  %v18460_v31 = vpop.permute.xlu1 %12032 }
 0x3d3   : > { %10602 = vmatpush1.msra.mxu1 %v10369_v32  ;;  %v9068_v60 = vsel %vm4291_vm13, %v9043_v46, %v11995_v3  ;;  %v9868_v9 = vcombine.high %v12188_v28, %v12188_v28  ;;  %v10336_v57 = vcombine.low %v9899_v54, %v9908_v25  ;;  %v9892_v50 = vrot.slane %v12187_v36, %v12321_v13  ;;  %v18454_v36 = vpop.f32.mrf.mxu0 }
 0x3d4   : > { %9373 = vmatmul.mubr.f32.gmra.mxu1 %v9067_v8  ;;  %10603 = vmatprep.subr.mxu1 %v19852_v29  ;;  %v10337_v41 = vcombine.low %v9916_v30, %v9915_v1  ;;  %v9093_v15 = vsel %vm4187_vm9, %v8322_v34, %v11959_v38  ;;  %v9852_v2 = vcombine.high %v12189_v44, %v12189_v44  ;;  %v12010_v53 = vunpack.i.h.bf16 %v18388_v51  ;;  %v18464_v45 = vpop.permute.xlu0 %12022 }
 0x3d5   : > { %v9882_v27 = vrot.slane %v9868_v9, %v12321_v13  ;;  %v9859_v3 = vrot.slane %v12189_v44, %v12321_v13  ;;  %v9118_v8 = vsel %vm4239_vm11, %v9093_v15, %v11979_v26  ;;  %v10344_v39 = vrot.slane %v10336_v57, %v12321_v13  ;;  %v11227_v30 = vpop.f32.mrf.mxu0  ;;  %v12190_v57 = vld [vmem:[%s12314_s24 + $0x50] sm:$0xff] }
 0x3d6   : > { %v10351_v1 = vrot.slane %v10337_v41, %v12321_v13  ;;  %v9900_v25 = vcombine.high %v9892_v50, %v9892_v50  ;;  %v9143_v20 = vsel %vm4291_vm13, %v9118_v8, %v11994_v52  ;;  %v9866_v23 = vrot.slane %v9852_v2, %v12321_v13 }
 0x3d7   : > { %v9884_v38 = vcombine.high %v9882_v27, %v9882_v27  ;;  %v9867_v32 = vcombine.high %v9859_v3, %v9859_v3  ;;  %9377 = vmatprep.mubr.f32.mxu1 %v9143_v20  ;;  %v9875_v48 = vrot.slane %v12188_v28, %v12321_v13  ;;  %v12009_v52 = vunpack.i.l.bf16 %v18388_v51  ;;  %v20163_v20 = vld [vmem:[#allocation94_spill] sm:$0xff] }
 0x3d8   : > { %v10352_v55 = vcombine.low %v10344_v39, %v10351_v1  ;;  %v10320_v26 = vcombine.low %v9892_v50, %v9900_v25  ;;  %9378 = vmatmul.mubr.f32.gmra.mxu1 %v9068_v60  ;;  %v9835_v41 = vcombine.high %v12190_v57, %v12190_v57  ;;  %v12015_v60 = vunpack.i.h.bf16 %v18427_v14  ;;  %v18488_v30 = vpop.permute.xlu0 %12027 }
 0x3d9   : > { %v10319_v37 = vcombine.low %v9882_v27, %v9884_v38  ;;  %v10302_v6 = vcombine.low %v9867_v32, %v9866_v23  ;;  %v9883_v34 = vcombine.high %v9875_v48, %v9875_v48  ;;  %v12014_v50 = vunpack.i.l.bf16 %v18427_v14  ;;  %v20164_v38 = vld [vmem:[#allocation93_spill] sm:$0xff]  ;;  %v18482_v32 = vpop.permute.xlu1 %12037 }
 0x3da   : > { %10604 = vmatpush1.msra.mxu1 %v10352_v55  ;;  %v10334_v46 = vrot.slane %v10320_v26, %v12321_v13  ;;  %v9842_v15 = vrot.slane %v12190_v57, %v12321_v13  ;;  %v9849_v2 = vrot.slane %v9835_v41, %v12321_v13  ;;  %v12025_v8 = vunpack.i.h.bf16 %v18464_v45  ;;  %v20168_v57 = vld [vmem:[#allocation77_spill] sm:$0xff] }
 0x3db   : > { %10605 = vmatprep.subr.mxu1 %v19852_v29  ;;  %v10327_v28 = vrot.slane %v10319_v37, %v12321_v13  ;;  %v10303_v27 = vcombine.low %v9875_v48, %v9883_v34  ;;  %v10310_v44 = vrot.slane %v10302_v6, %v12321_v13  ;;  %v12024_v25 = vunpack.i.l.bf16 %v18464_v45  ;;  %v20165_v48 = vld [vmem:[#allocation96_spill] sm:$0xff]  ;;  %v20166_v37 = vld [vmem:[#allocation95_spill] sm:$0xff]  ;;  %v20167_v34 = vld [vmem:[#allocation9_spill] sm:$0xff] }
 0x3dc   : > { %v9850_v1 = vcombine.high %v9842_v15, %v9842_v15  ;;  %v8323_v23 = vcombine.low %v20164_v38, %v20163_v20  ;;  %v9851_v55 = vcombine.high %v9849_v2, %v9849_v2  ;;  %v8324_v6 = vcombine.low %v20166_v37, %v20165_v48 }
 0x3dd   : > { %v10335_v39 = vcombine.low %v10327_v28, %v10334_v46  ;;  %v10317_v14 = vrot.slane %v10303_v27, %v12321_v13  ;;  %v6732_v41 = vcombine.low %v20168_v57, %v20167_v34  ;;  %v12191_v28 = vld [vmem:[%s12314_s24 + $0x48] sm:$0x3f]  ;;  %v12034_v34 = vunpack.i.l.bf16 %v18460_v31  ;;  %v20170_v57 = vld [vmem:[#allocation98_spill] sm:$0xff] }
 0x3de   : > { %v10285_v46 = vcombine.low %v9850_v1, %v9849_v2  ;;  %v9819_v9 = vcombine.high %v12191_v28, %v12191_v28  ;;  %v9826_v20 = vrot.slane %v12191_v28, %v12321_v13  ;;  %v10286_v38 = vcombine.low %v9851_v55, %v9859_v3 }
 0x3df   : > { %10606 = vmatpush1.msra.mxu1 %v10335_v39  ;;  %v10318_v27 = vcombine.low %v10310_v44, %v10317_v14  ;;  %v8331_v26 = vrot.slane %v8323_v23, %v12321_v13  ;;  %v8338_v54 = vrot.slane %v8324_v6, %v12321_v13  ;;  %v9019_v2 = vsel %vm4187_vm9, %v6732_v41, %v11975_v12  ;;  %v18512_v6 = vpop.f32.mrf.mxu0  ;;  %v20171_v41 = vld [vmem:[#allocation97_spill] sm:$0xff] }
 0x3e0   : > { %10607 = vmatprep.subr.mxu1 %v19852_v29  ;;  %v10293_v48 = vrot.slane %v10285_v46, %v12321_v13  ;;  %v9833_v39 = vrot.slane %v9819_v9, %v12321_v13  ;;  %v9834_v1 = vcombine.high %v9826_v20, %v9826_v20  ;;  %v10300_v37 = vrot.slane %v10286_v38, %v12321_v13  ;;  %v18510_v9 = vpop.permute.xlu1 %12042  ;;  %v20172_v38 = vld [vmem:[#allocation104_spill] sm:$0xff] }
 0x3e1   : > { %10608 = vmatpush1.msra.mxu1 %v10318_v27  ;;  %v8339_v44 = vcombine.low %v8331_v26, %v8338_v54  ;;  %v9044_v3 = vsel %vm4239_vm11, %v9019_v2, %v12000_v40  ;;  %v12030_v12 = vunpack.i.h.bf16 %v18488_v30  ;;  %v20169_v54 = vunpack.i.l.bf16 %v18262_v63  ;;  %v11230_v2 = vpop.f32.mrf.mxu0 }
 0x3e2   : > { %10609 = vmatprep.subr.mxu1 %v19852_v29  ;;  %v9069_v23 = vsel %vm4291_vm13, %v9044_v3, %v12015_v60  ;;  %v10268_v14 = vcombine.low %v9826_v20, %v9834_v1  ;;  %v10269_v55 = vcombine.low %v9833_v39, %v9842_v15  ;;  %v10301_v46 = vcombine.low %v10293_v48, %v10300_v37  ;;  %v18520_v60 = vpop.permute.xlu0 %12047  ;;  %v20173_v48 = vld [vmem:[#allocation99_spill] sm:$0xff]  ;;  %v12192_v1 = vld [vmem:[%s12314_s24 + $0x40] sm:$0xff] }
 0x3e3   : > { %v9094_v26 = vsel %vm4187_vm9, %v8339_v44, %v20169_v54  ;;  %v12029_v40 = vunpack.i.l.bf16 %v18488_v30  ;;  %v8340_v28 = vcombine.low %v20171_v41, %v20170_v57  ;;  %v8341_v63 = vcombine.low %v20173_v48, %v20172_v38  ;;  %v20174_v54 = vld [vmem:[#allocation89_spill] sm:$0xff] }
 0x3e4   : > { %v9119_v15 = vsel %vm4239_vm11, %v9094_v26, %v11999_v19  ;;  %v10276_v20 = vrot.slane %v10268_v14, %v12321_v13  ;;  %v10283_v27 = vrot.slane %v10269_v55, %v12321_v13  ;;  %10610 = vmatpush1.msra.mxu1 %v10301_v46  ;;  %v12040_v39 = vunpack.i.h.bf16 %v18482_v32  ;;  %v20175_v26 = vld [vmem:[#allocation5_spill] sm:$0xff] }
 0x3e5   : > { %v9144_v30 = vsel %vm4291_vm13, %v9119_v15, %v12014_v50  ;;  %v9802_v37 = vcombine.high %v12192_v1, %v12192_v1  ;;  %v9809_v58 = vrot.slane %v12192_v1, %v12321_v13  ;;  %10611 = vmatprep.subr.mxu1 %v19852_v29  ;;  %v12039_v44 = vunpack.i.l.bf16 %v18482_v32  ;;  %v12194_v38 = vld [vmem:[%s12314_s24 + $0x38] sm:$0x3f] }
 0x3e6   : > { %9382 = vmatprep.mubr.f32.mxu1 %v9144_v30  ;;  %v10284_v19 = vcombine.low %v10276_v20, %v10283_v27  ;;  %v8348_v3 = vrot.slane %v8340_v28, %v12321_v13  ;;  %v8355_v14 = vrot.slane %v8341_v63, %v12321_v13  ;;  %v6749_v57 = vcombine.low %v20175_v26, %v20174_v54  ;;  %v12193_v20 = vld [vmem:[%s12314_s24 + $0x30] sm:$0xff]  ;;  %v18544_v28 = vpop.permute.xlu1 %12062 }
 0x3e7   : > { %9383 = vmatmul.mubr.f32.gmra.mxu1 %v9069_v23  ;;  %v9816_v50 = vrot.slane %v9802_v37, %v12321_v13  ;;  %v9817_v55 = vcombine.high %v9809_v58, %v9809_v58  ;;  %v9769_v27 = vcombine.high %v12193_v20, %v12193_v20  ;;  %v9786_v48 = vcombine.high %v12194_v38, %v12194_v38  ;;  %v18551_v37 = vpop.permute.xlu0 %12052 }
 0x3e8   : > { %10612 = vmatpush1.msra.mxu1 %v10284_v19  ;;  %v8356_v41 = vcombine.low %v8348_v3, %v8355_v14  ;;  %v20176_v2 = vunpack.i.h.bf16 %v18328_v22  ;;  %v9793_v1 = vrot.slane %v12194_v38, %v12321_v13  ;;  %v20177_v19 = vunpack.i.l.bf16 %v18328_v22 }
 0x3e9   : > { %10613 = vmatprep.subr.mxu1 %v19852_v29  ;;  %v9818_v23 = vcombine.high %v9816_v50, %v9816_v50  ;;  %v10251_v63 = vcombine.low %v9809_v58, %v9817_v55  ;;  %v9783_v54 = vrot.slane %v9769_v27, %v12321_v13  ;;  %v9800_v58 = vrot.slane %v9786_v48, %v12321_v13 }
 0x3ea   : > { %v9020_v30 = vsel %vm4187_vm9, %v6749_v57, %v20176_v2  ;;  %v9095_v3 = vsel %vm4187_vm9, %v8356_v41, %v20177_v19  ;;  %v12045_v41 = vunpack.i.h.bf16 %v18510_v9  ;;  %v12044_v48 = vunpack.i.l.bf16 %v18510_v9  ;;  %v20181_v19 = vld [vmem:[#allocation107_spill] sm:$0xff] }
 0x3eb   : > { %v9045_v14 = vsel %vm4239_vm11, %v9020_v30, %v12010_v53  ;;  %v9120_v55 = vsel %vm4239_vm11, %v9095_v3, %v12009_v52  ;;  %v10252_v26 = vcombine.low %v9816_v50, %v9818_v23  ;;  %v10259_v57 = vrot.slane %v10251_v63, %v12321_v13  ;;  %v20179_v63 = vld [vmem:[#allocation105_spill] sm:$0xff]  ;;  %v18581_v46 = vpop.permute.xlu0 %12057 }
 0x3ec   : > { %v9070_v38 = vsel %vm4291_vm13, %v9045_v14, %v12030_v12  ;;  %v9145_v22 = vsel %vm4291_vm13, %v9120_v55, %v12029_v40  ;;  %v9785_v2 = vcombine.high %v9783_v54, %v9783_v54  ;;  %v9801_v53 = vcombine.high %v9793_v1, %v9793_v1  ;;  %v20178_v12 = vld [vmem:[#allocation106_spill] sm:$0xff]  ;;  %v20180_v30 = vld [vmem:[#allocation109_spill] sm:$0xff]  ;;  %v18576_v14 = vpop.permute.xlu1 %12067 }
 0x3ed   : > { %9387 = vmatprep.mubr.f32.mxu1 %v9145_v22  ;;  %v10266_v27 = vrot.slane %v10252_v26, %v12321_v13  ;;  %v12055_v51 = vunpack.i.h.bf16 %v18551_v37  ;;  %v12054_v52 = vunpack.i.l.bf16 %v18551_v37  ;;  %v8357_v40 = vcombine.low %v20179_v63, %v20178_v12  ;;  %v12195_v22 = vld [vmem:[%s12314_s24 + $0x28] sm:$0x3f] }
 0x3ee   : > { %9388 = vmatmul.mubr.f32.gmra.mxu1 %v9070_v38  ;;  %v10234_v50 = vcombine.low %v9785_v2, %v9793_v1  ;;  %v10235_v23 = vcombine.low %v9801_v53, %v9800_v58  ;;  %v8358_v3 = vcombine.low %v20181_v19, %v20180_v30  ;;  %v12065_v26 = vunpack.i.h.bf16 %v18544_v28  ;;  %v18587_v53 = vpop.f32.mrf.mxu0 }
 0x3ef   : > { %v10267_v55 = vcombine.low %v10259_v57, %v10266_v27  ;;  %v9753_v9 = vcombine.high %v12195_v22, %v12195_v22  ;;  %v9776_v15 = vrot.slane %v12193_v20, %v12321_v13  ;;  %v8365_v38 = vrot.slane %v8357_v40, %v12321_v13  ;;  %v20182_v27 = vld [vmem:[#allocation90_spill] sm:$0xff] }
 0x3f0   : > { %v10242_v1 = vrot.slane %v10234_v50, %v12321_v13  ;;  %v10249_v58 = vrot.slane %v10235_v23, %v12321_v13  ;;  %v8372_v2 = vrot.slane %v8358_v3, %v12321_v13  ;;  %v9021_v20 = vsel %vm4187_vm9, %v20182_v27, %v12005_v21  ;;  %v11233_v19 = vpop.f32.mrf.mxu0 }
 0x3f1   : > { %10614 = vmatpush1.msra.mxu1 %v10267_v55  ;;  %v9767_v12 = vrot.slane %v9753_v9, %v12321_v13  ;;  %v9784_v50 = vcombine.high %v9776_v15, %v9776_v15  ;;  %v9046_v40 = vsel %vm4239_vm11, %v9021_v20, %v12025_v8  ;;  %v12060_v30 = vunpack.i.h.bf16 %v18581_v46  ;;  %v20184_v8 = vld [vmem:[#allocation110_spill] sm:$0xff]  ;;  %v18609_v20 = vpop.permute.xlu1 %12072  ;;  %v20187_v19 = vld [vmem:[#allocation100_spill] sm:$0xff] }
 0x3f2   : > { %10615 = vmatprep.subr.mxu1 %v19852_v29  ;;  %v10250_v23 = vcombine.low %v10242_v1, %v10249_v58  ;;  %v8373_v63 = vcombine.low %v8365_v38, %v8372_v2  ;;  %v9071_v3 = vsel %vm4291_vm13, %v9046_v40, %v12045_v41  ;;  %v12059_v21 = vunpack.i.l.bf16 %v18581_v46  ;;  %v12196_v1 = vld [vmem:[%s12314_s24 + $0x20] sm:$0xff]  ;;  %v20183_v2 = vld [vmem:[#allocation113_spill] sm:$0xff] }
 0x3f3   : > { %v10217_v55 = vcombine.low %v9767_v12, %v9776_v15  ;;  %v10218_v57 = vcombine.low %v9784_v50, %v9783_v54  ;;  %v9736_v58 = vcombine.high %v12196_v1, %v12196_v1  ;;  %v9760_v38 = vrot.slane %v12195_v22, %v12321_v13  ;;  %v20186_v54 = vld [vmem:[#allocation114_spill] sm:$0xff]  ;;  %v18619_v12 = vpop.permute.xlu0 %12077 }
 0x3f4   : > { %10616 = vmatpush1.msra.mxu1 %v10250_v23  ;;  %v9096_v9 = vsel %vm4187_vm9, %v8373_v63, %v12004_v43  ;;  %v8374_v27 = vcombine.low %v20184_v8, %v20183_v2  ;;  %v20185_v43 = vld [vmem:[#allocation120_spill] sm:$0xff]  ;;  %v12070_v50 = vunpack.i.h.bf16 %v18576_v14 }
 0x3f5   : > { %10617 = vmatprep.subr.mxu1 %v19852_v29  ;;  %v9121_v46 = vsel %vm4239_vm11, %v9096_v9, %v12024_v25  ;;  %v10225_v15 = vrot.slane %v10217_v55, %v12321_v13  ;;  %v10232_v5 = vrot.slane %v10218_v57, %v12321_v13  ;;  %v8375_v41 = vcombine.low %v20186_v54, %v20185_v43  ;;  %v20188_v57 = vld [vmem:[#allocation91_spill] sm:$0xff]  ;;  %v20191_v43 = vld [vmem:[#allocation122_spill] sm:$0xff] }
 0x3f6   : > { %v9146_v22 = vsel %vm4291_vm13, %v9121_v46, %v12044_v48  ;;  %v9750_v23 = vrot.slane %v9736_v58, %v12321_v13  ;;  %v9768_v63 = vcombine.high %v9760_v38, %v9760_v38  ;;  %v8382_v25 = vrot.slane %v8374_v27, %v12321_v13 }
 0x3f7   : > { %9392 = vmatprep.mubr.f32.mxu1 %v9146_v22  ;;  %v10233_v45 = vcombine.low %v10225_v15, %v10232_v5  ;;  %v8389_v40 = vrot.slane %v8375_v41, %v12321_v13  ;;  %v6783_v55 = vcombine.low %v20188_v57, %v20187_v19  ;;  %v12069_v9 = vunpack.i.l.bf16 %v18576_v14  ;;  %v20190_v5 = vld [vmem:[#allocation124_spill] sm:$0xff]  ;;  %v20192_v41 = vld [vmem:[#allocation125_spill] sm:$0xff] }
 0x3f8   : > { %9393 = vmatmul.mubr.f32.gmra.mxu1 %v9071_v3  ;;  %v9752_v2 = vcombine.high %v9750_v23, %v9750_v23  ;;  %v10201_v8 = vcombine.low %v9760_v38, %v9768_v63  ;;  %v12075_v48 = vunpack.i.h.bf16 %v18609_v20  ;;  %v20189_v46 = vunpack.i.h.bf16 %v18435_v49  ;;  %v18643_v63 = vpop.permute.xlu1 %12087 }
 0x3f9   : > { %10618 = vmatpush1.msra.mxu1 %v10233_v45  ;;  %v8390_v58 = vcombine.low %v8382_v25, %v8389_v40  ;;  %v12074_v27 = vunpack.i.l.bf16 %v18609_v20  ;;  %v8391_v54 = vcombine.low %v20191_v43, %v20190_v5  ;;  %v8392_v22 = vcombine.low %v20192_v41, %v17569_v7 }
 0x3fa   : > { %v9022_v15 = vsel %vm4187_vm9, %v6783_v55, %v20189_v46  ;;  %10619 = vmatprep.subr.mxu1 %v19852_v29  ;;  %v10200_v3 = vcombine.low %v9750_v23, %v9752_v2  ;;  %v10215_v14 = vrot.slane %v10201_v8, %v12321_v13  ;;  %v20193_v45 = vunpack.i.l.bf16 %v18435_v49  ;;  %v12197_v23 = vld [vmem:[%s12314_s24 + $0x18] sm:$0x3f]  ;;  %v18651_v55 = vpop.permute.xlu0 %12082 }
 0x3fb   : > { %v9047_v38 = vsel %vm4239_vm11, %v9022_v15, %v12040_v39  ;;  %v8399_v19 = vrot.slane %v8391_v54, %v12321_v13  ;;  %v9720_v57 = vcombine.high %v12197_v23, %v12197_v23  ;;  %v8406_v39 = vrot.slane %v8392_v22, %v12321_v13  ;;  %v20195_v15 = vld [vmem:[#allocation101_spill] sm:$0xff] }
 0x3fc   : > { %v9097_v25 = vsel %vm4187_vm9, %v8390_v58, %v20193_v45  ;;  %v9072_v40 = vsel %vm4291_vm13, %v9047_v38, %v12060_v30  ;;  %v10208_v2 = vrot.slane %v10200_v3, %v12321_v13  ;;  %v9727_v49 = vrot.slane %v12197_v23, %v12321_v13  ;;  %v18672_v41 = vpop.f32.mrf.mxu0 }
 0x3fd   : > { %v9122_v7 = vsel %vm4239_vm11, %v9097_v25, %v12039_v44  ;;  %v9734_v30 = vrot.slane %v9720_v57, %v12321_v13  ;;  %v9743_v58 = vrot.slane %v12196_v1, %v12321_v13  ;;  %v20194_v46 = vunpack.i.h.bf16 %v18460_v31  ;;  %v18679_v25 = vpop.permute.xlu1 %12097 }
 0x3fe   : > { %v9147_v8 = vsel %vm4291_vm13, %v9122_v7, %v12059_v21  ;;  %v10216_v43 = vcombine.low %v10208_v2, %v10215_v14  ;;  %v8407_v32 = vcombine.low %v8399_v19, %v8406_v39  ;;  %v9735_v54 = vcombine.high %v9727_v49, %v9727_v49  ;;  %v12198_v19 = vld [vmem:[%s12314_s24 + $0x10] sm:$0xff]  ;;  %v11236_v57 = vpop.f32.mrf.mxu0 }
 0x3ff   : > { %v9023_v5 = vsel %vm4187_vm9, %v20195_v15, %v20194_v46  ;;  %9397 = vmatprep.mubr.f32.mxu1 %v9147_v8  ;;  %v12080_v21 = vunpack.i.h.bf16 %v18619_v12  ;;  %v12079_v3 = vunpack.i.l.bf16 %v18619_v12  ;;  %v9751_v1 = vcombine.high %v9743_v58, %v9743_v58  ;;  %v12199_v15 = vld [vmem:[%s12314_s24 + $0x8] sm:$0x3f] }
 0x400   : > { %v9048_v44 = vsel %vm4239_vm11, %v9023_v5, %v12055_v51  ;;  %9398 = vmatmul.mubr.f32.gmra.mxu1 %v9072_v40  ;;  %v9098_v14 = vsel %vm4187_vm9, %v8407_v32, %v12034_v34  ;;  %v10183_v22 = vcombine.low %v9735_v54, %v9734_v30  ;;  %v9703_v23 = vcombine.high %v12198_v19, %v12198_v19  ;;  %v18687_v34 = vpop.permute.xlu0 %12092 }
 0x401   : > { %v9073_v38 = vsel %vm4291_vm13, %v9048_v44, %v12070_v50  ;;  %10620 = vmatpush1.msra.mxu1 %v10216_v43  ;;  %v9123_v50 = vsel %vm4239_vm11, %v9098_v14, %v12054_v52  ;;  %v10184_v40 = vcombine.low %v9743_v58, %v9751_v1  ;;  %v9710_v31 = vrot.slane %v12198_v19, %v12321_v13  ;;  %v20196_v43 = vld [vmem:[#allocation128_spill] sm:$0xff]  ;;  %v20197_v14 = vld [vmem:[#allocation129_spill] sm:$0xff] }
 0x402   : > { %10621 = vmatprep.subr.mxu1 %v19852_v29  ;;  %v9148_v2 = vsel %vm4291_vm13, %v9123_v50, %v12069_v9  ;;  %v10191_v7 = vrot.slane %v10183_v22, %v12321_v13  ;;  %v12085_v39 = vunpack.i.h.bf16 %v18651_v55  ;;  %v12084_v8 = vunpack.i.l.bf16 %v18651_v55 }
 0x403   : > { %9402 = vmatprep.mubr.f32.mxu1 %v9148_v2  ;;  %v10198_v37 = vrot.slane %v10184_v40, %v12321_v13  ;;  %v9717_v52 = vrot.slane %v9703_v23, %v12321_v13  ;;  %v9718_v30 = vcombine.high %v9710_v31, %v9710_v31  ;;  %v12100_v58 = vunpack.i.h.bf16 %v18679_v25  ;;  %v18706_v23 = vpop.permute.xlu1 %12102 }
 0x404   : > { %9403 = vmatmul.mubr.f32.gmra.mxu1 %v9073_v38  ;;  %v12099_v46 = vunpack.i.l.bf16 %v18679_v25  ;;  %v9687_v5 = vcombine.high %v12199_v15, %v12199_v15  ;;  %v9694_v9 = vrot.slane %v12199_v15, %v12321_v13  ;;  %v8408_v32 = vcombine.low %v20196_v43, %v17613_v18  ;;  %v18709_v2 = vpop.permute.xlu0 %12107 }
 0x405   : > { %v10199_v54 = vcombine.low %v10191_v7, %v10198_v37  ;;  %v9719_v44 = vcombine.high %v9717_v52, %v9717_v52  ;;  %v10166_v1 = vcombine.low %v9718_v30, %v9717_v52  ;;  %v8409_v22 = vcombine.low %v20197_v14, %v17622_v11  ;;  %v20198_v37 = vld [vmem:[#allocation103_spill] sm:$0xff]  ;;  %v20199_v11 = vld [vmem:[#allocation102_spill] sm:$0xff] }
 0x406   : > { %v12095_v50 = vunpack.i.h.bf16 %v18687_v34  ;;  %v12094_v40 = vunpack.i.l.bf16 %v18687_v34  ;;  %v9701_v38 = vrot.slane %v9687_v5, %v12321_v13  ;;  %v9702_v19 = vcombine.high %v9694_v9, %v9694_v9 }
 0x407   : > { %10622 = vmatpush1.msra.mxu1 %v10199_v54  ;;  %v10167_v57 = vcombine.low %v9719_v44, %v9727_v49  ;;  %v10174_v18 = vrot.slane %v10166_v1, %v12321_v13  ;;  %v8416_v7 = vrot.slane %v8408_v32, %v12321_v13  ;;  %v6817_v52 = vcombine.low %v20199_v11, %v20198_v37  ;;  %v12200_v44 = vld [vmem:[%s12314_s24] sm:$0xff] }
 0x408   : > { %10623 = vmatprep.subr.mxu1 %v19852_v29  ;;  %v10149_v34 = vcombine.low %v9694_v9, %v9702_v19  ;;  %v10150_v30 = vcombine.low %v9701_v38, %v9710_v31  ;;  %v12105_v15 = vunpack.i.h.bf16 %v18706_v23  ;;  %v8423_v54 = vrot.slane %v8409_v22, %v12321_v13  ;;  %v20201_v49 = vld [vmem:[#allocation30_spill] sm:$0xff] }
 0x409   : > { %v10181_v43 = vrot.slane %v10167_v57, %v12321_v13  ;;  %v9670_v1 = vcombine.high %v12200_v44, %v12200_v44  ;;  %v20200_v37 = vunpack.i.h.bf16 %v18520_v60  ;;  %v9677_v9 = vrot.slane %v12200_v44, %v12321_v13 }
 0x40a   : > { %v10157_v32 = vrot.slane %v10149_v34, %v12321_v13  ;;  %v10164_v14 = vrot.slane %v10150_v30, %v12321_v13  ;;  %v8424_v19 = vcombine.low %v8416_v7, %v8423_v54  ;;  %v20202_v34 = vld [vmem:[#allocation130_spill] sm:$0xff]  ;;  %v20203_v30 = vld [vmem:[#allocation33_spill] sm:$0xff]  ;;  %v18740_v54 = vpop.permute.xlu1 %12122 }
 0x40b   : > { %v9024_v31 = vsel %vm4187_vm9, %v6817_v52, %v20200_v37  ;;  %v10182_v38 = vcombine.low %v10174_v18, %v10181_v43  ;;  %v9684_v22 = vrot.slane %v9670_v1, %v12321_v13  ;;  %v9685_v51 = vcombine.high %v9677_v9, %v9677_v9  ;;  %v12201_v37 = vld [vmem:[%s12314_s24 + $0xd8] sm:$0x3f] }
 0x40c   : > { %v9049_v57 = vsel %vm4239_vm11, %v9024_v31, %v12075_v48  ;;  %v10165_v11 = vcombine.low %v10157_v32, %v10164_v14  ;;  %v8425_v45 = vcombine.low %v20202_v34, %v20201_v49  ;;  %v8426_v5 = vcombine.low %v20203_v30, %v17786_v59  ;;  %v20208_v34 = vld [vmem:[#allocation25_spill] sm:$0xff]  ;;  %v20209_v30 = vld [vmem:[#allocation12_spill] sm:$0xff] }
 0x40d   : > { %10624 = vmatpush1.msra.mxu1 %v10182_v38  ;;  %v12109_v52 = vunpack.i.l.bf16 %v18709_v2  ;;  %v20204_v18 = vunpack.i.l.bf16 %v18520_v60  ;;  %v9074_v48 = vsel %vm4291_vm13, %v9049_v57, %v12095_v50  ;;  %v9686_v43 = vcombine.high %v9684_v22, %v9684_v22  ;;  %v20205_v50 = vld [vmem:[#allocation112_spill] sm:$0xff] }
 0x40e   : > { %10625 = vmatprep.subr.mxu1 %v19852_v29  ;;  %v10132_v59 = vcombine.low %v9677_v9, %v9685_v51  ;;  %v8433_v44 = vrot.slane %v8425_v45, %v12321_v13  ;;  %v8440_v1 = vrot.slane %v8426_v5, %v12321_v13  ;;  %v9025_v14 = vsel %vm4187_vm9, %v20205_v50, %v12065_v26  ;;  %v12113_v57 = vpop.permute.xlu0 %12112 }
 0x40f   : > { %v9099_v7 = vsel %vm4187_vm9, %v8424_v19, %v20204_v18  ;;  %10626 = vmatpush1.msra.mxu1 %v10165_v11  ;;  %v10133_v32 = vcombine.low %v9684_v22, %v9686_v43  ;;  %v10116_v31 = vcombine.high %v12201_v37, %v12201_v37  ;;  %v12125_v45 = vunpack.i.h.bf16 %v18740_v54  ;;  %v20210_v43 = vld [vmem:[#allocation121_spill] sm:$0xff] }
 0x410   : > { %v9124_v49 = vsel %vm4239_vm11, %v9099_v7, %v12074_v27  ;;  %10627 = vmatprep.subr.mxu1 %v19852_v29  ;;  %v10140_v20 = vrot.slane %v10132_v59, %v12321_v13  ;;  %v8441_v27 = vcombine.low %v8433_v44, %v8440_v1  ;;  %v9050_v51 = vsel %vm4239_vm11, %v9025_v14, %v12085_v39  ;;  %v20207_v39 = vld [vmem:[#allocation23_spill] sm:$0xff] }
 0x411   : > { %v9149_v60 = vsel %vm4291_vm13, %v9124_v49, %v12094_v40  ;;  %v10147_v40 = vrot.slane %v10133_v32, %v12321_v13  ;;  %v12124_v5 = vunpack.i.l.bf16 %v18740_v54  ;;  %v9075_v26 = vsel %vm4291_vm13, %v9050_v51, %v12100_v58  ;;  %v12202_v32 = vld [vmem:[%s12314_s24 + $0xd0] sm:$0xff] }
 0x412   : > { %9407 = vmatprep.mubr.f32.mxu1 %v9149_v60  ;;  %v10123_v9 = vrot.slane %v12201_v37, %v12321_v13  ;;  %v20206_v38 = vunpack.i.l.bf16 %v18544_v28  ;;  %v10130_v22 = vrot.slane %v10116_v31, %v12321_v13  ;;  %v8442_v11 = vcombine.low %v20207_v39, %v17873_v0  ;;  %v20211_v28 = vld [vmem:[#allocation117_spill] sm:$0xff]  ;;  %v18784_v60 = vpop.f32.mrf.mxu0  ;;  %v18792_v14 = vpop.permute.xlu0 %12117 }
 0x413   : > { %9408 = vmatmul.mubr.f32.gmra.mxu1 %v9074_v48  ;;  %v8443_v18 = vcombine.low %v20209_v30, %v20208_v34  ;;  %v10148_v7 = vcombine.low %v10140_v20, %v10147_v40  ;;  %v12115_v48 = vunpack.i.h.bf16 %v12113_v57  ;;  %v6851_v49 = vcombine.low %v20211_v28, %v20210_v43  ;;  %v20213_v30 = vld [vmem:[#allocation18_spill] sm:$0xff] }
 0x414   : > { %v9100_v19 = vsel %vm4187_vm9, %v8441_v27, %v20206_v38  ;;  %v10131_v44 = vcombine.high %v10123_v9, %v10123_v9  ;;  %v8450_v1 = vrot.slane %v8442_v11, %v12321_v13  ;;  %v12114_v55 = vunpack.i.l.bf16 %v12113_v57  ;;  %v11239_v20 = vpop.f32.mrf.mxu0 }
 0x415   : > { %v9125_v58 = vsel %vm4239_vm11, %v9100_v19, %v12084_v8  ;;  %v8457_v0 = vrot.slane %v8443_v18, %v12321_v13  ;;  %10628 = vmatpush1.msra.mxu1 %v10148_v7  ;;  %v9026_v8 = vsel %vm4187_vm9, %v6851_v49, %v12080_v21  ;;  %v10099_v50 = vcombine.high %v12202_v32, %v12202_v32  ;;  %v18800_v21 = vld [vmem:[%s19350_s8 + $0x8] sm:$0xff]  ;;  %v20214_v18 = vld [vmem:[#allocation34_spill] sm:$0xff] }
 0x416   : > { %v9150_v59 = vsel %vm4291_vm13, %v9125_v58, %v12099_v46  ;;  %v10106_v25 = vrot.slane %v12202_v32, %v12321_v13  ;;  %10643 = vmatprep.subr.mxu1 %v19852_v29  ;;  %v10540_v46 = vcombine.low %v10131_v44, %v10130_v22  ;;  %v9051_v31 = vsel %vm4239_vm11, %v9026_v8, %v12105_v15  ;;  %v12203_v19 = vld [vmem:[%s12314_s24 + $0xc8] sm:$0x3f]  ;;  %v18821_v43 = vpop.permute.xlu0 %12127 }
 0x417   : > { %9412 = vmatprep.mubr.f32.mxu1 %v9150_v59  ;;  %v8458_v37 = vcombine.low %v8450_v1, %v8457_v0  ;;  %v12120_v27 = vunpack.i.h.bf16 %v18792_v14  ;;  %v9076_v51 = vsel %vm4291_vm13, %v9051_v31, %v12115_v48  ;;  %v10113_v40 = vrot.slane %v10099_v50, %v12321_v13  ;;  %11131 = vmatprep.mubr.msk.f32.mxu0 %vm10572_vm0, %v18800_v21  ;;  %v18827_v0 = vpop.f32.mrf.mxu0 }
 0x418   : > { %9413 = vmatmul.mubr.f32.gmra.mxu1 %v9075_v26  ;;  %v10547_v26 = vrot.slane %v10540_v46, %v12321_v13  ;;  %v10114_v38 = vcombine.high %v10106_v25, %v10106_v25  ;;  %v10083_v57 = vcombine.high %v12203_v19, %v12203_v19  ;;  %v20212_v22 = vunpack.i.l.bf16 %v18706_v23  ;;  %v12133_v58 = vpop.permute.xlu1 %12132  ;;  %v20215_v23 = vld [vmem:[#allocation4_spill] sm:$0xff] }
 0x419   : > { %v9101_v15 = vsel %vm4187_vm9, %v8458_v37, %v12079_v3  ;;  %v10115_v11 = vcombine.high %v10113_v40, %v10113_v40  ;;  %v10090_v34 = vrot.slane %v12203_v19, %v12321_v13  ;;  %v8459_v7 = vcombine.low %v20214_v18, %v20213_v30  ;;  %v11242_v20 = vpop.f32.mrf.mxu0 }
 0x41a   : > { %v9126_v39 = vsel %vm4239_vm11, %v9101_v15, %v20212_v22  ;;  %11114 = vmatpush2.msk.msra.mxu1 %vm10594_vm1, %v10547_v26  ;;  %v10523_v48 = vcombine.low %v10114_v38, %v10113_v40  ;;  %v10097_v3 = vrot.slane %v10083_v57, %v12321_v13  ;;  %v8460_v28 = vcombine.low %v20215_v23, %v18007_v35  ;;  %v20216_v26 = vld [vmem:[#allocation32_spill] sm:$0xff]  ;;  %v20217_v15 = vld [vmem:[#allocation126_spill] sm:$0xff] }
 0x41b   : > { %v9151_v12 = vsel %vm4291_vm13, %v9126_v39, %v12114_v55  ;;  %10645 = vmatprep.subr.mxu1 %v19852_v29  ;;  %v12135_v49 = vunpack.i.h.bf16 %v12133_v58  ;;  %v12119_v59 = vunpack.i.l.bf16 %v18792_v14  ;;  %v10524_v44 = vcombine.low %v10115_v11, %v10123_v9  ;;  %v12204_v38 = vld [vmem:[%s12314_s24 + $0xc0] sm:$0xff]  ;;  %v12205_v23 = vld [vmem:[%s12314_s24 + $0xb0] sm:$0xff] }
 0x41c   : > { %9417 = vmatprep.mubr.f32.mxu1 %v9151_v12  ;;  %v10098_v1 = vcombine.high %v10090_v34, %v10090_v34  ;;  %v12134_v55 = vunpack.i.l.bf16 %v12133_v58  ;;  %v10531_v8 = vrot.slane %v10523_v48, %v12321_v13  ;;  %v10507_v32 = vcombine.low %v10097_v3, %v10106_v25  ;;  %v18835_v40 = vpop.permute.xlu1 %12137 }
 0x41d   : > { %9418 = vmatmul.mubr.f32.gmra.mxu1 %v9076_v51  ;;  %v12130_v50 = vunpack.i.h.bf16 %v18821_v43  ;;  %v10538_v35 = vrot.slane %v10524_v44, %v12321_v13  ;;  %v8467_v37 = vrot.slane %v8459_v7, %v12321_v13  ;;  %v8474_v31 = vrot.slane %v8460_v28, %v12321_v13  ;;  %v12206_v44 = vld [vmem:[%s12314_s24 + $0xb8] sm:$0x3f] }
 0x41e   : > { %v10506_v46 = vcombine.low %v10090_v34, %v10098_v1  ;;  %v10521_v9 = vrot.slane %v10507_v32, %v12321_v13  ;;  %v6868_v51 = vcombine.low %v20217_v15, %v20216_v26  ;;  %v10066_v25 = vcombine.high %v12204_v38, %v12204_v38 }
 0x41f   : > { %v10073_v19 = vrot.slane %v12204_v38, %v12321_v13  ;;  %v10539_v57 = vcombine.low %v10531_v8, %v10538_v35  ;;  %v12140_v39 = vunpack.i.h.bf16 %v18835_v40  ;;  %v12129_v11 = vunpack.i.l.bf16 %v18821_v43 }
 0x420   : > { %v10514_v22 = vrot.slane %v10506_v46, %v12321_v13  ;;  %v8475_v34 = vcombine.low %v8467_v37, %v8474_v31  ;;  %v20218_v30 = vunpack.i.h.bf16 %v18643_v63  ;;  %v10080_v7 = vrot.slane %v10066_v25, %v12321_v13  ;;  %v18858_v31 = vpop.permute.xlu1 %12142  ;;  %v18870_v25 = vpop.f32.mrf.mxu0 }
 0x421   : > { %v10081_v58 = vcombine.high %v10073_v19, %v10073_v19  ;;  %10646 = vmatpush2.msra.mxu1 %v10539_v57  ;;  %v20219_v48 = vunpack.i.h.bf16 %v18709_v2  ;;  %v10033_v28 = vcombine.high %v12205_v23, %v12205_v23  ;;  %v10050_v1 = vcombine.high %v12206_v44, %v12206_v44  ;;  %v20221_v57 = vld [vmem:[#allocation22_spill] sm:$0xff] }
 0x422   : > { %v9027_v18 = vsel %vm4187_vm9, %v6868_v51, %v20218_v30  ;;  %v10522_v12 = vcombine.low %v10514_v22, %v10521_v9  ;;  %10647 = vmatprep.subr.mxu1 %v19852_v29  ;;  %v20220_v8 = vunpack.i.l.bf16 %v18643_v63  ;;  %v10082_v46 = vcombine.high %v10080_v7, %v10080_v7 }
 0x423   : > { %v9052_v3 = vsel %vm4239_vm11, %v9027_v18, %v20219_v48  ;;  %v10489_v37 = vcombine.low %v10073_v19, %v10081_v58  ;;  %v10047_v9 = vrot.slane %v10033_v28, %v12321_v13  ;;  %v10057_v26 = vrot.slane %v12206_v44, %v12321_v13  ;;  %v20222_v48 = vld [vmem:[#allocation14_spill] sm:$0xff] }
 0x424   : > { %v9102_v32 = vsel %vm4187_vm9, %v8475_v34, %v20220_v8  ;;  %v9077_v35 = vsel %vm4291_vm13, %v9052_v3, %v12135_v49  ;;  %10648 = vmatpush2.msra.mxu1 %v10522_v12  ;;  %v10064_v15 = vrot.slane %v10050_v1, %v12321_v13  ;;  %v12139_v63 = vunpack.i.l.bf16 %v18835_v40  ;;  %v7824_v34 = vpop.permute.xlu0 %7823  ;;  %v12207_v3 = vld [vmem:[%s12314_s24 + $0xa8] sm:$0x3f] }
 0x425   : > { %v9127_v20 = vsel %vm4239_vm11, %v9102_v32, %v12109_v52  ;;  %10649 = vmatprep.subr.mxu1 %v19852_v29  ;;  %v10490_v49 = vcombine.low %v10080_v7, %v10082_v46  ;;  %v10497_v38 = vrot.slane %v10489_v37, %v12321_v13  ;;  %v10049_v2 = vcombine.high %v10047_v9, %v10047_v9  ;;  %v11245_v7 = vpop.f32.mrf.mxu0  ;;  %v12208_v37 = vld [vmem:[%s12314_s24 + $0xa0] sm:$0xff] }
 0x426   : > { %v9152_v51 = vsel %vm4291_vm13, %v9127_v20, %v12134_v55  ;;  %v10065_v52 = vcombine.high %v10057_v26, %v10057_v26  ;;  %v12145_v19 = vunpack.i.h.bf16 %v18858_v31  ;;  %v9029_v22 = vsel %vm4187_vm9, %v20221_v57, %v12140_v39 }
 0x427   : > { %9422 = vmatprep.mubr.f32.mxu1 %v9152_v51  ;;  %v10504_v55 = vrot.slane %v10490_v49, %v12321_v13  ;;  %v12144_v40 = vunpack.i.l.bf16 %v18858_v31  ;;  %v8476_v30 = vcombine.low %v18011_v17, %v18038_v62  ;;  %v8477_v18 = vcombine.low %v18046_v10, %v18087_v4  ;;  %v12209_v51 = vld [vmem:[%s12314_s24 + $0x98] sm:$0x3f] }
 0x428   : > { %9423 = vmatmul.mubr.f32.gmra.mxu1 %v9077_v35  ;;  %v10472_v58 = vcombine.low %v10049_v2, %v10057_v26  ;;  %v10473_v12 = vcombine.low %v10065_v52, %v10064_v15  ;;  %v9028_v39 = vsel %vm4187_vm9, %v20222_v48, %v12120_v27  ;;  %v10017_v28 = vcombine.high %v12207_v3, %v12207_v3 }
 0x429   : > { %v10505_v44 = vcombine.low %v10497_v38, %v10504_v55  ;;  %v9054_v1 = vsel %vm4239_vm11, %v9029_v22, %v7824_v34  ;;  %v8484_v8 = vrot.slane %v8476_v30, %v12321_v13  ;;  %v8491_v17 = vrot.slane %v8477_v18, %v12321_v13 }
 0x42a   : > { %v10480_v62 = vrot.slane %v10472_v58, %v12321_v13  ;;  %v10487_v10 = vrot.slane %v10473_v12, %v12321_v13  ;;  %v9053_v4 = vsel %vm4239_vm11, %v9028_v39, %v12124_v5  ;;  %v10031_v27 = vrot.slane %v10017_v28, %v12321_v13 }
 0x42b   : > { %10650 = vmatpush2.msra.mxu1 %v10505_v44  ;;  %v8492_v32 = vcombine.low %v8484_v8, %v8491_v17  ;;  %v10040_v35 = vrot.slane %v12205_v23, %v12321_v13  ;;  %v8493_v46 = vcombine.low %v18091_v47, %v18102_v61  ;;  %v10000_v20 = vcombine.high %v12208_v37, %v12208_v37  ;;  %v20223_v61 = vld [vmem:[#allocation115_spill] sm:$0xff] }
 0x42c   : > { %10651 = vmatprep.subr.mxu1 %v19852_v29  ;;  %v10488_v26 = vcombine.low %v10480_v62, %v10487_v10  ;;  %v9078_v15 = vsel %vm4291_vm13, %v9053_v4, %v12130_v50  ;;  %v10024_v5 = vrot.slane %v12207_v3, %v12321_v13  ;;  %v9984_v49 = vcombine.high %v12209_v51, %v12209_v51  ;;  %v12210_v3 = vld [vmem:[%s12314_s24 + $0x90] sm:$0xff]  ;;  %s11337_s24 = smul.u32 56, %s20235_s18 }
 0x42d   : > { %v9103_v23 = vsel %vm4187_vm9, %v8492_v32, %v12119_v59  ;;  %v10048_v38 = vcombine.high %v10040_v35, %v10040_v35  ;;  %v10455_v2 = vcombine.low %v10031_v27, %v10040_v35  ;;  %v8500_v47 = vrot.slane %v8493_v46, %v12321_v13 }
 0x42e   : > { %10652 = vmatpush2.msra.mxu1 %v10488_v26  ;;  %v20224_v52 = vunpack.i.h.bf16 %v20223_v61  ;;  %v10014_v22 = vrot.slane %v10000_v20, %v12321_v13  ;;  %v10032_v50 = vcombine.high %v10024_v5, %v10024_v5  ;;  %v9991_v34 = vrot.slane %v12209_v51, %v12321_v13  ;;  %s19324_s19 = scalar_lea.vmem %s19353_s11, %s11337_s24 }
 0x42f   : > { %10653 = vmatprep.subr.mxu1 %v19852_v29  ;;  %v10456_v59 = vcombine.low %v10048_v38, %v10047_v9  ;;  %v10463_v55 = vrot.slane %v10455_v2, %v12321_v13  ;;  %v9104_v30 = vsel %vm4187_vm9, %v8500_v47, %v12139_v63  ;;  %v9998_v12 = vrot.slane %v9984_v49, %v12321_v13  ;;  %v18973_v38 = vld [vmem:[%s19350_s8 + $0x28] sm:$0xff]  ;;  %v18981_v2 = vld [vmem:[%s19350_s8 + $0x20] sm:$0xff]  ;;  %v18986_v47 = vld [vmem:[%s19350_s8 + $0x38] sm:$0xff] }
 0x430   : > { %v9128_v57 = vsel %vm4239_vm11, %v9103_v23, %v20224_v52  ;;  %v9129_v18 = vsel %vm4239_vm11, %v9104_v30, %v12125_v45  ;;  %v10016_v7 = vcombine.high %v10014_v22, %v10014_v22  ;;  %v10439_v58 = vcombine.low %v10024_v5, %v10032_v50  ;;  %v18968_v23 = vld [vmem:[%s19350_s8 + $0x10] sm:$0xff]  ;;  %v19009_v50 = vld [vmem:[%s19350_s8 + $0x40] sm:$0xff] }
 0x431   : > { %v9153_v14 = vsel %vm4291_vm13, %v9128_v57, %v12129_v11  ;;  %v10470_v43 = vrot.slane %v10456_v59, %v12321_v13  ;;  %v9154_v11 = vsel %vm4291_vm13, %v9129_v18, %v12144_v40  ;;  %v9999_v9 = vcombine.high %v9991_v34, %v9991_v34  ;;  %v18934_v40 = vpop.f32.mrf.mxu1  ;;  %v18996_v57 = vld [vmem:[%s19350_s8 + $0x30] sm:$0xff]  ;;  %v19031_v18 = vld [vmem:[%s19350_s8 + $0x68] sm:$0x1] }
 0x432   : > { %9427 = vmatprep.mubr.f32.mxu1 %v9153_v14  ;;  %v10007_v48 = vrot.slane %v12208_v37, %v12321_v13  ;;  %v10438_v39 = vcombine.low %v10014_v22, %v10016_v7  ;;  %v10453_v63 = vrot.slane %v10439_v58, %v12321_v13  ;;  %v9967_v54 = vcombine.high %v12210_v3, %v12210_v3  ;;  %v19001_v22 = vld [vmem:[%s19350_s8 + $0x48] sm:$0xff]  ;;  %v19024_v59 = vld [vmem:[%s19350_s8 + $0x50] sm:$0xff]  ;;  %v19039_v58 = vld [vmem:[%s19350_s8 + $0x60] sm:$0x1] }
 0x433   : > { %9428 = vmatmul.mubr.f32.gmra.mxu1 %v9078_v15  ;;  %v9982_v45 = vcombine.high %v18342_v33, %v18342_v33  ;;  %v10471_v28 = vcombine.low %v10463_v55, %v10470_v43  ;;  %v9079_v44 = vsel %vm4291_vm13, %v9054_v1, %v12145_v19  ;;  %v10421_v17 = vcombine.low %v9999_v9, %v9998_v12  ;;  %v9316_v32 = vpop.f32.mrf.mxu1  ;;  %v18950_v15 = vld [vmem:[%s19350_s8] sm:$0xff] }
 0x434   : > { %9432 = vmatprep.mubr.f32.mxu1 %v9154_v11  ;;  %v10015_v8 = vcombine.high %v10007_v48, %v10007_v48  ;;  %v10446_v62 = vrot.slane %v10438_v39, %v12321_v13  ;;  %v9981_v10 = vrot.slane %v9967_v54, %v12321_v13 }
 0x435   : > { %10654 = vmatpush2.msra.mxu1 %v10471_v28  ;;  %v10429_v27 = vrot.slane %v10421_v17, %v12321_v13  ;;  %v18952_v5 = vpop.f32.mrf.mxu0  ;;  %v10697_v17 = vld [vmem:[%s19351_s9] sm:$0xff] }
 0x436   : > { %v10422_v4 = vcombine.low %v10007_v48, %v10015_v8  ;;  %10655 = vmatprep.subr.mxu1 %v19852_v29  ;;  %v10454_v33 = vcombine.low %v10446_v62, %v10453_v63  ;;  %v9983_v31 = vcombine.high %v9981_v10, %v9981_v10  ;;  %v10404_v35 = vcombine.low %v9982_v45, %v9981_v10  ;;  %v10698_v48 = vld [vmem:[%s19351_s9 + $0x8] sm:$0xff] }
 0x437   : > { %9433 = vmatmul.mubr.f32.gmra.mxu1 %v9079_v44 }
 0x438   : > { %v10436_v19 = vrot.slane %v10422_v4, %v12321_v13  ;;  %11115 = vmatprep.mubr.msk.f32.mxu1 %vm10572_vm0, %v18800_v21  ;;  %10656 = vmatpush2.msra.mxu1 %v10454_v33  ;;  %v10405_v1 = vcombine.low %v9983_v31, %v9991_v34  ;;  %v10412_v46 = vrot.slane %v10404_v35, %v12321_v13  ;;  %v18957_v21 = vld [vmem:[%s19350_s8 + $0x18] sm:$0xff] }
 0x439   : > { %10657 = vmatprep.subr.mxu1 %v19852_v29  ;;  %v18959_v51 = vpop.f32.mrf.mxu1  ;;  %v19014_v34 = vld [vmem:[%s19350_s8 + $0x58] sm:$0xff] }
 0x43a   : > { %v10437_v37 = vcombine.low %v10429_v27, %v10436_v19  ;;  %v10419_v20 = vrot.slane %v10405_v1, %v12321_v13  ;;  %v11248_v13 = vpop.f32.mrf.mxu0 }
 0x43b   : > { %v9321_v49 = vpop.f32.mrf.mxu1 }
 0x43c   : > { %10658 = vmatpush2.msra.mxu1 %v10437_v37  ;;  %v10420_v26 = vcombine.low %v10412_v46, %v10419_v20 }
 0x43d   : > { %10659 = vmatprep.subr.mxu1 %v19852_v29 }
 0x43e   : > { %10660 = vmatpush2.msra.mxu1 %v10420_v26 }
 0x43f   : > { %10662 = vmatmul.mubr.f32.vlgmr.msra.gmra.mxu1 %v18950_v15  ;;  %11261 = vmatprep.subr.mxu1 %v19852_v29  ;;  %v18988_v61 = vpop.f32.mrf.mxu0 }
 0x440   : > { %11116 = vmatprep.mubr.msk.f32.mxu1 %vm10572_vm0, %v18957_v21  ;;  %11262 = vmatpush3.msra.mxu1 %v10698_v48 }
 0x441   : > { %v11251_v52 = vpop.f32.mrf.mxu0  ;;  %11263 = vmatprep.subr.mxu1 %v19852_v29 }
 0x442   : > { %11264 = vmatpush3.msra.mxu1 %v10697_v17  ;;  %v19065_v52 = vld [vmem:[%s19349_s7] ss:$0 sm:$0xff] }
 0x443   : > { %10667 = vmatmul.mubr.f32.gmra.mxu1 %v18968_v23  ;;  %11286 = vmatprep.subr.mxu1 %v19852_v29 }
 0x444   : > { %11117 = vmatprep.mubr.msk.f32.mxu1 %vm10572_vm0, %v18973_v38 }
 0x447   : > { %10672 = vmatmul.mubr.f32.gmra.mxu1 %v18981_v2 }
 0x448   : > { %11118 = vmatprep.mubr.msk.f32.mxu1 %vm10572_vm0, %v18986_v47 }
 0x44b   : > { %10677 = vmatmul.mubr.f32.gmra.mxu1 %v18996_v57  ;;  %v19016_v14 = vpop.f32.mrf.mxu1 }
 0x44c   : > { %11119 = vmatprep.mubr.msk.f32.mxu1 %vm10572_vm0, %v19001_v22  ;;  %v19026_v55 = vpop.f32.mrf.mxu0 }
 0x44d   : > { %v9326_v30 = vpop.f32.mrf.mxu1 }
 0x44e   : > { %v11254_v7 = vpop.f32.mrf.mxu0 }
 0x44f   : > { %10682 = vmatmul.mubr.f32.gmra.mxu1 %v19009_v50 }
 0x450   : > { %11120 = vmatprep.mubr.msk.f32.mxu1 %vm10572_vm0, %v19014_v34  ;;  %v19054_v54 = vpop.f32.mrf.mxu0 }
 0x452   : > { %v11257_v28 = vpop.f32.mrf.mxu0 }
 0x453   : > { %10687 = vmatmul.mubr.f32.gmra.mxu1 %v19024_v59 }
 0x454   : > { %11121 = vmatprep.mubr.msk.f32.mxu1 %vm10572_vm0, %v19031_v18  ;;  %v19056_v8 = vpop.f32.mrf.mxu0 }
 0x456   : > { %v11260_v10 = vpop.f32.mrf.mxu0 }
 0x457   : > { %10692 = vmatmul.mubr.f32.gmra.mxu1 %v19039_v58  ;;  %v19044_v12 = vpop.f32.mrf.mxu1 }
 0x458   : > { %11265 = vmatprep.mubr.msk.f32.mxu1 %vm12229_vm15, %v19852_v29 }
 0x459   : > { %v9331_v43 = vpop.f32.mrf.mxu1 }
 0x463   : > { %v19046_v11 = vpop.f32.mrf.mxu1 }
 0x465   : > { %v9336_v9 = vpop.f32.mrf.mxu1 }
 0x46e   : > { %v19052_v39 = vpop.f32.mrf.mxu1 }
 0x470   : > { %v9341_v63 = vpop.f32.mrf.mxu1 }
 0x472   : > { %v9344_v3 = vpop.f32.mrf.mxu1 }
 0x474   : > { %v9346_v45 = vpop.f32.mrf.mxu1 }
 0x478   : > { %v9349_v44 = vpop.f32.mrf.mxu1 }
 0x47a   : > { %v9351_v62 = vpop.f32.mrf.mxu1 }
 0x47c   : > { %v9354_v4 = vpop.f32.mrf.mxu1 }
 0x47e   : > { %v9356_v27 = vpop.f32.mrf.mxu1 }
 0x480   : > { %v9359_v32 = vpop.f32.mrf.mxu1 }
 0x481   : > { %v9360_v27 = vadd.f32 %v19065_v52, %v9359_v32 }
 0x482   : > { %v9361_v33 = vpop.f32.mrf.mxu1 }
 0x483   : > { %v19107_v32 = vadd.f32 %v18078_v24, %v9360_v27  ;;  %v20226_v24 = vld [vmem:[#allocation74_spill] sm:$0xff] }
 0x486   : > { %v9364_v31 = vpop.f32.mrf.mxu1 }
 0x488   : > { %v9366_v35 = vpop.f32.mrf.mxu1 }
 0x489   : > { %v9350_v35 = vadd.f32 %v19065_v52, %v9349_v44  ;;  %v9340_v44 = vadd.f32 %v19065_v52, %v19052_v39  ;;  %v9330_v39 = vadd.f32 %v19065_v52, %v19044_v12  ;;  %v9320_v12 = vadd.f32 %v19065_v52, %v18959_v51  ;;  %v20233_v51 = vld [vmem:[#allocation108_spill] sm:$0xff] }
 0x48a   : > { %v9369_v19 = vpop.f32.mrf.mxu1 }
 0x48b   : > { %v9370_v17 = vadd.f32 %v19065_v52, %v9369_v19  ;;  %v20225_v19 = vld [vmem:[#allocation31_spill] sm:$0xff] }
 0x48c   : > { %v9371_v1 = vpop.f32.mrf.mxu1 }
 0x48d   : > { %v19122_v1 = vadd.f32 %v20226_v24, %v9350_v35 }
 0x494   : > { %v9374_v46 = vpop.f32.mrf.mxu1 }
 0x495   : > { %v9375_v45 = vadd.f32 %v19065_v52, %v9374_v46 }
 0x496   : > { %v9376_v37 = vpop.f32.mrf.mxu1 }
 0x497   : > { %v19087_v10 = vadd.f32 %v18407_v56, %v9375_v45  ;;  %v20227_v37 = vld [vmem:[#allocation37_spill] sm:$0xff]  ;;  %v20231_v45 = vld [vmem:[#allocation116_spill] sm:$0xff] }
 0x498   : > { %v9379_v20 = vpop.f32.mrf.mxu1 }
 0x499   : > { %v9380_v48 = vadd.f32 %v19065_v52, %v9379_v20 }
 0x49a   : > { %v9381_v26 = vpop.f32.mrf.mxu1 }
 0x49b   : > { %v19081_v62 = vadd.f32 %v18454_v36, %v9380_v48  ;;  %v19095_v36 = vadd.f32 %v18237_v42, %v9370_v17  ;;  %v9345_v42 = vadd.f32 %v19065_v52, %v9344_v3  ;;  %v9335_v3 = vadd.f32 %v19065_v52, %v19046_v11 }
 0x49c   : > { %v9325_v11 = vadd.f32 %v19065_v52, %v19016_v14  ;;  %v9315_v14 = vadd.f32 %v19065_v52, %v18934_v40 }
 0x49d   : > { %v19129_v20 = vadd.f32 %v20227_v37, %v9345_v42 }
 0x49e   : > { %v19157_v17 = vadd.f32 %v20231_v45, %v9325_v11 }
 0x4a7   : > { %v9384_v13 = vpop.f32.mrf.mxu1 }
 0x4a8   : > { %v9385_v7 = vadd.f32 %v19065_v52, %v9384_v13  ;;  %v20228_v13 = vld [vmem:[#allocation127_spill] sm:$0xff] }
 0x4a9   : > { %v9386_v49 = vpop.f32.mrf.mxu1 }
 0x4aa   : > { %v19075_v28 = vadd.f32 %v18512_v6, %v9385_v7  ;;  %v19136_v49 = vadd.f32 %v20228_v13, %v9340_v44  ;;  %v20229_v7 = vld [vmem:[#allocation123_spill] sm:$0xff] }
 0x4ae   : > { %v9389_v30 = vpop.f32.mrf.mxu1 }
 0x4af   : > { %v9390_v43 = vadd.f32 %v19065_v52, %v9389_v30 }
 0x4b0   : > { %v9391_v9 = vpop.f32.mrf.mxu1 }
 0x4b1   : > { %v19071_v63 = vadd.f32 %v18587_v53, %v9390_v43  ;;  %v9365_v53 = vadd.f32 %v19065_v52, %v9364_v31  ;;  %v9355_v31 = vadd.f32 %v19065_v52, %v9354_v4  ;;  %v19143_v43 = vadd.f32 %v20229_v7, %v9335_v3  ;;  %v20230_v9 = vld [vmem:[#allocation118_spill] sm:$0xff] }
 0x4b2   : > { %v19150_v48 = vadd.f32 %v20230_v9, %v9330_v39 }
 0x4b3   : > { %10831 = vmatpush1.msra.mxu0 %v19071_v63  ;;  %v19101_v56 = vadd.f32 %v18177_v16, %v9365_v53  ;;  %v19113_v4 = vadd.f32 %v20225_v19, %v9355_v31  ;;  %v20232_v53 = vld [vmem:[#allocation111_spill] sm:$0xff] }
 0x4b4   : > { %10832 = vmatprep.subr.mxu0 %v19852_v29  ;;  %v19162_v27 = vadd.f32 %v20232_v53, %v9320_v12 }
 0x4b5   : > { %10833 = vmatpush1.msra.mxu0 %v19075_v28 }
 0x4b6   : > { %10834 = vmatprep.subr.mxu0 %v19852_v29 }
 0x4b7   : > { %10835 = vmatpush1.msra.mxu0 %v19081_v62 }
 0x4b8   : > { %v19090_v6 = vpop.f32.mrf.mxu1  ;;  %10836 = vmatprep.subr.mxu0 %v19852_v29 }
 0x4b9   : > { %10837 = vmatpush1.msra.mxu0 %v19087_v10 }
 0x4ba   : > { %v9396_v33 = vpop.f32.mrf.mxu1  ;;  %10838 = vmatprep.subr.mxu0 %v19852_v29 }
 0x4bb   : > { %10839 = vmatpush1.msra.mxu0 %v19095_v36  ;;  %v19167_v33 = vadd.f32 %v20233_v51, %v9315_v14 }
 0x4bc   : > { %10840 = vmatprep.subr.mxu0 %v19852_v29 }
 0x4bd   : > { %10841 = vmatpush1.msra.mxu0 %v19101_v56 }
 0x4be   : > { %10842 = vmatprep.subr.mxu0 %v19852_v29 }
 0x4bf   : > { %10843 = vmatpush1.msra.mxu0 %v19107_v32 }
 0x4c0   : > { %v19115_v16 = vpop.f32.mrf.mxu1  ;;  %10844 = vmatprep.subr.mxu0 %v19852_v29 }
 0x4c1   : > { %10845 = vmatpush1.msra.mxu0 %v19113_v4 }
 0x4c2   : > { %v9401_v46 = vpop.f32.mrf.mxu1  ;;  %10846 = vmatprep.subr.mxu0 %v19852_v29 }
 0x4c3   : > { %10847 = vmatpush1.msra.mxu0 %v19122_v1 }
 0x4c4   : > { %v9404_v26 = vpop.f32.mrf.mxu1  ;;  %10848 = vmatprep.subr.mxu0 %v19852_v29 }
 0x4c5   : > { %10849 = vmatpush1.msra.mxu0 %v19129_v20 }
 0x4c6   : > { %v9406_v30 = vpop.f32.mrf.mxu1  ;;  %10850 = vmatprep.subr.mxu0 %v19852_v29 }
 0x4c7   : > { %10851 = vmatpush1.msra.mxu0 %v19136_v49 }
 0x4c8   : > { %10852 = vmatprep.subr.mxu0 %v19852_v29 }
 0x4c9   : > { %10853 = vmatpush1.msra.mxu0 %v19143_v43 }
 0x4ca   : > { %10854 = vmatprep.subr.mxu0 %v19852_v29 }
 0x4cb   : > { %10855 = vmatpush1.msra.mxu0 %v19150_v48 }
 0x4cc   : > { %10856 = vmatprep.subr.mxu0 %v19852_v29 }
 0x4cd   : > { %10857 = vmatpush1.msra.mxu0 %v19157_v17 }
 0x4ce   : > { %10858 = vmatprep.subr.mxu0 %v19852_v29 }
 0x4cf   : > { %10859 = vmatpush1.msra.mxu0 %v19162_v27 }
 0x4d0   : > { %10860 = vmatprep.subr.mxu0 %v19852_v29 }
 0x4d1   : > { %10861 = vmatpush1.msra.mxu0 %v19167_v33 }
 0x4d2   : > { %10876 = vmatprep.subr.mxu0 %v19852_v29 }
 0x4d3   : > { %v9409_v40 = vpop.f32.mrf.mxu1 }
 0x4d5   : > { %v9411_v31 = vpop.f32.mrf.mxu1 }
 0x4d6   : > { %v9405_v31 = vadd.f32 %v19065_v52, %v9404_v26 }
 0x4d8   : > { %v9414_v35 = vpop.f32.mrf.mxu1  ;;  %v19219_v26 = vadd.f32 %v18827_v0, %v9405_v31 }
 0x4d9   : > { %v9415_v45 = vadd.f32 %v19065_v52, %v9414_v35 }
 0x4da   : > { %v9416_v42 = vpop.f32.mrf.mxu1 }
 0x4dd   : > { %v9419_v19 = vpop.f32.mrf.mxu1 }
 0x4de   : > { %v9420_v9 = vadd.f32 %v19065_v52, %v9419_v19 }
 0x4df   : > { %v9421_v44 = vpop.f32.mrf.mxu1 }
 0x4e0   : > { %v19194_v51 = vadd.f32 %v18988_v61, %v9420_v9  ;;  %v9400_v61 = vadd.f32 %v19065_v52, %v19115_v16 }
 0x4e8   : > { %v9424_v24 = vpop.f32.mrf.mxu1 }
 0x4e9   : > { %v9425_v7 = vadd.f32 %v19065_v52, %v9424_v24 }
 0x4ea   : > { %v9426_v46 = vpop.f32.mrf.mxu1 }
 0x4eb   : > { %v19188_v53 = vadd.f32 %v19026_v55, %v9425_v7  ;;  %v19201_v55 = vadd.f32 %v18952_v5, %v9415_v45 }
 0x4f3   : > { %v9429_v3 = vpop.f32.mrf.mxu1 }
 0x4f4   : > { %v9430_v13 = vadd.f32 %v19065_v52, %v9429_v3 }
 0x4f5   : > { %v9431_v37 = vpop.f32.mrf.mxu1 }
 0x4f6   : > { %v19181_v14 = vadd.f32 %v19054_v54, %v9430_v13 }
 0x4f7   : > { %v9434_v39 = vpop.f32.mrf.mxu1 }
 0x4f8   : > { %v9435_v30 = vadd.f32 %v19065_v52, %v9434_v39 }
 0x4f9   : > { %v9436_v11 = vpop.f32.mrf.mxu1 }
 0x4fa   : > { %v19177_v12 = vadd.f32 %v19056_v8, %v9435_v30  ;;  %v9410_v8 = vadd.f32 %v19065_v52, %v9409_v40 }
 0x4fc   : > { %11130 = vmatpush2.msk.msra.mxu0 %vm10594_vm1, %v19177_v12  ;;  %v19210_v35 = vadd.f32 %v18870_v25, %v9410_v8 }
 0x4fd   : > { %10878 = vmatprep.subr.mxu0 %v19852_v29 }
 0x4fe   : > { %10879 = vmatpush2.msra.mxu0 %v19181_v14 }
 0x4ff   : > { %10880 = vmatprep.subr.mxu0 %v19852_v29  ;;  %v10663_v54 = vpop.f32.mrf.mxu1 }
 0x500   : > { %10881 = vmatpush2.msra.mxu0 %v19188_v53  ;;  %11266 = vmatmul.mubr.msk.f32.vlgmr.msra.gmra.mxu1 %vm4161_vm8, %v10663_v54 }
 0x501   : > { %10882 = vmatprep.subr.mxu0 %v19852_v29  ;;  %11311 = vmatpush1.msra.mxu1 %v19071_v63  ;;  %v10665_v40 = vpop.f32.mrf.mxu1  ;;  %v9395_v63 = vadd.f32 %v19065_v52, %v19090_v6 }
 0x502   : > { %10883 = vmatpush2.msra.mxu0 %v19194_v51  ;;  %11287 = vmatprep.subr.mxu1 %v19852_v29 }
 0x503   : > { %10884 = vmatprep.subr.mxu0 %v19852_v29  ;;  %11312 = vmatpush1.msra.mxu1 %v19075_v28  ;;  %v10668_v5 = vpop.f32.mrf.mxu1  ;;  %v19226_v28 = vadd.f32 %v18784_v60, %v9400_v61  ;;  %v19233_v0 = vadd.f32 %v18672_v41, %v9395_v63 }
 0x504   : > { %10885 = vmatpush2.msra.mxu0 %v19201_v55  ;;  %11288 = vmatprep.subr.mxu1 %v19852_v29 }
 0x505   : > { %10886 = vmatprep.subr.mxu0 %v19852_v29  ;;  %11313 = vmatpush1.msra.mxu1 %v19081_v62  ;;  %v10670_v25 = vpop.f32.mrf.mxu1 }
 0x506   : > { %10887 = vmatpush2.msra.mxu0 %v19210_v35  ;;  %11289 = vmatprep.subr.mxu1 %v19852_v29 }
 0x507   : > { %10888 = vmatprep.subr.mxu0 %v19852_v29  ;;  %11314 = vmatpush1.msra.mxu1 %v19087_v10  ;;  %v10673_v52 = vpop.f32.mrf.mxu1 }
 0x508   : > { %10889 = vmatpush2.msra.mxu0 %v19219_v26  ;;  %11290 = vmatprep.subr.mxu1 %v19852_v29 }
 0x509   : > { %10890 = vmatprep.subr.mxu0 %v19852_v29  ;;  %11315 = vmatpush1.msra.mxu1 %v19095_v36  ;;  %v10675_v62 = vpop.f32.mrf.mxu1 }
 0x50a   : > { %10891 = vmatpush2.msra.mxu0 %v19226_v28  ;;  %11291 = vmatprep.subr.mxu1 %v19852_v29 }
 0x50b   : > { %10892 = vmatprep.subr.mxu0 %v19852_v29  ;;  %11316 = vmatpush1.msra.mxu1 %v19101_v56  ;;  %v10678_v60 = vpop.f32.mrf.mxu1 }
 0x50c   : > { %10893 = vmatpush2.msra.mxu0 %v19233_v0  ;;  %11292 = vmatprep.subr.mxu1 %v19852_v29 }
 0x50d   : > { %10895 = vmatmul.mubr.f32.vlgmr.msra.gmra.mxu0 %v18950_v15  ;;  %11317 = vmatpush1.msra.mxu1 %v19107_v32  ;;  %v10680_v41 = vpop.f32.mrf.mxu1 }
 0x50e   : > { %11268 = vmatprep.mubr.msk.f32.mxu1 %vm12229_vm15, %v19852_v29  ;;  %11293 = vmatprep.subr.mxu1 %v19852_v29 }
 0x50f   : > { %11269 = vmatmul.mubr.msk.f32.gmra.mxu1 %vm4161_vm8, %v10668_v5  ;;  %v10683_v10 = vpop.f32.mrf.mxu1  ;;  %11132 = vmatprep.mubr.msk.f32.mxu0 %vm10572_vm0, %v18957_v21 }
 0x510   : > { %11318 = vmatpush1.msra.mxu1 %v19113_v4  ;;  %11271 = vmatprep.mubr.msk.f32.mxu1 %vm12229_vm15, %v19852_v29 }
 0x511   : > { %11294 = vmatprep.subr.mxu1 %v19852_v29  ;;  %10900 = vmatmul.mubr.f32.gmra.mxu0 %v18968_v23  ;;  %v10685_v15 = vpop.f32.mrf.mxu1 }
 0x512   : > { %11319 = vmatpush1.msra.mxu1 %v19122_v1  ;;  %11133 = vmatprep.mubr.msk.f32.mxu0 %vm10572_vm0, %v18973_v38 }
 0x513   : > { %11295 = vmatprep.subr.mxu1 %v19852_v29  ;;  %11272 = vmatmul.mubr.msk.f32.gmra.mxu1 %vm4161_vm8, %v10673_v52  ;;  %v10688_v6 = vpop.f32.mrf.mxu1 }
 0x514   : > { %11320 = vmatpush1.msra.mxu1 %v19129_v20  ;;  %11274 = vmatprep.mubr.msk.f32.mxu1 %vm12229_vm15, %v19852_v29 }
 0x515   : > { %11296 = vmatprep.subr.mxu1 %v19852_v29  ;;  %10905 = vmatmul.mubr.f32.gmra.mxu0 %v18981_v2  ;;  %v10690_v21 = vpop.f32.mrf.mxu1 }
 0x516   : > { %11321 = vmatpush1.msra.mxu1 %v19136_v49  ;;  %11134 = vmatprep.mubr.msk.f32.mxu0 %vm10572_vm0, %v18986_v47 }
 0x517   : > { %11297 = vmatprep.subr.mxu1 %v19852_v29  ;;  %11275 = vmatmul.mubr.msk.f32.gmra.mxu1 %vm4161_vm8, %v10678_v60  ;;  %v10693_v23 = vpop.f32.mrf.mxu1 }
 0x518   : > { %11322 = vmatpush1.msra.mxu1 %v19143_v43  ;;  %11277 = vmatprep.mubr.msk.f32.mxu1 %vm12229_vm15, %v19852_v29 }
 0x519   : > { %11298 = vmatprep.subr.mxu1 %v19852_v29  ;;  %10910 = vmatmul.mubr.f32.gmra.mxu0 %v18996_v57  ;;  %v10695_v38 = vpop.f32.mrf.mxu1  ;;  %v11122_v57 = vld [vmem:[%s19352_s10] ss:$0 sm:$0xff] }
 0x51a   : > { %11323 = vmatpush1.msra.mxu1 %v19150_v48  ;;  %11135 = vmatprep.mubr.msk.f32.mxu0 %vm10572_vm0, %v19001_v22 }
 0x51b   : > { %11299 = vmatprep.subr.mxu1 %v19852_v29  ;;  %11278 = vmatmul.mubr.msk.f32.gmra.mxu1 %vm4161_vm8, %v10683_v10 }
 0x51c   : > { %11324 = vmatpush1.msra.mxu1 %v19157_v17  ;;  %11280 = vmatprep.mubr.msk.f32.mxu1 %vm12229_vm15, %v19852_v29 }
 0x51d   : > { %11300 = vmatprep.subr.mxu1 %v19852_v29  ;;  %10915 = vmatmul.mubr.f32.gmra.mxu0 %v19009_v50 }
 0x51e   : > { %11325 = vmatpush1.msra.mxu1 %v19162_v27 }
 0x51f   : > { %11301 = vmatprep.subr.mxu1 %v19852_v29  ;;  %11281 = vmatmul.mubr.msk.f32.gmra.mxu1 %vm4161_vm8, %v10688_v6 }
 0x520   : > { %11326 = vmatpush1.msra.mxu1 %v19167_v33  ;;  %11283 = vmatprep.mubr.msk.f32.mxu1 %vm12229_vm15, %v19852_v29 }
 0x521   : > { %11302 = vmatprep.subr.mxu1 %v19852_v29 }
 0x522   : > { %11327 = vmatpush2.msk.msra.mxu1 %vm10594_vm1, %v19177_v12 }
 0x523   : > { %11303 = vmatprep.subr.mxu1 %v19852_v29  ;;  %11284 = vmatmul.mubr.msk.f32.gmra.mxu1 %vm4161_vm8, %v10693_v23 }
 0x524   : > { %11328 = vmatpush2.msra.mxu1 %v19181_v14  ;;  %11136 = vmatprep.mubr.msk.f32.mxu1 %vm10572_vm0, %v19014_v34 }
 0x525   : > { %11304 = vmatprep.subr.mxu1 %v19852_v29 }
 0x526   : > { %11329 = vmatpush2.msra.mxu1 %v19188_v53 }
 0x527   : > { %11305 = vmatprep.subr.mxu1 %v19852_v29 }
 0x528   : > { %11330 = vmatpush2.msra.mxu1 %v19194_v51 }
 0x529   : > { %11306 = vmatprep.subr.mxu1 %v19852_v29 }
 0x52a   : > { %11331 = vmatpush2.msra.mxu1 %v19201_v55 }
 0x52b   : > { %11307 = vmatprep.subr.mxu1 %v19852_v29 }
 0x52c   : > { %11332 = vmatpush2.msra.mxu1 %v19210_v35 }
 0x52d   : > { %11308 = vmatprep.subr.mxu1 %v19852_v29 }
 0x52e   : > { %11333 = vmatpush2.msra.mxu1 %v19219_v26 }
 0x52f   : > { %11309 = vmatprep.subr.mxu1 %v19852_v29 }
 0x530   : > { %11334 = vmatpush2.msra.mxu1 %v19226_v28 }
 0x531   : > { %11310 = vmatprep.subr.mxu1 %v19852_v29 }
 0x532   : > { %11335 = vmatpush2.msra.mxu1 %v19233_v0 }
 0x533   : > { %10920 = vmatmul.mubr.f32.vlgmr.msra.gmra.mxu1 %v19024_v59 }
 0x534   : > { %11137 = vmatprep.mubr.msk.f32.mxu1 %vm10572_vm0, %v19031_v18 }
 0x537   : > { %10925 = vmatmul.mubr.f32.gmra.mxu1 %v19039_v58 }
 0x5c0   : > { %v10793_v2 = vpop.f32.mrf.mxu1 }
 0x5c1   : > { %v10794_v22 = vadd.f32 %v11122_v57, %v10793_v2 }
 0x5c2   : > { %v11267_v47 = vpop.f32.mrf.mxu1 }
 0x5cd   : > { %v10896_v29 = vpop.f32.mrf.mxu0 }
 0x5ce   : > { %v10897_v50 = vadd.f32 %v10896_v29, %v10794_v22 }
 0x5cf   : > { %v10798_v34 = vpop.f32.mrf.mxu1  ;;  %v10898_v59 = vpop.f32.mrf.mxu0 }
 0x5d0   : > { %10930 = vst.msk [vmem:[%s19324_s19] sm:$0xff] %vm4187_vm9, %v10897_v50  ;;  %v10799_v18 = vadd.f32 %v11122_v57, %v10798_v34 }
 0x5d1   : > { %v11270_v58 = vpop.f32.mrf.mxu1  ;;  %v10901_v36 = vpop.f32.mrf.mxu0 }
 0x5d2   : > { %v10902_v32 = vadd.f32 %v10901_v36, %v10799_v18 }
 0x5d3   : > { %v10803_v56 = vpop.f32.mrf.mxu1  ;;  %v10903_v16 = vpop.f32.mrf.mxu0 }
 0x5d4   : > { %v10804_v4 = vadd.f32 %v11122_v57, %v10803_v56  ;;  %10931 = vst.msk [vmem:[%s19324_s19 + $0x8] sm:$0xff] %vm4187_vm9, %v10902_v32 }
 0x5d5   : > { %v11273_v1 = vpop.f32.mrf.mxu1  ;;  %v10906_v20 = vpop.f32.mrf.mxu0 }
 0x5d6   : > { %v10907_v43 = vadd.f32 %v10906_v20, %v10804_v4 }
 0x5d7   : > { %v10808_v49 = vpop.f32.mrf.mxu1  ;;  %v10908_v17 = vpop.f32.mrf.mxu0 }
 0x5d8   : > { %v10809_v48 = vadd.f32 %v11122_v57, %v10808_v49  ;;  %10932 = vst.msk [vmem:[%s19324_s19 + $0x10] sm:$0xff] %vm4187_vm9, %v10907_v43 }
 0x5d9   : > { %v11276_v27 = vpop.f32.mrf.mxu1  ;;  %v10911_v33 = vpop.f32.mrf.mxu0 }
 0x5da   : > { %v10912_v19 = vadd.f32 %v10911_v33, %v10809_v48 }
 0x5db   : > { %v10813_v42 = vpop.f32.mrf.mxu1  ;;  %v10913_v24 = vpop.f32.mrf.mxu0 }
 0x5dc   : > { %v10814_v44 = vadd.f32 %v11122_v57, %v10813_v42  ;;  %10933 = vst.msk [vmem:[%s19324_s19 + $0x18] sm:$0xff] %vm4187_vm9, %v10912_v19 }
 0x5dd   : > { %v11279_v46 = vpop.f32.mrf.mxu1  ;;  %v10916_v3 = vpop.f32.mrf.mxu0 }
 0x5de   : > { %v10917_v39 = vadd.f32 %v10916_v3, %v10814_v44 }
 0x5df   : > { %v10818_v37 = vpop.f32.mrf.mxu1  ;;  %v10918_v13 = vpop.f32.mrf.mxu0 }
 0x5e0   : > { %10934 = vst.msk [vmem:[%s19324_s19 + $0x20] sm:$0xff] %vm4187_vm9, %v10917_v39  ;;  %v10819_v12 = vadd.f32 %v11122_v57, %v10818_v37 }
 0x5e1   : > { %v11282_v30 = vpop.f32.mrf.mxu1 }
 0x5e3   : > { %v10823_v11 = vpop.f32.mrf.mxu1 }
 0x5e4   : > { %v10824_v53 = vadd.f32 %v11122_v57, %v10823_v11 }
 0x5e5   : > { %v11285_v7 = vpop.f32.mrf.mxu1 }
 0x5f3   : > { %v10921_v9 = vpop.f32.mrf.mxu1 }
 0x5f4   : > { %v10922_v14 = vadd.f32 %v10921_v9, %v10819_v12 }
 0x5f5   : > { %v10923_v45 = vpop.f32.mrf.mxu1 }
 0x5f6   : > { %10935 = vst.msk [vmem:[%s19324_s19 + $0x28] sm:$0xff] %vm4187_vm9, %v10922_v14 }
 0x5f7   : > { %v10926_v8 = vpop.f32.mrf.mxu1 }
 0x5f8   : > { %v10927_v51 = vadd.f32 %v10926_v8, %v10824_v53 }
 0x5f9   : > { %v10928_v54 = vpop.f32.mrf.mxu1 }
 0x5fa   : > { %10937 = vst.msk [vmem:[%s19324_s19 + $0x30] sm:$0x1] %vm10936_vm7, %v10927_v51 }
 0x5fb PF: > { %s21_s17 = sadd.s32 1, %s12218_s17  }
 0x5fc   : > { %p18_p4 = scmp.ge.s32.totalorder %s21_s17, 4  }
 0x5fe   :  { %20 = sbr.rel (!%p18_p4) target bundleno = 1 (0x1), region = 94 }

</bundles_post_ra>
